<compile_context>
chip_gen: v7x
topology: tpu7x:2x2x1
jax: 0.10.0
libtpu: 0.0.40
codegen_flags: <defaults>
</compile_context>

<pallas_src>
import functools

import jax
import jax.numpy as jnp
from jax.experimental import pallas as pl
from jax.experimental.pallas import tpu as pltpu


def _round_up(x, m):
    return (x + m - 1) // m * m


# ---------------------------------------------------------------------------
# Pallas kernels: fused (sum of shifted tap matmuls) + BN + [residual] + ReLU
# ---------------------------------------------------------------------------
def _conv_bn_kernel(x_ref, w_ref, s_ref, b_ref, o_ref, *, offsets, rows, relu):
    # x_ref: (1, L_in, Cin_p) bf16   flattened, spatially zero-padded activation
    # w_ref: (T, Cin_p, Cout_p) bf16 one (Cin, Cout) matrix per conv tap
    # s_ref, b_ref: (1, Cout_p) f32  folded BatchNorm scale / bias
    # o_ref: (1, rows, Cout_p) f32
    x = x_ref[0]                                   # tile-aligned full-block load
    acc = None
    for t, off in enumerate(offsets):
        d = jnp.dot(x, w_ref[t], preferred_element_type=jnp.float32)
        d = d[off:off + rows]                      # static f32 sublane shift
        acc = d if acc is None else acc + d
    y = acc * s_ref[...] + b_ref[...]
    if relu:
        y = jnp.maximum(y, 0.0)
    o_ref[0] = y.astype(o_ref.dtype)


def _conv_bn_res_kernel(x_ref, w_ref, s_ref, b_ref, r_ref, o_ref, *,
                        offsets, rows, relu):
    # Same as above, plus the BasicBlock residual add (before the ReLU).
    x = x_ref[0]
    acc = None
    for t, off in enumerate(offsets):
        d = jnp.dot(x, w_ref[t], preferred_element_type=jnp.float32)
        d = d[off:off + rows]
        acc = d if acc is None else acc + d
    y = acc * s_ref[...] + b_ref[...] + r_ref[0]
    if relu:
        y = jnp.maximum(y, 0.0)
    o_ref[0] = y.astype(o_ref.dtype)


# ---------------------------------------------------------------------------
# Pallas wrappers
# ---------------------------------------------------------------------------
def _conv_taps(xf, w, scale, bias, *, offsets, rows, relu, residual=None):
    """Fused conv (sum of shifted tap matmuls) + BN [+ residual] [+ ReLU].

    xf:       (N, L_in, Cin_p) bf16 flattened activation (Cin_p mult. of 128)
    w:        (T, Cin_p, Cout_p) bf16
    scale/bias: (Cout_p,) f32 folded BN
    residual: (N, rows, Cout_p) f32 or None
    returns   (N, rows, Cout_p) f32
    """
    n, l_in, cin_p = xf.shape
    n_taps, _, cout_p = w.shape
    assert n_taps == len(offsets)
    s2 = scale.reshape(1, cout_p).astype(jnp.float32)
    b2 = bias.reshape(1, cout_p).astype(jnp.float32)

    in_specs = [
        pl.BlockSpec((1, l_in, cin_p), lambda i: (i, 0, 0)),
        pl.BlockSpec((n_taps, cin_p, cout_p), lambda i: (0, 0, 0)),  # resident
        pl.BlockSpec((1, cout_p), lambda i: (0, 0)),
        pl.BlockSpec((1, cout_p), lambda i: (0, 0)),
    ]
    args = [xf, w, s2, b2]
    if residual is not None:
        in_specs.append(pl.BlockSpec((1, rows, cout_p), lambda i: (i, 0, 0)))
        args.append(residual)
        kernel = functools.partial(_conv_bn_res_kernel, offsets=offsets,
                                   rows=rows, relu=relu)
    else:
        kernel = functools.partial(_conv_bn_kernel, offsets=offsets,
                                   rows=rows, relu=relu)

    flops = 2 * n * l_in * cin_p * cout_p * n_taps
    bytes_accessed = (xf.size * xf.dtype.itemsize
                      + w.size * w.dtype.itemsize
                      + n * rows * cout_p * 4
                      + (residual.size * residual.dtype.itemsize
                         if residual is not None else 0))

    return pl.pallas_call(
        kernel,
        out_shape=jax.ShapeDtypeStruct((n, rows, cout_p), jnp.float32),
        grid=(n,),
        in_specs=in_specs,
        out_specs=pl.BlockSpec((1, rows, cout_p), lambda i: (i, 0, 0)),
        compiler_params=pltpu.CompilerParams(
            dimension_semantics=("parallel",)),
        cost_estimate=pl.CostEstimate(flops=flops, transcendentals=0,
                                      bytes_accessed=bytes_accessed),
    )(*args)


def conv3x3_bn(x_p, w9, scale, bias, *, relu, residual=None):
    """3x3 / stride-1 / pad-1 conv + folded BN [+ residual] [+ ReLU].

    x_p: (N, H, W, Cin_p) f32, channels zero-padded to a multiple of 128.
    Returns (N, H, W+2, Cout_p) f32 in the internal padded-width layout:
    columns >= W are don't-care, padded channel lanes are exactly zero.
    """
    n, h, w, cin_p = x_p.shape
    wp = w + 2
    cout_p = w9.shape[-1]
    # Zero pad: 1 row top / 2 rows bottom / 1 col each side.  The extra bottom
    # row only feeds don't-care output positions; it keeps the largest tap
    # shift (2*Wp + 2) in bounds for the flattened layout.
    xpad = jnp.pad(x_p, ((0, 0), (1, 2), (1, 1), (0, 0))).astype(jnp.bfloat16)
    xf = xpad.reshape(n, (h + 3) * wp, cin_p)
    offsets = tuple(di * wp + dj for di in range(3) for dj in range(3))
    out = _conv_taps(xf, w9, scale, bias, offsets=offsets, rows=h * wp,
                     relu=relu, residual=residual)
    return out.reshape(n, h, wp, cout_p)


def conv1x1_bn_flat(x_wpad, w1, scale, bias, *, relu):
    """1x1 conv + folded BN on the padded-width layout (pure fused matmul).

    x_wpad: (N, H, W+2, Cin_p) f32 (width right-padded by 2, padded channels).
    Returns (N, H*(W+2), Cout_p) f32, i.e. directly in the residual layout
    consumed by the BasicBlock's second conv.
    """
    n, h, wp, cin_p = x_wpad.shape
    xf = x_wpad.astype(jnp.bfloat16).reshape(n, h * wp, cin_p)
    return _conv_taps(xf, w1, scale, bias, offsets=(0,), rows=h * wp, relu=relu)


def basic_block(x_p, params):
    """BasicBlock forward on a channel-padded NHWC activation.

    x_p: (N, H, W, Cin_p) f32 with true channels first and exact zeros in the
    padded channel lanes.  Returns (N, H, W, Cout_p) f32 with the same
    channel-padding invariant.
    """
    n, h, w, cin_p = x_p.shape
    wp = w + 2
    cout_p = params["w1"].shape[-1]

    # Residual branch, built directly in the (N, H*(W+2), Cout_p) flat layout
    # of the second conv's output (width right-padded by 2).
    x_wpad = jnp.pad(x_p, ((0, 0), (0, 0), (0, 2), (0, 0)))
    if "wd" in params:   # downsample = 1x1 conv + BN (fused matmul, no im2col)
        residual = conv1x1_bn_flat(x_wpad, params["wd"], params["sd"],
                                   params["bd"], relu=False)
    else:                # identity residual
        assert cin_p == cout_p
        residual = x_wpad.reshape(n, h * wp, cout_p)

    out = conv3x3_bn(x_p, params["w1"], params["s1"], params["b1"], relu=True)
    out = out[:, :, :w, :]                         # back to dense width
    out = conv3x3_bn(out, params["w2"], params["s2"], params["b2"],
                     relu=True, residual=residual)
    return out[:, :, :w, :]


# ---------------------------------------------------------------------------
# deterministic parameter construction (mirrors BasicBlock.__init__)
# ---------------------------------------------------------------------------
def _fold_bn(key, c, eps=1e-5):
    k1, k2, k3, k4 = jax.random.split(key, 4)
    gamma = 1.0 + 0.1 * jax.random.normal(k1, (c,), jnp.float32)
    beta = 0.1 * jax.random.normal(k2, (c,), jnp.float32)
    mean = 0.1 * jax.random.normal(k3, (c,), jnp.float32)
    var = 0.5 + jax.random.uniform(k4, (c,), jnp.float32)
    scale = gamma / jnp.sqrt(var + eps)
    bias = beta - mean * scale
    return scale, bias


def _pad_vec(v, cp):
    return jnp.zeros((cp,), jnp.float32).at[:v.shape[0]].set(v)


def _pack_conv(w_oihw, cin_p, cout_p):
    # PyTorch (Cout, Cin, kh, kw) -> per-tap (kh*kw, Cin_p, Cout_p) bf16,
    # zero-padded so padded input channels / output lanes contribute nothing.
    cout, cin, kh, kw = w_oihw.shape
    wt = jnp.transpose(w_oihw, (2, 3, 1, 0)).reshape(kh * kw, cin, cout)
    wp = jnp.zeros((kh * kw, cin_p, cout_p), jnp.float32)
    wp = wp.at[:, :cin, :cout].set(wt)
    return wp.astype(jnp.bfloat16)


def make_block_params(key, inplanes, planes, with_downsample):
    cin_p = _round_up(inplanes, 128)
    cout_p = _round_up(planes, 128)
    ks = jax.random.split(key, 6)
    w1 = jax.random.normal(ks[0], (planes, inplanes, 3, 3), jnp.float32)
    w1 = w1 * (1.0 / float(inplanes * 9) ** 0.5)
    s1, b1 = _fold_bn(ks[1], planes)
    w2 = jax.random.normal(ks[2], (planes, planes, 3, 3), jnp.float32)
    w2 = w2 * (1.0 / float(planes * 9) ** 0.5)
    s2, b2 = _fold_bn(ks[3], planes)
    params = {
        "w1": _pack_conv(w1, cin_p, cout_p),
        "s1": _pad_vec(s1, cout_p), "b1": _pad_vec(b1, cout_p),
        "w2": _pack_conv(w2, cout_p, cout_p),
        "s2": _pad_vec(s2, cout_p), "b2": _pad_vec(b2, cout_p),
        "ref": {"w1": w1, "s1": s1, "b1": b1, "w2": w2, "s2": s2, "b2": b2},
    }
    if with_downsample:
        wd = jax.random.normal(ks[4], (planes, inplanes, 1, 1), jnp.float32)
        wd = wd * (1.0 / float(inplanes) ** 0.5)
        sd, bd = _fold_bn(ks[5], planes)
        params["wd"] = _pack_conv(wd, cin_p, cout_p)
        params["sd"] = _pad_vec(sd, cout_p)
        params["bd"] = _pad_vec(bd, cout_p)
        params["ref"].update({"wd": wd, "sd": sd, "bd": bd})
    return params


# ---------------------------------------------------------------------------
# pure-JAX reference (f32) for a numerical sanity check
# ---------------------------------------------------------------------------
def _ref_conv_bn(x, w_oihw, scale, bias, padding):
    w_hwio = jnp.transpose(w_oihw, (2, 3, 1, 0))
    y = jax.lax.conv_general_dilated(
        x, w_hwio, window_strides=(1, 1), padding=padding,
        dimension_numbers=("NHWC", "HWIO", "NHWC"),
        precision=jax.lax.Precision.HIGHEST)
    return y * scale + bias


def ref_basic_block(x, rp):
    out = jnp.maximum(
        _ref_conv_bn(x, rp["w1"], rp["s1"], rp["b1"], ((1, 1), (1, 1))), 0.0)
    out = _ref_conv_bn(out, rp["w2"], rp["s2"], rp["b2"], ((1, 1), (1, 1)))
    if "wd" in rp:
        residual = _ref_conv_bn(x, rp["wd"], rp["sd"], rp["bd"],
                                ((0, 0), (0, 0)))
    else:
        residual = x
    return jnp.maximum(out + residual, 0.0)


# ---------------------------------------------------------------------------
if __name__ == "__main__":
    key = jax.random.PRNGKey(0)
    kx, ka, kb = jax.random.split(key, 3)

    n, inplanes, planes, h, w = 2, 64, 128, 16, 16
    x_nchw = jax.random.normal(kx, (n, inplanes, h, w), jnp.float32)

    # Block A: first block of a layer (inplanes != planes -> 1x1 downsample).
    # Block B: later block (identity residual).  Matches clova's _make_layer.
    params_a = make_block_params(ka, inplanes, planes, with_downsample=True)
    params_b = make_block_params(kb, planes, planes, with_downsample=False)

    cin_p = _round_up(inplanes, 128)

    def forward(x):
        xh = jnp.transpose(x, (0, 2, 3, 1))                       # NCHW->NHWC
        xh = jnp.pad(xh, ((0, 0), (0, 0), (0, 0), (0, cin_p - inplanes)))
        y = basic_block(xh, params_a)
        y = basic_block(y, params_b)
        y = y[..., :planes]
        return jnp.transpose(y, (0, 3, 1, 2))                     # NHWC->NCHW

    out = jax.jit(forward)(x_nchw)
    jax.block_until_ready(out)
    assert out.shape == (n, planes, h, w), out.shape
    assert out.dtype == jnp.float32

    def ref_forward(x):
        xh = jnp.transpose(x, (0, 2, 3, 1))
        y = ref_basic_block(xh, params_a["ref"])
        y = ref_basic_block(y, params_b["ref"])
        return jnp.transpose(y, (0, 3, 1, 2))

    ref = jax.jit(ref_forward)(x_nchw)
    jax.block_until_ready(ref)
    rel_err = float(jnp.linalg.norm(out - ref) / (jnp.linalg.norm(ref) + 1e-6))
    assert rel_err < 3e-2, rel_err
    print("KERNEL_OK")
</pallas_src>

<mosaic_0001>
module attributes {stable_mosaic.version = 11 : i64} {
  func.func @_conv_bn_kernel(%arg0: i32, %arg1: memref<1x288x128xbf16, #tpu.memory_space<vmem>>, %arg2: memref<1x128x128xbf16, #tpu.memory_space<vmem>>, %arg3: memref<1x128xf32, #tpu.memory_space<vmem>>, %arg4: memref<1x128xf32, #tpu.memory_space<vmem>>, %arg5: memref<1x288x128xf32, #tpu.memory_space<vmem>>) attributes {dimension_semantics = [#tpu.dimension_semantics<parallel>], iteration_bounds = array<i64: 2>, scalar_prefetch = 0 : i64, scratch_operands = 0 : i64, tpu.core_type = #tpu.core_type<tc>, window_params = [{transform_indices = @transform_0, window_bounds = array<i64: 1, 288, 128>}, {pipeline_mode = #tpu.pipeline_mode<synchronous>, transform_indices = @transform_1, window_bounds = array<i64: 1, 128, 128>}, {pipeline_mode = #tpu.pipeline_mode<synchronous>, transform_indices = @transform_2, window_bounds = array<i64: 1, 128>}, {pipeline_mode = #tpu.pipeline_mode<synchronous>, transform_indices = @transform_3, window_bounds = array<i64: 1, 128>}, {transform_indices = @transform_4, window_bounds = array<i64: 1, 288, 128>}]} {
    %c0 = arith.constant 0 : index
    %c0_0 = arith.constant 0 : index
    %c0_1 = arith.constant 0 : index
    %0 = vector.load %arg1[%c0, %c0_0, %c0_1] : memref<1x288x128xbf16, #tpu.memory_space<vmem>>, vector<1x288x128xbf16>
    %1 = vector.shape_cast %0 : vector<1x288x128xbf16> to vector<288x128xbf16>
    %c0_2 = arith.constant 0 : index
    %c0_3 = arith.constant 0 : index
    %c0_4 = arith.constant 0 : index
    %2 = vector.load %arg2[%c0_2, %c0_3, %c0_4] : memref<1x128x128xbf16, #tpu.memory_space<vmem>>, vector<1x128x128xbf16>
    %3 = vector.shape_cast %2 : vector<1x128x128xbf16> to vector<128x128xbf16>
    %cst = arith.constant dense<0.000000e+00> : vector<288x128xf32>
    %4 = tpu.matmul %1, %3, %cst {dimension_numbers = #tpu.dot_dimension_numbers<[1], [0], [0], [1], [0, 0, 1, 1], [], []>} : vector<288x128xbf16>, vector<128x128xbf16>, vector<288x128xf32> -> vector<288x128xf32>
    %c0_5 = arith.constant 0 : index
    %c0_6 = arith.constant 0 : index
    %5 = vector.load %arg3[%c0_5, %c0_6] : memref<1x128xf32, #tpu.memory_space<vmem>>, vector<1x128xf32>
    %6 = vector.broadcast %5 : vector<1x128xf32> to vector<288x128xf32>
    %7 = arith.mulf %4, %6 : vector<288x128xf32>
    %c0_7 = arith.constant 0 : index
    %c0_8 = arith.constant 0 : index
    %8 = vector.load %arg4[%c0_7, %c0_8] : memref<1x128xf32, #tpu.memory_space<vmem>>, vector<1x128xf32>
    %9 = vector.broadcast %8 : vector<1x128xf32> to vector<288x128xf32>
    %10 = arith.addf %7, %9 : vector<288x128xf32>
    %c0_9 = arith.constant 0 : index
    %c0_10 = arith.constant 0 : index
    %c0_11 = arith.constant 0 : index
    %11 = vector.load %arg5[%c0_9, %c0_10, %c0_11] : memref<1x288x128xf32, #tpu.memory_space<vmem>>, vector<1x288x128xf32>
    %12 = vector.shape_cast %11 : vector<1x288x128xf32> to vector<288x128xf32>
    %13 = vector.shape_cast %10 : vector<288x128xf32> to vector<1x288x128xf32>
    tpu.vector_store %arg5[%c0_9, %c0_10, %c0_11], %13 {strides = array<i32>} : memref<1x288x128xf32, #tpu.memory_space<vmem>>, vector<1x288x128xf32>,
    return
  }
  func.func @transform_0(%arg0: i32) -> (i32, i32, i32) {
    %c0_i32 = arith.constant 0 : i32
    %c0_i32_0 = arith.constant 0 : i32
    %c0_i32_1 = arith.constant 0 : i32
    return %arg0, %c0_i32, %c0_i32_0 : i32, i32, i32
  }
  func.func @transform_1(%arg0: i32) -> (i32, i32, i32) {
    %c0_i32 = arith.constant 0 : i32
    %c0_i32_0 = arith.constant 0 : i32
    %c0_i32_1 = arith.constant 0 : i32
    %c0_i32_2 = arith.constant 0 : i32
    return %c0_i32, %c0_i32_0, %c0_i32_1 : i32, i32, i32
  }
  func.func @transform_2(%arg0: i32) -> (i32, i32) {
    %c0_i32 = arith.constant 0 : i32
    %c0_i32_0 = arith.constant 0 : i32
    %c0_i32_1 = arith.constant 0 : i32
    return %c0_i32, %c0_i32_0 : i32, i32
  }
  func.func @transform_3(%arg0: i32) -> (i32, i32) {
    %c0_i32 = arith.constant 0 : i32
    %c0_i32_0 = arith.constant 0 : i32
    %c0_i32_1 = arith.constant 0 : i32
    return %c0_i32, %c0_i32_0 : i32, i32
  }
  func.func @transform_4(%arg0: i32) -> (i32, i32, i32) {
    %c0_i32 = arith.constant 0 : i32
    %c0_i32_0 = arith.constant 0 : i32
    %c0_i32_1 = arith.constant 0 : i32
    return %arg0, %c0_i32, %c0_i32_0 : i32, i32, i32
  }
}

module attributes {stable_mosaic.version = 11 : i64} {
  func.func @_conv_bn_kernel(%arg0: i32, %arg1: memref<1x342x128xbf16, #tpu.memory_space<vmem>>, %arg2: memref<9x128x128xbf16, #tpu.memory_space<vmem>>, %arg3: memref<1x128xf32, #tpu.memory_space<vmem>>, %arg4: memref<1x128xf32, #tpu.memory_space<vmem>>, %arg5: memref<1x288x128xf32, #tpu.memory_space<vmem>>) attributes {dimension_semantics = [#tpu.dimension_semantics<parallel>], iteration_bounds = array<i64: 2>, scalar_prefetch = 0 : i64, scratch_operands = 0 : i64, tpu.core_type = #tpu.core_type<tc>, window_params = [{transform_indices = @transform_0, window_bounds = array<i64: 1, 342, 128>}, {pipeline_mode = #tpu.pipeline_mode<synchronous>, transform_indices = @transform_1, window_bounds = array<i64: 9, 128, 128>}, {pipeline_mode = #tpu.pipeline_mode<synchronous>, transform_indices = @transform_2, window_bounds = array<i64: 1, 128>}, {pipeline_mode = #tpu.pipeline_mode<synchronous>, transform_indices = @transform_3, window_bounds = array<i64: 1, 128>}, {transform_indices = @transform_4, window_bounds = array<i64: 1, 288, 128>}]} {
    %c0 = arith.constant 0 : index
    %c0_0 = arith.constant 0 : index
    %c0_1 = arith.constant 0 : index
    %0 = vector.load %arg1[%c0, %c0_0, %c0_1] : memref<1x342x128xbf16, #tpu.memory_space<vmem>>, vector<1x342x128xbf16>
    %1 = vector.shape_cast %0 : vector<1x342x128xbf16> to vector<342x128xbf16>
    %c0_2 = arith.constant 0 : index
    %c0_3 = arith.constant 0 : index
    %c0_4 = arith.constant 0 : index
    %2 = vector.load %arg2[%c0_2, %c0_3, %c0_4] : memref<9x128x128xbf16, #tpu.memory_space<vmem>>, vector<1x128x128xbf16>
    %3 = vector.shape_cast %2 : vector<1x128x128xbf16> to vector<128x128xbf16>
    %cst = arith.constant dense<0.000000e+00> : vector<342x128xf32>
    %4 = tpu.matmul %1, %3, %cst {dimension_numbers = #tpu.dot_dimension_numbers<[1], [0], [0], [1], [0, 0, 1, 1], [], []>} : vector<342x128xbf16>, vector<128x128xbf16>, vector<342x128xf32> -> vector<342x128xf32>
    %5 = vector.extract_strided_slice %4 {offsets = [0, 0], sizes = [288, 128], strides = [1, 1]} : vector<342x128xf32> to vector<288x128xf32>
    %c1 = arith.constant 1 : index
    %c0_5 = arith.constant 0 : index
    %c0_6 = arith.constant 0 : index
    %6 = vector.load %arg2[%c1, %c0_5, %c0_6] : memref<9x128x128xbf16, #tpu.memory_space<vmem>>, vector<1x128x128xbf16>
    %7 = vector.shape_cast %6 : vector<1x128x128xbf16> to vector<128x128xbf16>
    %cst_7 = arith.constant dense<0.000000e+00> : vector<342x128xf32>
    %8 = tpu.matmul %1, %7, %cst_7 {dimension_numbers = #tpu.dot_dimension_numbers<[1], [0], [0], [1], [0, 0, 1, 1], [], []>} : vector<342x128xbf16>, vector<128x128xbf16>, vector<342x128xf32> -> vector<342x128xf32>
    %9 = vector.extract_strided_slice %8 {offsets = [1, 0], sizes = [288, 128], strides = [1, 1]} : vector<342x128xf32> to vector<288x128xf32>
    %10 = arith.addf %5, %9 : vector<288x128xf32>
    %c2 = arith.constant 2 : index
    %c0_8 = arith.constant 0 : index
    %c0_9 = arith.constant 0 : index
    %11 = vector.load %arg2[%c2, %c0_8, %c0_9] : memref<9x128x128xbf16, #tpu.memory_space<vmem>>, vector<1x128x128xbf16>
    %12 = vector.shape_cast %11 : vector<1x128x128xbf16> to vector<128x128xbf16>
    %cst_10 = arith.constant dense<0.000000e+00> : vector<342x128xf32>
    %13 = tpu.matmul %1, %12, %cst_10 {dimension_numbers = #tpu.dot_dimension_numbers<[1], [0], [0], [1], [0, 0, 1, 1], [], []>} : vector<342x128xbf16>, vector<128x128xbf16>, vector<342x128xf32> -> vector<342x128xf32>
    %14 = vector.extract_strided_slice %13 {offsets = [2, 0], sizes = [288, 128], strides = [1, 1]} : vector<342x128xf32> to vector<288x128xf32>
    %15 = arith.addf %10, %14 : vector<288x128xf32>
    %c3 = arith.constant 3 : index
    %c0_11 = arith.constant 0 : index
    %c0_12 = arith.constant 0 : index
    %16 = vector.load %arg2[%c3, %c0_11, %c0_12] : memref<9x128x128xbf16, #tpu.memory_space<vmem>>, vector<1x128x128xbf16>
    %17 = vector.shape_cast %16 : vector<1x128x128xbf16> to vector<128x128xbf16>
    %cst_13 = arith.constant dense<0.000000e+00> : vector<342x128xf32>
    %18 = tpu.matmul %1, %17, %cst_13 {dimension_numbers = #tpu.dot_dimension_numbers<[1], [0], [0], [1], [0, 0, 1, 1], [], []>} : vector<342x128xbf16>, vector<128x128xbf16>, vector<342x128xf32> -> vector<342x128xf32>
    %19 = vector.extract_strided_slice %18 {offsets = [18, 0], sizes = [288, 128], strides = [1, 1]} : vector<342x128xf32> to vector<288x128xf32>
    %20 = arith.addf %15, %19 : vector<288x128xf32>
    %c4 = arith.constant 4 : index
    %c0_14 = arith.constant 0 : index
    %c0_15 = arith.constant 0 : index
    %21 = vector.load %arg2[%c4, %c0_14, %c0_15] : memref<9x128x128xbf16, #tpu.memory_space<vmem>>, vector<1x128x128xbf16>
    %22 = vector.shape_cast %21 : vector<1x128x128xbf16> to vector<128x128xbf16>
    %cst_16 = arith.constant dense<0.000000e+00> : vector<342x128xf32>
    %23 = tpu.matmul %1, %22, %cst_16 {dimension_numbers = #tpu.dot_dimension_numbers<[1], [0], [0], [1], [0, 0, 1, 1], [], []>} : vector<342x128xbf16>, vector<128x128xbf16>, vector<342x128xf32> -> vector<342x128xf32>
    %24 = vector.extract_strided_slice %23 {offsets = [19, 0], sizes = [288, 128], strides = [1, 1]} : vector<342x128xf32> to vector<288x128xf32>
    %25 = arith.addf %20, %24 : vector<288x128xf32>
    %c5 = arith.constant 5 : index
    %c0_17 = arith.constant 0 : index
    %c0_18 = arith.constant 0 : index
    %26 = vector.load %arg2[%c5, %c0_17, %c0_18] : memref<9x128x128xbf16, #tpu.memory_space<vmem>>, vector<1x128x128xbf16>
    %27 = vector.shape_cast %26 : vector<1x128x128xbf16> to vector<128x128xbf16>
    %cst_19 = arith.constant dense<0.000000e+00> : vector<342x128xf32>
    %28 = tpu.matmul %1, %27, %cst_19 {dimension_numbers = #tpu.dot_dimension_numbers<[1], [0], [0], [1], [0, 0, 1, 1], [], []>} : vector<342x128xbf16>, vector<128x128xbf16>, vector<342x128xf32> -> vector<342x128xf32>
    %29 = vector.extract_strided_slice %28 {offsets = [20, 0], sizes = [288, 128], strides = [1, 1]} : vector<342x128xf32> to vector<288x128xf32>
    %30 = arith.addf %25, %29 : vector<288x128xf32>
    %c6 = arith.constant 6 : index
    %c0_20 = arith.constant 0 : index
    %c0_21 = arith.constant 0 : index
    %31 = vector.load %arg2[%c6, %c0_20, %c0_21] : memref<9x128x128xbf16, #tpu.memory_space<vmem>>, vector<1x128x128xbf16>
    %32 = vector.shape_cast %31 : vector<1x128x128xbf16> to vector<128x128xbf16>
    %cst_22 = arith.constant dense<0.000000e+00> : vector<342x128xf32>
    %33 = tpu.matmul %1, %32, %cst_22 {dimension_numbers = #tpu.dot_dimension_numbers<[1], [0], [0], [1], [0, 0, 1, 1], [], []>} : vector<342x128xbf16>, vector<128x128xbf16>, vector<342x128xf32> -> vector<342x128xf32>
    %34 = vector.extract_strided_slice %33 {offsets = [36, 0], sizes = [288, 128], strides = [1, 1]} : vector<342x128xf32> to vector<288x128xf32>
    %35 = arith.addf %30, %34 : vector<288x128xf32>
    %c7 = arith.constant 7 : index
    %c0_23 = arith.constant 0 : index
    %c0_24 = arith.constant 0 : index
    %36 = vector.load %arg2[%c7, %c0_23, %c0_24] : memref<9x128x128xbf16, #tpu.memory_space<vmem>>, vector<1x128x128xbf16>
    %37 = vector.shape_cast %36 : vector<1x128x128xbf16> to vector<128x128xbf16>
    %cst_25 = arith.constant dense<0.000000e+00> : vector<342x128xf32>
    %38 = tpu.matmul %1, %37, %cst_25 {dimension_numbers = #tpu.dot_dimension_numbers<[1], [0], [0], [1], [0, 0, 1, 1], [], []>} : vector<342x128xbf16>, vector<128x128xbf16>, vector<342x128xf32> -> vector<342x128xf32>
    %39 = vector.extract_strided_slice %38 {offsets = [37, 0], sizes = [288, 128], strides = [1, 1]} : vector<342x128xf32> to vector<288x128xf32>
    %40 = arith.addf %35, %39 : vector<288x128xf32>
    %c8 = arith.constant 8 : index
    %c0_26 = arith.constant 0 : index
    %c0_27 = arith.constant 0 : index
    %41 = vector.load %arg2[%c8, %c0_26, %c0_27] : memref<9x128x128xbf16, #tpu.memory_space<vmem>>, vector<1x128x128xbf16>
    %42 = vector.shape_cast %41 : vector<1x128x128xbf16> to vector<128x128xbf16>
    %cst_28 = arith.constant dense<0.000000e+00> : vector<342x128xf32>
    %43 = tpu.matmul %1, %42, %cst_28 {dimension_numbers = #tpu.dot_dimension_numbers<[1], [0], [0], [1], [0, 0, 1, 1], [], []>} : vector<342x128xbf16>, vector<128x128xbf16>, vector<342x128xf32> -> vector<342x128xf32>
    %44 = vector.extract_strided_slice %43 {offsets = [38, 0], sizes = [288, 128], strides = [1, 1]} : vector<342x128xf32> to vector<288x128xf32>
    %45 = arith.addf %40, %44 : vector<288x128xf32>
    %c0_29 = arith.constant 0 : index
    %c0_30 = arith.constant 0 : index
    %46 = vector.load %arg3[%c0_29, %c0_30] : memref<1x128xf32, #tpu.memory_space<vmem>>, vector<1x128xf32>
    %47 = vector.broadcast %46 : vector<1x128xf32> to vector<288x128xf32>
    %48 = arith.mulf %45, %47 : vector<288x128xf32>
    %c0_31 = arith.constant 0 : index
    %c0_32 = arith.constant 0 : index
    %49 = vector.load %arg4[%c0_31, %c0_32] : memref<1x128xf32, #tpu.memory_space<vmem>>, vector<1x128xf32>
    %50 = vector.broadcast %49 : vector<1x128xf32> to vector<288x128xf32>
    %51 = arith.addf %48, %50 : vector<288x128xf32>
    %cst_33 = arith.constant 0.000000e+00 : f32
    %52 = vector.broadcast %cst_33 : f32 to vector<288x128xf32>
    %53 = arith.maximumf %51, %52 : vector<288x128xf32>
    %c0_34 = arith.constant 0 : index
    %c0_35 = arith.constant 0 : index
    %c0_36 = arith.constant 0 : index
    %54 = vector.load %arg5[%c0_34, %c0_35, %c0_36] : memref<1x288x128xf32, #tpu.memory_space<vmem>>, vector<1x288x128xf32>
    %55 = vector.shape_cast %54 : vector<1x288x128xf32> to vector<288x128xf32>
    %56 = vector.shape_cast %53 : vector<288x128xf32> to vector<1x288x128xf32>
    tpu.vector_store %arg5[%c0_34, %c0_35, %c0_36], %56 {strides = array<i32>} : memref<1x288x128xf32, #tpu.memory_space<vmem>>, vector<1x288x128xf32>,
    return
  }
  func.func @transform_0(%arg0: i32) -> (i32, i32, i32) {
    %c0_i32 = arith.constant 0 : i32
    %c0_i32_0 = arith.constant 0 : i32
    %c0_i32_1 = arith.constant 0 : i32
    return %arg0, %c0_i32, %c0_i32_0 : i32, i32, i32
  }
  func.func @transform_1(%arg0: i32) -> (i32, i32, i32) {
    %c0_i32 = arith.constant 0 : i32
    %c0_i32_0 = arith.constant 0 : i32
    %c0_i32_1 = arith.constant 0 : i32
    %c0_i32_2 = arith.constant 0 : i32
    return %c0_i32, %c0_i32_0, %c0_i32_1 : i32, i32, i32
  }
  func.func @transform_2(%arg0: i32) -> (i32, i32) {
    %c0_i32 = arith.constant 0 : i32
    %c0_i32_0 = arith.constant 0 : i32
    %c0_i32_1 = arith.constant 0 : i32
    return %c0_i32, %c0_i32_0 : i32, i32
  }
  func.func @transform_3(%arg0: i32) -> (i32, i32) {
    %c0_i32 = arith.constant 0 : i32
    %c0_i32_0 = arith.constant 0 : i32
    %c0_i32_1 = arith.constant 0 : i32
    return %c0_i32, %c0_i32_0 : i32, i32
  }
  func.func @transform_4(%arg0: i32) -> (i32, i32, i32) {
    %c0_i32 = arith.constant 0 : i32
    %c0_i32_0 = arith.constant 0 : i32
    %c0_i32_1 = arith.constant 0 : i32
    return %arg0, %c0_i32, %c0_i32_0 : i32, i32, i32
  }
}

module attributes {stable_mosaic.version = 11 : i64} {
  func.func @_conv_bn_res_kernel(%arg0: i32, %arg1: memref<1x342x128xbf16, #tpu.memory_space<vmem>>, %arg2: memref<9x128x128xbf16, #tpu.memory_space<vmem>>, %arg3: memref<1x128xf32, #tpu.memory_space<vmem>>, %arg4: memref<1x128xf32, #tpu.memory_space<vmem>>, %arg5: memref<1x288x128xf32, #tpu.memory_space<vmem>>, %arg6: memref<1x288x128xf32, #tpu.memory_space<vmem>>) attributes {dimension_semantics = [#tpu.dimension_semantics<parallel>], iteration_bounds = array<i64: 2>, scalar_prefetch = 0 : i64, scratch_operands = 0 : i64, tpu.core_type = #tpu.core_type<tc>, window_params = [{transform_indices = @transform_0, window_bounds = array<i64: 1, 342, 128>}, {pipeline_mode = #tpu.pipeline_mode<synchronous>, transform_indices = @transform_1, window_bounds = array<i64: 9, 128, 128>}, {pipeline_mode = #tpu.pipeline_mode<synchronous>, transform_indices = @transform_2, window_bounds = array<i64: 1, 128>}, {pipeline_mode = #tpu.pipeline_mode<synchronous>, transform_indices = @transform_3, window_bounds = array<i64: 1, 128>}, {transform_indices = @transform_4, window_bounds = array<i64: 1, 288, 128>}, {transform_indices = @transform_5, window_bounds = array<i64: 1, 288, 128>}]} {
    %c0 = arith.constant 0 : index
    %c0_0 = arith.constant 0 : index
    %c0_1 = arith.constant 0 : index
    %0 = vector.load %arg1[%c0, %c0_0, %c0_1] : memref<1x342x128xbf16, #tpu.memory_space<vmem>>, vector<1x342x128xbf16>
    %1 = vector.shape_cast %0 : vector<1x342x128xbf16> to vector<342x128xbf16>
    %c0_2 = arith.constant 0 : index
    %c0_3 = arith.constant 0 : index
    %c0_4 = arith.constant 0 : index
    %2 = vector.load %arg2[%c0_2, %c0_3, %c0_4] : memref<9x128x128xbf16, #tpu.memory_space<vmem>>, vector<1x128x128xbf16>
    %3 = vector.shape_cast %2 : vector<1x128x128xbf16> to vector<128x128xbf16>
    %cst = arith.constant dense<0.000000e+00> : vector<342x128xf32>
    %4 = tpu.matmul %1, %3, %cst {dimension_numbers = #tpu.dot_dimension_numbers<[1], [0], [0], [1], [0, 0, 1, 1], [], []>} : vector<342x128xbf16>, vector<128x128xbf16>, vector<342x128xf32> -> vector<342x128xf32>
    %5 = vector.extract_strided_slice %4 {offsets = [0, 0], sizes = [288, 128], strides = [1, 1]} : vector<342x128xf32> to vector<288x128xf32>
    %c1 = arith.constant 1 : index
    %c0_5 = arith.constant 0 : index
    %c0_6 = arith.constant 0 : index
    %6 = vector.load %arg2[%c1, %c0_5, %c0_6] : memref<9x128x128xbf16, #tpu.memory_space<vmem>>, vector<1x128x128xbf16>
    %7 = vector.shape_cast %6 : vector<1x128x128xbf16> to vector<128x128xbf16>
    %cst_7 = arith.constant dense<0.000000e+00> : vector<342x128xf32>
    %8 = tpu.matmul %1, %7, %cst_7 {dimension_numbers = #tpu.dot_dimension_numbers<[1], [0], [0], [1], [0, 0, 1, 1], [], []>} : vector<342x128xbf16>, vector<128x128xbf16>, vector<342x128xf32> -> vector<342x128xf32>
    %9 = vector.extract_strided_slice %8 {offsets = [1, 0], sizes = [288, 128], strides = [1, 1]} : vector<342x128xf32> to vector<288x128xf32>
    %10 = arith.addf %5, %9 : vector<288x128xf32>
    %c2 = arith.constant 2 : index
    %c0_8 = arith.constant 0 : index
    %c0_9 = arith.constant 0 : index
    %11 = vector.load %arg2[%c2, %c0_8, %c0_9] : memref<9x128x128xbf16, #tpu.memory_space<vmem>>, vector<1x128x128xbf16>
    %12 = vector.shape_cast %11 : vector<1x128x128xbf16> to vector<128x128xbf16>
    %cst_10 = arith.constant dense<0.000000e+00> : vector<342x128xf32>
    %13 = tpu.matmul %1, %12, %cst_10 {dimension_numbers = #tpu.dot_dimension_numbers<[1], [0], [0], [1], [0, 0, 1, 1], [], []>} : vector<342x128xbf16>, vector<128x128xbf16>, vector<342x128xf32> -> vector<342x128xf32>
    %14 = vector.extract_strided_slice %13 {offsets = [2, 0], sizes = [288, 128], strides = [1, 1]} : vector<342x128xf32> to vector<288x128xf32>
    %15 = arith.addf %10, %14 : vector<288x128xf32>
    %c3 = arith.constant 3 : index
    %c0_11 = arith.constant 0 : index
    %c0_12 = arith.constant 0 : index
    %16 = vector.load %arg2[%c3, %c0_11, %c0_12] : memref<9x128x128xbf16, #tpu.memory_space<vmem>>, vector<1x128x128xbf16>
    %17 = vector.shape_cast %16 : vector<1x128x128xbf16> to vector<128x128xbf16>
    %cst_13 = arith.constant dense<0.000000e+00> : vector<342x128xf32>
    %18 = tpu.matmul %1, %17, %cst_13 {dimension_numbers = #tpu.dot_dimension_numbers<[1], [0], [0], [1], [0, 0, 1, 1], [], []>} : vector<342x128xbf16>, vector<128x128xbf16>, vector<342x128xf32> -> vector<342x128xf32>
    %19 = vector.extract_strided_slice %18 {offsets = [18, 0], sizes = [288, 128], strides = [1, 1]} : vector<342x128xf32> to vector<288x128xf32>
    %20 = arith.addf %15, %19 : vector<288x128xf32>
    %c4 = arith.constant 4 : index
    %c0_14 = arith.constant 0 : index
    %c0_15 = arith.constant 0 : index
    %21 = vector.load %arg2[%c4, %c0_14, %c0_15] : memref<9x128x128xbf16, #tpu.memory_space<vmem>>, vector<1x128x128xbf16>
    %22 = vector.shape_cast %21 : vector<1x128x128xbf16> to vector<128x128xbf16>
    %cst_16 = arith.constant dense<0.000000e+00> : vector<342x128xf32>
    %23 = tpu.matmul %1, %22, %cst_16 {dimension_numbers = #tpu.dot_dimension_numbers<[1], [0], [0], [1], [0, 0, 1, 1], [], []>} : vector<342x128xbf16>, vector<128x128xbf16>, vector<342x128xf32> -> vector<342x128xf32>
    %24 = vector.extract_strided_slice %23 {offsets = [19, 0], sizes = [288, 128], strides = [1, 1]} : vector<342x128xf32> to vector<288x128xf32>
    %25 = arith.addf %20, %24 : vector<288x128xf32>
    %c5 = arith.constant 5 : index
    %c0_17 = arith.constant 0 : index
    %c0_18 = arith.constant 0 : index
    %26 = vector.load %arg2[%c5, %c0_17, %c0_18] : memref<9x128x128xbf16, #tpu.memory_space<vmem>>, vector<1x128x128xbf16>
    %27 = vector.shape_cast %26 : vector<1x128x128xbf16> to vector<128x128xbf16>
    %cst_19 = arith.constant dense<0.000000e+00> : vector<342x128xf32>
    %28 = tpu.matmul %1, %27, %cst_19 {dimension_numbers = #tpu.dot_dimension_numbers<[1], [0], [0], [1], [0, 0, 1, 1], [], []>} : vector<342x128xbf16>, vector<128x128xbf16>, vector<342x128xf32> -> vector<342x128xf32>
    %29 = vector.extract_strided_slice %28 {offsets = [20, 0], sizes = [288, 128], strides = [1, 1]} : vector<342x128xf32> to vector<288x128xf32>
    %30 = arith.addf %25, %29 : vector<288x128xf32>
    %c6 = arith.constant 6 : index
    %c0_20 = arith.constant 0 : index
    %c0_21 = arith.constant 0 : index
    %31 = vector.load %arg2[%c6, %c0_20, %c0_21] : memref<9x128x128xbf16, #tpu.memory_space<vmem>>, vector<1x128x128xbf16>
    %32 = vector.shape_cast %31 : vector<1x128x128xbf16> to vector<128x128xbf16>
    %cst_22 = arith.constant dense<0.000000e+00> : vector<342x128xf32>
    %33 = tpu.matmul %1, %32, %cst_22 {dimension_numbers = #tpu.dot_dimension_numbers<[1], [0], [0], [1], [0, 0, 1, 1], [], []>} : vector<342x128xbf16>, vector<128x128xbf16>, vector<342x128xf32> -> vector<342x128xf32>
    %34 = vector.extract_strided_slice %33 {offsets = [36, 0], sizes = [288, 128], strides = [1, 1]} : vector<342x128xf32> to vector<288x128xf32>
    %35 = arith.addf %30, %34 : vector<288x128xf32>
    %c7 = arith.constant 7 : index
    %c0_23 = arith.constant 0 : index
    %c0_24 = arith.constant 0 : index
    %36 = vector.load %arg2[%c7, %c0_23, %c0_24] : memref<9x128x128xbf16, #tpu.memory_space<vmem>>, vector<1x128x128xbf16>
    %37 = vector.shape_cast %36 : vector<1x128x128xbf16> to vector<128x128xbf16>
    %cst_25 = arith.constant dense<0.000000e+00> : vector<342x128xf32>
    %38 = tpu.matmul %1, %37, %cst_25 {dimension_numbers = #tpu.dot_dimension_numbers<[1], [0], [0], [1], [0, 0, 1, 1], [], []>} : vector<342x128xbf16>, vector<128x128xbf16>, vector<342x128xf32> -> vector<342x128xf32>
    %39 = vector.extract_strided_slice %38 {offsets = [37, 0], sizes = [288, 128], strides = [1, 1]} : vector<342x128xf32> to vector<288x128xf32>
    %40 = arith.addf %35, %39 : vector<288x128xf32>
    %c8 = arith.constant 8 : index
    %c0_26 = arith.constant 0 : index
    %c0_27 = arith.constant 0 : index
    %41 = vector.load %arg2[%c8, %c0_26, %c0_27] : memref<9x128x128xbf16, #tpu.memory_space<vmem>>, vector<1x128x128xbf16>
    %42 = vector.shape_cast %41 : vector<1x128x128xbf16> to vector<128x128xbf16>
    %cst_28 = arith.constant dense<0.000000e+00> : vector<342x128xf32>
    %43 = tpu.matmul %1, %42, %cst_28 {dimension_numbers = #tpu.dot_dimension_numbers<[1], [0], [0], [1], [0, 0, 1, 1], [], []>} : vector<342x128xbf16>, vector<128x128xbf16>, vector<342x128xf32> -> vector<342x128xf32>
    %44 = vector.extract_strided_slice %43 {offsets = [38, 0], sizes = [288, 128], strides = [1, 1]} : vector<342x128xf32> to vector<288x128xf32>
    %45 = arith.addf %40, %44 : vector<288x128xf32>
    %c0_29 = arith.constant 0 : index
    %c0_30 = arith.constant 0 : index
    %46 = vector.load %arg3[%c0_29, %c0_30] : memref<1x128xf32, #tpu.memory_space<vmem>>, vector<1x128xf32>
    %47 = vector.broadcast %46 : vector<1x128xf32> to vector<288x128xf32>
    %48 = arith.mulf %45, %47 : vector<288x128xf32>
    %c0_31 = arith.constant 0 : index
    %c0_32 = arith.constant 0 : index
    %49 = vector.load %arg4[%c0_31, %c0_32] : memref<1x128xf32, #tpu.memory_space<vmem>>, vector<1x128xf32>
    %50 = vector.broadcast %49 : vector<1x128xf32> to vector<288x128xf32>
    %51 = arith.addf %48, %50 : vector<288x128xf32>
    %c0_33 = arith.constant 0 : index
    %c0_34 = arith.constant 0 : index
    %c0_35 = arith.constant 0 : index
    %52 = vector.load %arg5[%c0_33, %c0_34, %c0_35] : memref<1x288x128xf32, #tpu.memory_space<vmem>>, vector<1x288x128xf32>
    %53 = vector.shape_cast %52 : vector<1x288x128xf32> to vector<288x128xf32>
    %54 = arith.addf %51, %53 : vector<288x128xf32>
    %cst_36 = arith.constant 0.000000e+00 : f32
    %55 = vector.broadcast %cst_36 : f32 to vector<288x128xf32>
    %56 = arith.maximumf %54, %55 : vector<288x128xf32>
    %c0_37 = arith.constant 0 : index
    %c0_38 = arith.constant 0 : index
    %c0_39 = arith.constant 0 : index
    %57 = vector.load %arg6[%c0_37, %c0_38, %c0_39] : memref<1x288x128xf32, #tpu.memory_space<vmem>>, vector<1x288x128xf32>
    %58 = vector.shape_cast %57 : vector<1x288x128xf32> to vector<288x128xf32>
    %59 = vector.shape_cast %56 : vector<288x128xf32> to vector<1x288x128xf32>
    tpu.vector_store %arg6[%c0_37, %c0_38, %c0_39], %59 {strides = array<i32>} : memref<1x288x128xf32, #tpu.memory_space<vmem>>, vector<1x288x128xf32>,
    return
  }
  func.func @transform_0(%arg0: i32) -> (i32, i32, i32) {
    %c0_i32 = arith.constant 0 : i32
    %c0_i32_0 = arith.constant 0 : i32
    %c0_i32_1 = arith.constant 0 : i32
    return %arg0, %c0_i32, %c0_i32_0 : i32, i32, i32
  }
  func.func @transform_1(%arg0: i32) -> (i32, i32, i32) {
    %c0_i32 = arith.constant 0 : i32
    %c0_i32_0 = arith.constant 0 : i32
    %c0_i32_1 = arith.constant 0 : i32
    %c0_i32_2 = arith.constant 0 : i32
    return %c0_i32, %c0_i32_0, %c0_i32_1 : i32, i32, i32
  }
  func.func @transform_2(%arg0: i32) -> (i32, i32) {
    %c0_i32 = arith.constant 0 : i32
    %c0_i32_0 = arith.constant 0 : i32
    %c0_i32_1 = arith.constant 0 : i32
    return %c0_i32, %c0_i32_0 : i32, i32
  }
  func.func @transform_3(%arg0: i32) -> (i32, i32) {
    %c0_i32 = arith.constant 0 : i32
    %c0_i32_0 = arith.constant 0 : i32
    %c0_i32_1 = arith.constant 0 : i32
    return %c0_i32, %c0_i32_0 : i32, i32
  }
  func.func @transform_4(%arg0: i32) -> (i32, i32, i32) {
    %c0_i32 = arith.constant 0 : i32
    %c0_i32_0 = arith.constant 0 : i32
    %c0_i32_1 = arith.constant 0 : i32
    return %arg0, %c0_i32, %c0_i32_0 : i32, i32, i32
  }
  func.func @transform_5(%arg0: i32) -> (i32, i32, i32) {
    %c0_i32 = arith.constant 0 : i32
    %c0_i32_0 = arith.constant 0 : i32
    %c0_i32_1 = arith.constant 0 : i32
    return %arg0, %c0_i32, %c0_i32_0 : i32, i32, i32
  }
}

</mosaic_0001>

<bundles_post_ra>
// kernel: forward.5
= control target key start
LH: loop header
LB: loop body
LE: loop exit
PB: predicated region body
PF: predicated region fallthrough
CT: control target
= control target key end

     0   :  { %s961_s15 = smov 0   ;;  %s1146_s0 = inlined_call_operand.vmem [shape: bf16[2,288,128], index: 0, kind: input, shape index: {}]   ;;  %s1147_s1 = inlined_call_operand.vmem [shape: bf16[1,128,128], index: 1, kind: input, shape index: {}]   ;;  %s1148_s2 = inlined_call_operand.vmem [shape: f32[1,128], index: 2, kind: input, shape index: {}]   ;;  %s1149_s3 = inlined_call_operand.vmem [shape: f32[1,128], index: 3, kind: input, shape index: {}]   ;;  %s1150_s4 = inlined_call_operand.vmem [shape: f32[2,288,128], index: 4, kind: output, shape index: {}]  }
   0x1 LB: > { %s761_s16 = sadd.s32 4294967295, %s934_s15   ;;  %p765_p0 = scmp.ge.s32.totalorder %s934_s15, 1  ;;  %s934_s15 = sphi %s961_s15, %s14_s15  }
   0x2   : > { %p162_p1 = scmp.lt.s32.totalorder %s934_s15, 3 }
   0x4   : > { %p163_p2 = pnand %p765_p0, %p162_p1 }
   0x5   : > { %v902_v0 = vld [vmem:[%s1147_s1] sm:$0xff] (!%p163_p2)   ;;  %p188_p3 = scmp.lt.s32.totalorder (!%p163_p2), %s761_s16, 1  ;;  %v903_v1 = vld [vmem:[%s1147_s1 + $0x8] sm:$0xff] (!%p163_p2)   ;;  %v904_v2 = vld [vmem:[%s1147_s1 + $0x10] sm:$0xff] (!%p163_p2)  }
   0x6   : > { %166 = sbr.rel (%p163_p2) target bundleno = 290 (0x122), region = 36  ;;  %824 = vmatprep.subr.bf16.mxu0 (!%p163_p2), %v902_v0  ;;  %876 = vmatprep.subr.bf16.mxu1 (!%p163_p2), %v902_v0  ;;  %v905_v3 = vld [vmem:[%s1147_s1 + $0x18] sm:$0xff] (!%p163_p2)   ;;  %v906_v6 = vld [vmem:[%s1147_s1 + $0x20] sm:$0xff] (!%p163_p2)   ;;  %v907_v7 = vld [vmem:[%s1147_s1 + $0x28] sm:$0xff] (!%p163_p2)  }
   0x7   : > { %825 = vmatpush3.bf16.msra.mxu0 (!%p163_p2), %v902_v0  ;;  %884 = vmatpush3.bf16.msra.mxu1 (!%p163_p2), %v902_v0  ;;  %v908_v8 = vld [vmem:[%s1147_s1 + $0x30] sm:$0xff] (!%p163_p2)   ;;  %v909_v9 = vld [vmem:[%s1147_s1 + $0x38] sm:$0xff] (!%p163_p2)   ;;  %v1023_v26 = vld [vmem:[%s1148_s2] ss:$0 sm:$0xff] (!%p163_p2) }
   0x8   : > { %826 = vmatprep.subr.bf16.mxu0 (!%p163_p2), %v903_v1  ;;  %877 = vmatprep.subr.bf16.mxu1 (!%p163_p2), %v903_v1  ;;  %v1028_v28 = vld [vmem:[%s1149_s3] ss:$0 sm:$0xff] (!%p163_p2) }
   0xb   : > { %827 = vmatpush3.bf16.msra.mxu0 (!%p163_p2), %v903_v1  ;;  %885 = vmatpush3.bf16.msra.mxu1 (!%p163_p2), %v903_v1 }
   0xc   : > { %828 = vmatprep.subr.bf16.mxu0 (!%p163_p2), %v904_v2  ;;  %878 = vmatprep.subr.bf16.mxu1 (!%p163_p2), %v904_v2 }
   0xd   : > { %s1152_s16 = smov (!%p188_p3, %s761_s16), 1 }
   0xe   : > { %s892_s23 = smul.u32 144, %s1152_s16 }
   0xf   : > { %829 = vmatpush3.bf16.msra.mxu0 %v904_v2  ;;  %886 = vmatpush3.bf16.msra.mxu1 %v904_v2  ;;  %s893_s11 = smul.u32 288, %s1152_s16 }
  0x10   : > { %s984_s26 = scalar_lea.vmem %s1146_s0, %s892_s23  ;;  %830 = vmatprep.subr.bf16.mxu0 %v905_v3  ;;  %879 = vmatprep.subr.bf16.mxu1 %v905_v3 }
  0x11   : > { %v910_v4 = vld [vmem:[%s984_s26] sm:$0xff]   ;;  %v912_v5 = vld [vmem:[%s984_s26 + $0x50] sm:$0xff]   ;;  %v911_v10 = vld [vmem:[%s984_s26 + $0x8] sm:$0xff]   ;;  %s1035_s19 = scalar_lea.vmem %s1150_s4, %s893_s11 }
  0x12   : > { %840 = vmatprep.mubr.bf16.mxu0 %v910_v4  ;;  %860 = vmatprep.mubr.bf16.mxu1 %v912_v5  ;;  %v913_v11 = vld [vmem:[%s984_s26 + $0x58] sm:$0xff]   ;;  %v914_v12 = vld [vmem:[%s984_s26 + $0x10] sm:$0xff]   ;;  %v916_v13 = vld [vmem:[%s984_s26 + $0x60] sm:$0xff]  }
  0x13   : > { %831 = vmatpush3.bf16.msra.mxu0 %v905_v3  ;;  %887 = vmatpush3.bf16.msra.mxu1 %v905_v3  ;;  %v915_v14 = vld [vmem:[%s984_s26 + $0x18] sm:$0xff]   ;;  %v917_v15 = vld [vmem:[%s984_s26 + $0x68] sm:$0xff]   ;;  %v918_v16 = vld [vmem:[%s984_s26 + $0x20] sm:$0xff]  }
  0x14   : > { %832 = vmatprep.subr.bf16.mxu0 %v906_v6  ;;  %880 = vmatprep.subr.bf16.mxu1 %v906_v6  ;;  %v920_v17 = vld [vmem:[%s984_s26 + $0x70] sm:$0xff]   ;;  %v919_v18 = vld [vmem:[%s984_s26 + $0x28] sm:$0xff]   ;;  %v921_v19 = vld [vmem:[%s984_s26 + $0x78] sm:$0xff]  }
  0x15   : > { %v922_v20 = vld [vmem:[%s984_s26 + $0x30] sm:$0xff]   ;;  %v924_v21 = vld [vmem:[%s984_s26 + $0x80] sm:$0xff]   ;;  %v923_v22 = vld [vmem:[%s984_s26 + $0x38] sm:$0xff]  }
  0x16   : > { %v925_v23 = vld [vmem:[%s984_s26 + $0x88] sm:$0xff]   ;;  %v926_v24 = vld [vmem:[%s984_s26 + $0x40] sm:$0xff]  }
  0x17   : > { %833 = vmatpush3.bf16.msra.mxu0 %v906_v6  ;;  %888 = vmatpush3.bf16.msra.mxu1 %v906_v6  ;;  %v927_v25 = vld [vmem:[%s984_s26 + $0x48] sm:$0xff]  }
  0x18   : > { %834 = vmatprep.subr.bf16.mxu0 %v907_v7  ;;  %881 = vmatprep.subr.bf16.mxu1 %v907_v7 }
  0x1b   : > { %835 = vmatpush3.bf16.msra.mxu0 %v907_v7  ;;  %889 = vmatpush3.bf16.msra.mxu1 %v907_v7 }
  0x1c   : > { %836 = vmatprep.subr.bf16.mxu0 %v908_v8  ;;  %882 = vmatprep.subr.bf16.mxu1 %v908_v8 }
  0x1f   : > { %837 = vmatpush3.bf16.msra.mxu0 %v908_v8  ;;  %890 = vmatpush3.bf16.msra.mxu1 %v908_v8 }
  0x20   : > { %838 = vmatprep.subr.bf16.mxu0 %v909_v9  ;;  %883 = vmatprep.subr.bf16.mxu1 %v909_v9 }
  0x23   : > { %839 = vmatpush3.bf16.msra.mxu0 %v909_v9  ;;  %891 = vmatpush3.bf16.msra.mxu1 %v909_v9 }
  0x26   : > { %841 = vmatmul.mubr.bf16.vlgmr.msra.gmra.mrb[0].mxu0 %v911_v10  ;;  %861 = vmatmul.mubr.bf16.vlgmr.msra.gmra.mrb[0].mxu1 %v913_v11 }
  0x27   : > { %844 = vmatprep.mubr.bf16.mxu0 %v914_v12  ;;  %864 = vmatprep.mubr.bf16.mxu1 %v916_v13 }
  0x2e   : > { %845 = vmatmul.mubr.bf16.gmra.mrb[4].mxu0 %v915_v14  ;;  %865 = vmatmul.mubr.bf16.gmra.mrb[4].mxu1 %v917_v15 }
  0x2f   : > { %848 = vmatprep.mubr.bf16.mxu0 %v918_v16  ;;  %868 = vmatprep.mubr.bf16.mxu1 %v920_v17 }
  0x36   : > { %849 = vmatmul.mubr.bf16.gmra.mrb[8].mxu0 %v919_v18  ;;  %869 = vmatmul.mubr.bf16.gmra.mrb[8].mxu1 %v921_v19 }
  0x37   : > { %852 = vmatprep.mubr.bf16.mxu0 %v922_v20  ;;  %872 = vmatprep.mubr.bf16.mxu1 %v924_v21 }
  0x3e   : > { %853 = vmatmul.mubr.bf16.gmra.mrb[12].mxu0 %v923_v22  ;;  %873 = vmatmul.mubr.bf16.gmra.mrb[12].mxu1 %v925_v23 }
  0x3f   : > { %856 = vmatprep.mubr.bf16.mxu0 %v926_v24 }
  0x46   : > { %857 = vmatmul.mubr.bf16.gmra.mrb[16].mxu0 %v927_v25 }
  0xf9   : > { %v842_v27 = vpop.f32.mrb[0].mxu0  ;;  %v862_v29 = vpop.f32.mrb[0].mxu1 }
  0xfa   : > { %v593_v30 = vmul.f32 %v842_v27, %v1023_v26  ;;  %v441_v31 = vpop.f32.mrb[1].mxu0  ;;  %v613_v32 = vmul.f32 %v862_v29, %v1023_v26  ;;  %v521_v33 = vpop.f32.mrb[1].mxu1 }
  0xfb   : > { %v591_v34 = vmul.f32 %v1023_v26, %v441_v31  ;;  %v843_v35 = vpop.f32.mrb[2].mxu0  ;;  %v611_v36 = vmul.f32 %v1023_v26, %v521_v33  ;;  %v863_v37 = vpop.f32.mrb[2].mxu1 }
  0xfc   : > { %v636_v38 = vadd.f32 %v1028_v28, %v593_v30  ;;  %v594_v39 = vmul.f32 %v843_v35, %v1023_v26  ;;  %v444_v40 = vpop.f32.mrb[3].mxu0  ;;  %v656_v41 = vadd.f32 %v1028_v28, %v613_v32  ;;  %v614_v42 = vmul.f32 %v863_v37, %v1023_v26  ;;  %v524_v43 = vpop.f32.mrb[3].mxu1 }
  0xfd   : > { %v634_v44 = vadd.f32 %v1028_v28, %v591_v34  ;;  %v592_v45 = vmul.f32 %v1023_v26, %v444_v40  ;;  %v654_v46 = vadd.f32 %v1028_v28, %v611_v36  ;;  %v612_v47 = vmul.f32 %v1023_v26, %v524_v43 }
  0xfe   : > { %672 = vst [vmem:[%s1035_s19 + $0x10] sm:$0xff] %v636_v38  ;;  %v637_v48 = vadd.f32 %v1028_v28, %v594_v39  ;;  %692 = vst [vmem:[%s1035_s19 + $0xb0] sm:$0xff] %v656_v41  ;;  %v657_v49 = vadd.f32 %v1028_v28, %v614_v42 }
  0xff   : > { %670 = vst [vmem:[%s1035_s19] sm:$0xff] %v634_v44  ;;  %v635_v50 = vadd.f32 %v1028_v28, %v592_v45  ;;  %690 = vst [vmem:[%s1035_s19 + $0xa0] sm:$0xff] %v654_v46  ;;  %v655_v51 = vadd.f32 %v1028_v28, %v612_v47 }
 0x100   : > { %673 = vst [vmem:[%s1035_s19 + $0x18] sm:$0xff] %v637_v48  ;;  %693 = vst [vmem:[%s1035_s19 + $0xb8] sm:$0xff] %v657_v49 }
 0x101   : > { %671 = vst [vmem:[%s1035_s19 + $0x8] sm:$0xff] %v635_v50  ;;  %v846_v52 = vpop.f32.mrb[4].mxu0  ;;  %691 = vst [vmem:[%s1035_s19 + $0xa8] sm:$0xff] %v655_v51  ;;  %v866_v53 = vpop.f32.mrb[4].mxu1 }
 0x102   : > { %v597_v54 = vmul.f32 %v846_v52, %v1023_v26  ;;  %v457_v55 = vpop.f32.mrb[5].mxu0  ;;  %v617_v56 = vmul.f32 %v866_v53, %v1023_v26  ;;  %v537_v57 = vpop.f32.mrb[5].mxu1 }
 0x103   : > { %v595_v58 = vmul.f32 %v1023_v26, %v457_v55  ;;  %v847_v59 = vpop.f32.mrb[6].mxu0  ;;  %v615_v60 = vmul.f32 %v1023_v26, %v537_v57  ;;  %v867_v61 = vpop.f32.mrb[6].mxu1 }
 0x104   : > { %v640_v62 = vadd.f32 %v1028_v28, %v597_v54  ;;  %v598_v63 = vmul.f32 %v847_v59, %v1023_v26  ;;  %v460_v0 = vpop.f32.mrb[7].mxu0  ;;  %v660_v1 = vadd.f32 %v1028_v28, %v617_v56  ;;  %v618_v2 = vmul.f32 %v867_v61, %v1023_v26  ;;  %v540_v3 = vpop.f32.mrb[7].mxu1 }
 0x105   : > { %v638_v4 = vadd.f32 %v1028_v28, %v595_v58  ;;  %v596_v5 = vmul.f32 %v1023_v26, %v460_v0  ;;  %v658_v6 = vadd.f32 %v1028_v28, %v615_v60  ;;  %v616_v7 = vmul.f32 %v1023_v26, %v540_v3 }
 0x106   : > { %676 = vst [vmem:[%s1035_s19 + $0x30] sm:$0xff] %v640_v62  ;;  %v641_v8 = vadd.f32 %v1028_v28, %v598_v63  ;;  %696 = vst [vmem:[%s1035_s19 + $0xd0] sm:$0xff] %v660_v1  ;;  %v661_v9 = vadd.f32 %v1028_v28, %v618_v2 }
 0x107   : > { %674 = vst [vmem:[%s1035_s19 + $0x20] sm:$0xff] %v638_v4  ;;  %v639_v10 = vadd.f32 %v1028_v28, %v596_v5  ;;  %694 = vst [vmem:[%s1035_s19 + $0xc0] sm:$0xff] %v658_v6  ;;  %v659_v11 = vadd.f32 %v1028_v28, %v616_v7 }
 0x108   : > { %677 = vst [vmem:[%s1035_s19 + $0x38] sm:$0xff] %v641_v8  ;;  %697 = vst [vmem:[%s1035_s19 + $0xd8] sm:$0xff] %v661_v9 }
 0x109   : > { %675 = vst [vmem:[%s1035_s19 + $0x28] sm:$0xff] %v639_v10  ;;  %v850_v12 = vpop.f32.mrb[8].mxu0  ;;  %695 = vst [vmem:[%s1035_s19 + $0xc8] sm:$0xff] %v659_v11  ;;  %v870_v13 = vpop.f32.mrb[8].mxu1 }
 0x10a   : > { %v601_v14 = vmul.f32 %v850_v12, %v1023_v26  ;;  %v473_v15 = vpop.f32.mrb[9].mxu0  ;;  %v621_v16 = vmul.f32 %v870_v13, %v1023_v26  ;;  %v553_v17 = vpop.f32.mrb[9].mxu1 }
 0x10b   : > { %v599_v18 = vmul.f32 %v1023_v26, %v473_v15  ;;  %v851_v19 = vpop.f32.mrb[10].mxu0  ;;  %v619_v20 = vmul.f32 %v1023_v26, %v553_v17  ;;  %v871_v21 = vpop.f32.mrb[10].mxu1 }
 0x10c   : > { %v644_v22 = vadd.f32 %v1028_v28, %v601_v14  ;;  %v602_v23 = vmul.f32 %v851_v19, %v1023_v26  ;;  %v476_v24 = vpop.f32.mrb[11].mxu0  ;;  %v664_v25 = vadd.f32 %v1028_v28, %v621_v16  ;;  %v622_v27 = vmul.f32 %v871_v21, %v1023_v26  ;;  %v556_v29 = vpop.f32.mrb[11].mxu1 }
 0x10d   : > { %v642_v30 = vadd.f32 %v1028_v28, %v599_v18  ;;  %v600_v31 = vmul.f32 %v1023_v26, %v476_v24  ;;  %v662_v32 = vadd.f32 %v1028_v28, %v619_v20  ;;  %v620_v33 = vmul.f32 %v1023_v26, %v556_v29 }
 0x10e   : > { %680 = vst [vmem:[%s1035_s19 + $0x50] sm:$0xff] %v644_v22  ;;  %v645_v34 = vadd.f32 %v1028_v28, %v602_v23  ;;  %700 = vst [vmem:[%s1035_s19 + $0xf0] sm:$0xff] %v664_v25  ;;  %v665_v35 = vadd.f32 %v1028_v28, %v622_v27 }
 0x10f   : > { %678 = vst [vmem:[%s1035_s19 + $0x40] sm:$0xff] %v642_v30  ;;  %v643_v36 = vadd.f32 %v1028_v28, %v600_v31  ;;  %698 = vst [vmem:[%s1035_s19 + $0xe0] sm:$0xff] %v662_v32  ;;  %v663_v37 = vadd.f32 %v1028_v28, %v620_v33 }
 0x110   : > { %681 = vst [vmem:[%s1035_s19 + $0x58] sm:$0xff] %v645_v34  ;;  %701 = vst [vmem:[%s1035_s19 + $0xf8] sm:$0xff] %v665_v35 }
 0x111   : > { %679 = vst [vmem:[%s1035_s19 + $0x48] sm:$0xff] %v643_v36  ;;  %v854_v38 = vpop.f32.mrb[12].mxu0  ;;  %699 = vst [vmem:[%s1035_s19 + $0xe8] sm:$0xff] %v663_v37  ;;  %v874_v39 = vpop.f32.mrb[12].mxu1 }
 0x112   : > { %v605_v40 = vmul.f32 %v854_v38, %v1023_v26  ;;  %v489_v41 = vpop.f32.mrb[13].mxu0  ;;  %v625_v42 = vmul.f32 %v874_v39, %v1023_v26  ;;  %v569_v43 = vpop.f32.mrb[13].mxu1 }
 0x113   : > { %v603_v44 = vmul.f32 %v1023_v26, %v489_v41  ;;  %v855_v45 = vpop.f32.mrb[14].mxu0  ;;  %v623_v46 = vmul.f32 %v1023_v26, %v569_v43  ;;  %v875_v47 = vpop.f32.mrb[14].mxu1 }
 0x114   : > { %v648_v48 = vadd.f32 %v1028_v28, %v605_v40  ;;  %v606_v49 = vmul.f32 %v855_v45, %v1023_v26  ;;  %v492_v50 = vpop.f32.mrb[15].mxu0  ;;  %v668_v51 = vadd.f32 %v1028_v28, %v625_v42  ;;  %v626_v52 = vmul.f32 %v875_v47, %v1023_v26  ;;  %v572_v53 = vpop.f32.mrb[15].mxu1 }
 0x115   : > { %v646_v54 = vadd.f32 %v1028_v28, %v603_v44  ;;  %v604_v55 = vmul.f32 %v1023_v26, %v492_v50  ;;  %v666_v56 = vadd.f32 %v1028_v28, %v623_v46  ;;  %v624_v57 = vmul.f32 %v1023_v26, %v572_v53 }
 0x116   : > { %684 = vst [vmem:[%s1035_s19 + $0x70] sm:$0xff] %v648_v48  ;;  %v649_v58 = vadd.f32 %v1028_v28, %v606_v49  ;;  %704 = vst [vmem:[%s1035_s19 + $0x110] sm:$0xff] %v668_v51  ;;  %v669_v59 = vadd.f32 %v1028_v28, %v626_v52 }
 0x117   : > { %682 = vst [vmem:[%s1035_s19 + $0x60] sm:$0xff] %v646_v54  ;;  %v647_v60 = vadd.f32 %v1028_v28, %v604_v55  ;;  %702 = vst [vmem:[%s1035_s19 + $0x100] sm:$0xff] %v666_v56  ;;  %v667_v61 = vadd.f32 %v1028_v28, %v624_v57 }
 0x118   : > { %685 = vst [vmem:[%s1035_s19 + $0x78] sm:$0xff] %v649_v58  ;;  %705 = vst [vmem:[%s1035_s19 + $0x118] sm:$0xff] %v669_v59 }
 0x119   : > { %683 = vst [vmem:[%s1035_s19 + $0x68] sm:$0xff] %v647_v60  ;;  %v858_v62 = vpop.f32.mrb[16].mxu0  ;;  %703 = vst [vmem:[%s1035_s19 + $0x108] sm:$0xff] %v667_v61 }
 0x11a   : > { %v609_v63 = vmul.f32 %v858_v62, %v1023_v26  ;;  %v505_v0 = vpop.f32.mrb[17].mxu0 }
 0x11b   : > { %v607_v1 = vmul.f32 %v1023_v26, %v505_v0  ;;  %v859_v2 = vpop.f32.mrb[18].mxu0 }
 0x11c   : > { %v652_v3 = vadd.f32 %v1028_v28, %v609_v63  ;;  %v610_v4 = vmul.f32 %v859_v2, %v1023_v26  ;;  %v508_v5 = vpop.f32.mrb[19].mxu0 }
 0x11d   : > { %v650_v6 = vadd.f32 %v1028_v28, %v607_v1  ;;  %v608_v7 = vmul.f32 %v1023_v26, %v508_v5 }
 0x11e   : > { %688 = vst [vmem:[%s1035_s19 + $0x90] sm:$0xff] %v652_v3  ;;  %v653_v8 = vadd.f32 %v1028_v28, %v610_v4 }
 0x11f   : > { %686 = vst [vmem:[%s1035_s19 + $0x80] sm:$0xff] %v650_v6  ;;  %v651_v9 = vadd.f32 %v1028_v28, %v608_v7 }
 0x120   : > { %689 = vst [vmem:[%s1035_s19 + $0x98] sm:$0xff] %v653_v8 }
 0x121   : > { %687 = vst [vmem:[%s1035_s19 + $0x88] sm:$0xff] %v651_v9 }
 0x122 PF: > { %s14_s15 = sadd.s32 1, %s934_s15  }
 0x123   : > { %p11_p4 = scmp.ge.s32.totalorder %s14_s15, 4  }
 0x125   :  { %13 = sbr.rel (!%p11_p4) target bundleno = 1 (0x1), region = 66 }

// kernel: forward.6
= control target key start
LH: loop header
LB: loop body
LE: loop exit
PB: predicated region body
PF: predicated region fallthrough
CT: control target
= control target key end

     0   :  { %s5666_s15 = smov 0   ;;  %s7136_s0 = inlined_call_operand.vmem [shape: bf16[2,342,128], index: 0, kind: input, shape index: {}]   ;;  %s7137_s1 = inlined_call_operand.vmem [shape: bf16[9,128,128], index: 1, kind: input, shape index: {}]   ;;  %s7138_s2 = inlined_call_operand.vmem [shape: f32[1,128], index: 2, kind: input, shape index: {}]   ;;  %s7139_s3 = inlined_call_operand.vmem [shape: f32[1,128], index: 3, kind: input, shape index: {}]   ;;  %s7140_s4 = inlined_call_operand.vmem [shape: f32[2,288,128], index: 4, kind: output, shape index: {}]  }
   0x1 LB: > { %s4448_s16 = sadd.s32 4294967295, %s5639_s15   ;;  %p4452_p0 = scmp.ge.s32.totalorder %s5639_s15, 1  ;;  %s5639_s15 = sphi %s5666_s15, %s14_s15  }
   0x2   : > { %p162_p1 = scmp.lt.s32.totalorder %s5639_s15, 3 }
   0x4   : > { %p163_p2 = pnand %p4452_p0, %p162_p1 }
   0x6   : > { %166 = sbr.rel (%p163_p2) target bundleno = 667 (0x29b), region = 36 }
   0xd   : > { %v5517_v0 = vld [vmem:[%s7137_s1] sm:$0xff]   ;;  %p188_p3 = scmp.lt.s32.totalorder %s4448_s16, 1  ;;  %v5518_v1 = vld [vmem:[%s7137_s1 + $0x8] sm:$0xff]   ;;  %v5519_v2 = vld [vmem:[%s7137_s1 + $0x10] sm:$0xff]   ;;  %vm941_vm0 = vcmask 1046528   ;;  %vm1391_vm1 = vcmask 1045504  }
   0xe   : > { %4951 = vmatprep.subr.bf16.mxu0 %v5517_v0  ;;  %5491 = vmatprep.subr.bf16.mxu1 %v5517_v0  ;;  %v5520_v3 = vld [vmem:[%s7137_s1 + $0x18] sm:$0xff]   ;;  %v5521_v6 = vld [vmem:[%s7137_s1 + $0x20] sm:$0xff]   ;;  %v5522_v7 = vld [vmem:[%s7137_s1 + $0x28] sm:$0xff]   ;;  %vm2290_vm2 = vcmask 1044480   ;;  %vm2740_vm3 = vcmask 1043456   ;;  %vm3639_vm4 = vcmask 1042432  }
   0xf   : > { %s7154_s16 = smov (!%p188_p3, %s4448_s16), 1  ;;  %4952 = vmatpush3.bf16.msra.mxu0 %v5517_v0  ;;  %5499 = vmatpush3.bf16.msra.mxu1 %v5517_v0  ;;  %v5523_v8 = vld [vmem:[%s7137_s1 + $0x30] sm:$0xff]   ;;  %v5524_v9 = vld [vmem:[%s7137_s1 + $0x38] sm:$0xff]   ;;  %v5529_v10 = vld [vmem:[%s7137_s1 + $0x80] sm:$0xff]   ;;  %vm4089_vm5 = vcmask 1041408  }
  0x10   : > { %4953 = vmatprep.subr.bf16.mxu0 %v5518_v1  ;;  %5492 = vmatprep.subr.bf16.mxu1 %v5518_v1  ;;  %s5507_s23 = smul.u32 172, %s7154_s16  ;;  %v5530_v12 = vld [vmem:[%s7137_s1 + $0x40] sm:$0xff]   ;;  %v5531_v14 = vld [vmem:[%s7137_s1 + $0x88] sm:$0xff]   ;;  %v5537_v19 = vld [vmem:[%s7137_s1 + $0x90] sm:$0xff]  }
  0x11   : > { %v5536_v17 = vld [vmem:[%s7137_s1 + $0x48] sm:$0xff]   ;;  %v5542_v23 = vld [vmem:[%s7137_s1 + $0x50] sm:$0xff]   ;;  %v5543_v24 = vld [vmem:[%s7137_s1 + $0x98] sm:$0xff]   ;;  %s5508_s28 = smul.u32 288, %s7154_s16 }
  0x12   : > { %s5689_s26 = scalar_lea.vmem %s7136_s0, %s5507_s23  ;;  %v5544_v25 = vld [vmem:[%s7137_s1 + $0x58] sm:$0xff]   ;;  %v5550_v27 = vld [vmem:[%s7137_s1 + $0xa0] sm:$0xff]   ;;  %v5552_v32 = vld [vmem:[%s7137_s1 + $0xa8] sm:$0xff]  }
  0x13   : > { %4954 = vmatpush3.bf16.msra.mxu0 %v5518_v1  ;;  %5500 = vmatpush3.bf16.msra.mxu1 %v5518_v1  ;;  %v5695_v4 = vld [vmem:[%s5689_s26] sm:$0xff]   ;;  %v5718_v11 = vld [vmem:[%s5689_s26 + $0x8] sm:$0xff]   ;;  %v5730_v15 = vld [vmem:[%s5689_s26 + $0x10] sm:$0xff]   ;;  %s6848_s6 = scalar_lea.vmem %s7140_s4, %s5508_s28 }
  0x14   : > { %4955 = vmatprep.subr.bf16.mxu0 %v5519_v2  ;;  %5493 = vmatprep.subr.bf16.mxu1 %v5519_v2  ;;  %v5698_v5 = vld [vmem:[%s5689_s26 + $0x60] sm:$0xff]   ;;  %v5724_v13 = vld [vmem:[%s5689_s26 + $0x68] sm:$0xff]   ;;  %v5733_v16 = vld [vmem:[%s5689_s26 + $0x70] sm:$0xff]  }
  0x15   : > { %4967 = vmatprep.mubr.bf16.mxu0 %v5695_v4  ;;  %4991 = vmatprep.mubr.bf16.mxu1 %v5698_v5  ;;  %v5743_v18 = vld [vmem:[%s5689_s26 + $0x18] sm:$0xff]   ;;  %v5752_v21 = vld [vmem:[%s5689_s26 + $0x20] sm:$0xff]   ;;  %v5771_v26 = vld [vmem:[%s5689_s26 + $0x28] sm:$0xff]  }
  0x16   : > { %v5749_v20 = vld [vmem:[%s5689_s26 + $0x78] sm:$0xff]   ;;  %v5755_v22 = vld [vmem:[%s5689_s26 + $0x80] sm:$0xff]   ;;  %v5777_v28 = vld [vmem:[%s5689_s26 + $0x88] sm:$0xff]  }
  0x17   : > { %4956 = vmatpush3.bf16.msra.mxu0 %v5519_v2  ;;  %5501 = vmatpush3.bf16.msra.mxu1 %v5519_v2  ;;  %v5780_v29 = vld [vmem:[%s5689_s26 + $0x30] sm:$0xff]   ;;  %v5549_v31 = vld [vmem:[%s7137_s1 + $0x60] sm:$0xff]   ;;  %v5551_v33 = vld [vmem:[%s7137_s1 + $0x68] sm:$0xff]  }
  0x18   : > { %4957 = vmatprep.subr.bf16.mxu0 %v5520_v3  ;;  %5494 = vmatprep.subr.bf16.mxu1 %v5520_v3  ;;  %v5783_v30 = vld [vmem:[%s5689_s26 + $0x90] sm:$0xff]   ;;  %v5799_v34 = vld [vmem:[%s5689_s26 + $0x38] sm:$0xff]   ;;  %v5808_v37 = vld [vmem:[%s5689_s26 + $0x40] sm:$0xff]  }
  0x19   : > { %v5802_v35 = vld [vmem:[%s5689_s26 + $0x98] sm:$0xff]   ;;  %v5559_v36 = vld [vmem:[%s7137_s1 + $0xb0] sm:$0xff]   ;;  %v5811_v38 = vld [vmem:[%s5689_s26 + $0xa0] sm:$0xff]  }
  0x1a   : > { %v5557_v39 = vld [vmem:[%s7137_s1 + $0x70] sm:$0xff]   ;;  %v5562_v40 = vld [vmem:[%s7137_s1 + $0xb8] sm:$0xff]   ;;  %v5827_v42 = vld [vmem:[%s5689_s26 + $0xa8] ss:$0 sps:$4 sm:$0x77]  }
  0x1b   : > { %4958 = vmatpush3.bf16.msra.mxu0 %v5520_v3  ;;  %5502 = vmatpush3.bf16.msra.mxu1 %v5520_v3  ;;  %v5558_v41 = vld [vmem:[%s7137_s1 + $0x78] sm:$0xff]   ;;  %v5564_v43 = vld [vmem:[%s7137_s1 + $0x100] sm:$0xff]   ;;  %v5833_v44 = vld [vmem:[%s5689_s26 + $0x48] sm:$0xff]  }
  0x1c   : > { %4959 = vmatprep.subr.bf16.mxu0 %v5521_v6  ;;  %5495 = vmatprep.subr.bf16.mxu1 %v5521_v6  ;;  %v5836_v45 = vld [vmem:[%s5689_s26 + $0x50] sm:$0xff]   ;;  %v5563_v46 = vld [vmem:[%s7137_s1 + $0xc0] sm:$0xff]   ;;  %v5846_v47 = vld [vmem:[%s5689_s26 + $0x58] sm:$0xff]  }
  0x1d   : > { %v5565_v48 = vld [vmem:[%s7137_s1 + $0xc8] sm:$0xff]   ;;  %v5567_v49 = vld [vmem:[%s7137_s1 + $0xd0] sm:$0xff]   ;;  %v5569_v52 = vld [vmem:[%s7137_s1 + $0xd8] sm:$0xff]  }
  0x1e   : > { %v5566_v50 = vld [vmem:[%s7137_s1 + $0x108] sm:$0xff]   ;;  %v5568_v51 = vld [vmem:[%s7137_s1 + $0x110] sm:$0xff]   ;;  %v5571_v53 = vld [vmem:[%s7137_s1 + $0xe0] sm:$0xff]  }
  0x1f   : > { %4960 = vmatpush3.bf16.msra.mxu0 %v5521_v6  ;;  %5503 = vmatpush3.bf16.msra.mxu1 %v5521_v6  ;;  %v5570_v54 = vld [vmem:[%s7137_s1 + $0x118] sm:$0xff]   ;;  %v5573_v55 = vld [vmem:[%s7137_s1 + $0xe8] sm:$0xff]   ;;  %v5572_v56 = vld [vmem:[%s7137_s1 + $0x120] sm:$0xff]  }
  0x20   : > { %4961 = vmatprep.subr.bf16.mxu0 %v5522_v7  ;;  %5496 = vmatprep.subr.bf16.mxu1 %v5522_v7  ;;  %v5575_v57 = vld [vmem:[%s7137_s1 + $0xf0] sm:$0xff]   ;;  %v5574_v58 = vld [vmem:[%s7137_s1 + $0x128] sm:$0xff]   ;;  %v5577_v59 = vld [vmem:[%s7137_s1 + $0xf8] sm:$0xff]  }
  0x21   : > { %v5576_v60 = vld [vmem:[%s7137_s1 + $0x130] sm:$0xff]   ;;  %v5579_v61 = vld [vmem:[%s7137_s1 + $0x140] sm:$0xff]   ;;  %v5578_v62 = vld [vmem:[%s7137_s1 + $0x138] sm:$0xff]  }
  0x22   : > { %v5580_v63 = vld [vmem:[%s7137_s1 + $0x180] sm:$0xff]   ;;  %v5581_v0 = vld [vmem:[%s7137_s1 + $0x148] sm:$0xff]   ;;  %v5583_v1 = vld [vmem:[%s7137_s1 + $0x150] sm:$0xff]  }
  0x23   : > { %4962 = vmatpush3.bf16.msra.mxu0 %v5522_v7  ;;  %5504 = vmatpush3.bf16.msra.mxu1 %v5522_v7  ;;  %v5582_v2 = vld [vmem:[%s7137_s1 + $0x188] sm:$0xff]   ;;  %v5585_v3 = vld [vmem:[%s7137_s1 + $0x158] sm:$0xff]   ;;  %v5584_v6 = vld [vmem:[%s7137_s1 + $0x190] sm:$0xff]  }
  0x24   : > { %4963 = vmatprep.subr.bf16.mxu0 %v5523_v8  ;;  %5497 = vmatprep.subr.bf16.mxu1 %v5523_v8  ;;  %v5587_v7 = vld [vmem:[%s7137_s1 + $0x160] sm:$0xff]  }
  0x27   : > { %4964 = vmatpush3.bf16.msra.mxu0 %v5523_v8  ;;  %5505 = vmatpush3.bf16.msra.mxu1 %v5523_v8  ;;  %v5586_v8 = vld [vmem:[%s7137_s1 + $0x198] sm:$0xff]  }
  0x28   : > { %4965 = vmatprep.subr.bf16.mxu0 %v5524_v9  ;;  %5498 = vmatprep.subr.bf16.mxu1 %v5524_v9 }
  0x2b   : > { %4966 = vmatpush3.bf16.msra.mxu0 %v5524_v9  ;;  %5506 = vmatpush3.bf16.msra.mxu1 %v5524_v9  ;;  %v5589_v9 = vld [vmem:[%s7137_s1 + $0x168] sm:$0xff]  }
  0x2c   : > { %5071 = vmatprep.subr.bf16.mxu0 %v5529_v10  ;;  %5011 = vmatprep.subr.bf16.mxu1 %v5530_v12 }
  0x2e   : > { %4968 = vmatmul.mubr.bf16.vlgmr.msra.gmra.mrb[0].mxu0 %v5718_v11  ;;  %4992 = vmatmul.mubr.bf16.vlgmr.msra.gmra.mrb[0].mxu1 %v5724_v13 }
  0x2f   : > { %5072 = vmatpush3.bf16.msra.mxu0 %v5529_v10  ;;  %4971 = vmatprep.mubr.bf16.mxu0 %v5730_v15  ;;  %v5588_v10 = vld [vmem:[%s7137_s1 + $0x1a0] sm:$0xff]  }
  0x30   : > { %5073 = vmatprep.subr.bf16.mxu0 %v5531_v14  ;;  %4995 = vmatprep.mubr.bf16.mxu1 %v5733_v16 }
  0x31   : > { %5012 = vmatpush3.bf16.msra.mxu1 %v5530_v12  ;;  %v5591_v12 = vld [vmem:[%s7137_s1 + $0x170] sm:$0xff]  }
  0x32   : > { %5013 = vmatprep.subr.bf16.mxu1 %v5536_v17 }
  0x33   : > { %5074 = vmatpush3.bf16.msra.mxu0 %v5531_v14  ;;  %v5590_v14 = vld [vmem:[%s7137_s1 + $0x1a8] sm:$0xff]  }
  0x34   : > { %5075 = vmatprep.subr.bf16.mxu0 %v5537_v19 }
  0x35   : > { %5014 = vmatpush3.bf16.msra.mxu1 %v5536_v17  ;;  %v5593_v17 = vld [vmem:[%s7137_s1 + $0x178] sm:$0xff]  }
  0x36   : > { %4972 = vmatmul.mubr.bf16.gmra.mrb[4].mxu0 %v5743_v18  ;;  %4996 = vmatmul.mubr.bf16.gmra.mrb[4].mxu1 %v5749_v20 }
  0x37   : > { %5076 = vmatpush3.bf16.msra.mxu0 %v5537_v19  ;;  %4975 = vmatprep.mubr.bf16.mxu0 %v5752_v21  ;;  %v5592_v19 = vld [vmem:[%s7137_s1 + $0x1b0] sm:$0xff]  }
  0x38   : > { %4999 = vmatprep.mubr.bf16.mxu1 %v5755_v22  ;;  %5015 = vmatprep.subr.bf16.mxu1 %v5542_v23 }
  0x39   : > { %5016 = vmatpush3.bf16.msra.mxu1 %v5542_v23  ;;  %5077 = vmatprep.subr.bf16.mxu0 %v5543_v24  ;;  %v5595_v23 = vld [vmem:[%s7137_s1 + $0x1c0] sm:$0xff]  }
  0x3a   : > { %5017 = vmatprep.subr.bf16.mxu1 %v5544_v25 }
  0x3b   : > { %5078 = vmatpush3.bf16.msra.mxu0 %v5543_v24  ;;  %v5594_v24 = vld [vmem:[%s7137_s1 + $0x1b8] sm:$0xff]  }
  0x3c   : > { %5079 = vmatprep.subr.bf16.mxu0 %v5550_v27 }
  0x3d   : > { %5018 = vmatpush3.bf16.msra.mxu1 %v5544_v25  ;;  %v5596_v25 = vld [vmem:[%s7137_s1 + $0x200] sm:$0xff]  }
  0x3e   : > { %4976 = vmatmul.mubr.bf16.gmra.mrb[8].mxu0 %v5771_v26  ;;  %5000 = vmatmul.mubr.bf16.gmra.mrb[8].mxu1 %v5777_v28 }
  0x3f   : > { %4979 = vmatprep.mubr.bf16.mxu0 %v5780_v29  ;;  %5003 = vmatprep.mubr.bf16.mxu1 %v5783_v30 }
  0x40   : > { %5019 = vmatprep.subr.bf16.mxu1 %v5549_v31  ;;  %5080 = vmatpush3.bf16.msra.mxu0 %v5550_v27 }
  0x41   : > { %5020 = vmatpush3.bf16.msra.mxu1 %v5549_v31  ;;  %5081 = vmatprep.subr.bf16.mxu0 %v5552_v32  ;;  %v5597_v31 = vld [vmem:[%s7137_s1 + $0x1c8] sm:$0xff]  }
  0x42   : > { %5021 = vmatprep.subr.bf16.mxu1 %v5551_v33 }
  0x44   : > { %5082 = vmatpush3.bf16.msra.mxu0 %v5552_v32 }
  0x45   : > { %5022 = vmatpush3.bf16.msra.mxu1 %v5551_v33  ;;  %5083 = vmatprep.subr.bf16.mxu0 %v5559_v36 }
  0x46   : > { %4980 = vmatmul.mubr.bf16.gmra.mrb[12].mxu0 %v5799_v34  ;;  %5004 = vmatmul.mubr.bf16.gmra.mrb[12].mxu1 %v5802_v35 }
  0x47   : > { %4983 = vmatprep.mubr.bf16.mxu0 %v5808_v37  ;;  %5007 = vmatprep.mubr.bf16.mxu1 %v5811_v38 }
  0x48   : > { %5023 = vmatprep.subr.bf16.mxu1 %v5557_v39  ;;  %5084 = vmatpush3.bf16.msra.mxu0 %v5559_v36 }
  0x49   : > { %5024 = vmatpush3.bf16.msra.mxu1 %v5557_v39  ;;  %5085 = vmatprep.subr.bf16.mxu0 %v5562_v40 }
  0x4a   : > { %5025 = vmatprep.subr.bf16.mxu1 %v5558_v41 }
  0x4c   : > { %5086 = vmatpush3.bf16.msra.mxu0 %v5562_v40 }
  0x4d   : > { %5026 = vmatpush3.bf16.msra.mxu1 %v5558_v41  ;;  %5191 = vmatprep.subr.bf16.mxu0 %v5564_v43 }
  0x4e   : > { %4984 = vmatmul.mubr.bf16.gmra.mrb[16].mxu0 %v5833_v44  ;;  %5008 = vmatmul.mubr.bf16.gmra.mrb[16].mxu1 %v5827_v42 }
  0x4f   : > { %4987 = vmatprep.mubr.bf16.mxu0 %v5836_v45  ;;  %5027 = vmatprep.mubr.bf16.mxu1 %v5695_v4 }
  0x50   : > { %5131 = vmatprep.subr.bf16.mxu1 %v5563_v46 }
  0x56   : > { %4988 = vmatmul.mubr.bf16.gmra.mrb[20].mxu0 %v5846_v47  ;;  %5028 = vmatmul.mubr.bf16.vlgmr.msra.gmra.mrb[20].mxu1 %v5718_v11 }
  0x57   : > { %5031 = vmatprep.mubr.bf16.mxu1 %v5730_v15  ;;  %5087 = vmatprep.mubr.bf16.mxu0 %v5695_v4 }
  0x58   : > { %5132 = vmatpush3.bf16.msra.mxu1 %v5563_v46  ;;  %v5600_v46 = vld [vmem:[%s7137_s1 + $0x210] sm:$0xff]  }
  0x59   : > { %5133 = vmatprep.subr.bf16.mxu1 %v5565_v48 }
  0x5c   : > { %5134 = vmatpush3.bf16.msra.mxu1 %v5565_v48 }
  0x5d   : > { %5135 = vmatprep.subr.bf16.mxu1 %v5567_v49 }
  0x5e   : > { %5032 = vmatmul.mubr.bf16.gmra.mrb[24].mxu1 %v5743_v18  ;;  %5088 = vmatmul.mubr.bf16.vlgmr.msra.gmra.mrb[24].mxu0 %v5718_v11 }
  0x5f   : > { %5192 = vmatpush3.bf16.msra.mxu0 %v5564_v43  ;;  %5035 = vmatprep.mubr.bf16.mxu1 %v5752_v21  ;;  %v5601_v43 = vld [vmem:[%s7137_s1 + $0x1d8] sm:$0xff]  }
  0x60   : > { %5091 = vmatprep.mubr.bf16.mxu0 %v5730_v15  ;;  %5193 = vmatprep.subr.bf16.mxu0 %v5566_v50 }
  0x61   : > { %5136 = vmatpush3.bf16.msra.mxu1 %v5567_v49 }
  0x62   : > { %5137 = vmatprep.subr.bf16.mxu1 %v5569_v52 }
  0x63   : > { %5194 = vmatpush3.bf16.msra.mxu0 %v5566_v50 }
  0x64   : > { %5195 = vmatprep.subr.bf16.mxu0 %v5568_v51 }
  0x65   : > { %5138 = vmatpush3.bf16.msra.mxu1 %v5569_v52 }
  0x66   : > { %5036 = vmatmul.mubr.bf16.gmra.mrb[28].mxu1 %v5771_v26  ;;  %5092 = vmatmul.mubr.bf16.gmra.mrb[28].mxu0 %v5743_v18 }
  0x67   : > { %5039 = vmatprep.mubr.bf16.mxu1 %v5780_v29  ;;  %5095 = vmatprep.mubr.bf16.mxu0 %v5752_v21 }
  0x68   : > { %5196 = vmatpush3.bf16.msra.mxu0 %v5568_v51  ;;  %5139 = vmatprep.subr.bf16.mxu1 %v5571_v53 }
  0x69   : > { %5197 = vmatprep.subr.bf16.mxu0 %v5570_v54  ;;  %5140 = vmatpush3.bf16.msra.mxu1 %v5571_v53 }
  0x6a   : > { %5141 = vmatprep.subr.bf16.mxu1 %v5573_v55 }
  0x6c   : > { %5198 = vmatpush3.bf16.msra.mxu0 %v5570_v54  ;;  %v5603_v54 = vld [vmem:[%s7137_s1 + $0x1e0] sm:$0xff]  }
  0x6d   : > { %5199 = vmatprep.subr.bf16.mxu0 %v5572_v56  ;;  %5142 = vmatpush3.bf16.msra.mxu1 %v5573_v55  ;;  %v5602_v55 = vld [vmem:[%s7137_s1 + $0x218] sm:$0xff]  }
  0x6e   : > { %5040 = vmatmul.mubr.bf16.gmra.mrb[32].mxu1 %v5799_v34  ;;  %5096 = vmatmul.mubr.bf16.gmra.mrb[32].mxu0 %v5771_v26 }
  0x6f   : > { %5043 = vmatprep.mubr.bf16.mxu1 %v5808_v37  ;;  %5099 = vmatprep.mubr.bf16.mxu0 %v5780_v29 }
  0x70   : > { %5200 = vmatpush3.bf16.msra.mxu0 %v5572_v56  ;;  %5143 = vmatprep.subr.bf16.mxu1 %v5575_v57  ;;  %v5605_v56 = vld [vmem:[%s7137_s1 + $0x1e8] sm:$0xff]  }
  0x71   : > { %5201 = vmatprep.subr.bf16.mxu0 %v5574_v58  ;;  %5144 = vmatpush3.bf16.msra.mxu1 %v5575_v57 }
  0x72   : > { %5145 = vmatprep.subr.bf16.mxu1 %v5577_v59 }
  0x74   : > { %5202 = vmatpush3.bf16.msra.mxu0 %v5574_v58 }
  0x75   : > { %5203 = vmatprep.subr.bf16.mxu0 %v5576_v60  ;;  %5146 = vmatpush3.bf16.msra.mxu1 %v5577_v59  ;;  %v5604_v59 = vld [vmem:[%s7137_s1 + $0x220] sm:$0xff]  }
  0x76   : > { %5044 = vmatmul.mubr.bf16.gmra.mrb[36].mxu1 %v5833_v44  ;;  %5100 = vmatmul.mubr.bf16.gmra.mrb[36].mxu0 %v5799_v34 }
  0x77   : > { %5047 = vmatprep.mubr.bf16.mxu1 %v5836_v45  ;;  %5103 = vmatprep.mubr.bf16.mxu0 %v5808_v37 }
  0x78   : > { %5204 = vmatpush3.bf16.msra.mxu0 %v5576_v60  ;;  %5251 = vmatprep.subr.bf16.mxu1 %v5579_v61 }
  0x79   : > { %5205 = vmatprep.subr.bf16.mxu0 %v5578_v62 }
  0x7c   : > { %5206 = vmatpush3.bf16.msra.mxu0 %v5578_v62 }
  0x7d   : > { %5311 = vmatprep.subr.bf16.mxu0 %v5580_v63 }
  0x7e   : > { %5048 = vmatmul.mubr.bf16.gmra.mrb[40].mxu1 %v5846_v47  ;;  %5104 = vmatmul.mubr.bf16.gmra.mrb[40].mxu0 %v5833_v44 }
  0x7f   : > { %5051 = vmatprep.mubr.bf16.mxu1 %v5698_v5  ;;  %5107 = vmatprep.mubr.bf16.mxu0 %v5836_v45 }
  0x86   : > { %5052 = vmatmul.mubr.bf16.gmra.mrb[44].mxu1 %v5724_v13  ;;  %5108 = vmatmul.mubr.bf16.gmra.mrb[44].mxu0 %v5846_v47 }
  0x87   : > { %5055 = vmatprep.mubr.bf16.mxu1 %v5733_v16  ;;  %5111 = vmatprep.mubr.bf16.mxu0 %v5698_v5 }
  0x8e   : > { %5056 = vmatmul.mubr.bf16.gmra.mrb[48].mxu1 %v5749_v20  ;;  %5112 = vmatmul.mubr.bf16.gmra.mrb[48].mxu0 %v5724_v13 }
  0x8f   : > { %5059 = vmatprep.mubr.bf16.mxu1 %v5755_v22  ;;  %5115 = vmatprep.mubr.bf16.mxu0 %v5733_v16 }
  0x96   : > { %5060 = vmatmul.mubr.bf16.gmra.mrb[52].mxu1 %v5777_v28  ;;  %5116 = vmatmul.mubr.bf16.gmra.mrb[52].mxu0 %v5749_v20 }
  0x97   : > { %5063 = vmatprep.mubr.bf16.mxu1 %v5783_v30  ;;  %5119 = vmatprep.mubr.bf16.mxu0 %v5755_v22 }
  0x9e   : > { %5064 = vmatmul.mubr.bf16.gmra.mrb[56].mxu1 %v5802_v35  ;;  %5120 = vmatmul.mubr.bf16.gmra.mrb[56].mxu0 %v5777_v28 }
  0x9f   : > { %5067 = vmatprep.mubr.bf16.mxu1 %v5811_v38  ;;  %5123 = vmatprep.mubr.bf16.mxu0 %v5783_v30 }
  0xa6   : > { %5068 = vmatmul.mubr.bf16.gmra.mrb[60].mxu1 %v5827_v42  ;;  %5124 = vmatmul.mubr.bf16.gmra.mrb[60].mxu0 %v5802_v35 }
  0xa7   : > { %5127 = vmatprep.mubr.bf16.mxu0 %v5811_v38  ;;  %5147 = vmatprep.mubr.bf16.mxu1 %v5695_v4 }
  0xae   : > { %5128 = vmatmul.mubr.bf16.gmra.mrb[64].mxu0 %v5827_v42  ;;  %5148 = vmatmul.mubr.bf16.vlgmr.msra.gmra.mrb[64].mxu1 %v5718_v11 }
  0xaf   : > { %5151 = vmatprep.mubr.bf16.mxu1 %v5730_v15  ;;  %5207 = vmatprep.mubr.bf16.mxu0 %v5695_v4 }
  0xb0   : > { %5252 = vmatpush3.bf16.msra.mxu1 %v5579_v61 }
  0xb1   : > { %5253 = vmatprep.subr.bf16.mxu1 %v5581_v0 }
  0xb4   : > { %5254 = vmatpush3.bf16.msra.mxu1 %v5581_v0  ;;  %v5607_v0 = vld [vmem:[%s7137_s1 + $0x1f0] sm:$0xff]  }
  0xb5   : > { %5255 = vmatprep.subr.bf16.mxu1 %v5583_v1 }
  0xb6   : > { %5152 = vmatmul.mubr.bf16.gmra.mrb[68].mxu1 %v5743_v18  ;;  %5208 = vmatmul.mubr.bf16.vlgmr.msra.gmra.mrb[68].mxu0 %v5718_v11 }
  0xb7   : > { %5312 = vmatpush3.bf16.msra.mxu0 %v5580_v63  ;;  %5155 = vmatprep.mubr.bf16.mxu1 %v5752_v21 }
  0xb8   : > { %5211 = vmatprep.mubr.bf16.mxu0 %v5730_v15  ;;  %5313 = vmatprep.subr.bf16.mxu0 %v5582_v2 }
  0xb9   : > { %5256 = vmatpush3.bf16.msra.mxu1 %v5583_v1  ;;  %v5606_v1 = vld [vmem:[%s7137_s1 + $0x228] sm:$0xff]  }
  0xba   : > { %5257 = vmatprep.subr.bf16.mxu1 %v5585_v3 }
  0xbb   : > { %5314 = vmatpush3.bf16.msra.mxu0 %v5582_v2  ;;  %v5609_v2 = vld [vmem:[%s7137_s1 + $0x1f8] sm:$0xff]  }
  0xbc   : > { %5315 = vmatprep.subr.bf16.mxu0 %v5584_v6 }
  0xbd   : > { %5258 = vmatpush3.bf16.msra.mxu1 %v5585_v3 }
  0xbe   : > { %5156 = vmatmul.mubr.bf16.gmra.mrb[72].mxu1 %v5771_v26  ;;  %5212 = vmatmul.mubr.bf16.gmra.mrb[72].mxu0 %v5743_v18 }
  0xbf   : > { %5159 = vmatprep.mubr.bf16.mxu1 %v5780_v29  ;;  %5215 = vmatprep.mubr.bf16.mxu0 %v5752_v21 }
  0xc0   : > { %5316 = vmatpush3.bf16.msra.mxu0 %v5584_v6  ;;  %5259 = vmatprep.subr.bf16.mxu1 %v5587_v7 }
  0xc1   : > { %5317 = vmatprep.subr.bf16.mxu0 %v5586_v8  ;;  %5260 = vmatpush3.bf16.msra.mxu1 %v5587_v7  ;;  %v5608_v7 = vld [vmem:[%s7137_s1 + $0x230] sm:$0xff]  }
  0xc2   : > { %5261 = vmatprep.subr.bf16.mxu1 %v5589_v9 }
  0xc4   : > { %5318 = vmatpush3.bf16.msra.mxu0 %v5586_v8 }
  0xc5   : > { %5319 = vmatprep.subr.bf16.mxu0 %v5588_v10  ;;  %5262 = vmatpush3.bf16.msra.mxu1 %v5589_v9 }
  0xc6   : > { %5160 = vmatmul.mubr.bf16.gmra.mrb[76].mxu1 %v5799_v34  ;;  %5216 = vmatmul.mubr.bf16.gmra.mrb[76].mxu0 %v5771_v26 }
  0xc7   : > { %5163 = vmatprep.mubr.bf16.mxu1 %v5808_v37  ;;  %5219 = vmatprep.mubr.bf16.mxu0 %v5780_v29 }
  0xc8   : > { %5320 = vmatpush3.bf16.msra.mxu0 %v5588_v10  ;;  %5263 = vmatprep.subr.bf16.mxu1 %v5591_v12 }
  0xc9   : > { %5321 = vmatprep.subr.bf16.mxu0 %v5590_v14  ;;  %5264 = vmatpush3.bf16.msra.mxu1 %v5591_v12 }
  0xca   : > { %5265 = vmatprep.subr.bf16.mxu1 %v5593_v17 }
  0xcc   : > { %5322 = vmatpush3.bf16.msra.mxu0 %v5590_v14  ;;  %v5610_v14 = vld [vmem:[%s7137_s1 + $0x238] sm:$0xff]  }
  0xcd   : > { %5323 = vmatprep.subr.bf16.mxu0 %v5592_v19  ;;  %5266 = vmatpush3.bf16.msra.mxu1 %v5593_v17 }
  0xce   : > { %5164 = vmatmul.mubr.bf16.gmra.mrb[80].mxu1 %v5833_v44  ;;  %5220 = vmatmul.mubr.bf16.gmra.mrb[80].mxu0 %v5799_v34 }
  0xcf   : > { %5167 = vmatprep.mubr.bf16.mxu1 %v5836_v45  ;;  %5223 = vmatprep.mubr.bf16.mxu0 %v5808_v37 }
  0xd0   : > { %5324 = vmatpush3.bf16.msra.mxu0 %v5592_v19  ;;  %5371 = vmatprep.subr.bf16.mxu1 %v5595_v23 }
  0xd1   : > { %5325 = vmatprep.subr.bf16.mxu0 %v5594_v24 }
  0xd4   : > { %5326 = vmatpush3.bf16.msra.mxu0 %v5594_v24 }
  0xd5   : > { %5431 = vmatprep.subr.bf16.mxu0 %v5596_v25 }
  0xd6   : > { %5168 = vmatmul.mubr.bf16.gmra.mrb[84].mxu1 %v5846_v47  ;;  %5224 = vmatmul.mubr.bf16.gmra.mrb[84].mxu0 %v5833_v44 }
  0xd7   : > { %5171 = vmatprep.mubr.bf16.mxu1 %v5698_v5  ;;  %5227 = vmatprep.mubr.bf16.mxu0 %v5836_v45 }
  0xde   : > { %5172 = vmatmul.mubr.bf16.gmra.mrb[88].mxu1 %v5724_v13  ;;  %5228 = vmatmul.mubr.bf16.gmra.mrb[88].mxu0 %v5846_v47 }
  0xdf   : > { %5175 = vmatprep.mubr.bf16.mxu1 %v5733_v16  ;;  %5231 = vmatprep.mubr.bf16.mxu0 %v5698_v5 }
  0xe6   : > { %5176 = vmatmul.mubr.bf16.gmra.mrb[92].mxu1 %v5749_v20  ;;  %5232 = vmatmul.mubr.bf16.gmra.mrb[92].mxu0 %v5724_v13 }
  0xe7   : > { %5179 = vmatprep.mubr.bf16.mxu1 %v5755_v22  ;;  %5235 = vmatprep.mubr.bf16.mxu0 %v5733_v16 }
  0xee   : > { %5180 = vmatmul.mubr.bf16.gmra.mrb[96].mxu1 %v5777_v28  ;;  %5236 = vmatmul.mubr.bf16.gmra.mrb[96].mxu0 %v5749_v20 }
  0xef   : > { %5183 = vmatprep.mubr.bf16.mxu1 %v5783_v30  ;;  %5239 = vmatprep.mubr.bf16.mxu0 %v5755_v22 }
  0xf6   : > { %5184 = vmatmul.mubr.bf16.gmra.mrb[100].mxu1 %v5802_v35  ;;  %5240 = vmatmul.mubr.bf16.gmra.mrb[100].mxu0 %v5777_v28 }
  0xf7   : > { %5187 = vmatprep.mubr.bf16.mxu1 %v5811_v38  ;;  %5243 = vmatprep.mubr.bf16.mxu0 %v5783_v30 }
  0xfe   : > { %5188 = vmatmul.mubr.bf16.gmra.mrb[104].mxu1 %v5827_v42  ;;  %5244 = vmatmul.mubr.bf16.gmra.mrb[104].mxu0 %v5802_v35  ;;  %v5599_v35 = vld [vmem:[%s7137_s1 + $0x1d0] sm:$0xff]  }
  0xff   : > { %5247 = vmatprep.mubr.bf16.mxu0 %v5811_v38  ;;  %5267 = vmatprep.mubr.bf16.mxu1 %v5695_v4 }
 0x101   : > { %v6032_v5 = vpop.f32.mrb[0].mxu0  ;;  %v6034_v13 = vpop.f32.mrb[0].mxu1 }
 0x102   : > { %v6036_v16 = vpop.f32.mrb[1].mxu0  ;;  %v6038_v20 = vpop.f32.mrb[1].mxu1 }
 0x103   : > { %v6040_v22 = vpop.f32.mrb[2].mxu0  ;;  %v6042_v27 = vpop.f32.mrb[2].mxu1 }
 0x104   : > { %v6044_v28 = vpop.f32.mrb[3].mxu0  ;;  %v6046_v30 = vpop.f32.mrb[3].mxu1 }
 0x106   : > { %5248 = vmatmul.mubr.bf16.gmra.mrb[108].mxu0 %v5827_v42  ;;  %5268 = vmatmul.mubr.bf16.vlgmr.msra.gmra.mrb[108].mxu1 %v5718_v11  ;;  %v5598_v42 = vld [vmem:[%s7137_s1 + $0x208] sm:$0xff]  }
 0x107   : > { %5271 = vmatprep.mubr.bf16.mxu1 %v5730_v15  ;;  %5327 = vmatprep.mubr.bf16.mxu0 %v5695_v4 }
 0x108   : > { %5372 = vmatpush3.bf16.msra.mxu1 %v5595_v23 }
 0x109   : > { %v6055_v32 = vpop.f32.mrb[4].mxu0  ;;  %v6057_v33 = vpop.f32.mrb[4].mxu1  ;;  %5373 = vmatprep.subr.bf16.mxu1 %v5597_v31 }
 0x10a   : > { %v6062_v36 = vpop.f32.mrb[5].mxu0  ;;  %v6064_v38 = vpop.f32.mrb[5].mxu1 }
 0x10b   : > { %v6066_v39 = vpop.f32.mrb[6].mxu0  ;;  %v6068_v40 = vpop.f32.mrb[6].mxu1 }
 0x10c   : > { %v6070_v41 = vpop.f32.mrb[7].mxu0  ;;  %v6072_v4 = vpop.f32.mrb[7].mxu1  ;;  %5374 = vmatpush3.bf16.msra.mxu1 %v5597_v31 }
 0x10d   : > { %5375 = vmatprep.subr.bf16.mxu1 %v5599_v35 }
 0x10e   : > { %5272 = vmatmul.mubr.bf16.gmra.mrb[112].mxu1 %v5743_v18  ;;  %5328 = vmatmul.mubr.bf16.vlgmr.msra.gmra.mrb[112].mxu0 %v5718_v11 }
 0x10f   : > { %5432 = vmatpush3.bf16.msra.mxu0 %v5596_v25  ;;  %5275 = vmatprep.mubr.bf16.mxu1 %v5752_v21 }
 0x110   : > { %5331 = vmatprep.mubr.bf16.mxu0 %v5730_v15  ;;  %5433 = vmatprep.subr.bf16.mxu0 %v5598_v42 }
 0x111   : > { %v6087_v48 = vpop.f32.mrb[8].mxu0  ;;  %v6089_v49 = vpop.f32.mrb[8].mxu1  ;;  %5376 = vmatpush3.bf16.msra.mxu1 %v5599_v35 }
 0x112   : > { %v6091_v11 = vpop.f32.mrb[9].mxu0  ;;  %v6093_v50 = vpop.f32.mrb[9].mxu1  ;;  %5377 = vmatprep.subr.bf16.mxu1 %v5601_v43 }
 0x113   : > { %v6095_v51 = vpop.f32.mrb[10].mxu0  ;;  %v6097_v52 = vpop.f32.mrb[10].mxu1  ;;  %5434 = vmatpush3.bf16.msra.mxu0 %v5598_v42 }
 0x114   : > { %v6099_v15 = vpop.f32.mrb[11].mxu0  ;;  %v6101_v53 = vpop.f32.mrb[11].mxu1  ;;  %5435 = vmatprep.subr.bf16.mxu0 %v5600_v46 }
 0x115   : > { %5378 = vmatpush3.bf16.msra.mxu1 %v5601_v43 }
 0x116   : > { %5276 = vmatmul.mubr.bf16.gmra.mrb[116].mxu1 %v5771_v26  ;;  %5332 = vmatmul.mubr.bf16.gmra.mrb[116].mxu0 %v5743_v18 }
 0x117   : > { %5279 = vmatprep.mubr.bf16.mxu1 %v5780_v29  ;;  %5335 = vmatprep.mubr.bf16.mxu0 %v5752_v21 }
 0x118   : > { %5436 = vmatpush3.bf16.msra.mxu0 %v5600_v46  ;;  %5379 = vmatprep.subr.bf16.mxu1 %v5603_v54 }
 0x119   : > { %v6116_v57 = vpop.f32.mrb[12].mxu0  ;;  %v5005_v58 = vpop.f32.mrb[12].mxu1  ;;  %5437 = vmatprep.subr.bf16.mxu0 %v5602_v55  ;;  %5380 = vmatpush3.bf16.msra.mxu1 %v5603_v54 }
 0x11a   : > { %v6121_v18 = vpop.f32.mrb[13].mxu0  ;;  %v614_v60 = vpop.f32.mrb[13].mxu1  ;;  %5381 = vmatprep.subr.bf16.mxu1 %v5605_v56 }
 0x11b   : > { %v6123_v61 = vpop.f32.mrb[14].mxu0  ;;  %v5006_v62 = vpop.f32.mrb[14].mxu1 }
 0x11c   : > { %v6125_v63 = vpop.f32.mrb[15].mxu0  ;;  %v616_v21 = vpop.f32.mrb[15].mxu1  ;;  %5438 = vmatpush3.bf16.msra.mxu0 %v5602_v55 }
 0x11d   : > { %5439 = vmatprep.subr.bf16.mxu0 %v5604_v59  ;;  %5382 = vmatpush3.bf16.msra.mxu1 %v5605_v56 }
 0x11e   : > { %5280 = vmatmul.mubr.bf16.gmra.mrb[120].mxu1 %v5799_v34  ;;  %5336 = vmatmul.mubr.bf16.gmra.mrb[120].mxu0 %v5771_v26 }
 0x11f   : > { %5283 = vmatprep.mubr.bf16.mxu1 %v5808_v37  ;;  %5339 = vmatprep.mubr.bf16.mxu0 %v5780_v29 }
 0x120   : > { %5440 = vmatpush3.bf16.msra.mxu0 %v5604_v59  ;;  %5383 = vmatprep.subr.bf16.mxu1 %v5607_v0  ;;  %v6173_v59 = vld [vmem:[%s5689_s26 + $0x60] sm:$0xff]  }
 0x121   : > { %v6140_v3 = vpop.f32.mrb[16].mxu0  ;;  %v5009_v6 = vpop.f32.mrb[16].mxu1  ;;  %5441 = vmatprep.subr.bf16.mxu0 %v5606_v1  ;;  %5384 = vmatpush3.bf16.msra.mxu1 %v5607_v0 }
 0x122   : > { %v6145_v26 = vpop.f32.mrb[17].mxu0  ;;  %v626_v8 = vpop.f32.mrb[17].mxu1  ;;  %5385 = vmatprep.subr.bf16.mxu1 %v5609_v2 }
 0x123   : > { %v6147_v9 = vpop.f32.mrb[18].mxu0  ;;  %v5010_v10 = vpop.f32.mrb[18].mxu1 }
 0x124   : > { %v6149_v12 = vpop.f32.mrb[19].mxu0  ;;  %v628_v29 = vpop.f32.mrb[19].mxu1  ;;  %5442 = vmatpush3.bf16.msra.mxu0 %v5606_v1 }
 0x125   : > { %5443 = vmatprep.subr.bf16.mxu0 %v5608_v7  ;;  %5386 = vmatpush3.bf16.msra.mxu1 %v5609_v2 }
 0x126   : > { %5284 = vmatmul.mubr.bf16.gmra.mrb[124].mxu1 %v5833_v44  ;;  %5340 = vmatmul.mubr.bf16.gmra.mrb[124].mxu0 %v5799_v34 }
 0x127   : > { %5287 = vmatprep.mubr.bf16.mxu1 %v5836_v45  ;;  %5343 = vmatprep.mubr.bf16.mxu0 %v5808_v37 }
 0x128   : > { %5444 = vmatpush3.bf16.msra.mxu0 %v5608_v7 }
 0x129   : > { %v6158_v17 = vpop.f32.mrb[20].mxu0  ;;  %v5029_v19 = vpop.f32.mrb[20].mxu1  ;;  %5445 = vmatprep.subr.bf16.mxu0 %v5610_v14 }
 0x12a   : > { %v945_v23 = vrot.slane %v5029_v19, 1  ;;  %v6160_v24 = vpop.f32.mrb[21].mxu0  ;;  %v736_v25 = vpop.f32.mrb[21].mxu1 }
 0x12b   : > { %v942_v31 = vrot.slane %v736_v25, 1  ;;  %v6162_v35 = vpop.f32.mrb[22].mxu0  ;;  %v5030_v42 = vpop.f32.mrb[22].mxu1 }
 0x12c   : > { %v947_v34 = vrot.slane %v5030_v42, 1  ;;  %v6164_v43 = vpop.f32.mrb[23].mxu0  ;;  %v739_v46 = vpop.f32.mrb[23].mxu1  ;;  %5446 = vmatpush3.bf16.msra.mxu0 %v5610_v14 }
 0x12d   : > { %v943_v37 = vrot.slane %v739_v46, 1  ;;  %v6184_v46 = vld [vmem:[%s5689_s26 + $0x68] sm:$0xff]  }
 0x12e   : > { %v948_v54 = vsel %vm941_vm0, %v945_v23, %v947_v34  ;;  %5288 = vmatmul.mubr.bf16.gmra.mrb[128].mxu1 %v5846_v47  ;;  %5344 = vmatmul.mubr.bf16.gmra.mrb[128].mxu0 %v5833_v44 }
 0x12f   : > { %v1053_v55 = vadd.f32 %v6032_v5, %v948_v54  ;;  %v944_v56 = vsel %vm941_vm0, %v942_v31, %v943_v37  ;;  %v946_v58 = vsel %vm941_vm0, %v943_v37, %v945_v23  ;;  %5291 = vmatprep.mubr.bf16.mxu1 %v6173_v59  ;;  %5347 = vmatprep.mubr.bf16.mxu0 %v5836_v45 }
 0x130   : > { %v1051_v60 = vadd.f32 %v944_v56, %v6036_v16  ;;  %v1052_v62 = vadd.f32 %v946_v58, %v6044_v28 }
 0x131   : > { %v5033_v21 = vpop.f32.mrb[24].mxu1  ;;  %v5089_v0 = vpop.f32.mrb[24].mxu0 }
 0x132   : > { %v953_v1 = vrot.slane %v5033_v21, 1  ;;  %v752_v44 = vpop.f32.mrb[25].mxu1  ;;  %v1186_v2 = vpop.f32.mrb[25].mxu0  ;;  %v1395_v8 = vrot.slane %v5089_v0, 2 }
 0x133   : > { %v949_v5 = vrot.slane %v752_v44, 1  ;;  %v5034_v6 = vpop.f32.mrb[26].mxu1  ;;  %v5090_v7 = vpop.f32.mrb[26].mxu0  ;;  %v1392_v25 = vrot.slane %v1186_v2, 2 }
 0x134   : > { %v955_v10 = vrot.slane %v5034_v6, 1  ;;  %v1397_v29 = vrot.slane %v5090_v7, 2  ;;  %v755_v14 = vpop.f32.mrb[27].mxu1  ;;  %v1189_v45 = vpop.f32.mrb[27].mxu0 }
 0x135   : > { %v950_v16 = vsel %vm941_vm0, %v947_v34, %v949_v5  ;;  %v951_v19 = vrot.slane %v755_v14, 1  ;;  %v1393_v28 = vrot.slane %v1189_v45, 2 }
 0x136   : > { %v1054_v23 = vadd.f32 %v6040_v22, %v950_v16  ;;  %v956_v31 = vsel %vm941_vm0, %v953_v1, %v955_v10  ;;  %v1398_v42 = vsel %vm1391_vm1, %v1395_v8, %v1397_v29  ;;  %5292 = vmatmul.mubr.bf16.gmra.mrb[132].mxu1 %v6184_v46  ;;  %5348 = vmatmul.mubr.bf16.gmra.mrb[132].mxu0 %v5846_v47  ;;  %v6194_v22 = vld [vmem:[%s5689_s26 + $0x70] sm:$0xff]  }
 0x137   : > { %v1057_v37 = vadd.f32 %v6055_v32, %v956_v31  ;;  %v6189_v54 = vadd.f32 %v1398_v42, %v1053_v55  ;;  %v952_v34 = vsel %vm941_vm0, %v949_v5, %v951_v19  ;;  %v954_v56 = vsel %vm941_vm0, %v951_v19, %v953_v1  ;;  %5295 = vmatprep.mubr.bf16.mxu1 %v6194_v22 }
 0x138   : > { %v1055_v58 = vadd.f32 %v952_v34, %v6062_v36  ;;  %v1056_v21 = vadd.f32 %v954_v56, %v6070_v41  ;;  %v1394_v0 = vsel %vm1391_vm1, %v1392_v25, %v1393_v28  ;;  %v1396_v47 = vsel %vm1391_vm1, %v1393_v28, %v1395_v8  ;;  %5351 = vmatprep.mubr.bf16.mxu0 %v6173_v59 }
 0x139   : > { %v6202_v32 = vadd.f32 %v1394_v0, %v1051_v60  ;;  %v6204_v55 = vadd.f32 %v1396_v47, %v1052_v62  ;;  %v5037_v44 = vpop.f32.mrb[28].mxu1  ;;  %v5093_v1 = vpop.f32.mrb[28].mxu0  ;;  %v6214_v47 = vld [vmem:[%s5689_s26 + $0x78] sm:$0xff]  }
 0x13a   : > { %v961_v2 = vrot.slane %v5037_v44, 1  ;;  %v768_v5 = vpop.f32.mrb[29].mxu1  ;;  %v1202_v6 = vpop.f32.mrb[29].mxu0  ;;  %v1403_v45 = vrot.slane %v5093_v1, 2 }
 0x13b   : > { %v957_v7 = vrot.slane %v768_v5, 1  ;;  %v1399_v14 = vrot.slane %v1202_v6, 2  ;;  %v5038_v36 = vpop.f32.mrb[30].mxu1  ;;  %v5094_v41 = vpop.f32.mrb[30].mxu0 }
 0x13c   : > { %v963_v16 = vrot.slane %v5038_v36, 1  ;;  %v1405_v19 = vrot.slane %v5094_v41, 2  ;;  %v771_v8 = vpop.f32.mrb[31].mxu1  ;;  %v1205_v28 = vpop.f32.mrb[31].mxu0  ;;  %v6228_v36 = vld [vmem:[%s5689_s26 + $0x80] sm:$0xff]  }
 0x13d   : > { %v958_v60 = vsel %vm941_vm0, %v955_v10, %v957_v7  ;;  %v1400_v62 = vsel %vm1391_vm1, %v1397_v29, %v1399_v14  ;;  %v959_v25 = vrot.slane %v771_v8, 1  ;;  %v1401_v31 = vrot.slane %v1205_v28, 2 }
 0x13e   : > { %v1058_v42 = vadd.f32 %v6066_v39, %v958_v60  ;;  %v6209_v34 = vadd.f32 %v1400_v62, %v1054_v23  ;;  %v964_v56 = vsel %vm941_vm0, %v961_v2, %v963_v16  ;;  %v1406_v0 = vsel %vm1391_vm1, %v1403_v45, %v1405_v19  ;;  %5296 = vmatmul.mubr.bf16.gmra.mrb[136].mxu1 %v6214_v47 }
 0x13f   : > { %v1061_v44 = vadd.f32 %v6087_v48, %v964_v56  ;;  %v6218_v10 = vadd.f32 %v1406_v0, %v1057_v37  ;;  %v960_v29 = vsel %vm941_vm0, %v957_v7, %v959_v25  ;;  %v962_v1 = vsel %vm941_vm0, %v959_v25, %v961_v2  ;;  %5352 = vmatmul.mubr.bf16.gmra.mrb[136].mxu0 %v6184_v46 }
 0x140   : > { %v1059_v39 = vadd.f32 %v960_v29, %v6091_v11  ;;  %v1060_v23 = vadd.f32 %v962_v1, %v6099_v15  ;;  %v1402_v5 = vsel %vm1391_vm1, %v1399_v14, %v1401_v31  ;;  %v1404_v6 = vsel %vm1391_vm1, %v1401_v31, %v1403_v45  ;;  %5299 = vmatprep.mubr.bf16.mxu1 %v6228_v36 }
 0x141   : > { %v6231_v48 = vadd.f32 %v1402_v5, %v1055_v58  ;;  %v6233_v37 = vadd.f32 %v1404_v6, %v1056_v21  ;;  %v5041_v7 = vpop.f32.mrb[32].mxu1  ;;  %v5097_v2 = vpop.f32.mrb[32].mxu0  ;;  %5355 = vmatprep.mubr.bf16.mxu0 %v6194_v22 }
 0x142   : > { %v969_v41 = vrot.slane %v5041_v7, 1  ;;  %v784_v11 = vpop.f32.mrb[33].mxu1  ;;  %v1218_v8 = vpop.f32.mrb[33].mxu0  ;;  %v1411_v60 = vrot.slane %v5097_v2, 2  ;;  %v6244_v2 = vld [vmem:[%s5689_s26 + $0x88] sm:$0xff]  }
 0x143   : > { %v965_v15 = vrot.slane %v784_v11, 1  ;;  %v1407_v28 = vrot.slane %v1218_v8, 2  ;;  %v5042_v14 = vpop.f32.mrb[34].mxu1  ;;  %v5098_v45 = vpop.f32.mrb[34].mxu0 }
 0x144   : > { %v971_v62 = vrot.slane %v5042_v14, 1  ;;  %v1413_v25 = vrot.slane %v5098_v45, 2  ;;  %v787_v31 = vpop.f32.mrb[35].mxu1  ;;  %v1221_v58 = vpop.f32.mrb[35].mxu0 }
 0x145   : > { %v966_v21 = vsel %vm941_vm0, %v963_v16, %v965_v15  ;;  %v1408_v56 = vsel %vm1391_vm1, %v1405_v19, %v1407_v28  ;;  %v967_v0 = vrot.slane %v787_v31, 1  ;;  %v1409_v29 = vrot.slane %v1221_v58, 2  ;;  %v6258_v31 = vld [vmem:[%s5689_s26 + $0x90] sm:$0xff]  }
 0x146   : > { %v1062_v1 = vadd.f32 %v6095_v51, %v966_v21  ;;  %v6239_v5 = vadd.f32 %v1408_v56, %v1058_v42  ;;  %v972_v6 = vsel %vm941_vm0, %v969_v41, %v971_v62  ;;  %v1414_v7 = vsel %vm1391_vm1, %v1411_v60, %v1413_v25  ;;  %5300 = vmatmul.mubr.bf16.gmra.mrb[140].mxu1 %v6244_v2 }
 0x147   : > { %v1065_v11 = vadd.f32 %v6116_v57, %v972_v6  ;;  %v6248_v16 = vadd.f32 %v1414_v7, %v1061_v44  ;;  %v968_v19 = vsel %vm941_vm0, %v965_v15, %v967_v0  ;;  %v970_v8 = vsel %vm941_vm0, %v967_v0, %v969_v41  ;;  %5356 = vmatmul.mubr.bf16.gmra.mrb[140].mxu0 %v6214_v47 }
 0x148   : > { %v1063_v51 = vadd.f32 %v968_v19, %v6121_v18  ;;  %v1064_v42 = vadd.f32 %v970_v8, %v6125_v63  ;;  %v1410_v14 = vsel %vm1391_vm1, %v1407_v28, %v1409_v29  ;;  %v1412_v45 = vsel %vm1391_vm1, %v1409_v29, %v1411_v60  ;;  %7143 = vst [vmem:[#allocation2_spill] sm:$0xff] %v6258_v31 }
 0x149   : > { %5303 = vmatprep.mubr.bf16.mxu1 %v6258_v31  ;;  %v6261_v57 = vadd.f32 %v1410_v14, %v1059_v39  ;;  %v6263_v44 = vadd.f32 %v1412_v45, %v1060_v23  ;;  %v5045_v15 = vpop.f32.mrb[36].mxu1  ;;  %v5101_v41 = vpop.f32.mrb[36].mxu0  ;;  %5359 = vmatprep.mubr.bf16.mxu0 %v6228_v36 }
 0x14a   : > { %v977_v58 = vrot.slane %v5045_v15, 1  ;;  %v800_v18 = vpop.f32.mrb[37].mxu1  ;;  %v1234_v21 = vpop.f32.mrb[37].mxu0  ;;  %v1419_v0 = vrot.slane %v5101_v41, 2  ;;  %v6274_v41 = vld [vmem:[%s5689_s26 + $0x98] sm:$0xff]  }
 0x14b   : > { %v973_v63 = vrot.slane %v800_v18, 1  ;;  %v1415_v56 = vrot.slane %v1234_v21, 2  ;;  %v5046_v28 = vpop.f32.mrb[38].mxu1  ;;  %v5102_v60 = vpop.f32.mrb[38].mxu0 }
 0x14c   : > { %v979_v29 = vrot.slane %v5046_v28, 1  ;;  %v1421_v6 = vrot.slane %v5102_v60, 2  ;;  %v803_v7 = vpop.f32.mrb[39].mxu1  ;;  %v1237_v39 = vpop.f32.mrb[39].mxu0 }
 0x14d   : > { %v974_v23 = vsel %vm941_vm0, %v971_v62, %v973_v63  ;;  %v1416_v19 = vsel %vm1391_vm1, %v1413_v25, %v1415_v56  ;;  %v975_v8 = vrot.slane %v803_v7, 1  ;;  %v1417_v14 = vrot.slane %v1237_v39, 2 }
 0x14e   : > { %v1066_v45 = vadd.f32 %v6123_v61, %v974_v23  ;;  %v6269_v15 = vadd.f32 %v1416_v19, %v1062_v1  ;;  %v980_v18 = vsel %vm941_vm0, %v977_v58, %v979_v29  ;;  %v1422_v21 = vsel %vm1391_vm1, %v1419_v0, %v1421_v6  ;;  %5304 = vmatmul.mubr.bf16.gmra.mrb[144].mxu1 %v6274_v41  ;;  %v6288_v23 = vld [vmem:[%s5689_s26 + $0xa0] sm:$0xff]  }
 0x14f   : > { %v1069_v28 = vadd.f32 %v6140_v3, %v980_v18  ;;  %v6278_v62 = vadd.f32 %v1422_v21, %v1065_v11  ;;  %v976_v25 = vsel %vm941_vm0, %v973_v63, %v975_v8  ;;  %v978_v60 = vsel %vm941_vm0, %v975_v8, %v977_v58  ;;  %5360 = vmatmul.mubr.bf16.gmra.mrb[144].mxu0 %v6244_v2 }
 0x150   : > { %v1067_v61 = vadd.f32 %v976_v25, %v6145_v26  ;;  %v1068_v1 = vadd.f32 %v978_v60, %v6149_v12  ;;  %v1418_v7 = vsel %vm1391_vm1, %v1415_v56, %v1417_v14  ;;  %v1420_v39 = vsel %vm1391_vm1, %v1417_v14, %v1419_v0  ;;  %5307 = vmatprep.mubr.bf16.mxu1 %v6288_v23 }
 0x151   : > { %7144 = vst [vmem:[#allocation3_spill] sm:$0xff] %v6278_v62  ;;  %v6291_v3 = vadd.f32 %v1418_v7, %v1063_v51  ;;  %v6293_v11 = vadd.f32 %v1420_v39, %v1064_v42  ;;  %v5049_v63 = vpop.f32.mrb[40].mxu1  ;;  %v5105_v58 = vpop.f32.mrb[40].mxu0  ;;  %5363 = vmatprep.mubr.bf16.mxu0 %v6258_v31  ;;  %v6304_v31 = vld [vmem:[%s5689_s26 + $0xa8] ss:$0 sps:$4 sm:$0x77]  }
 0x152   : > { %v985_v19 = vrot.slane %v5049_v63, 1  ;;  %v816_v26 = vpop.f32.mrb[41].mxu1  ;;  %v1250_v8 = vpop.f32.mrb[41].mxu0  ;;  %v1427_v14 = vrot.slane %v5105_v58, 2 }
 0x153   : > { %7145 = vst [vmem:[#allocation4_spill] sm:$0xff] %v6293_v11  ;;  %v981_v12 = vrot.slane %v816_v26, 1  ;;  %v1423_v18 = vrot.slane %v1250_v8, 2  ;;  %v5050_v56 = vpop.f32.mrb[42].mxu1  ;;  %v5106_v0 = vpop.f32.mrb[42].mxu0 }
 0x154   : > { %v987_v21 = vrot.slane %v5050_v56, 1  ;;  %v1429_v25 = vrot.slane %v5106_v0, 2  ;;  %v819_v60 = vpop.f32.mrb[43].mxu1  ;;  %v1253_v51 = vpop.f32.mrb[43].mxu0 }
 0x155   : > { %v982_v42 = vsel %vm941_vm0, %v979_v29, %v981_v12  ;;  %v1424_v7 = vsel %vm1391_vm1, %v1421_v6, %v1423_v18  ;;  %v983_v39 = vrot.slane %v819_v60, 1  ;;  %v1425_v62 = vrot.slane %v1253_v51, 2 }
 0x156   : > { %v1070_v63 = vadd.f32 %v6147_v9, %v982_v42  ;;  %v6299_v11 = vadd.f32 %v1424_v7, %v1066_v45  ;;  %v988_v26 = vsel %vm941_vm0, %v985_v19, %v987_v21  ;;  %v1430_v8 = vsel %vm1391_vm1, %v1427_v14, %v1429_v25  ;;  %5308 = vmatmul.mubr.bf16.gmra.mrb[148].mxu1 %v6304_v31  ;;  %v5621_v42 = vld [vmem:[%s5689_s26] sm:$0xff]  }
 0x157   : > { %v1073_v58 = vadd.f32 %v6158_v17, %v988_v26  ;;  %v6308_v29 = vadd.f32 %v1430_v8, %v1069_v28  ;;  %v984_v6 = vsel %vm941_vm0, %v981_v12, %v983_v39  ;;  %v986_v56 = vsel %vm941_vm0, %v983_v39, %v985_v19  ;;  %5364 = vmatmul.mubr.bf16.gmra.mrb[148].mxu0 %v6274_v41 }
 0x158   : > { %v1071_v9 = vadd.f32 %v984_v6, %v6160_v24  ;;  %v1072_v45 = vadd.f32 %v986_v56, %v6164_v43  ;;  %v1426_v0 = vsel %vm1391_vm1, %v1423_v18, %v1425_v62  ;;  %v1428_v60 = vsel %vm1391_vm1, %v1425_v62, %v1427_v14  ;;  %5367 = vmatprep.mubr.bf16.mxu0 %v6288_v23 }
 0x159   : > { %7146 = vst [vmem:[#allocation5_spill] sm:$0xff] %v6308_v29  ;;  %v6318_v51 = vadd.f32 %v1426_v0, %v1067_v61  ;;  %v6320_v17 = vadd.f32 %v1428_v60, %v1068_v1  ;;  %v5053_v28 = vpop.f32.mrb[44].mxu1  ;;  %v5109_v12 = vpop.f32.mrb[44].mxu0  ;;  %5387 = vmatprep.mubr.bf16.mxu1 %v5621_v42 }
 0x15a   : > { %v993_v19 = vrot.slane %v5053_v28, 1  ;;  %v832_v7 = vpop.f32.mrb[45].mxu1  ;;  %v1266_v39 = vpop.f32.mrb[45].mxu0  ;;  %v1435_v8 = vrot.slane %v5109_v12, 2  ;;  %v5622_v12 = vld [vmem:[%s5689_s26 + $0x8] sm:$0xff]  }
 0x15b   : > { %v989_v24 = vrot.slane %v832_v7, 1  ;;  %v1431_v26 = vrot.slane %v1266_v39, 2  ;;  %v5054_v43 = vpop.f32.mrb[46].mxu1  ;;  %v5110_v18 = vpop.f32.mrb[46].mxu0 }
 0x15c   : > { %v995_v62 = vrot.slane %v5054_v43, 1  ;;  %v1437_v14 = vrot.slane %v5110_v18, 2  ;;  %v835_v6 = vpop.f32.mrb[47].mxu1  ;;  %v1269_v61 = vpop.f32.mrb[47].mxu0 }
 0x15d   : > { %v990_v1 = vsel %vm941_vm0, %v987_v21, %v989_v24  ;;  %v1432_v56 = vsel %vm1391_vm1, %v1429_v25, %v1431_v26  ;;  %v991_v0 = vrot.slane %v835_v6, 1  ;;  %v1433_v60 = vrot.slane %v1269_v61, 2 }
 0x15e   : > { %v1074_v28 = vadd.f32 %v6162_v35, %v990_v1  ;;  %v6326_v29 = vadd.f32 %v1432_v56, %v1070_v63  ;;  %v996_v7 = vsel %vm941_vm0, %v993_v19, %v995_v62  ;;  %v1438_v39 = vsel %vm1391_vm1, %v1435_v8, %v1437_v14  ;;  %5388 = vmatmul.mubr.bf16.vlgmr.msra.gmra.mrb[152].mxu1 %v5622_v12  ;;  %v5623_v1 = vld [vmem:[%s5689_s26 + $0x10] sm:$0xff]  }
 0x15f   : > { %v1077_v43 = vadd.f32 %v6034_v13, %v996_v7  ;;  %v6332_v18 = vadd.f32 %v1438_v39, %v1073_v58  ;;  %v992_v21 = vsel %vm941_vm0, %v989_v24, %v991_v0  ;;  %v994_v25 = vsel %vm941_vm0, %v991_v0, %v993_v19  ;;  %5368 = vmatmul.mubr.bf16.gmra.mrb[152].mxu0 %v6304_v31 }
 0x160   : > { %v1075_v35 = vadd.f32 %v992_v21, %v6038_v20  ;;  %v1076_v63 = vadd.f32 %v994_v25, %v6046_v30  ;;  %v1434_v6 = vsel %vm1391_vm1, %v1431_v26, %v1433_v60  ;;  %v1436_v61 = vsel %vm1391_vm1, %v1433_v60, %v1435_v8  ;;  %5391 = vmatprep.mubr.bf16.mxu1 %v5623_v1 }
 0x161   : > { %7147 = vst [vmem:[#allocation6_spill] sm:$0xff] %v6332_v18  ;;  %v6342_v56 = vadd.f32 %v1434_v6, %v1071_v9  ;;  %v6344_v13 = vadd.f32 %v1436_v61, %v1072_v45  ;;  %v5057_v58 = vpop.f32.mrb[48].mxu1  ;;  %v5113_v24 = vpop.f32.mrb[48].mxu0  ;;  %5447 = vmatprep.mubr.bf16.mxu0 %v5621_v42 }
 0x162   : > { %v1001_v19 = vrot.slane %v5057_v58, 1  ;;  %v848_v0 = vpop.f32.mrb[49].mxu1  ;;  %v1282_v7 = vpop.f32.mrb[49].mxu0  ;;  %v1443_v26 = vrot.slane %v5113_v24, 2  ;;  %v5624_v24 = vld [vmem:[%s5689_s26 + $0x18] sm:$0xff]  }
 0x163   : > { %v997_v39 = vrot.slane %v848_v0, 1  ;;  %v1439_v20 = vrot.slane %v1282_v7, 2  ;;  %v5058_v30 = vpop.f32.mrb[50].mxu1  ;;  %v5114_v21 = vpop.f32.mrb[50].mxu0 }
 0x164   : > { %v1003_v25 = vrot.slane %v5058_v30, 1  ;;  %v1445_v8 = vrot.slane %v5114_v21, 2  ;;  %v851_v60 = vpop.f32.mrb[51].mxu1  ;;  %v1285_v18 = vpop.f32.mrb[51].mxu0 }
 0x165   : > { %v998_v9 = vsel %vm941_vm0, %v995_v62, %v997_v39  ;;  %v1440_v45 = vsel %vm1391_vm1, %v1437_v14, %v1439_v20  ;;  %v999_v6 = vrot.slane %v851_v60, 1  ;;  %v1441_v61 = vrot.slane %v1285_v18, 2 }
 0x166   : > { %v1078_v42 = vadd.f32 %v6042_v27, %v998_v9  ;;  %v6349_v58 = vadd.f32 %v1440_v45, %v1074_v28  ;;  %v1004_v0 = vsel %vm941_vm0, %v1001_v19, %v1003_v25  ;;  %v1446_v7 = vsel %vm1391_vm1, %v1443_v26, %v1445_v8  ;;  %5392 = vmatmul.mubr.bf16.gmra.mrb[156].mxu1 %v5624_v24  ;;  %v5625_v9 = vld [vmem:[%s5689_s26 + $0x20] sm:$0xff]  }
 0x167   : > { %v1081_v30 = vadd.f32 %v6057_v33, %v1004_v0  ;;  %v6355_v21 = vadd.f32 %v1446_v7, %v1077_v43  ;;  %v1000_v62 = vsel %vm941_vm0, %v997_v39, %v999_v6  ;;  %v1002_v14 = vsel %vm941_vm0, %v999_v6, %v1001_v19  ;;  %5448 = vmatmul.mubr.bf16.vlgmr.msra.gmra.mrb[156].mxu0 %v5622_v12 }
 0x168   : > { %v1079_v18 = vadd.f32 %v1000_v62, %v6064_v38  ;;  %v1080_v27 = vadd.f32 %v1002_v14, %v6072_v4  ;;  %v1442_v28 = vsel %vm1391_vm1, %v1439_v20, %v1441_v61  ;;  %v1444_v60 = vsel %vm1391_vm1, %v1441_v61, %v1443_v26  ;;  %5395 = vmatprep.mubr.bf16.mxu1 %v5625_v9 }
 0x169   : > { %v6364_v45 = vadd.f32 %v1442_v28, %v1075_v35  ;;  %v6366_v33 = vadd.f32 %v1444_v60, %v1076_v63  ;;  %v5061_v43 = vpop.f32.mrb[52].mxu1  ;;  %v5117_v0 = vpop.f32.mrb[52].mxu0  ;;  %5451 = vmatprep.mubr.bf16.mxu0 %v5623_v1 }
 0x16a   : > { %v1009_v39 = vrot.slane %v5061_v43, 1  ;;  %v864_v19 = vpop.f32.mrb[53].mxu1  ;;  %v1298_v12 = vpop.f32.mrb[53].mxu0  ;;  %v1451_v20 = vrot.slane %v5117_v0, 2  ;;  %v5626_v0 = vld [vmem:[%s5689_s26 + $0x28] sm:$0xff]  }
 0x16b   : > { %v1005_v6 = vrot.slane %v864_v19, 1  ;;  %v1447_v38 = vrot.slane %v1298_v12, 2  ;;  %v5062_v4 = vpop.f32.mrb[54].mxu1  ;;  %v5118_v7 = vpop.f32.mrb[54].mxu0 }
 0x16c   : > { %v1011_v62 = vrot.slane %v5062_v4, 1  ;;  %v1453_v26 = vrot.slane %v5118_v7, 2  ;;  %v867_v61 = vpop.f32.mrb[55].mxu1  ;;  %v1301_v14 = vpop.f32.mrb[55].mxu0 }
 0x16d   : > { %v1006_v35 = vsel %vm941_vm0, %v1003_v25, %v1005_v6  ;;  %v1448_v63 = vsel %vm1391_vm1, %v1445_v8, %v1447_v38  ;;  %v1007_v28 = vrot.slane %v867_v61, 1  ;;  %v1449_v60 = vrot.slane %v1301_v14, 2 }
 0x16e   : > { %v1082_v1 = vadd.f32 %v6068_v40, %v1006_v35  ;;  %v6371_v43 = vadd.f32 %v1448_v63, %v1078_v42  ;;  %v1012_v19 = vsel %vm941_vm0, %v1009_v39, %v1011_v62  ;;  %v1454_v12 = vsel %vm1391_vm1, %v1451_v20, %v1453_v26  ;;  %5396 = vmatmul.mubr.bf16.gmra.mrb[160].mxu1 %v5626_v0  ;;  %v5627_v35 = vld [vmem:[%s5689_s26 + $0x30] sm:$0xff]  }
 0x16f   : > { %v1085_v4 = vadd.f32 %v6089_v49, %v1012_v19  ;;  %v6377_v7 = vadd.f32 %v1454_v12, %v1081_v30  ;;  %v1008_v25 = vsel %vm941_vm0, %v1005_v6, %v1007_v28  ;;  %v1010_v8 = vsel %vm941_vm0, %v1007_v28, %v1009_v39  ;;  %5452 = vmatmul.mubr.bf16.gmra.mrb[160].mxu0 %v5624_v24 }
 0x170   : > { %v1083_v61 = vadd.f32 %v1008_v25, %v6093_v50  ;;  %v1084_v40 = vadd.f32 %v1010_v8, %v6101_v53  ;;  %v1450_v42 = vsel %vm1391_vm1, %v1447_v38, %v1449_v60  ;;  %v1452_v14 = vsel %vm1391_vm1, %v1449_v60, %v1451_v20  ;;  %5399 = vmatprep.mubr.bf16.mxu1 %v5627_v35 }
 0x171   : > { %v6386_v63 = vadd.f32 %v1450_v42, %v1079_v18  ;;  %v6388_v49 = vadd.f32 %v1452_v14, %v1080_v27  ;;  %v5065_v30 = vpop.f32.mrb[56].mxu1  ;;  %v5121_v19 = vpop.f32.mrb[56].mxu0  ;;  %5455 = vmatprep.mubr.bf16.mxu0 %v5625_v9  ;;  %v5628_v14 = vld [vmem:[%s5689_s26 + $0x38] sm:$0xff]  }
 0x172   : > { %v880_v6 = vpop.f32.mrb[57].mxu1  ;;  %v1314_v24 = vpop.f32.mrb[57].mxu0  ;;  %v1459_v12 = vrot.slane %v5121_v19, 2 }
 0x173   : > { %v1013_v39 = vrot.slane %v880_v6, 1  ;;  %v1455_v50 = vrot.slane %v1314_v24, 2  ;;  %v5122_v28 = vpop.f32.mrb[58].mxu0  ;;  %v5066_v53 = vpop.f32.mrb[58].mxu1  ;;  %v5629_v24 = vld [vmem:[%s5689_s26 + $0x40] sm:$0xff]  }
 0x174   : > { %v1461_v38 = vrot.slane %v5122_v28, 2  ;;  %v1317_v20 = vpop.f32.mrb[59].mxu0  ;;  %v883_v60 = vpop.f32.mrb[59].mxu1 }
 0x175   : > { %v1014_v18 = vsel %vm941_vm0, %v1011_v62, %v1013_v39  ;;  %v1456_v27 = vsel %vm1391_vm1, %v1453_v26, %v1455_v50  ;;  %v1457_v25 = vrot.slane %v1317_v20, 2 }
 0x176   : > { %v1086_v8 = vadd.f32 %v6097_v52, %v1014_v18  ;;  %v6393_v9 = vadd.f32 %v1456_v27, %v1082_v1  ;;  %v1462_v42 = vsel %vm1391_vm1, %v1459_v12, %v1461_v38  ;;  %5400 = vmatmul.mubr.bf16.gmra.mrb[164].mxu1 %v5628_v14  ;;  %v5630_v18 = vld [vmem:[%s5689_s26 + $0x48] sm:$0xff]  }
 0x177   : > { %v6397_v30 = vadd.f32 %v1462_v42, %v1085_v4  ;;  %v1458_v19 = vsel %vm1391_vm1, %v1455_v50, %v1457_v25  ;;  %v1460_v6 = vsel %vm1391_vm1, %v1457_v25, %v1459_v12  ;;  %5456 = vmatmul.mubr.bf16.gmra.mrb[164].mxu0 %v5626_v0  ;;  %5403 = vmatprep.mubr.bf16.mxu1 %v5629_v24 }
 0x178   : > { %v6402_v62 = vadd.f32 %v1458_v19, %v1083_v61  ;;  %v6404_v26 = vadd.f32 %v1460_v6, %v1084_v40  ;;  %5459 = vmatprep.mubr.bf16.mxu0 %v5627_v35  ;;  %v5631_v61 = vld [vmem:[%s5689_s26 + $0x50] sm:$0xff]  }
 0x179   : > { %v5125_v52 = vpop.f32.mrb[60].mxu0  ;;  %v5069_v1 = vpop.f32.mrb[60].mxu1 }
 0x17a   : > { %v1330_v39 = vpop.f32.mrb[61].mxu0  ;;  %v893_v28 = vpop.f32.mrb[61].mxu1 }
 0x17b   : > { %v1463_v4 = vrot.slane %v1330_v39, 2  ;;  %v5126_v53 = vpop.f32.mrb[62].mxu0  ;;  %v5070_v20 = vpop.f32.mrb[62].mxu1 }
 0x17c   : > { %v1333_v50 = vpop.f32.mrb[63].mxu0  ;;  %v895_v60 = vpop.f32.mrb[63].mxu1 }
 0x17d   : > { %v1464_v0 = vsel %vm1391_vm1, %v1461_v38, %v1463_v4 }
 0x17e   : > { %v6407_v12 = vadd.f32 %v1464_v0, %v1086_v8  ;;  %5404 = vmatmul.mubr.bf16.gmra.mrb[168].mxu1 %v5630_v18  ;;  %v5632_v8 = vld [vmem:[%s5689_s26 + $0x58] sm:$0xff]  }
 0x17f   : > { %5460 = vmatmul.mubr.bf16.gmra.mrb[168].mxu0 %v5628_v14  ;;  %5407 = vmatprep.mubr.bf16.mxu1 %v5631_v61 }
 0x180   : > { %5463 = vmatprep.mubr.bf16.mxu0 %v5629_v24 }
 0x181   : > { %v5129_v40 = vpop.f32.mrb[64].mxu0  ;;  %v5149_v35 = vpop.f32.mrb[64].mxu1 }
 0x182   : > { %v1841_v27 = vrot.slane %v5149_v35, 2  ;;  %v1343_v25 = vpop.f32.mrb[65].mxu0  ;;  %v1636_v42 = vpop.f32.mrb[65].mxu1 }
 0x183   : > { %v5130_v19 = vpop.f32.mrb[66].mxu0  ;;  %v5150_v6 = vpop.f32.mrb[66].mxu1 }
 0x184   : > { %v1842_v52 = vrot.slane %v5150_v6, 2  ;;  %v1345_v1 = vpop.f32.mrb[67].mxu0  ;;  %v1638_v39 = vpop.f32.mrb[67].mxu1 }
 0x186   : > { %v1843_v38 = vsel %vm1391_vm1, %v1841_v27, %v1842_v52  ;;  %5408 = vmatmul.mubr.bf16.gmra.mrb[172].mxu1 %v5632_v8 }
 0x187   : > { %v1950_v28 = vadd.f32 %v1843_v38, %v6202_v32  ;;  %5464 = vmatmul.mubr.bf16.gmra.mrb[172].mxu0 %v5630_v18  ;;  %5411 = vmatprep.mubr.bf16.mxu1 %v6173_v59 }
 0x188   : > { %5467 = vmatprep.mubr.bf16.mxu0 %v5631_v61 }
 0x189   : > { %v5153_v14 = vpop.f32.mrb[68].mxu1  ;;  %v5209_v24 = vpop.f32.mrb[68].mxu0 }
 0x18a   : > { %v1848_v4 = vrot.slane %v5153_v14, 2  ;;  %v1650_v53 = vpop.f32.mrb[69].mxu1  ;;  %v2085_v20 = vpop.f32.mrb[69].mxu0  ;;  %v2291_v40 = vrot.slane %v5209_v24, 3 }
 0x18b   : > { %v1844_v50 = vrot.slane %v1650_v53, 2  ;;  %v5154_v60 = vpop.f32.mrb[70].mxu1  ;;  %v5210_v0 = vpop.f32.mrb[70].mxu0 }
 0x18c   : > { %v1850_v35 = vrot.slane %v5154_v60, 2  ;;  %v2292_v27 = vrot.slane %v5210_v0, 3  ;;  %v1653_v25 = vpop.f32.mrb[71].mxu1  ;;  %v2087_v42 = vpop.f32.mrb[71].mxu0 }
 0x18d   : > { %v1845_v32 = vsel %vm1391_vm1, %v1842_v52, %v1844_v50  ;;  %v1846_v18 = vrot.slane %v1653_v25, 2 }
 0x18e   : > { %v1951_v19 = vadd.f32 %v1845_v32, %v6204_v55  ;;  %v1851_v61 = vsel %vm1391_vm1, %v1848_v4, %v1850_v35  ;;  %v2293_v6 = vsel %vm2290_vm2, %v2291_v40, %v2292_v27  ;;  %5412 = vmatmul.mubr.bf16.gmra.mrb[176].mxu1 %v6184_v46 }
 0x18f   : > { %v1954_v1 = vadd.f32 %v1851_v61, %v6231_v48  ;;  %v6421_v39 = vadd.f32 %v2293_v6, %v1950_v28  ;;  %v1847_v38 = vsel %vm1391_vm1, %v1844_v50, %v1846_v18  ;;  %v1849_v14 = vsel %vm1391_vm1, %v1846_v18, %v1848_v4  ;;  %5468 = vmatmul.mubr.bf16.gmra.mrb[176].mxu0 %v5632_v8 }
 0x190   : > { %v1952_v52 = vadd.f32 %v1847_v38, %v6189_v54  ;;  %v1953_v24 = vadd.f32 %v1849_v14, %v6209_v34  ;;  %5415 = vmatprep.mubr.bf16.mxu1 %v6194_v22  ;;  %5471 = vmatprep.mubr.bf16.mxu0 %v6173_v59 }
 0x191   : > { %v5157_v55 = vpop.f32.mrb[72].mxu1  ;;  %v5213_v53 = vpop.f32.mrb[72].mxu0 }
 0x192   : > { %v1856_v20 = vrot.slane %v5157_v55, 2  ;;  %v1666_v60 = vpop.f32.mrb[73].mxu1  ;;  %v2099_v48 = vpop.f32.mrb[73].mxu0  ;;  %v2298_v25 = vrot.slane %v5213_v53, 3 }
 0x193   : > { %v1852_v28 = vrot.slane %v1666_v60, 2  ;;  %v2294_v0 = vrot.slane %v2099_v48, 3  ;;  %v5158_v40 = vpop.f32.mrb[74].mxu1  ;;  %v5214_v50 = vpop.f32.mrb[74].mxu0 }
 0x194   : > { %v1858_v4 = vrot.slane %v5158_v40, 2  ;;  %v2300_v8 = vrot.slane %v5214_v50, 3  ;;  %v1669_v42 = vpop.f32.mrb[75].mxu1  ;;  %v2102_v54 = vpop.f32.mrb[75].mxu0 }
 0x195   : > { %v1853_v34 = vsel %vm1391_vm1, %v1850_v35, %v1852_v28  ;;  %v2295_v32 = vsel %vm2290_vm2, %v2292_v27, %v2294_v0  ;;  %v1854_v18 = vrot.slane %v1669_v42, 2  ;;  %v2296_v59 = vrot.slane %v2102_v54, 3 }
 0x196   : > { %v1955_v61 = vadd.f32 %v1853_v34, %v6233_v37  ;;  %v6432_v6 = vadd.f32 %v2295_v32, %v1951_v19  ;;  %v1859_v38 = vsel %vm1391_vm1, %v1856_v20, %v1858_v4  ;;  %v2301_v14 = vsel %vm2290_vm2, %v2298_v25, %v2300_v8  ;;  %5416 = vmatmul.mubr.bf16.gmra.mrb[180].mxu1 %v6214_v47 }
 0x197   : > { %v1958_v55 = vadd.f32 %v1859_v38, %v6261_v57  ;;  %v6438_v53 = vadd.f32 %v2301_v14, %v1954_v1  ;;  %v1855_v35 = vsel %vm1391_vm1, %v1852_v28, %v1854_v18  ;;  %v1857_v27 = vsel %vm1391_vm1, %v1854_v18, %v1856_v20  ;;  %5472 = vmatmul.mubr.bf16.gmra.mrb[180].mxu0 %v6184_v46 }
 0x198   : > { %v1956_v37 = vadd.f32 %v1855_v35, %v6218_v10  ;;  %v1957_v19 = vadd.f32 %v1857_v27, %v6239_v5  ;;  %v2297_v60 = vsel %vm2290_vm2, %v2294_v0, %v2296_v59  ;;  %v2299_v48 = vsel %vm2290_vm2, %v2296_v59, %v2298_v25  ;;  %5419 = vmatprep.mubr.bf16.mxu1 %v6228_v36 }
 0x199   : > { %v6448_v40 = vadd.f32 %v2297_v60, %v1952_v52  ;;  %v6450_v57 = vadd.f32 %v2299_v48, %v1953_v24  ;;  %v5161_v1 = vpop.f32.mrb[76].mxu1  ;;  %v5217_v28 = vpop.f32.mrb[76].mxu0  ;;  %5475 = vmatprep.mubr.bf16.mxu0 %v6194_v22 }
 0x19a   : > { %v1864_v20 = vrot.slane %v5161_v1, 2  ;;  %v1682_v46 = vpop.f32.mrb[77].mxu1  ;;  %v2115_v50 = vpop.f32.mrb[77].mxu0  ;;  %v2306_v0 = vrot.slane %v5217_v28, 3 }
 0x19b   : > { %v1860_v10 = vrot.slane %v1682_v46, 2  ;;  %v2302_v42 = vrot.slane %v2115_v50, 3  ;;  %v5162_v5 = vpop.f32.mrb[78].mxu1  ;;  %v5218_v54 = vpop.f32.mrb[78].mxu0  ;;  %v7148_v46 = vld [vmem:[#allocation2_spill] sm:$0xff] }
 0x19c   : > { %v1866_v34 = vrot.slane %v5162_v5, 2  ;;  %v2308_v25 = vrot.slane %v5218_v54, 3  ;;  %v1685_v32 = vpop.f32.mrb[79].mxu1  ;;  %v2118_v18 = vpop.f32.mrb[79].mxu0 }
 0x19d   : > { %v1861_v52 = vsel %vm1391_vm1, %v1858_v4, %v1860_v10  ;;  %v2303_v24 = vsel %vm2290_vm2, %v2300_v8, %v2302_v42  ;;  %v1862_v59 = vrot.slane %v1685_v32, 2  ;;  %v2304_v38 = vrot.slane %v2118_v18, 3 }
 0x19e   : > { %v1959_v22 = vadd.f32 %v1861_v52, %v6263_v44  ;;  %v6456_v14 = vadd.f32 %v2303_v24, %v1955_v61  ;;  %v1867_v35 = vsel %vm1391_vm1, %v1864_v20, %v1866_v34  ;;  %v2309_v27 = vsel %vm2290_vm2, %v2306_v0, %v2308_v25  ;;  %5420 = vmatmul.mubr.bf16.gmra.mrb[184].mxu1 %v6244_v2 }
 0x19f   : > { %v1962_v60 = vadd.f32 %v1867_v35, %v6291_v3  ;;  %v6462_v48 = vadd.f32 %v2309_v27, %v1958_v55  ;;  %v1863_v4 = vsel %vm1391_vm1, %v1860_v10, %v1862_v59  ;;  %v1865_v8 = vsel %vm1391_vm1, %v1862_v59, %v1864_v20  ;;  %5476 = vmatmul.mubr.bf16.gmra.mrb[184].mxu0 %v6214_v47  ;;  %v7149_v35 = vld [vmem:[#allocation4_spill] sm:$0xff] }
 0x1a0   : > { %v1960_v44 = vadd.f32 %v1863_v4, %v6248_v16  ;;  %v1961_v61 = vadd.f32 %v1865_v8, %v6269_v15  ;;  %v2305_v1 = vsel %vm2290_vm2, %v2302_v42, %v2304_v38  ;;  %v2307_v28 = vsel %vm2290_vm2, %v2304_v38, %v2306_v0  ;;  %5423 = vmatprep.mubr.bf16.mxu1 %v7148_v46 }
 0x1a1   : > { %v6472_v50 = vadd.f32 %v2305_v1, %v1956_v37  ;;  %v6474_v3 = vadd.f32 %v2307_v28, %v1957_v19  ;;  %v5165_v55 = vpop.f32.mrb[80].mxu1  ;;  %v5221_v10 = vpop.f32.mrb[80].mxu0  ;;  %5479 = vmatprep.mubr.bf16.mxu0 %v6228_v36 }
 0x1a2   : > { %v1872_v20 = vrot.slane %v5165_v55, 2  ;;  %v1698_v47 = vpop.f32.mrb[81].mxu1  ;;  %v2131_v5 = vpop.f32.mrb[81].mxu0  ;;  %v2314_v42 = vrot.slane %v5221_v10, 3  ;;  %v7150_v55 = vld [vmem:[#allocation3_spill] sm:$0xff] }
 0x1a3   : > { %v1868_v16 = vrot.slane %v1698_v47, 2  ;;  %v2310_v54 = vrot.slane %v2131_v5, 3  ;;  %v5166_v15 = vpop.f32.mrb[82].mxu1  ;;  %v5222_v32 = vpop.f32.mrb[82].mxu0 }
 0x1a4   : > { %v1874_v18 = vrot.slane %v5166_v15, 2  ;;  %v2316_v0 = vrot.slane %v5222_v32, 3  ;;  %v1701_v52 = vpop.f32.mrb[83].mxu1  ;;  %v2134_v24 = vpop.f32.mrb[83].mxu0 }
 0x1a5   : > { %v1869_v37 = vsel %vm1391_vm1, %v1866_v34, %v1868_v16  ;;  %v2311_v19 = vsel %vm2290_vm2, %v2308_v25, %v2310_v54  ;;  %v1870_v59 = vrot.slane %v1701_v52, 2  ;;  %v2312_v38 = vrot.slane %v2134_v24, 3 }
 0x1a6   : > { %v1963_v36 = vadd.f32 %v1869_v37, %v7149_v35  ;;  %v6480_v27 = vadd.f32 %v2311_v19, %v1959_v22  ;;  %v1875_v4 = vsel %vm1391_vm1, %v1872_v20, %v1874_v18  ;;  %v2317_v8 = vsel %vm2290_vm2, %v2314_v42, %v2316_v0  ;;  %5424 = vmatmul.mubr.bf16.gmra.mrb[188].mxu1 %v6274_v41 }
 0x1a7   : > { %v1966_v1 = vadd.f32 %v1875_v4, %v6318_v51  ;;  %v6486_v28 = vadd.f32 %v2317_v8, %v1962_v60  ;;  %v1871_v34 = vsel %vm1391_vm1, %v1868_v16, %v1870_v59  ;;  %v1873_v25 = vsel %vm1391_vm1, %v1870_v59, %v1872_v20  ;;  %5480 = vmatmul.mubr.bf16.gmra.mrb[188].mxu0 %v6244_v2 }
 0x1a8   : > { %v1964_v10 = vadd.f32 %v1871_v34, %v7150_v55  ;;  %v1965_v22 = vadd.f32 %v1873_v25, %v6299_v11  ;;  %v2313_v47 = vsel %vm2290_vm2, %v2310_v54, %v2312_v38  ;;  %v2315_v5 = vsel %vm2290_vm2, %v2312_v38, %v2314_v42  ;;  %5427 = vmatprep.mubr.bf16.mxu1 %v6288_v23 }
 0x1a9   : > { %v6496_v15 = vadd.f32 %v2313_v47, %v1960_v44  ;;  %v6498_v51 = vadd.f32 %v2315_v5, %v1961_v61  ;;  %v5169_v60 = vpop.f32.mrb[84].mxu1  ;;  %v5225_v16 = vpop.f32.mrb[84].mxu0  ;;  %5483 = vmatprep.mubr.bf16.mxu0 %v7148_v46  ;;  %v7151_v5 = vld [vmem:[#allocation5_spill] sm:$0xff] }
 0x1aa   : > { %v1880_v20 = vrot.slane %v5169_v60, 2  ;;  %v1714_v2 = vpop.f32.mrb[85].mxu1  ;;  %v2147_v32 = vpop.f32.mrb[85].mxu0  ;;  %v2322_v54 = vrot.slane %v5225_v16, 3 }
 0x1ab   : > { %v1876_v52 = vrot.slane %v1714_v2, 2  ;;  %v2318_v24 = vrot.slane %v2147_v32, 3  ;;  %v5170_v11 = vpop.f32.mrb[86].mxu1  ;;  %v5226_v37 = vpop.f32.mrb[86].mxu0 }
 0x1ac   : > { %v1882_v19 = vrot.slane %v5170_v11, 2  ;;  %v2324_v42 = vrot.slane %v5226_v37, 3  ;;  %v1717_v59 = vpop.f32.mrb[87].mxu1  ;;  %v2150_v38 = vpop.f32.mrb[87].mxu0 }
 0x1ad   : > { %v1877_v44 = vsel %vm1391_vm1, %v1874_v18, %v1876_v52  ;;  %v2319_v61 = vsel %vm2290_vm2, %v2316_v0, %v2318_v24  ;;  %v1878_v35 = vrot.slane %v1717_v59, 2  ;;  %v2320_v4 = vrot.slane %v2150_v38, 3 }
 0x1ae   : > { %v1967_v46 = vadd.f32 %v1877_v44, %v6320_v17  ;;  %v6504_v8 = vadd.f32 %v2319_v61, %v1963_v36  ;;  %v1883_v34 = vsel %vm1391_vm1, %v1880_v20, %v1882_v19  ;;  %v2325_v25 = vsel %vm2290_vm2, %v2322_v54, %v2324_v42  ;;  %5428 = vmatmul.mubr.bf16.gmra.mrb[192].mxu1 %v6304_v31 }
 0x1af   : > { %v1970_v55 = vadd.f32 %v1883_v34, %v6342_v56  ;;  %v6510_v47 = vadd.f32 %v2325_v25, %v1966_v1  ;;  %v1879_v18 = vsel %vm1391_vm1, %v1876_v52, %v1878_v35  ;;  %v1881_v0 = vsel %vm1391_vm1, %v1878_v35, %v1880_v20  ;;  %5484 = vmatmul.mubr.bf16.gmra.mrb[192].mxu0 %v6274_v41 }
 0x1b0   : > { %v1968_v17 = vadd.f32 %v1879_v18, %v7151_v5  ;;  %v1969_v36 = vadd.f32 %v1881_v0, %v6326_v29  ;;  %v2321_v60 = vsel %vm2290_vm2, %v2318_v24, %v2320_v4  ;;  %v2323_v16 = vsel %vm2290_vm2, %v2320_v4, %v2322_v54  ;;  %5487 = vmatprep.mubr.bf16.mxu0 %v6288_v23 }
 0x1b1   : > { %v6520_v2 = vadd.f32 %v2321_v60, %v1964_v10  ;;  %v6522_v56 = vadd.f32 %v2323_v16, %v1965_v22  ;;  %v5173_v1 = vpop.f32.mrb[88].mxu1  ;;  %v5229_v32 = vpop.f32.mrb[88].mxu0 }
 0x1b2   : > { %v1888_v52 = vrot.slane %v5173_v1, 2  ;;  %v1730_v20 = vpop.f32.mrb[89].mxu1  ;;  %v2163_v11 = vpop.f32.mrb[89].mxu0  ;;  %v2330_v29 = vrot.slane %v5229_v32, 3 }
 0x1b3   : > { %v1884_v41 = vrot.slane %v1730_v20, 2  ;;  %v2326_v37 = vrot.slane %v2163_v11, 3  ;;  %v5174_v59 = vpop.f32.mrb[90].mxu1  ;;  %v5230_v38 = vpop.f32.mrb[90].mxu0 }
 0x1b4   : > { %v1890_v44 = vrot.slane %v5174_v59, 2  ;;  %v2332_v24 = vrot.slane %v5230_v38, 3  ;;  %v1733_v61 = vpop.f32.mrb[91].mxu1  ;;  %v2166_v54 = vpop.f32.mrb[91].mxu0 }
 0x1b5   : > { %v1885_v23 = vsel %vm1391_vm1, %v1882_v19, %v1884_v41  ;;  %v2327_v10 = vsel %vm2290_vm2, %v2324_v42, %v2326_v37  ;;  %v1886_v22 = vrot.slane %v1733_v61, 2  ;;  %v2328_v35 = vrot.slane %v2166_v54, 3  ;;  %v7152_v42 = vld [vmem:[#allocation6_spill] sm:$0xff] }
 0x1b6   : > { %v1971_v4 = vadd.f32 %v1885_v23, %v6344_v13  ;;  %v6527_v34 = vadd.f32 %v2327_v10, %v1967_v46  ;;  %v1891_v25 = vsel %vm1391_vm1, %v1888_v52, %v1890_v44  ;;  %v2333_v18 = vsel %vm2290_vm2, %v2330_v29, %v2332_v24 }
 0x1b7   : > { %v1974_v0 = vadd.f32 %v1891_v25, %v6364_v45  ;;  %v6532_v5 = vadd.f32 %v2333_v18, %v1970_v55  ;;  %v1887_v60 = vsel %vm1391_vm1, %v1884_v41, %v1886_v22  ;;  %v1889_v19 = vsel %vm1391_vm1, %v1886_v22, %v1888_v52  ;;  %5488 = vmatmul.mubr.bf16.gmra.mrb[196].mxu0 %v6304_v31 }
 0x1b8   : > { %v1972_v16 = vadd.f32 %v1887_v60, %v7152_v42  ;;  %v1973_v13 = vadd.f32 %v1889_v19, %v6349_v58  ;;  %v2329_v46 = vsel %vm2290_vm2, %v2326_v37, %v2328_v35  ;;  %v2331_v1 = vsel %vm2290_vm2, %v2328_v35, %v2330_v29 }
 0x1b9   : > { %v6541_v32 = vadd.f32 %v2329_v46, %v1968_v17  ;;  %v6543_v20 = vadd.f32 %v2331_v1, %v1969_v36  ;;  %v5177_v45 = vpop.f32.mrb[92].mxu1  ;;  %v5233_v55 = vpop.f32.mrb[92].mxu0 }
 0x1ba   : > { %v1896_v11 = vrot.slane %v5177_v45, 2  ;;  %v1746_v41 = vpop.f32.mrb[93].mxu1  ;;  %v2179_v59 = vpop.f32.mrb[93].mxu0  ;;  %v2338_v54 = vrot.slane %v5233_v55, 3 }
 0x1bb   : > { %v1892_v52 = vrot.slane %v1746_v41, 2  ;;  %v2334_v38 = vrot.slane %v2179_v59, 3  ;;  %v5178_v31 = vpop.f32.mrb[94].mxu1  ;;  %v5234_v61 = vpop.f32.mrb[94].mxu0 }
 0x1bc   : > { %v1898_v23 = vrot.slane %v5178_v31, 2  ;;  %v2340_v58 = vrot.slane %v5234_v61, 3  ;;  %v1749_v10 = vpop.f32.mrb[95].mxu1  ;;  %v2182_v37 = vpop.f32.mrb[95].mxu0 }
 0x1bd   : > { %v1893_v29 = vsel %vm1391_vm1, %v1890_v44, %v1892_v52  ;;  %v2335_v17 = vsel %vm2290_vm2, %v2332_v24, %v2334_v38  ;;  %v1894_v36 = vrot.slane %v1749_v10, 2  ;;  %v2336_v22 = vrot.slane %v2182_v37, 3 }
 0x1be   : > { %v1975_v35 = vadd.f32 %v1893_v29, %v6366_v33  ;;  %v6548_v25 = vadd.f32 %v2335_v17, %v1971_v4  ;;  %v1899_v18 = vsel %vm1391_vm1, %v1896_v11, %v1898_v23  ;;  %v2341_v60 = vsel %vm2290_vm2, %v2338_v54, %v2340_v58 }
 0x1bf   : > { %v1978_v19 = vadd.f32 %v1899_v18, %v6386_v63  ;;  %v6553_v42 = vadd.f32 %v2341_v60, %v1974_v0  ;;  %v1895_v46 = vsel %vm1391_vm1, %v1892_v52, %v1894_v36  ;;  %v1897_v44 = vsel %vm1391_vm1, %v1894_v36, %v1896_v11 }
 0x1c0   : > { %v1976_v24 = vadd.f32 %v1895_v46, %v6355_v21  ;;  %v1977_v1 = vadd.f32 %v1897_v44, %v6371_v43  ;;  %v2337_v33 = vsel %vm2290_vm2, %v2334_v38, %v2336_v22  ;;  %v2339_v4 = vsel %vm2290_vm2, %v2336_v22, %v2338_v54 }
 0x1c1   : > { %v6561_v45 = vadd.f32 %v2337_v33, %v1972_v16  ;;  %v6563_v55 = vadd.f32 %v2339_v4, %v1973_v13  ;;  %v5181_v41 = vpop.f32.mrb[96].mxu1  ;;  %v5237_v63 = vpop.f32.mrb[96].mxu0 }
 0x1c2   : > { %v1904_v0 = vrot.slane %v5181_v41, 2  ;;  %v1762_v59 = vpop.f32.mrb[97].mxu1  ;;  %v2195_v31 = vpop.f32.mrb[97].mxu0  ;;  %v2346_v21 = vrot.slane %v5237_v63, 3 }
 0x1c3   : > { %v1900_v52 = vrot.slane %v1762_v59, 2  ;;  %v2342_v61 = vrot.slane %v2195_v31, 3  ;;  %v5182_v11 = vpop.f32.mrb[98].mxu1  ;;  %v5238_v10 = vpop.f32.mrb[98].mxu0 }
 0x1c4   : > { %v1906_v37 = vrot.slane %v5182_v11, 2  ;;  %v2348_v43 = vrot.slane %v5238_v10, 3  ;;  %v1765_v29 = vpop.f32.mrb[99].mxu1  ;;  %v2198_v38 = vpop.f32.mrb[99].mxu0 }
 0x1c5   : > { %v1901_v54 = vsel %vm1391_vm1, %v1898_v23, %v1900_v52  ;;  %v2343_v16 = vsel %vm2290_vm2, %v2340_v58, %v2342_v61  ;;  %v1902_v13 = vrot.slane %v1765_v29, 2  ;;  %v2344_v17 = vrot.slane %v2198_v38, 3 }
 0x1c6   : > { %v1979_v36 = vadd.f32 %v1901_v54, %v6388_v49  ;;  %v6568_v22 = vadd.f32 %v2343_v16, %v1975_v35  ;;  %v1907_v18 = vsel %vm1391_vm1, %v1904_v0, %v1906_v37  ;;  %v2349_v60 = vsel %vm2290_vm2, %v2346_v21, %v2348_v43 }
 0x1c7   : > { %v1982_v46 = vadd.f32 %v1907_v18, %v6402_v62  ;;  %v6573_v44 = vadd.f32 %v2349_v60, %v1978_v19  ;;  %v1903_v33 = vsel %vm1391_vm1, %v1900_v52, %v1902_v13  ;;  %v1905_v23 = vsel %vm1391_vm1, %v1902_v13, %v1904_v0 }
 0x1c8   : > { %v1980_v58 = vadd.f32 %v1903_v33, %v6377_v7  ;;  %v1981_v4 = vadd.f32 %v1905_v23, %v6393_v9  ;;  %v2345_v49 = vsel %vm2290_vm2, %v2342_v61, %v2344_v17  ;;  %v2347_v35 = vsel %vm2290_vm2, %v2344_v17, %v2346_v21 }
 0x1c9   : > { %v6581_v41 = vadd.f32 %v2345_v49, %v1976_v24  ;;  %v6583_v63 = vadd.f32 %v2347_v35, %v1977_v1  ;;  %v5185_v59 = vpop.f32.mrb[100].mxu1  ;;  %v5241_v62 = vpop.f32.mrb[100].mxu0 }
 0x1ca   : > { %v1778_v19 = vpop.f32.mrb[101].mxu1  ;;  %v2211_v31 = vpop.f32.mrb[101].mxu0  ;;  %v1912_v11 = vrot.slane %v5185_v59, 2  ;;  %v2354_v7 = vrot.slane %v5241_v62, 3 }
 0x1cb   : > { %v1908_v52 = vrot.slane %v1778_v19, 2  ;;  %v2350_v10 = vrot.slane %v2211_v31, 3  ;;  %v5186_v0 = vpop.f32.mrb[102].mxu1  ;;  %v5242_v29 = vpop.f32.mrb[102].mxu0 }
 0x1cc   : > { %v2356_v38 = vrot.slane %v5242_v29, 3  ;;  %v1781_v9 = vpop.f32.mrb[103].mxu1  ;;  %v2214_v54 = vpop.f32.mrb[103].mxu0 }
 0x1cd   : > { %v1909_v61 = vsel %vm1391_vm1, %v1906_v37, %v1908_v52  ;;  %v2351_v24 = vsel %vm2290_vm2, %v2348_v43, %v2350_v10  ;;  %v1910_v21 = vrot.slane %v1781_v9, 2  ;;  %v2352_v1 = vrot.slane %v2214_v54, 3 }
 0x1ce   : > { %v1983_v16 = vadd.f32 %v1909_v61, %v6404_v26  ;;  %v6588_v13 = vadd.f32 %v2351_v24, %v1979_v36  ;;  %v2357_v17 = vsel %vm2290_vm2, %v2354_v7, %v2356_v38 }
 0x1cf   : > { %v6591_v18 = vadd.f32 %v2357_v17, %v1982_v46  ;;  %v1911_v60 = vsel %vm1391_vm1, %v1908_v52, %v1910_v21  ;;  %v1913_v33 = vsel %vm1391_vm1, %v1910_v21, %v1912_v11  ;;  %v2353_v23 = vsel %vm2290_vm2, %v2350_v10, %v2352_v1 }
 0x1d0   : > { %v1984_v37 = vadd.f32 %v1911_v60, %v6397_v30  ;;  %v1985_v43 = vadd.f32 %v1913_v33, %v6407_v12  ;;  %v2355_v49 = vsel %vm2290_vm2, %v2352_v1, %v2354_v7  ;;  %v6599_v35 = vadd.f32 %v2353_v23, %v1980_v58 }
 0x1d1   : > { %v6601_v26 = vadd.f32 %v2355_v49, %v1981_v4  ;;  %v5245_v36 = vpop.f32.mrb[104].mxu0  ;;  %v5189_v59 = vpop.f32.mrb[104].mxu1 }
 0x1d2   : > { %v2227_v46 = vpop.f32.mrb[105].mxu0  ;;  %v1793_v62 = vpop.f32.mrb[105].mxu1  ;;  %v2362_v10 = vrot.slane %v5245_v36, 3 }
 0x1d3   : > { %v2358_v19 = vrot.slane %v2227_v46, 3  ;;  %v5246_v31 = vpop.f32.mrb[106].mxu0  ;;  %v5190_v52 = vpop.f32.mrb[106].mxu1 }
 0x1d4   : > { %v2230_v11 = vpop.f32.mrb[107].mxu0  ;;  %v1795_v0 = vpop.f32.mrb[107].mxu1 }
 0x1d5   : > { %v2359_v30 = vsel %vm2290_vm2, %v2356_v38, %v2358_v19  ;;  %v2360_v29 = vrot.slane %v2230_v11, 3 }
 0x1d6   : > { %v6604_v12 = vadd.f32 %v2359_v30, %v1983_v16 }
 0x1d7   : > { %v2361_v58 = vsel %vm2290_vm2, %v2358_v19, %v2360_v29  ;;  %v2363_v4 = vsel %vm2290_vm2, %v2360_v29, %v2362_v10 }
 0x1d8   : > { %v6608_v7 = vadd.f32 %v2361_v58, %v1984_v37  ;;  %v6610_v9 = vadd.f32 %v2363_v4, %v1985_v43 }
 0x1d9   : > { %v5249_v54 = vpop.f32.mrb[108].mxu0  ;;  %v5269_v61 = vpop.f32.mrb[108].mxu1 }
 0x1da   : > { %v2741_v24 = vrot.slane %v5269_v61, 4  ;;  %v2242_v21 = vpop.f32.mrb[109].mxu0  ;;  %v2535_v1 = vpop.f32.mrb[109].mxu1 }
 0x1db   : > { %v5250_v17 = vpop.f32.mrb[110].mxu0  ;;  %v5270_v60 = vpop.f32.mrb[110].mxu1 }
 0x1dc   : > { %v2742_v38 = vrot.slane %v5270_v60, 4  ;;  %v2244_v33 = vpop.f32.mrb[111].mxu0  ;;  %v2537_v16 = vpop.f32.mrb[111].mxu1 }
 0x1de   : > { %v2743_v23 = vsel %vm2740_vm3, %v2741_v24, %v2742_v38 }
 0x1df   : > { %v2850_v49 = vadd.f32 %v2743_v23, %v6421_v39 }
 0x1e1   : > { %v5273_v36 = vpop.f32.mrb[112].mxu1  ;;  %v5329_v37 = vpop.f32.mrb[112].mxu0 }
 0x1e2   : > { %v2748_v59 = vrot.slane %v5273_v36, 4  ;;  %v2549_v43 = vpop.f32.mrb[113].mxu1  ;;  %v2985_v46 = vpop.f32.mrb[113].mxu0 }
 0x1e3   : > { %v2744_v62 = vrot.slane %v2549_v43, 4  ;;  %v5274_v19 = vpop.f32.mrb[114].mxu1  ;;  %v5330_v31 = vpop.f32.mrb[114].mxu0 }
 0x1e4   : > { %v2750_v52 = vrot.slane %v5274_v19, 4  ;;  %v2552_v11 = vpop.f32.mrb[115].mxu1  ;;  %v2987_v0 = vpop.f32.mrb[115].mxu0 }
 0x1e5   : > { %v2745_v10 = vsel %vm2740_vm3, %v2742_v38, %v2744_v62  ;;  %v2746_v30 = vrot.slane %v2552_v11, 4 }
 0x1e6   : > { %v2851_v29 = vadd.f32 %v2745_v10, %v6432_v6  ;;  %v2751_v58 = vsel %vm2740_vm3, %v2748_v59, %v2750_v52 }
 0x1e7   : > { %v6618_v39 = vadd.f32 %v2751_v58, %v6438_v53  ;;  %v2747_v4 = vsel %vm2740_vm3, %v2744_v62, %v2746_v30  ;;  %v2749_v54 = vsel %vm2740_vm3, %v2746_v30, %v2748_v59 }
 0x1e8   : > { %v2852_v61 = vadd.f32 %v2747_v4, %v6448_v40  ;;  %v2853_v24 = vadd.f32 %v2749_v54, %v6450_v57 }
 0x1e9   : > { %v5277_v21 = vpop.f32.mrb[116].mxu1  ;;  %v5333_v1 = vpop.f32.mrb[116].mxu0 }
 0x1ea   : > { %v2756_v17 = vrot.slane %v5277_v21, 4  ;;  %v2565_v60 = vpop.f32.mrb[117].mxu1  ;;  %v2997_v38 = vpop.f32.mrb[117].mxu0  ;;  %v3193_v23 = vrot.slane %v5333_v1, 4 }
 0x1eb   : > { %v2752_v33 = vrot.slane %v2565_v60, 4  ;;  %v5278_v6 = vpop.f32.mrb[118].mxu1  ;;  %v5334_v16 = vpop.f32.mrb[118].mxu0  ;;  %v3190_v57 = vrot.slane %v2997_v38, 4 }
 0x1ec   : > { %v2758_v36 = vrot.slane %v5278_v6, 4  ;;  %v3195_v53 = vrot.slane %v5334_v16, 4  ;;  %v2568_v37 = vpop.f32.mrb[119].mxu1  ;;  %v3000_v43 = vpop.f32.mrb[119].mxu0 }
 0x1ed   : > { %v2753_v46 = vsel %vm2740_vm3, %v2750_v52, %v2752_v33  ;;  %v2754_v59 = vrot.slane %v2568_v37, 4  ;;  %v3191_v62 = vrot.slane %v3000_v43, 4 }
 0x1ee   : > { %v2855_v40 = vadd.f32 %v2753_v46, %v6456_v14  ;;  %v2759_v19 = vsel %vm2740_vm3, %v2756_v17, %v2758_v36  ;;  %v3196_v31 = vsel %vm2740_vm3, %v3193_v23, %v3195_v53 }
 0x1ef   : > { %v6629_v11 = vadd.f32 %v2759_v19, %v6462_v48  ;;  %v6631_v0 = vadd.f32 %v3196_v31, %v2852_v61  ;;  %v2755_v10 = vsel %vm2740_vm3, %v2752_v33, %v2754_v59  ;;  %v2757_v30 = vsel %vm2740_vm3, %v2754_v59, %v2756_v17 }
 0x1f0   : > { %v2856_v52 = vadd.f32 %v2755_v10, %v6472_v50  ;;  %v2857_v58 = vadd.f32 %v2757_v30, %v6474_v3  ;;  %v3192_v14 = vsel %vm2740_vm3, %v3190_v57, %v3191_v62  ;;  %v3194_v4 = vsel %vm2740_vm3, %v3191_v62, %v3193_v23 }
 0x1f1   : > { %v6639_v54 = vadd.f32 %v3192_v14, %v2850_v49  ;;  %v6641_v21 = vadd.f32 %v3194_v4, %v2851_v29  ;;  %v5281_v48 = vpop.f32.mrb[120].mxu1  ;;  %v5337_v1 = vpop.f32.mrb[120].mxu0 }
 0x1f2   : > { %v2764_v61 = vrot.slane %v5281_v48, 4  ;;  %v2581_v60 = vpop.f32.mrb[121].mxu1  ;;  %v3013_v38 = vpop.f32.mrb[121].mxu0  ;;  %v3201_v50 = vrot.slane %v5337_v1, 4 }
 0x1f3   : > { %v2760_v33 = vrot.slane %v2581_v60, 4  ;;  %v3197_v6 = vrot.slane %v3013_v38, 4  ;;  %v5282_v17 = vpop.f32.mrb[122].mxu1  ;;  %v5338_v16 = vpop.f32.mrb[122].mxu0 }
 0x1f4   : > { %v2766_v37 = vrot.slane %v5282_v17, 4  ;;  %v3203_v3 = vrot.slane %v5338_v16, 4  ;;  %v2584_v43 = vpop.f32.mrb[123].mxu1  ;;  %v3016_v46 = vpop.f32.mrb[123].mxu0 }
 0x1f5   : > { %v2761_v23 = vsel %vm2740_vm3, %v2758_v36, %v2760_v33  ;;  %v3198_v49 = vsel %vm2740_vm3, %v3195_v53, %v3197_v6  ;;  %v2762_v29 = vrot.slane %v2584_v43, 4  ;;  %v3199_v59 = vrot.slane %v3016_v46, 4 }
 0x1f6   : > { %v2859_v62 = vadd.f32 %v2761_v23, %v6480_v27  ;;  %v6646_v57 = vadd.f32 %v3198_v49, %v2853_v24  ;;  %v2767_v19 = vsel %vm2740_vm3, %v2764_v61, %v2766_v37  ;;  %v3204_v31 = vsel %vm2740_vm3, %v3201_v50, %v3203_v3 }
 0x1f7   : > { %v6651_v10 = vadd.f32 %v2767_v19, %v6486_v28  ;;  %v6653_v30 = vadd.f32 %v3204_v31, %v2856_v52  ;;  %v2763_v14 = vsel %vm2740_vm3, %v2760_v33, %v2762_v29  ;;  %v2765_v36 = vsel %vm2740_vm3, %v2762_v29, %v2764_v61 }
 0x1f8   : > { %v2860_v53 = vadd.f32 %v2763_v14, %v6496_v15  ;;  %v2861_v4 = vadd.f32 %v2765_v36, %v6498_v51  ;;  %v3200_v27 = vsel %vm2740_vm3, %v3197_v6, %v3199_v59  ;;  %v3202_v24 = vsel %vm2740_vm3, %v3199_v59, %v3201_v50 }
 0x1f9   : > { %v6662_v48 = vadd.f32 %v3200_v27, %v6618_v39  ;;  %v6664_v1 = vadd.f32 %v3202_v24, %v2855_v40  ;;  %v5285_v28 = vpop.f32.mrb[124].mxu1  ;;  %v5341_v52 = vpop.f32.mrb[124].mxu0 }
 0x1fa   : > { %v2772_v60 = vrot.slane %v5285_v28, 4  ;;  %v2597_v38 = vpop.f32.mrb[125].mxu1  ;;  %v3029_v33 = vpop.f32.mrb[125].mxu0  ;;  %v3209_v43 = vrot.slane %v5341_v52, 4 }
 0x1fb   : > { %v2768_v17 = vrot.slane %v2597_v38, 4  ;;  %v3205_v61 = vrot.slane %v3029_v33, 4  ;;  %v5286_v16 = vpop.f32.mrb[126].mxu1  ;;  %v5342_v15 = vpop.f32.mrb[126].mxu0 }
 0x1fc   : > { %v2774_v51 = vrot.slane %v5286_v16, 4  ;;  %v3211_v46 = vrot.slane %v5342_v15, 4  ;;  %v2600_v6 = vpop.f32.mrb[127].mxu1  ;;  %v3032_v23 = vpop.f32.mrb[127].mxu0 }
 0x1fd   : > { %v2769_v50 = vsel %vm2740_vm3, %v2766_v37, %v2768_v17  ;;  %v3206_v39 = vsel %vm2740_vm3, %v3203_v3, %v3205_v61  ;;  %v2770_v40 = vrot.slane %v2600_v6, 4  ;;  %v3207_v49 = vrot.slane %v3032_v23, 4 }
 0x1fe   : > { %v2863_v29 = vadd.f32 %v2769_v50, %v6504_v8  ;;  %v6669_v59 = vadd.f32 %v3206_v39, %v2857_v58  ;;  %v2775_v19 = vsel %vm2740_vm3, %v2772_v60, %v2774_v51  ;;  %v3212_v31 = vsel %vm2740_vm3, %v3209_v43, %v3211_v46 }
 0x1ff   : > { %v6674_v14 = vadd.f32 %v2775_v19, %v6510_v47  ;;  %v6676_v36 = vadd.f32 %v3212_v31, %v2860_v53  ;;  %v2771_v27 = vsel %vm2740_vm3, %v2768_v17, %v2770_v40  ;;  %v2773_v37 = vsel %vm2740_vm3, %v2770_v40, %v2772_v60 }
 0x200   : > { %v2864_v3 = vadd.f32 %v2771_v27, %v6520_v2  ;;  %v2865_v24 = vadd.f32 %v2773_v37, %v6522_v56  ;;  %v3208_v8 = vsel %vm2740_vm3, %v3205_v61, %v3207_v49  ;;  %v3210_v58 = vsel %vm2740_vm3, %v3207_v49, %v3209_v43 }
 0x201   : > { %v6685_v28 = vadd.f32 %v3208_v8, %v6629_v11  ;;  %v6687_v52 = vadd.f32 %v3210_v58, %v2859_v62  ;;  %v5289_v47 = vpop.f32.mrb[128].mxu1  ;;  %v5345_v53 = vpop.f32.mrb[128].mxu0 }
 0x202   : > { %v2780_v38 = vrot.slane %v5289_v47, 4  ;;  %v2613_v33 = vpop.f32.mrb[129].mxu1  ;;  %v3045_v17 = vpop.f32.mrb[129].mxu0  ;;  %v3217_v6 = vrot.slane %v5345_v53, 4 }
 0x203   : > { %v2776_v16 = vrot.slane %v2613_v33, 4  ;;  %v3213_v60 = vrot.slane %v3045_v17, 4  ;;  %v5290_v15 = vpop.f32.mrb[130].mxu1  ;;  %v5346_v2 = vpop.f32.mrb[130].mxu0 }
 0x204   : > { %v2782_v56 = vrot.slane %v5290_v15, 4  ;;  %v3219_v23 = vrot.slane %v5346_v2, 4  ;;  %v2616_v61 = vpop.f32.mrb[131].mxu1  ;;  %v3048_v50 = vpop.f32.mrb[131].mxu0 }
 0x205   : > { %v2777_v43 = vsel %vm2740_vm3, %v2774_v51, %v2776_v16  ;;  %v3214_v11 = vsel %vm2740_vm3, %v3211_v46, %v3213_v60  ;;  %v2778_v62 = vrot.slane %v2616_v61, 4  ;;  %v3215_v39 = vrot.slane %v3048_v50, 4 }
 0x206   : > { %v2867_v40 = vadd.f32 %v2777_v43, %v6527_v34  ;;  %v6692_v49 = vadd.f32 %v3214_v11, %v2861_v4  ;;  %v2783_v19 = vsel %vm2740_vm3, %v2780_v38, %v2782_v56  ;;  %v3220_v31 = vsel %vm2740_vm3, %v3217_v6, %v3219_v23 }
 0x207   : > { %v6697_v27 = vadd.f32 %v2783_v19, %v6532_v5  ;;  %v6699_v37 = vadd.f32 %v3220_v31, %v2864_v3  ;;  %v2779_v8 = vsel %vm2740_vm3, %v2776_v16, %v2778_v62  ;;  %v2781_v51 = vsel %vm2740_vm3, %v2778_v62, %v2780_v38 }
 0x208   : > { %v2868_v46 = vadd.f32 %v2779_v8, %v6541_v32  ;;  %v2869_v58 = vadd.f32 %v2781_v51, %v6543_v20  ;;  %v3216_v34 = vsel %vm2740_vm3, %v3213_v60, %v3215_v39  ;;  %v3218_v4 = vsel %vm2740_vm3, %v3215_v39, %v3217_v6 }
 0x209   : > { %v6708_v47 = vadd.f32 %v3216_v34, %v6651_v10  ;;  %v6710_v53 = vadd.f32 %v3218_v4, %v2863_v29  ;;  %v5293_v5 = vpop.f32.mrb[132].mxu1  ;;  %v5349_v3 = vpop.f32.mrb[132].mxu0 }
 0x20a   : > { %v2788_v33 = vrot.slane %v5293_v5, 4  ;;  %v2629_v17 = vpop.f32.mrb[133].mxu1  ;;  %v3061_v16 = vpop.f32.mrb[133].mxu0  ;;  %v3225_v61 = vrot.slane %v5349_v3, 4 }
 0x20b   : > { %v2784_v15 = vrot.slane %v2629_v17, 4  ;;  %v3221_v38 = vrot.slane %v3061_v16, 4  ;;  %v5294_v2 = vpop.f32.mrb[134].mxu1  ;;  %v5350_v32 = vpop.f32.mrb[134].mxu0 }
 0x20c   : > { %v2790_v20 = vrot.slane %v5294_v2, 4  ;;  %v3227_v50 = vrot.slane %v5350_v32, 4  ;;  %v2632_v60 = vpop.f32.mrb[135].mxu1  ;;  %v3064_v43 = vpop.f32.mrb[135].mxu0 }
 0x20d   : > { %v2785_v6 = vsel %vm2740_vm3, %v2782_v56, %v2784_v15  ;;  %v3222_v10 = vsel %vm2740_vm3, %v3219_v23, %v3221_v38  ;;  %v2786_v29 = vrot.slane %v2632_v60, 4  ;;  %v3223_v11 = vrot.slane %v3064_v43, 4 }
 0x20e   : > { %v2871_v62 = vadd.f32 %v2785_v6, %v6548_v25  ;;  %v6715_v39 = vadd.f32 %v3222_v10, %v2865_v24  ;;  %v2791_v19 = vsel %vm2740_vm3, %v2788_v33, %v2790_v20  ;;  %v3228_v31 = vsel %vm2740_vm3, %v3225_v61, %v3227_v50 }
 0x20f   : > { %v6720_v8 = vadd.f32 %v2791_v19, %v6553_v42  ;;  %v6722_v51 = vadd.f32 %v3228_v31, %v2868_v46  ;;  %v2787_v34 = vsel %vm2740_vm3, %v2784_v15, %v2786_v29  ;;  %v2789_v56 = vsel %vm2740_vm3, %v2786_v29, %v2788_v33 }
 0x210   : > { %v2872_v23 = vadd.f32 %v2787_v34, %v6561_v45  ;;  %v2873_v4 = vadd.f32 %v2789_v56, %v6563_v55  ;;  %v3224_v25 = vsel %vm2740_vm3, %v3221_v38, %v3223_v11  ;;  %v3226_v24 = vsel %vm2740_vm3, %v3223_v11, %v3225_v61 }
 0x211   : > { %v6731_v5 = vadd.f32 %v3224_v25, %v6674_v14  ;;  %v6733_v3 = vadd.f32 %v3226_v24, %v2867_v40  ;;  %v5297_v42 = vpop.f32.mrb[136].mxu1 }
 0x212   : > { %v2796_v46 = vrot.slane %v5297_v42, 4  ;;  %v5353_v17 = vpop.f32.mrb[136].mxu0  ;;  %v2645_v16 = vpop.f32.mrb[137].mxu1 }
 0x213   : > { %v2792_v15 = vrot.slane %v2645_v16, 4  ;;  %v3077_v2 = vpop.f32.mrb[137].mxu0  ;;  %v5298_v33 = vpop.f32.mrb[138].mxu1  ;;  %v3233_v43 = vrot.slane %v5353_v17, 4 }
 0x214   : > { %v3229_v32 = vrot.slane %v3077_v2, 4  ;;  %v2798_v45 = vrot.slane %v5298_v33, 4  ;;  %v5354_v60 = vpop.f32.mrb[138].mxu0  ;;  %v2648_v55 = vpop.f32.mrb[139].mxu1 }
 0x215   : > { %v2793_v38 = vsel %vm2740_vm3, %v2790_v20, %v2792_v15  ;;  %v3235_v61 = vrot.slane %v5354_v60, 4  ;;  %v2794_v6 = vrot.slane %v2648_v55, 4  ;;  %v3080_v14 = vpop.f32.mrb[139].mxu0 }
 0x216   : > { %v2875_v40 = vadd.f32 %v2793_v38, %v6568_v22  ;;  %v3230_v10 = vsel %vm2740_vm3, %v3227_v50, %v3229_v32  ;;  %v2799_v29 = vsel %vm2740_vm3, %v2796_v46, %v2798_v45  ;;  %v3231_v11 = vrot.slane %v3080_v14, 4 }
 0x217   : > { %v6739_v19 = vadd.f32 %v3230_v10, %v2869_v58  ;;  %v6742_v31 = vadd.f32 %v2799_v29, %v6573_v44  ;;  %v3236_v34 = vsel %vm2740_vm3, %v3233_v43, %v3235_v61  ;;  %v2795_v56 = vsel %vm2740_vm3, %v2792_v15, %v2794_v6 }
 0x218   : > { %v6746_v20 = vadd.f32 %v3236_v34, %v2872_v23  ;;  %v2797_v25 = vsel %vm2740_vm3, %v2794_v6, %v2796_v46  ;;  %v2876_v22 = vadd.f32 %v2795_v56, %v6581_v41  ;;  %v3232_v50 = vsel %vm2740_vm3, %v3229_v32, %v3231_v11 }
 0x219   : > { %v2877_v24 = vadd.f32 %v2797_v25, %v6583_v63  ;;  %v3234_v58 = vsel %vm2740_vm3, %v3231_v11, %v3233_v43  ;;  %v6754_v42 = vadd.f32 %v3232_v50, %v6697_v27  ;;  %v5301_v44 = vpop.f32.mrb[140].mxu1 }
 0x21a   : > { %v6756_v17 = vadd.f32 %v3234_v58, %v2871_v62  ;;  %v2804_v16 = vrot.slane %v5301_v44, 4  ;;  %v5357_v15 = vpop.f32.mrb[140].mxu0  ;;  %v2661_v23 = vpop.f32.mrb[141].mxu1 }
 0x21b   : > { %v2800_v2 = vrot.slane %v2661_v23, 4  ;;  %v3093_v33 = vpop.f32.mrb[141].mxu0  ;;  %v5302_v46 = vpop.f32.mrb[142].mxu1  ;;  %v3241_v38 = vrot.slane %v5357_v15, 4 }
 0x21c   : > { %v3237_v60 = vrot.slane %v3093_v33, 4  ;;  %v2806_v41 = vrot.slane %v5302_v46, 4  ;;  %v5358_v55 = vpop.f32.mrb[142].mxu0  ;;  %v2664_v32 = vpop.f32.mrb[143].mxu1 }
 0x21d   : > { %v2801_v63 = vsel %vm2740_vm3, %v2798_v45, %v2800_v2  ;;  %v3243_v43 = vrot.slane %v5358_v55, 4  ;;  %v2802_v6 = vrot.slane %v2664_v32, 4  ;;  %v3096_v27 = vpop.f32.mrb[143].mxu0 }
 0x21e   : > { %v2879_v14 = vadd.f32 %v2801_v63, %v6588_v13  ;;  %v3238_v62 = vsel %vm2740_vm3, %v3235_v61, %v3237_v60  ;;  %v2807_v10 = vsel %vm2740_vm3, %v2804_v16, %v2806_v41  ;;  %v3239_v29 = vrot.slane %v3096_v27, 4 }
 0x21f   : > { %v6762_v11 = vadd.f32 %v3238_v62, %v2873_v4  ;;  %v2882_v34 = vadd.f32 %v2807_v10, %v6591_v18  ;;  %v3244_v56 = vsel %vm2740_vm3, %v3241_v38, %v3243_v43  ;;  %v2803_v25 = vsel %vm2740_vm3, %v2800_v2, %v2802_v6 }
 0x220   : > { %v6767_v50 = vadd.f32 %v3244_v56, %v2876_v22  ;;  %v2805_v45 = vsel %vm2740_vm3, %v2802_v6, %v2804_v16  ;;  %v2880_v58 = vadd.f32 %v2803_v25, %v6599_v35  ;;  %v3240_v13 = vsel %vm2740_vm3, %v3237_v60, %v3239_v29 }
 0x221   : > { %v2881_v61 = vadd.f32 %v2805_v45, %v6601_v26  ;;  %v3242_v44 = vsel %vm2740_vm3, %v3239_v29, %v3241_v38  ;;  %v6775_v4 = vadd.f32 %v3240_v13, %v6720_v8  ;;  %v5305_v18 = vpop.f32.mrb[144].mxu1 }
 0x222   : > { %v6777_v15 = vadd.f32 %v3242_v44, %v2875_v40  ;;  %v5361_v23 = vpop.f32.mrb[144].mxu0  ;;  %v2677_v2 = vpop.f32.mrb[145].mxu1  ;;  %v2812_v22 = vrot.slane %v5305_v18, 4 }
 0x223   : > { %v2808_v33 = vrot.slane %v2677_v2, 4  ;;  %v3109_v46 = vpop.f32.mrb[145].mxu0  ;;  %v5306_v16 = vpop.f32.mrb[146].mxu1  ;;  %v3249_v60 = vrot.slane %v5361_v23, 4 }
 0x224   : > { %v3245_v55 = vrot.slane %v3109_v46, 4  ;;  %v5362_v35 = vpop.f32.mrb[146].mxu0  ;;  %v2680_v32 = vpop.f32.mrb[147].mxu1 }
 0x225   : > { %v2809_v26 = vsel %vm2740_vm3, %v2806_v41, %v2808_v33  ;;  %v3251_v63 = vrot.slane %v5362_v35, 4  ;;  %v2810_v38 = vrot.slane %v2680_v32, 4  ;;  %v3112_v6 = vpop.f32.mrb[147].mxu0 }
 0x226   : > { %v2883_v8 = vadd.f32 %v2809_v26, %v6604_v12  ;;  %v3246_v40 = vsel %vm2740_vm3, %v3243_v43, %v3245_v55  ;;  %v3247_v27 = vrot.slane %v3112_v6, 4 }
 0x227   : > { %v6782_v62 = vadd.f32 %v3246_v40, %v2877_v24  ;;  %v3252_v10 = vsel %vm2740_vm3, %v3249_v60, %v3251_v63  ;;  %v2811_v29 = vsel %vm2740_vm3, %v2808_v33, %v2810_v38  ;;  %v2813_v56 = vsel %vm2740_vm3, %v2810_v38, %v2812_v22 }
 0x228   : > { %v6787_v25 = vadd.f32 %v3252_v10, %v2880_v58  ;;  %v2884_v41 = vadd.f32 %v2811_v29, %v6608_v7  ;;  %v2885_v45 = vadd.f32 %v2813_v56, %v6610_v9  ;;  %v3248_v13 = vsel %vm2740_vm3, %v3245_v55, %v3247_v27 }
 0x229   : > { %v3250_v12 = vsel %vm2740_vm3, %v3247_v27, %v3249_v60  ;;  %v6794_v43 = vadd.f32 %v3248_v13, %v6742_v31  ;;  %v5309_v24 = vpop.f32.mrb[148].mxu1 }
 0x22a   : > { %v6796_v44 = vadd.f32 %v3250_v12, %v2879_v14  ;;  %v5365_v18 = vpop.f32.mrb[148].mxu0  ;;  %v2692_v23 = vpop.f32.mrb[149].mxu1 }
 0x22b   : > { %v3125_v2 = vpop.f32.mrb[149].mxu0  ;;  %v5310_v22 = vpop.f32.mrb[150].mxu1  ;;  %v3257_v7 = vrot.slane %v5365_v18, 4 }
 0x22c   : > { %v3253_v58 = vrot.slane %v3125_v2, 4  ;;  %v5366_v33 = vpop.f32.mrb[150].mxu0  ;;  %v2694_v46 = vpop.f32.mrb[151].mxu1 }
 0x22d   : > { %v3259_v16 = vrot.slane %v5366_v33, 4  ;;  %v3128_v9 = vpop.f32.mrb[151].mxu0 }
 0x22e   : > { %v3254_v55 = vsel %vm2740_vm3, %v3251_v63, %v3253_v58  ;;  %v3255_v35 = vrot.slane %v3128_v9, 4 }
 0x22f   : > { %v6799_v32 = vadd.f32 %v3254_v55, %v2881_v61  ;;  %v3260_v31 = vsel %vm2740_vm3, %v3257_v7, %v3259_v16 }
 0x230   : > { %v6802_v60 = vadd.f32 %v3260_v31, %v2884_v41  ;;  %v3256_v14 = vsel %vm2740_vm3, %v3253_v58, %v3255_v35  ;;  %v3258_v26 = vsel %vm2740_vm3, %v3255_v35, %v3257_v7 }
 0x231   : > { %v6806_v38 = vadd.f32 %v3256_v14, %v2882_v34  ;;  %v6808_v6 = vadd.f32 %v3258_v26, %v2883_v8  ;;  %v5389_v40 = vpop.f32.mrb[152].mxu1 }
 0x232   : > { %v5369_v27 = vpop.f32.mrb[152].mxu0  ;;  %v3434_v10 = vpop.f32.mrb[153].mxu1 }
 0x233   : > { %v3141_v29 = vpop.f32.mrb[153].mxu0  ;;  %v5390_v63 = vpop.f32.mrb[154].mxu1 }
 0x234   : > { %v3261_v56 = vrot.slane %v3141_v29, 4  ;;  %v5370_v61 = vpop.f32.mrb[154].mxu0  ;;  %v3436_v13 = vpop.f32.mrb[155].mxu1 }
 0x235   : > { %v3144_v12 = vpop.f32.mrb[155].mxu0 }
 0x236   : > { %v3262_v41 = vsel %vm2740_vm3, %v3259_v16, %v3261_v56 }
 0x237   : > { %v6811_v24 = vadd.f32 %v3262_v41, %v2885_v45 }
 0x239   : > { %v5393_v18 = vpop.f32.mrb[156].mxu1 }
 0x23a   : > { %v3643_v23 = vrot.slane %v5393_v18, 5  ;;  %v5449_v2 = vpop.f32.mrb[156].mxu0  ;;  %v3446_v34 = vpop.f32.mrb[157].mxu1 }
 0x23b   : > { %v3640_v22 = vrot.slane %v3446_v34, 5  ;;  %v3884_v8 = vpop.f32.mrb[157].mxu0  ;;  %v5394_v58 = vpop.f32.mrb[158].mxu1 }
 0x23c   : > { %v3645_v33 = vrot.slane %v5394_v58, 5  ;;  %v5450_v46 = vpop.f32.mrb[158].mxu0  ;;  %v3449_v7 = vpop.f32.mrb[159].mxu1 }
 0x23d   : > { %v3641_v9 = vrot.slane %v3449_v7, 5  ;;  %v3886_v55 = vpop.f32.mrb[159].mxu0  ;;  %v6827_v7 = vld [vmem:[%s7138_s2] ss:$0 sm:$0xff] }
 0x23e   : > { %v3646_v35 = vsel %vm3639_vm4, %v3643_v23, %v3645_v33 }
 0x23f   : > { %v3751_v31 = vadd.f32 %v3646_v35, %v6631_v0  ;;  %v3642_v45 = vsel %vm3639_vm4, %v3640_v22, %v3641_v9  ;;  %v3644_v16 = vsel %vm3639_vm4, %v3641_v9, %v3643_v23 }
 0x240   : > { %v3749_v14 = vadd.f32 %v3642_v45, %v6639_v54  ;;  %v3750_v26 = vadd.f32 %v3644_v16, %v6641_v21 }
 0x241   : > { %v5397_v40 = vpop.f32.mrb[160].mxu1 }
 0x242   : > { %v3651_v27 = vrot.slane %v5397_v40, 5  ;;  %v5453_v10 = vpop.f32.mrb[160].mxu0  ;;  %v3462_v29 = vpop.f32.mrb[161].mxu1 }
 0x243   : > { %v3647_v63 = vrot.slane %v3462_v29, 5  ;;  %v3896_v56 = vpop.f32.mrb[161].mxu0  ;;  %v5398_v61 = vpop.f32.mrb[162].mxu1  ;;  %v4093_v0 = vrot.slane %v5453_v10, 6 }
 0x244   : > { %v3653_v13 = vrot.slane %v5398_v61, 5  ;;  %v5454_v12 = vpop.f32.mrb[162].mxu0  ;;  %v3465_v41 = vpop.f32.mrb[163].mxu1  ;;  %v4090_v34 = vrot.slane %v3896_v56, 6 }
 0x245   : > { %v3648_v18 = vsel %vm3639_vm4, %v3645_v33, %v3647_v63  ;;  %v4095_v2 = vrot.slane %v5454_v12, 6  ;;  %v3649_v23 = vrot.slane %v3465_v41, 5  ;;  %v3899_v54 = vpop.f32.mrb[163].mxu0 }
 0x246   : > { %v3752_v21 = vadd.f32 %v3648_v18, %v6646_v57  ;;  %v3654_v22 = vsel %vm3639_vm4, %v3651_v27, %v3653_v13  ;;  %v4091_v8 = vrot.slane %v3899_v54, 6 }
 0x247   : > { %v3755_v58 = vadd.f32 %v3654_v22, %v6653_v30  ;;  %v4096_v46 = vsel %vm4089_vm5, %v4093_v0, %v4095_v2  ;;  %v3650_v33 = vsel %vm3639_vm4, %v3647_v63, %v3649_v23  ;;  %v3652_v9 = vsel %vm3639_vm4, %v3649_v23, %v3651_v27  ;;  %v6838_v30 = vld [vmem:[%s7139_s3] ss:$0 sm:$0xff] }
 0x248   : > { %v4201_v55 = vadd.f32 %v4096_v46, %v3751_v31  ;;  %v3753_v57 = vadd.f32 %v3650_v33, %v6662_v48  ;;  %v3754_v35 = vadd.f32 %v3652_v9, %v6664_v1  ;;  %v4092_v45 = vsel %vm4089_vm5, %v4090_v34, %v4091_v8 }
 0x249   : > { %v4094_v16 = vsel %vm4089_vm5, %v4091_v8, %v4093_v0  ;;  %v4199_v40 = vadd.f32 %v4092_v45, %v3749_v14  ;;  %v5401_v10 = vpop.f32.mrb[164].mxu1 }
 0x24a   : > { %v4244_v29 = vmul.f32 %v6827_v7, %v4201_v55  ;;  %v4200_v27 = vadd.f32 %v4094_v16, %v3750_v26  ;;  %v5457_v31 = vpop.f32.mrb[164].mxu0  ;;  %v3478_v63 = vpop.f32.mrb[165].mxu1  ;;  %v3659_v1 = vrot.slane %v5401_v10, 5 }
 0x24b   : > { %v4242_v48 = vmul.f32 %v6827_v7, %v4199_v40  ;;  %v4101_v56 = vrot.slane %v5457_v31, 6  ;;  %v3655_v61 = vrot.slane %v3478_v63, 5  ;;  %v3912_v12 = vpop.f32.mrb[165].mxu0  ;;  %v5402_v41 = vpop.f32.mrb[166].mxu1 }
 0x24c   : > { %v4287_v18 = vadd.f32 %v6838_v30, %v4244_v29  ;;  %v4243_v23 = vmul.f32 %v6827_v7, %v4200_v27  ;;  %v4097_v54 = vrot.slane %v3912_v12, 6  ;;  %v3661_v0 = vrot.slane %v5402_v41, 5  ;;  %v5458_v14 = vpop.f32.mrb[166].mxu0  ;;  %v3481_v34 = vpop.f32.mrb[167].mxu1 }
 0x24d   : > { %v4285_v26 = vadd.f32 %v6838_v30, %v4242_v48  ;;  %v3656_v22 = vsel %vm3639_vm4, %v3653_v13, %v3655_v61  ;;  %v4103_v8 = vrot.slane %v5458_v14, 6  ;;  %v3657_v46 = vrot.slane %v3481_v34, 5  ;;  %v3915_v33 = vpop.f32.mrb[167].mxu0 }
 0x24e   : > { %v4323_v9 = vmax.f32 %v4287_v18, 0.0  ;;  %v4286_v55 = vadd.f32 %v6838_v30, %v4243_v23  ;;  %v3756_v45 = vadd.f32 %v3656_v22, %v6669_v59  ;;  %v4098_v16 = vsel %vm4089_vm5, %v4095_v2, %v4097_v54 }
 0x24f   : > { %v4321_v40 = vmax.f32 %v4285_v26, 0.0  ;;  %v4202_v10 = vadd.f32 %v4098_v16, %v3752_v21  ;;  %v3662_v29 = vsel %vm3639_vm4, %v3659_v1, %v3661_v0  ;;  %v4104_v27 = vsel %vm4089_vm5, %v4101_v56, %v4103_v8 }
 0x250   : > { %4359 = vst [vmem:[%s6848_s6 + $0x10] sm:$0xff] %v4323_v9  ;;  %v4322_v13 = vmax.f32 %v4286_v55, 0.0  ;;  %v3759_v31 = vadd.f32 %v3662_v29, %v6676_v36  ;;  %v4205_v63 = vadd.f32 %v4104_v27, %v3755_v58  ;;  %v3658_v48 = vsel %vm3639_vm4, %v3655_v61, %v3657_v46 }
 0x251   : > { %4357 = vst [vmem:[%s6848_s6] sm:$0xff] %v4321_v40  ;;  %v4245_v12 = vmul.f32 %v6827_v7, %v4202_v10  ;;  %v3660_v59 = vsel %vm3639_vm4, %v3657_v46, %v3659_v1  ;;  %v6864_v2 = vadd.f32 %v3658_v48, %v6685_v28  ;;  %v4099_v21 = vrot.slane %v3915_v33, 6  ;;  %v5405_v41 = vpop.f32.mrb[168].mxu1 }
 0x252   : > { %4358 = vst [vmem:[%s6848_s6 + $0x8] sm:$0xff] %v4322_v13  ;;  %v4248_v18 = vmul.f32 %v6827_v7, %v4205_v63  ;;  %v3758_v23 = vadd.f32 %v3660_v59, %v6687_v52  ;;  %v3667_v14 = vrot.slane %v5405_v41, 5  ;;  %v5461_v36 = vpop.f32.mrb[168].mxu0  ;;  %v3494_v58 = vpop.f32.mrb[169].mxu1 }
 0x253   : > { %v4288_v61 = vadd.f32 %v6838_v30, %v4245_v12  ;;  %v4100_v34 = vsel %vm4089_vm5, %v4097_v54, %v4099_v21  ;;  %v4102_v26 = vsel %vm4089_vm5, %v4099_v21, %v4101_v56  ;;  %v4109_v1 = vrot.slane %v5461_v36, 6  ;;  %v3928_v22 = vpop.f32.mrb[169].mxu0  ;;  %v6872_v28 = vpop.f32.mrb[170].mxu1 }
 0x254   : > { %v4291_v46 = vadd.f32 %v6838_v30, %v4248_v18  ;;  %v4203_v33 = vadd.f32 %v4100_v34, %v3753_v57  ;;  %v4204_v9 = vadd.f32 %v4102_v26, %v3754_v35  ;;  %v3663_v55 = vrot.slane %v3494_v58, 5  ;;  %v5462_v52 = vpop.f32.mrb[170].mxu0  ;;  %v3497_v16 = vpop.f32.mrb[171].mxu1 }
 0x255   : > { %v4324_v40 = vmax.f32 %v4288_v61, 0.0  ;;  %v4105_v10 = vrot.slane %v3928_v22, 6  ;;  %v3669_v29 = vrot.slane %v6872_v28, 5  ;;  %v4111_v54 = vrot.slane %v5462_v52, 6  ;;  %v3931_v27 = vpop.f32.mrb[171].mxu0 }
 0x256   : > { %v4327_v56 = vmax.f32 %v4291_v46, 0.0  ;;  %v4246_v13 = vmul.f32 %v6827_v7, %v4203_v33  ;;  %v4247_v63 = vmul.f32 %v6827_v7, %v4204_v9  ;;  %v3664_v48 = vsel %vm3639_vm4, %v3661_v0, %v3663_v55 }
 0x257   : > { %4360 = vst [vmem:[%s6848_s6 + $0x18] sm:$0xff] %v4324_v40  ;;  %v3760_v57 = vadd.f32 %v3664_v48, %v6692_v49  ;;  %v4106_v35 = vsel %vm4089_vm5, %v4103_v8, %v4105_v10  ;;  %v3670_v12 = vsel %vm3639_vm4, %v3667_v14, %v3669_v29  ;;  %v4112_v59 = vsel %vm4089_vm5, %v4109_v1, %v4111_v54 }
 0x258   : > { %4363 = vst [vmem:[%s6848_s6 + $0x30] sm:$0xff] %v4327_v56  ;;  %v4289_v21 = vadd.f32 %v6838_v30, %v4246_v13  ;;  %v4290_v41 = vadd.f32 %v6838_v30, %v4247_v63  ;;  %v4206_v18 = vadd.f32 %v4106_v35, %v3756_v45  ;;  %v3763_v36 = vadd.f32 %v3670_v12, %v6699_v37 }
 0x259   : > { %v4209_v58 = vadd.f32 %v4112_v59, %v3759_v31  ;;  %v3665_v0 = vrot.slane %v3497_v16, 5  ;;  %v4107_v61 = vrot.slane %v3931_v27, 6  ;;  %v5409_v49 = vpop.f32.mrb[172].mxu1 }
 0x25a   : > { %v4325_v34 = vmax.f32 %v4289_v21, 0.0  ;;  %v4326_v8 = vmax.f32 %v4290_v41, 0.0  ;;  %v4249_v26 = vmul.f32 %v6827_v7, %v4206_v18  ;;  %v3675_v22 = vrot.slane %v5409_v49, 5  ;;  %v6889_v28 = vpop.f32.mrb[172].mxu0  ;;  %v3510_v46 = vpop.f32.mrb[173].mxu1 }
 0x25b   : > { %v4252_v33 = vmul.f32 %v6827_v7, %v4209_v58  ;;  %v3666_v45 = vsel %vm3639_vm4, %v3663_v55, %v3665_v0  ;;  %v3668_v37 = vsel %vm3639_vm4, %v3665_v0, %v3667_v14  ;;  %v4108_v31 = vsel %vm4089_vm5, %v4105_v10, %v4107_v61  ;;  %v3944_v9 = vpop.f32.mrb[173].mxu0  ;;  %v6895_v52 = vpop.f32.mrb[174].mxu1 }
 0x25c   : > { %4361 = vst [vmem:[%s6848_s6 + $0x20] sm:$0xff] %v4325_v34  ;;  %4362 = vst [vmem:[%s6848_s6 + $0x28] sm:$0xff] %v4326_v8  ;;  %v4292_v16 = vadd.f32 %v6838_v30, %v4249_v26  ;;  %v3761_v40 = vadd.f32 %v3666_v45, %v6708_v47  ;;  %v3762_v27 = vadd.f32 %v3668_v37, %v6710_v53  ;;  %v5466_v13 = vpop.f32.mrb[174].mxu0  ;;  %v3513_v55 = vpop.f32.mrb[175].mxu1  ;;  %v4117_v48 = vrot.slane %v6889_v28, 6 }
 0x25d   : > { %v4110_v56 = vsel %vm4089_vm5, %v4107_v61, %v4109_v1  ;;  %v4295_v14 = vadd.f32 %v6838_v30, %v4252_v33  ;;  %v4207_v10 = vadd.f32 %v4108_v31, %v6864_v2  ;;  %v3947_v35 = vpop.f32.mrb[175].mxu0  ;;  %v3671_v59 = vrot.slane %v3510_v46, 5 }
 0x25e   : > { %v4208_v63 = vadd.f32 %v4110_v56, %v3758_v23  ;;  %v4328_v12 = vmax.f32 %v4292_v16, 0.0  ;;  %v4113_v21 = vrot.slane %v3944_v9, 6  ;;  %v3677_v47 = vrot.slane %v6895_v52, 5 }
 0x25f   : > { %v4331_v53 = vmax.f32 %v4295_v14, 0.0  ;;  %v4250_v1 = vmul.f32 %v6827_v7, %v4207_v10  ;;  %v4119_v18 = vrot.slane %v5466_v13, 6  ;;  %v3672_v58 = vsel %vm3639_vm4, %v3669_v29, %v3671_v59 }
 0x260   : > { %v4251_v41 = vmul.f32 %v6827_v7, %v4208_v63  ;;  %4364 = vst [vmem:[%s6848_s6 + $0x38] sm:$0xff] %v4328_v12  ;;  %v4114_v2 = vsel %vm4089_vm5, %v4111_v54, %v4113_v21  ;;  %v3678_v23 = vsel %vm3639_vm4, %v3675_v22, %v3677_v47  ;;  %v3673_v0 = vrot.slane %v3513_v55, 5 }
 0x261   : > { %4367 = vst [vmem:[%s6848_s6 + $0x50] sm:$0xff] %v4331_v53  ;;  %v4293_v61 = vadd.f32 %v6838_v30, %v4250_v1  ;;  %v3764_v34 = vadd.f32 %v3672_v58, %v6715_v39  ;;  %v4210_v8 = vadd.f32 %v4114_v2, %v3760_v57  ;;  %v5413_v26 = vpop.f32.mrb[176].mxu1  ;;  %v3767_v28 = vadd.f32 %v3678_v23, %v6722_v51 }
 0x262   : > { %v4294_v49 = vadd.f32 %v6838_v30, %v4251_v41  ;;  %v4120_v46 = vsel %vm4089_vm5, %v4117_v48, %v4119_v18  ;;  %v3674_v29 = vsel %vm3639_vm4, %v3671_v59, %v3673_v0  ;;  %v3676_v54 = vsel %vm3639_vm4, %v3673_v0, %v3675_v22  ;;  %v6921_v33 = vpop.f32.mrb[176].mxu0  ;;  %v3526_v45 = vpop.f32.mrb[177].mxu1 }
 0x263   : > { %v4329_v37 = vmax.f32 %v4293_v61, 0.0  ;;  %v4253_v9 = vmul.f32 %v6827_v7, %v4210_v8  ;;  %v4213_v39 = vadd.f32 %v4120_v46, %v3763_v36  ;;  %v3960_v57 = vpop.f32.mrb[177].mxu0  ;;  %v6924_v52 = vpop.f32.mrb[178].mxu1  ;;  %v3765_v51 = vadd.f32 %v3674_v29, %v6731_v5 }
 0x264   : > { %v4330_v31 = vmax.f32 %v4294_v49, 0.0  ;;  %v3766_v16 = vadd.f32 %v3676_v54, %v6733_v3  ;;  %v4115_v56 = vrot.slane %v3947_v35, 6  ;;  %v3683_v13 = vrot.slane %v5413_v26, 5  ;;  %v6928_v55 = vpop.f32.mrb[178].mxu0  ;;  %v3529_v22 = vpop.f32.mrb[179].mxu1 }
 0x265   : > { %4365 = vst [vmem:[%s6848_s6 + $0x40] sm:$0xff] %v4329_v37  ;;  %v4296_v14 = vadd.f32 %v6838_v30, %v4253_v9  ;;  %v4256_v10 = vmul.f32 %v6827_v7, %v4213_v39  ;;  %v4125_v36 = vrot.slane %v6921_v33, 6  ;;  %v3679_v63 = vrot.slane %v3526_v45, 5  ;;  %v3963_v12 = vpop.f32.mrb[179].mxu0 }
 0x266   : > { %4366 = vst [vmem:[%s6848_s6 + $0x48] sm:$0xff] %v4330_v31  ;;  %v4116_v5 = vsel %vm4089_vm5, %v4113_v21, %v4115_v56  ;;  %v4118_v3 = vsel %vm4089_vm5, %v4115_v56, %v4117_v48  ;;  %v4121_v35 = vrot.slane %v3960_v57, 6  ;;  %v3685_v59 = vrot.slane %v6924_v52, 5 }
 0x267   : > { %v4332_v53 = vmax.f32 %v4296_v14, 0.0  ;;  %v4299_v1 = vadd.f32 %v6838_v30, %v4256_v10  ;;  %v4211_v41 = vadd.f32 %v4116_v5, %v3761_v40  ;;  %v4212_v58 = vadd.f32 %v4118_v3, %v3762_v27 }
 0x268   : > { %v3680_v2 = vsel %vm3639_vm4, %v3677_v47, %v3679_v63  ;;  %v4122_v23 = vsel %vm4089_vm5, %v4119_v18, %v4121_v35  ;;  %v3686_v0 = vsel %vm3639_vm4, %v3683_v13, %v3685_v59  ;;  %v4127_v61 = vrot.slane %v6928_v55, 6 }
 0x269   : > { %4368 = vst [vmem:[%s6848_s6 + $0x58] sm:$0xff] %v4332_v53  ;;  %v4335_v21 = vmax.f32 %v4299_v1, 0.0  ;;  %v4254_v48 = vmul.f32 %v6827_v7, %v4211_v41  ;;  %v4255_v49 = vmul.f32 %v6827_v7, %v4212_v58  ;;  %v3768_v8 = vadd.f32 %v3680_v2, %v6739_v19  ;;  %v6947_v26 = vpop.f32.mrb[180].mxu1 }
 0x26a   : > { %v4214_v40 = vadd.f32 %v4122_v23, %v3764_v34  ;;  %v6950_v27 = vadd.f32 %v3686_v0, %v6746_v20  ;;  %v4128_v47 = vsel %vm4089_vm5, %v4125_v36, %v4127_v61  ;;  %v3681_v18 = vrot.slane %v3529_v22, 5  ;;  %v6953_v46 = vpop.f32.mrb[180].mxu0  ;;  %v3542_v29 = vpop.f32.mrb[181].mxu1 }
 0x26b   : > { %4371 = vst [vmem:[%s6848_s6 + $0x70] sm:$0xff] %v4335_v21  ;;  %v4297_v54 = vadd.f32 %v6838_v30, %v4254_v48  ;;  %v4298_v33 = vadd.f32 %v6838_v30, %v4255_v49  ;;  %v4217_v45 = vadd.f32 %v4128_v47, %v3767_v28  ;;  %v4123_v37 = vrot.slane %v3963_v12, 6  ;;  %v6958_v19 = vpop.f32.mrb[181].mxu0  ;;  %v6960_v31 = vpop.f32.mrb[182].mxu1 }
 0x26c   : > { %v4257_v20 = vmul.f32 %v6827_v7, %v4214_v40  ;;  %v3682_v34 = vsel %vm3639_vm4, %v3679_v63, %v3681_v18  ;;  %v3684_v9 = vsel %vm3639_vm4, %v3681_v18, %v3683_v13  ;;  %v3691_v39 = vrot.slane %v6947_v26, 5  ;;  %v6966_v57 = vpop.f32.mrb[182].mxu0  ;;  %v3545_v52 = vpop.f32.mrb[183].mxu1 }
 0x26d   : > { %v4333_v56 = vmax.f32 %v4297_v54, 0.0  ;;  %v4334_v28 = vmax.f32 %v4298_v33, 0.0  ;;  %v4260_v55 = vmul.f32 %v6827_v7, %v4217_v45  ;;  %v3769_v22 = vadd.f32 %v3682_v34, %v6754_v42  ;;  %v3979_v14 = vpop.f32.mrb[183].mxu0 }
 0x26e   : > { %v4300_v10 = vadd.f32 %v6838_v30, %v4257_v20  ;;  %v3770_v12 = vadd.f32 %v3684_v9, %v6756_v17  ;;  %v4124_v63 = vsel %vm4089_vm5, %v4121_v35, %v4123_v37  ;;  %v4126_v13 = vsel %vm4089_vm5, %v4123_v37, %v4125_v36 }
 0x26f   : > { %4369 = vst [vmem:[%s6848_s6 + $0x60] sm:$0xff] %v4333_v56  ;;  %4370 = vst [vmem:[%s6848_s6 + $0x68] sm:$0xff] %v4334_v28  ;;  %v4303_v5 = vadd.f32 %v6838_v30, %v4260_v55  ;;  %v4215_v3 = vadd.f32 %v4124_v63, %v3765_v51  ;;  %v4216_v53 = vadd.f32 %v4126_v13, %v3766_v16  ;;  %v4133_v1 = vrot.slane %v6953_v46, 6 }
 0x270   : > { %v4336_v41 = vmax.f32 %v4300_v10, 0.0  ;;  %v3687_v42 = vrot.slane %v3542_v29, 5  ;;  %v4129_v58 = vrot.slane %v6958_v19, 6  ;;  %v3693_v17 = vrot.slane %v6960_v31, 5 }
 0x271   : > { %v4339_v2 = vmax.f32 %v4303_v5, 0.0  ;;  %v4258_v35 = vmul.f32 %v6827_v7, %v4215_v3  ;;  %v4259_v36 = vmul.f32 %v6827_v7, %v4216_v53  ;;  %v4135_v23 = vrot.slane %v6966_v57, 6  ;;  %v6983_v0 = vpop.f32.mrb[184].mxu1 }
 0x272   : > { %4372 = vst [vmem:[%s6848_s6 + $0x78] sm:$0xff] %v4336_v41  ;;  %v3688_v51 = vsel %vm3639_vm4, %v3685_v59, %v3687_v42  ;;  %v4130_v16 = vsel %vm4089_vm5, %v4127_v61, %v4129_v58  ;;  %v3694_v21 = vsel %vm3639_vm4, %v3691_v39, %v3693_v17  ;;  %v3689_v48 = vrot.slane %v3545_v52, 5  ;;  %v6989_v49 = vpop.f32.mrb[184].mxu0  ;;  %v6991_v26 = vpop.f32.mrb[185].mxu1 }
 0x273   : > { %4375 = vst [vmem:[%s6848_s6 + $0x90] sm:$0xff] %v4339_v2  ;;  %v4301_v40 = vadd.f32 %v6838_v30, %v4258_v35  ;;  %v4302_v47 = vadd.f32 %v6838_v30, %v4259_v36  ;;  %v3772_v18 = vadd.f32 %v3688_v51, %v6762_v11  ;;  %v4218_v46 = vadd.f32 %v4130_v16, %v3768_v8  ;;  %v6997_v29 = vpop.f32.mrb[185].mxu0  ;;  %v6999_v59 = vpop.f32.mrb[186].mxu1 }
 0x274   : > { %v3775_v61 = vadd.f32 %v3694_v21, %v6767_v50  ;;  %v4136_v54 = vsel %vm4089_vm5, %v4133_v1, %v4135_v23  ;;  %v3690_v33 = vsel %vm3639_vm4, %v3687_v42, %v3689_v48  ;;  %v3692_v45 = vsel %vm3639_vm4, %v3689_v48, %v3691_v39  ;;  %v7005_v37 = vpop.f32.mrb[186].mxu0  ;;  %v3561_v19 = vpop.f32.mrb[187].mxu1 }
 0x275   : > { %v4337_v31 = vmax.f32 %v4301_v40, 0.0  ;;  %v4338_v11 = vmax.f32 %v4302_v47, 0.0  ;;  %v4261_v8 = vmul.f32 %v6827_v7, %v4218_v46  ;;  %v4221_v20 = vadd.f32 %v4136_v54, %v6950_v27  ;;  %v3995_v34 = vpop.f32.mrb[187].mxu0 }
 0x276   : > { %v3773_v9 = vadd.f32 %v3690_v33, %v6775_v4  ;;  %v3774_v50 = vadd.f32 %v3692_v45, %v6777_v15  ;;  %v4131_v57 = vrot.slane %v3979_v14, 6  ;;  %v3699_v52 = vrot.slane %v6983_v0, 5 }
 0x277   : > { %4373 = vst [vmem:[%s6848_s6 + $0x80] sm:$0xff] %v4337_v31  ;;  %4374 = vst [vmem:[%s6848_s6 + $0x88] sm:$0xff] %v4338_v11  ;;  %v4304_v39 = vadd.f32 %v6838_v30, %v4261_v8  ;;  %v4264_v56 = vmul.f32 %v6827_v7, %v4221_v20  ;;  %v4141_v28 = vrot.slane %v6989_v49, 6  ;;  %v3695_v55 = vrot.slane %v6991_v26, 5 }
 0x278   : > { %v4132_v27 = vsel %vm4089_vm5, %v4129_v58, %v4131_v57  ;;  %v4134_v4 = vsel %vm4089_vm5, %v4131_v57, %v4133_v1  ;;  %v4137_v15 = vrot.slane %v6997_v29, 6  ;;  %v3701_v14 = vrot.slane %v6999_v59, 5 }
 0x279   : > { %v4340_v10 = vmax.f32 %v4304_v39, 0.0  ;;  %v4307_v63 = vadd.f32 %v6838_v30, %v4264_v56  ;;  %v4219_v13 = vadd.f32 %v4132_v27, %v3769_v22  ;;  %v4220_v5 = vadd.f32 %v4134_v4, %v3770_v12  ;;  %v7023_v3 = vpop.f32.mrb[188].mxu1 }
 0x27a   : > { %v3696_v53 = vsel %vm3639_vm4, %v3693_v17, %v3695_v55  ;;  %v4138_v41 = vsel %vm4089_vm5, %v4135_v23, %v4137_v15  ;;  %v3702_v42 = vsel %vm3639_vm4, %v3699_v52, %v3701_v14  ;;  %v4143_v1 = vrot.slane %v7005_v37, 6  ;;  %v7031_v58 = vpop.f32.mrb[188].mxu0  ;;  %v7033_v2 = vpop.f32.mrb[189].mxu1 }
 0x27b   : > { %4376 = vst [vmem:[%s6848_s6 + $0x98] sm:$0xff] %v4340_v10  ;;  %v4343_v22 = vmax.f32 %v4307_v63, 0.0  ;;  %v4262_v12 = vmul.f32 %v6827_v7, %v4219_v13  ;;  %v4263_v35 = vmul.f32 %v6827_v7, %v4220_v5  ;;  %v3776_v17 = vadd.f32 %v3696_v53, %v6782_v62  ;;  %v7039_v36 = vpop.f32.mrb[189].mxu0  ;;  %v7041_v23 = vpop.f32.mrb[190].mxu1 }
 0x27c   : > { %v4222_v0 = vadd.f32 %v4138_v41, %v3772_v18  ;;  %v3779_v51 = vadd.f32 %v3702_v42, %v6787_v25  ;;  %v4144_v16 = vsel %vm4089_vm5, %v4141_v28, %v4143_v1  ;;  %v3697_v21 = vrot.slane %v3561_v19, 5  ;;  %v7045_v48 = vpop.f32.mrb[190].mxu0  ;;  %v3577_v49 = vpop.f32.mrb[191].mxu1 }
 0x27d   : > { %4379 = vst [vmem:[%s6848_s6 + $0xb0] sm:$0xff] %v4343_v22  ;;  %v4305_v26 = vadd.f32 %v6838_v30, %v4262_v12  ;;  %v4306_v40 = vadd.f32 %v6838_v30, %v4263_v35  ;;  %v4225_v62 = vadd.f32 %v4144_v16, %v3775_v61  ;;  %v4139_v47 = vrot.slane %v3995_v34, 6  ;;  %v7050_v46 = vpop.f32.mrb[191].mxu0 }
 0x27e   : > { %v4265_v18 = vmul.f32 %v6827_v7, %v4222_v0  ;;  %v3698_v25 = vsel %vm3639_vm4, %v3695_v55, %v3697_v21  ;;  %v3700_v29 = vsel %vm3639_vm4, %v3697_v21, %v3699_v52  ;;  %v3707_v54 = vrot.slane %v7023_v3, 5 }
 0x27f   : > { %v4341_v33 = vmax.f32 %v4305_v26, 0.0  ;;  %v4342_v45 = vmax.f32 %v4306_v40, 0.0  ;;  %v4268_v37 = vmul.f32 %v6827_v7, %v4225_v62  ;;  %v3777_v19 = vadd.f32 %v3698_v25, %v6794_v43 }
 0x280   : > { %v4308_v61 = vadd.f32 %v6838_v30, %v4265_v18  ;;  %v3778_v31 = vadd.f32 %v3700_v29, %v6796_v44  ;;  %v4140_v11 = vsel %vm4089_vm5, %v4137_v15, %v4139_v47  ;;  %v4142_v8 = vsel %vm4089_vm5, %v4139_v47, %v4141_v28 }
 0x281   : > { %4377 = vst [vmem:[%s6848_s6 + $0xa0] sm:$0xff] %v4341_v33  ;;  %4378 = vst [vmem:[%s6848_s6 + $0xa8] sm:$0xff] %v4342_v45  ;;  %v4311_v20 = vadd.f32 %v6838_v30, %v4268_v37  ;;  %v4223_v34 = vadd.f32 %v4140_v11, %v3773_v9  ;;  %v4224_v57 = vadd.f32 %v4142_v8, %v3774_v50  ;;  %v4149_v52 = vrot.slane %v7031_v58, 6  ;;  %v5429_v39 = vpop.f32.mrb[192].mxu1 }
 0x282   : > { %v4344_v56 = vmax.f32 %v4308_v61, 0.0  ;;  %v3703_v43 = vrot.slane %v7033_v2, 5  ;;  %v4145_v55 = vrot.slane %v7039_v36, 6  ;;  %v3709_v44 = vrot.slane %v7041_v23, 5  ;;  %v7069_v27 = vpop.f32.mrb[192].mxu0  ;;  %v3590_v28 = vpop.f32.mrb[193].mxu1 }
 0x283   : > { %v4347_v4 = vmax.f32 %v4311_v20, 0.0  ;;  %v4266_v15 = vmul.f32 %v6827_v7, %v4223_v34  ;;  %v4267_v9 = vmul.f32 %v6827_v7, %v4224_v57  ;;  %v4151_v50 = vrot.slane %v7045_v48, 6  ;;  %v4024_v10 = vpop.f32.mrb[193].mxu0  ;;  %v5430_v63 = vpop.f32.mrb[194].mxu1 }
 0x284   : > { %4380 = vst [vmem:[%s6848_s6 + $0xb8] sm:$0xff] %v4344_v56  ;;  %v3704_v13 = vsel %vm3639_vm4, %v3701_v14, %v3703_v43  ;;  %v4146_v5 = vsel %vm4089_vm5, %v4143_v1, %v4145_v55  ;;  %v3710_v3 = vsel %vm3639_vm4, %v3707_v54, %v3709_v44  ;;  %v3705_v53 = vrot.slane %v3577_v49, 5  ;;  %v7080_v41 = vpop.f32.mrb[194].mxu0  ;;  %v3593_v42 = vpop.f32.mrb[195].mxu1 }
 0x285   : > { %4383 = vst [vmem:[%s6848_s6 + $0xd0] sm:$0xff] %v4347_v4  ;;  %v4309_v58 = vadd.f32 %v6838_v30, %v4266_v15  ;;  %v4310_v2 = vadd.f32 %v6838_v30, %v4267_v9  ;;  %v3780_v22 = vadd.f32 %v3704_v13, %v6799_v32  ;;  %v4226_v59 = vadd.f32 %v4146_v5, %v3776_v17  ;;  %v4027_v12 = vpop.f32.mrb[195].mxu0 }
 0x286   : > { %v3783_v14 = vadd.f32 %v3710_v3, %v6802_v60  ;;  %v4152_v1 = vsel %vm4089_vm5, %v4149_v52, %v4151_v50  ;;  %v3706_v35 = vsel %vm3639_vm4, %v3703_v43, %v3705_v53  ;;  %v3708_v36 = vsel %vm3639_vm4, %v3705_v53, %v3707_v54 }
 0x287   : > { %v4345_v23 = vmax.f32 %v4309_v58, 0.0  ;;  %v4346_v0 = vmax.f32 %v4310_v2, 0.0  ;;  %v4269_v16 = vmul.f32 %v6827_v7, %v4226_v59  ;;  %v4229_v21 = vadd.f32 %v4152_v1, %v3779_v51 }
 0x288   : > { %v3781_v48 = vadd.f32 %v3706_v35, %v6806_v38  ;;  %v3782_v32 = vadd.f32 %v3708_v36, %v6808_v6  ;;  %v4147_v17 = vrot.slane %v7050_v46, 6  ;;  %v4157_v49 = vrot.slane %v7069_v27, 6 }
 0x289   : > { %4381 = vst [vmem:[%s6848_s6 + $0xc0] sm:$0xff] %v4345_v23  ;;  %4382 = vst [vmem:[%s6848_s6 + $0xc8] sm:$0xff] %v4346_v0  ;;  %v4312_v60 = vadd.f32 %v6838_v30, %v4269_v16  ;;  %v4272_v26 = vmul.f32 %v6827_v7, %v4229_v21  ;;  %v3711_v40 = vrot.slane %v3590_v28, 5  ;;  %v4153_v62 = vrot.slane %v4024_v10, 6 }
 0x28a   : > { %v4148_v47 = vsel %vm4089_vm5, %v4145_v55, %v4147_v17  ;;  %v4150_v51 = vsel %vm4089_vm5, %v4147_v17, %v4149_v52  ;;  %v4159_v38 = vrot.slane %v7080_v41, 6  ;;  %v4155_v6 = vrot.slane %v4027_v12, 6  ;;  %v5489_v18 = vpop.f32.mrb[196].mxu0 }
 0x28b   : > { %v4348_v46 = vmax.f32 %v4312_v60, 0.0  ;;  %v4315_v25 = vadd.f32 %v6838_v30, %v4272_v26  ;;  %v4227_v29 = vadd.f32 %v4148_v47, %v3777_v19  ;;  %v4228_v54 = vadd.f32 %v4150_v51, %v3778_v31  ;;  %v4040_v33 = vpop.f32.mrb[197].mxu0 }
 0x28c   : > { %v3712_v45 = vsel %vm3639_vm4, %v3709_v44, %v3711_v40  ;;  %v4154_v37 = vsel %vm4089_vm5, %v4151_v50, %v4153_v62  ;;  %v4160_v61 = vsel %vm4089_vm5, %v4157_v49, %v4159_v38  ;;  %v4156_v11 = vsel %vm4089_vm5, %v4153_v62, %v4155_v6  ;;  %v5490_v8 = vpop.f32.mrb[198].mxu0 }
 0x28d   : > { %4384 = vst [vmem:[%s6848_s6 + $0xd8] sm:$0xff] %v4348_v46  ;;  %v4351_v20 = vmax.f32 %v4315_v25, 0.0  ;;  %v4270_v34 = vmul.f32 %v6827_v7, %v4227_v29  ;;  %v4271_v57 = vmul.f32 %v6827_v7, %v4228_v54  ;;  %v3784_v19 = vadd.f32 %v3712_v45, %v6811_v24  ;;  %v4043_v31 = vpop.f32.mrb[199].mxu0 }
 0x28e   : > { %v4230_v52 = vadd.f32 %v4154_v37, %v3780_v22  ;;  %v4233_v39 = vadd.f32 %v4160_v61, %v3783_v14  ;;  %v4158_v56 = vsel %vm4089_vm5, %v4155_v6, %v4157_v49  ;;  %v4231_v43 = vadd.f32 %v4156_v11, %v3781_v48 }
 0x28f   : > { %4387 = vst [vmem:[%s6848_s6 + $0xf0] sm:$0xff] %v4351_v20  ;;  %v4313_v55 = vadd.f32 %v6838_v30, %v4270_v34  ;;  %v4314_v44 = vadd.f32 %v6838_v30, %v4271_v57  ;;  %v4232_v27 = vadd.f32 %v4158_v56, %v3782_v32  ;;  %v4161_v28 = vrot.slane %v4040_v33, 6 }
 0x290   : > { %v4273_v4 = vmul.f32 %v6827_v7, %v4230_v52  ;;  %v4276_v15 = vmul.f32 %v6827_v7, %v4233_v39  ;;  %v4274_v24 = vmul.f32 %v6827_v7, %v4231_v43 }
 0x291   : > { %v4349_v9 = vmax.f32 %v4313_v55, 0.0  ;;  %v4350_v50 = vmax.f32 %v4314_v44, 0.0  ;;  %v4275_v10 = vmul.f32 %v6827_v7, %v4232_v27  ;;  %v4162_v63 = vsel %vm4089_vm5, %v4159_v38, %v4161_v28 }
 0x292   : > { %v4316_v13 = vadd.f32 %v6838_v30, %v4273_v4  ;;  %v4319_v5 = vadd.f32 %v6838_v30, %v4276_v15  ;;  %v4317_v3 = vadd.f32 %v6838_v30, %v4274_v24  ;;  %v4234_v53 = vadd.f32 %v4162_v63, %v3784_v19 }
 0x293   : > { %4385 = vst [vmem:[%s6848_s6 + $0xe0] sm:$0xff] %v4349_v9  ;;  %4386 = vst [vmem:[%s6848_s6 + $0xe8] sm:$0xff] %v4350_v50  ;;  %v4318_v41 = vadd.f32 %v6838_v30, %v4275_v10 }
 0x294   : > { %v4352_v42 = vmax.f32 %v4316_v13, 0.0  ;;  %v4355_v58 = vmax.f32 %v4319_v5, 0.0  ;;  %v4353_v2 = vmax.f32 %v4317_v3, 0.0  ;;  %v4277_v22 = vmul.f32 %v6827_v7, %v4234_v53 }
 0x295   : > { %v4354_v59 = vmax.f32 %v4318_v41, 0.0 }
 0x296   : > { %4388 = vst [vmem:[%s6848_s6 + $0xf8] sm:$0xff] %v4352_v42  ;;  %4391 = vst [vmem:[%s6848_s6 + $0x110] sm:$0xff] %v4355_v58  ;;  %v4320_v12 = vadd.f32 %v6838_v30, %v4277_v22 }
 0x297   : > { %4389 = vst [vmem:[%s6848_s6 + $0x100] sm:$0xff] %v4353_v2  ;;  %4390 = vst [vmem:[%s6848_s6 + $0x108] sm:$0xff] %v4354_v59 }
 0x298   : > { %v4356_v14 = vmax.f32 %v4320_v12, 0.0 }
 0x29a   : > { %4392 = vst [vmem:[%s6848_s6 + $0x118] sm:$0xff] %v4356_v14 }
 0x29b PF: > { %s14_s15 = sadd.s32 1, %s5639_s15  }
 0x29c   : > { %p11_p4 = scmp.ge.s32.totalorder %s14_s15, 4  }
 0x29e   :  { %13 = sbr.rel (!%p11_p4) target bundleno = 1 (0x1), region = 74 }

// kernel: forward.7
= control target key start
LH: loop header
LB: loop body
LE: loop exit
PB: predicated region body
PF: predicated region fallthrough
CT: control target
= control target key end

     0   :  { %s5803_s18 = smov 0   ;;  %s7443_s0 = inlined_call_operand.vmem [shape: bf16[2,342,128], index: 0, kind: input, shape index: {}]   ;;  %s7444_s1 = inlined_call_operand.vmem [shape: bf16[9,128,128], index: 1, kind: input, shape index: {}]   ;;  %s7445_s2 = inlined_call_operand.vmem [shape: f32[1,128], index: 2, kind: input, shape index: {}]   ;;  %s7446_s3 = inlined_call_operand.vmem [shape: f32[1,128], index: 3, kind: input, shape index: {}]   ;;  %s7447_s4 = inlined_call_operand.vmem [shape: f32[2,288,128], index: 4, kind: input, shape index: {}]   ;;  %s7448_s5 = inlined_call_operand.vmem [shape: f32[2,288,128], index: 5, kind: output, shape index: {}]  }
   0x1 LB: > { %s4579_s19 = sadd.s32 4294967295, %s5771_s18   ;;  %p4583_p0 = scmp.ge.s32.totalorder %s5771_s18, 1  ;;  %s5771_s18 = sphi %s5803_s18, %s15_s18  }
   0x2   : > { %p197_p1 = scmp.lt.s32.totalorder %s5771_s18, 3 }
   0x4   : > { %p198_p2 = pnand %p4583_p0, %p197_p1 }
   0x6   : > { %201 = sbr.rel (%p198_p2) target bundleno = 677 (0x2a5), region = 40 }
   0xd   : > { %v5649_v0 = vld [vmem:[%s7444_s1] sm:$0xff]   ;;  %p230_p3 = scmp.lt.s32.totalorder %s4579_s19, 1  ;;  %v5650_v1 = vld [vmem:[%s7444_s1 + $0x8] sm:$0xff]   ;;  %v5651_v2 = vld [vmem:[%s7444_s1 + $0x10] sm:$0xff]   ;;  %vm988_vm0 = vcmask 1046528   ;;  %vm1438_vm1 = vcmask 1045504  }
   0xe   : > { %5083 = vmatprep.subr.bf16.mxu0 %v5649_v0  ;;  %5623 = vmatprep.subr.bf16.mxu1 %v5649_v0  ;;  %v5652_v3 = vld [vmem:[%s7444_s1 + $0x18] sm:$0xff]   ;;  %v5653_v6 = vld [vmem:[%s7444_s1 + $0x20] sm:$0xff]   ;;  %v5654_v7 = vld [vmem:[%s7444_s1 + $0x28] sm:$0xff]   ;;  %vm2337_vm2 = vcmask 1044480   ;;  %vm2787_vm3 = vcmask 1043456   ;;  %vm3686_vm4 = vcmask 1042432  }
   0xf   : > { %s7462_s19 = smov (!%p230_p3, %s4579_s19), 1  ;;  %5084 = vmatpush3.bf16.msra.mxu0 %v5649_v0  ;;  %5631 = vmatpush3.bf16.msra.mxu1 %v5649_v0  ;;  %v5655_v8 = vld [vmem:[%s7444_s1 + $0x30] sm:$0xff]   ;;  %v5656_v9 = vld [vmem:[%s7444_s1 + $0x38] sm:$0xff]   ;;  %v5661_v10 = vld [vmem:[%s7444_s1 + $0x80] sm:$0xff]   ;;  %vm4136_vm5 = vcmask 1041408  }
  0x10   : > { %5085 = vmatprep.subr.bf16.mxu0 %v5650_v1  ;;  %5624 = vmatprep.subr.bf16.mxu1 %v5650_v1  ;;  %s5639_s26 = smul.u32 172, %s7462_s19  ;;  %v5662_v12 = vld [vmem:[%s7444_s1 + $0x40] sm:$0xff]   ;;  %v5663_v14 = vld [vmem:[%s7444_s1 + $0x88] sm:$0xff]   ;;  %v5669_v19 = vld [vmem:[%s7444_s1 + $0x90] sm:$0xff]  }
  0x11   : > { %v5668_v17 = vld [vmem:[%s7444_s1 + $0x48] sm:$0xff]   ;;  %v5674_v23 = vld [vmem:[%s7444_s1 + $0x50] sm:$0xff]   ;;  %v5675_v24 = vld [vmem:[%s7444_s1 + $0x98] sm:$0xff]  }
  0x12   : > { %s5826_s29 = scalar_lea.vmem %s7443_s0, %s5639_s26  ;;  %v5676_v25 = vld [vmem:[%s7444_s1 + $0x58] sm:$0xff]   ;;  %v5682_v27 = vld [vmem:[%s7444_s1 + $0xa0] sm:$0xff]   ;;  %v5684_v32 = vld [vmem:[%s7444_s1 + $0xa8] sm:$0xff]  }
  0x13   : > { %5086 = vmatpush3.bf16.msra.mxu0 %v5650_v1  ;;  %5632 = vmatpush3.bf16.msra.mxu1 %v5650_v1  ;;  %v5832_v4 = vld [vmem:[%s5826_s29] sm:$0xff]   ;;  %v5855_v11 = vld [vmem:[%s5826_s29 + $0x8] sm:$0xff]   ;;  %v5867_v15 = vld [vmem:[%s5826_s29 + $0x10] sm:$0xff]  }
  0x14   : > { %5087 = vmatprep.subr.bf16.mxu0 %v5651_v2  ;;  %5625 = vmatprep.subr.bf16.mxu1 %v5651_v2  ;;  %v5835_v5 = vld [vmem:[%s5826_s29 + $0x60] sm:$0xff]   ;;  %v5861_v13 = vld [vmem:[%s5826_s29 + $0x68] sm:$0xff]   ;;  %v5870_v16 = vld [vmem:[%s5826_s29 + $0x70] sm:$0xff]  }
  0x15   : > { %5099 = vmatprep.mubr.bf16.mxu0 %v5832_v4  ;;  %5123 = vmatprep.mubr.bf16.mxu1 %v5835_v5  ;;  %v5880_v18 = vld [vmem:[%s5826_s29 + $0x18] sm:$0xff]   ;;  %v5889_v21 = vld [vmem:[%s5826_s29 + $0x20] sm:$0xff]   ;;  %v5908_v26 = vld [vmem:[%s5826_s29 + $0x28] sm:$0xff]  }
  0x16   : > { %v5886_v20 = vld [vmem:[%s5826_s29 + $0x78] sm:$0xff]   ;;  %v5892_v22 = vld [vmem:[%s5826_s29 + $0x80] sm:$0xff]   ;;  %v5914_v28 = vld [vmem:[%s5826_s29 + $0x88] sm:$0xff]  }
  0x17   : > { %5088 = vmatpush3.bf16.msra.mxu0 %v5651_v2  ;;  %5633 = vmatpush3.bf16.msra.mxu1 %v5651_v2  ;;  %v5917_v29 = vld [vmem:[%s5826_s29 + $0x30] sm:$0xff]   ;;  %v5681_v31 = vld [vmem:[%s7444_s1 + $0x60] sm:$0xff]   ;;  %v5683_v33 = vld [vmem:[%s7444_s1 + $0x68] sm:$0xff]  }
  0x18   : > { %5089 = vmatprep.subr.bf16.mxu0 %v5652_v3  ;;  %5626 = vmatprep.subr.bf16.mxu1 %v5652_v3  ;;  %v5920_v30 = vld [vmem:[%s5826_s29 + $0x90] sm:$0xff]   ;;  %v5936_v34 = vld [vmem:[%s5826_s29 + $0x38] sm:$0xff]   ;;  %v5945_v37 = vld [vmem:[%s5826_s29 + $0x40] sm:$0xff]  }
  0x19   : > { %v5939_v35 = vld [vmem:[%s5826_s29 + $0x98] sm:$0xff]   ;;  %v5691_v36 = vld [vmem:[%s7444_s1 + $0xb0] sm:$0xff]   ;;  %v5948_v38 = vld [vmem:[%s5826_s29 + $0xa0] sm:$0xff]  }
  0x1a   : > { %v5689_v39 = vld [vmem:[%s7444_s1 + $0x70] sm:$0xff]   ;;  %v5694_v40 = vld [vmem:[%s7444_s1 + $0xb8] sm:$0xff]   ;;  %v5964_v42 = vld [vmem:[%s5826_s29 + $0xa8] ss:$0 sps:$4 sm:$0x77]  }
  0x1b   : > { %5090 = vmatpush3.bf16.msra.mxu0 %v5652_v3  ;;  %5634 = vmatpush3.bf16.msra.mxu1 %v5652_v3  ;;  %v5690_v41 = vld [vmem:[%s7444_s1 + $0x78] sm:$0xff]   ;;  %v5696_v43 = vld [vmem:[%s7444_s1 + $0x100] sm:$0xff]   ;;  %v5970_v44 = vld [vmem:[%s5826_s29 + $0x48] sm:$0xff]  }
  0x1c   : > { %5091 = vmatprep.subr.bf16.mxu0 %v5653_v6  ;;  %5627 = vmatprep.subr.bf16.mxu1 %v5653_v6  ;;  %v5973_v45 = vld [vmem:[%s5826_s29 + $0x50] sm:$0xff]   ;;  %v5695_v46 = vld [vmem:[%s7444_s1 + $0xc0] sm:$0xff]   ;;  %v5983_v47 = vld [vmem:[%s5826_s29 + $0x58] sm:$0xff]  }
  0x1d   : > { %v5697_v48 = vld [vmem:[%s7444_s1 + $0xc8] sm:$0xff]   ;;  %v5699_v49 = vld [vmem:[%s7444_s1 + $0xd0] sm:$0xff]   ;;  %v5701_v52 = vld [vmem:[%s7444_s1 + $0xd8] sm:$0xff]  }
  0x1e   : > { %v5698_v50 = vld [vmem:[%s7444_s1 + $0x108] sm:$0xff]   ;;  %v5700_v51 = vld [vmem:[%s7444_s1 + $0x110] sm:$0xff]   ;;  %v5703_v53 = vld [vmem:[%s7444_s1 + $0xe0] sm:$0xff]  }
  0x1f   : > { %5092 = vmatpush3.bf16.msra.mxu0 %v5653_v6  ;;  %5635 = vmatpush3.bf16.msra.mxu1 %v5653_v6  ;;  %v5702_v54 = vld [vmem:[%s7444_s1 + $0x118] sm:$0xff]   ;;  %v5705_v55 = vld [vmem:[%s7444_s1 + $0xe8] sm:$0xff]   ;;  %v5704_v56 = vld [vmem:[%s7444_s1 + $0x120] sm:$0xff]  }
  0x20   : > { %5093 = vmatprep.subr.bf16.mxu0 %v5654_v7  ;;  %5628 = vmatprep.subr.bf16.mxu1 %v5654_v7  ;;  %v5707_v57 = vld [vmem:[%s7444_s1 + $0xf0] sm:$0xff]   ;;  %v5706_v58 = vld [vmem:[%s7444_s1 + $0x128] sm:$0xff]   ;;  %v5709_v59 = vld [vmem:[%s7444_s1 + $0xf8] sm:$0xff]  }
  0x21   : > { %v5708_v60 = vld [vmem:[%s7444_s1 + $0x130] sm:$0xff]   ;;  %v5711_v61 = vld [vmem:[%s7444_s1 + $0x140] sm:$0xff]   ;;  %v5710_v62 = vld [vmem:[%s7444_s1 + $0x138] sm:$0xff]  }
  0x22   : > { %v5712_v63 = vld [vmem:[%s7444_s1 + $0x180] sm:$0xff]   ;;  %v5713_v0 = vld [vmem:[%s7444_s1 + $0x148] sm:$0xff]   ;;  %v5715_v1 = vld [vmem:[%s7444_s1 + $0x150] sm:$0xff]  }
  0x23   : > { %5094 = vmatpush3.bf16.msra.mxu0 %v5654_v7  ;;  %5636 = vmatpush3.bf16.msra.mxu1 %v5654_v7  ;;  %v5714_v2 = vld [vmem:[%s7444_s1 + $0x188] sm:$0xff]   ;;  %v5717_v3 = vld [vmem:[%s7444_s1 + $0x158] sm:$0xff]   ;;  %v5716_v6 = vld [vmem:[%s7444_s1 + $0x190] sm:$0xff]  }
  0x24   : > { %5095 = vmatprep.subr.bf16.mxu0 %v5655_v8  ;;  %5629 = vmatprep.subr.bf16.mxu1 %v5655_v8  ;;  %v5719_v7 = vld [vmem:[%s7444_s1 + $0x160] sm:$0xff]  }
  0x27   : > { %5096 = vmatpush3.bf16.msra.mxu0 %v5655_v8  ;;  %5637 = vmatpush3.bf16.msra.mxu1 %v5655_v8  ;;  %v5718_v8 = vld [vmem:[%s7444_s1 + $0x198] sm:$0xff]  }
  0x28   : > { %5097 = vmatprep.subr.bf16.mxu0 %v5656_v9  ;;  %5630 = vmatprep.subr.bf16.mxu1 %v5656_v9 }
  0x2b   : > { %5098 = vmatpush3.bf16.msra.mxu0 %v5656_v9  ;;  %5638 = vmatpush3.bf16.msra.mxu1 %v5656_v9  ;;  %v5721_v9 = vld [vmem:[%s7444_s1 + $0x168] sm:$0xff]  }
  0x2c   : > { %5203 = vmatprep.subr.bf16.mxu0 %v5661_v10  ;;  %5143 = vmatprep.subr.bf16.mxu1 %v5662_v12 }
  0x2e   : > { %5100 = vmatmul.mubr.bf16.vlgmr.msra.gmra.mrb[0].mxu0 %v5855_v11  ;;  %5124 = vmatmul.mubr.bf16.vlgmr.msra.gmra.mrb[0].mxu1 %v5861_v13 }
  0x2f   : > { %5204 = vmatpush3.bf16.msra.mxu0 %v5661_v10  ;;  %5103 = vmatprep.mubr.bf16.mxu0 %v5867_v15  ;;  %v5720_v10 = vld [vmem:[%s7444_s1 + $0x1a0] sm:$0xff]  }
  0x30   : > { %5205 = vmatprep.subr.bf16.mxu0 %v5663_v14  ;;  %5127 = vmatprep.mubr.bf16.mxu1 %v5870_v16 }
  0x31   : > { %5144 = vmatpush3.bf16.msra.mxu1 %v5662_v12  ;;  %v5723_v12 = vld [vmem:[%s7444_s1 + $0x170] sm:$0xff]  }
  0x32   : > { %5145 = vmatprep.subr.bf16.mxu1 %v5668_v17 }
  0x33   : > { %5206 = vmatpush3.bf16.msra.mxu0 %v5663_v14  ;;  %v5722_v14 = vld [vmem:[%s7444_s1 + $0x1a8] sm:$0xff]  }
  0x34   : > { %5207 = vmatprep.subr.bf16.mxu0 %v5669_v19 }
  0x35   : > { %5146 = vmatpush3.bf16.msra.mxu1 %v5668_v17  ;;  %v5725_v17 = vld [vmem:[%s7444_s1 + $0x178] sm:$0xff]  }
  0x36   : > { %5104 = vmatmul.mubr.bf16.gmra.mrb[4].mxu0 %v5880_v18  ;;  %5128 = vmatmul.mubr.bf16.gmra.mrb[4].mxu1 %v5886_v20 }
  0x37   : > { %5208 = vmatpush3.bf16.msra.mxu0 %v5669_v19  ;;  %5107 = vmatprep.mubr.bf16.mxu0 %v5889_v21  ;;  %v5724_v19 = vld [vmem:[%s7444_s1 + $0x1b0] sm:$0xff]  }
  0x38   : > { %5131 = vmatprep.mubr.bf16.mxu1 %v5892_v22  ;;  %5147 = vmatprep.subr.bf16.mxu1 %v5674_v23 }
  0x39   : > { %5148 = vmatpush3.bf16.msra.mxu1 %v5674_v23  ;;  %5209 = vmatprep.subr.bf16.mxu0 %v5675_v24  ;;  %v5727_v23 = vld [vmem:[%s7444_s1 + $0x1c0] sm:$0xff]  }
  0x3a   : > { %5149 = vmatprep.subr.bf16.mxu1 %v5676_v25 }
  0x3b   : > { %5210 = vmatpush3.bf16.msra.mxu0 %v5675_v24  ;;  %v5726_v24 = vld [vmem:[%s7444_s1 + $0x1b8] sm:$0xff]  }
  0x3c   : > { %5211 = vmatprep.subr.bf16.mxu0 %v5682_v27 }
  0x3d   : > { %5150 = vmatpush3.bf16.msra.mxu1 %v5676_v25  ;;  %v5728_v25 = vld [vmem:[%s7444_s1 + $0x200] sm:$0xff]  }
  0x3e   : > { %5108 = vmatmul.mubr.bf16.gmra.mrb[8].mxu0 %v5908_v26  ;;  %5132 = vmatmul.mubr.bf16.gmra.mrb[8].mxu1 %v5914_v28 }
  0x3f   : > { %5111 = vmatprep.mubr.bf16.mxu0 %v5917_v29  ;;  %5135 = vmatprep.mubr.bf16.mxu1 %v5920_v30 }
  0x40   : > { %5151 = vmatprep.subr.bf16.mxu1 %v5681_v31  ;;  %5212 = vmatpush3.bf16.msra.mxu0 %v5682_v27 }
  0x41   : > { %5152 = vmatpush3.bf16.msra.mxu1 %v5681_v31  ;;  %5213 = vmatprep.subr.bf16.mxu0 %v5684_v32  ;;  %v5729_v31 = vld [vmem:[%s7444_s1 + $0x1c8] sm:$0xff]  }
  0x42   : > { %5153 = vmatprep.subr.bf16.mxu1 %v5683_v33 }
  0x44   : > { %5214 = vmatpush3.bf16.msra.mxu0 %v5684_v32 }
  0x45   : > { %5154 = vmatpush3.bf16.msra.mxu1 %v5683_v33  ;;  %5215 = vmatprep.subr.bf16.mxu0 %v5691_v36 }
  0x46   : > { %5112 = vmatmul.mubr.bf16.gmra.mrb[12].mxu0 %v5936_v34  ;;  %5136 = vmatmul.mubr.bf16.gmra.mrb[12].mxu1 %v5939_v35 }
  0x47   : > { %5115 = vmatprep.mubr.bf16.mxu0 %v5945_v37  ;;  %5139 = vmatprep.mubr.bf16.mxu1 %v5948_v38 }
  0x48   : > { %5155 = vmatprep.subr.bf16.mxu1 %v5689_v39  ;;  %5216 = vmatpush3.bf16.msra.mxu0 %v5691_v36 }
  0x49   : > { %5156 = vmatpush3.bf16.msra.mxu1 %v5689_v39  ;;  %5217 = vmatprep.subr.bf16.mxu0 %v5694_v40 }
  0x4a   : > { %5157 = vmatprep.subr.bf16.mxu1 %v5690_v41 }
  0x4c   : > { %5218 = vmatpush3.bf16.msra.mxu0 %v5694_v40 }
  0x4d   : > { %5158 = vmatpush3.bf16.msra.mxu1 %v5690_v41  ;;  %5323 = vmatprep.subr.bf16.mxu0 %v5696_v43 }
  0x4e   : > { %5116 = vmatmul.mubr.bf16.gmra.mrb[16].mxu0 %v5970_v44  ;;  %5140 = vmatmul.mubr.bf16.gmra.mrb[16].mxu1 %v5964_v42 }
  0x4f   : > { %5119 = vmatprep.mubr.bf16.mxu0 %v5973_v45  ;;  %5159 = vmatprep.mubr.bf16.mxu1 %v5832_v4 }
  0x50   : > { %5263 = vmatprep.subr.bf16.mxu1 %v5695_v46 }
  0x56   : > { %5120 = vmatmul.mubr.bf16.gmra.mrb[20].mxu0 %v5983_v47  ;;  %5160 = vmatmul.mubr.bf16.vlgmr.msra.gmra.mrb[20].mxu1 %v5855_v11 }
  0x57   : > { %5163 = vmatprep.mubr.bf16.mxu1 %v5867_v15  ;;  %5219 = vmatprep.mubr.bf16.mxu0 %v5832_v4 }
  0x58   : > { %5264 = vmatpush3.bf16.msra.mxu1 %v5695_v46  ;;  %v5732_v46 = vld [vmem:[%s7444_s1 + $0x210] sm:$0xff]  }
  0x59   : > { %5265 = vmatprep.subr.bf16.mxu1 %v5697_v48 }
  0x5c   : > { %5266 = vmatpush3.bf16.msra.mxu1 %v5697_v48 }
  0x5d   : > { %5267 = vmatprep.subr.bf16.mxu1 %v5699_v49 }
  0x5e   : > { %5164 = vmatmul.mubr.bf16.gmra.mrb[24].mxu1 %v5880_v18  ;;  %5220 = vmatmul.mubr.bf16.vlgmr.msra.gmra.mrb[24].mxu0 %v5855_v11 }
  0x5f   : > { %5324 = vmatpush3.bf16.msra.mxu0 %v5696_v43  ;;  %5167 = vmatprep.mubr.bf16.mxu1 %v5889_v21  ;;  %v5733_v43 = vld [vmem:[%s7444_s1 + $0x1d8] sm:$0xff]  }
  0x60   : > { %5223 = vmatprep.mubr.bf16.mxu0 %v5867_v15  ;;  %5325 = vmatprep.subr.bf16.mxu0 %v5698_v50 }
  0x61   : > { %5268 = vmatpush3.bf16.msra.mxu1 %v5699_v49 }
  0x62   : > { %5269 = vmatprep.subr.bf16.mxu1 %v5701_v52 }
  0x63   : > { %5326 = vmatpush3.bf16.msra.mxu0 %v5698_v50 }
  0x64   : > { %5327 = vmatprep.subr.bf16.mxu0 %v5700_v51 }
  0x65   : > { %5270 = vmatpush3.bf16.msra.mxu1 %v5701_v52 }
  0x66   : > { %5168 = vmatmul.mubr.bf16.gmra.mrb[28].mxu1 %v5908_v26  ;;  %5224 = vmatmul.mubr.bf16.gmra.mrb[28].mxu0 %v5880_v18 }
  0x67   : > { %5171 = vmatprep.mubr.bf16.mxu1 %v5917_v29  ;;  %5227 = vmatprep.mubr.bf16.mxu0 %v5889_v21 }
  0x68   : > { %5328 = vmatpush3.bf16.msra.mxu0 %v5700_v51  ;;  %5271 = vmatprep.subr.bf16.mxu1 %v5703_v53 }
  0x69   : > { %5329 = vmatprep.subr.bf16.mxu0 %v5702_v54  ;;  %5272 = vmatpush3.bf16.msra.mxu1 %v5703_v53 }
  0x6a   : > { %5273 = vmatprep.subr.bf16.mxu1 %v5705_v55 }
  0x6c   : > { %5330 = vmatpush3.bf16.msra.mxu0 %v5702_v54  ;;  %v5735_v54 = vld [vmem:[%s7444_s1 + $0x1e0] sm:$0xff]  }
  0x6d   : > { %5331 = vmatprep.subr.bf16.mxu0 %v5704_v56  ;;  %5274 = vmatpush3.bf16.msra.mxu1 %v5705_v55  ;;  %v5734_v55 = vld [vmem:[%s7444_s1 + $0x218] sm:$0xff]  }
  0x6e   : > { %5172 = vmatmul.mubr.bf16.gmra.mrb[32].mxu1 %v5936_v34  ;;  %5228 = vmatmul.mubr.bf16.gmra.mrb[32].mxu0 %v5908_v26 }
  0x6f   : > { %5175 = vmatprep.mubr.bf16.mxu1 %v5945_v37  ;;  %5231 = vmatprep.mubr.bf16.mxu0 %v5917_v29 }
  0x70   : > { %5332 = vmatpush3.bf16.msra.mxu0 %v5704_v56  ;;  %5275 = vmatprep.subr.bf16.mxu1 %v5707_v57  ;;  %v5737_v56 = vld [vmem:[%s7444_s1 + $0x1e8] sm:$0xff]  }
  0x71   : > { %5333 = vmatprep.subr.bf16.mxu0 %v5706_v58  ;;  %5276 = vmatpush3.bf16.msra.mxu1 %v5707_v57 }
  0x72   : > { %5277 = vmatprep.subr.bf16.mxu1 %v5709_v59 }
  0x74   : > { %5334 = vmatpush3.bf16.msra.mxu0 %v5706_v58 }
  0x75   : > { %5335 = vmatprep.subr.bf16.mxu0 %v5708_v60  ;;  %5278 = vmatpush3.bf16.msra.mxu1 %v5709_v59  ;;  %v5736_v59 = vld [vmem:[%s7444_s1 + $0x220] sm:$0xff]  }
  0x76   : > { %5176 = vmatmul.mubr.bf16.gmra.mrb[36].mxu1 %v5970_v44  ;;  %5232 = vmatmul.mubr.bf16.gmra.mrb[36].mxu0 %v5936_v34 }
  0x77   : > { %5179 = vmatprep.mubr.bf16.mxu1 %v5973_v45  ;;  %5235 = vmatprep.mubr.bf16.mxu0 %v5945_v37 }
  0x78   : > { %5336 = vmatpush3.bf16.msra.mxu0 %v5708_v60  ;;  %5383 = vmatprep.subr.bf16.mxu1 %v5711_v61 }
  0x79   : > { %5337 = vmatprep.subr.bf16.mxu0 %v5710_v62 }
  0x7c   : > { %5338 = vmatpush3.bf16.msra.mxu0 %v5710_v62 }
  0x7d   : > { %5443 = vmatprep.subr.bf16.mxu0 %v5712_v63 }
  0x7e   : > { %5180 = vmatmul.mubr.bf16.gmra.mrb[40].mxu1 %v5983_v47  ;;  %5236 = vmatmul.mubr.bf16.gmra.mrb[40].mxu0 %v5970_v44 }
  0x7f   : > { %5183 = vmatprep.mubr.bf16.mxu1 %v5835_v5  ;;  %5239 = vmatprep.mubr.bf16.mxu0 %v5973_v45 }
  0x86   : > { %5184 = vmatmul.mubr.bf16.gmra.mrb[44].mxu1 %v5861_v13  ;;  %5240 = vmatmul.mubr.bf16.gmra.mrb[44].mxu0 %v5983_v47 }
  0x87   : > { %5187 = vmatprep.mubr.bf16.mxu1 %v5870_v16  ;;  %5243 = vmatprep.mubr.bf16.mxu0 %v5835_v5 }
  0x8e   : > { %5188 = vmatmul.mubr.bf16.gmra.mrb[48].mxu1 %v5886_v20  ;;  %5244 = vmatmul.mubr.bf16.gmra.mrb[48].mxu0 %v5861_v13 }
  0x8f   : > { %5191 = vmatprep.mubr.bf16.mxu1 %v5892_v22  ;;  %5247 = vmatprep.mubr.bf16.mxu0 %v5870_v16 }
  0x96   : > { %5192 = vmatmul.mubr.bf16.gmra.mrb[52].mxu1 %v5914_v28  ;;  %5248 = vmatmul.mubr.bf16.gmra.mrb[52].mxu0 %v5886_v20 }
  0x97   : > { %5195 = vmatprep.mubr.bf16.mxu1 %v5920_v30  ;;  %5251 = vmatprep.mubr.bf16.mxu0 %v5892_v22 }
  0x9e   : > { %5196 = vmatmul.mubr.bf16.gmra.mrb[56].mxu1 %v5939_v35  ;;  %5252 = vmatmul.mubr.bf16.gmra.mrb[56].mxu0 %v5914_v28 }
  0x9f   : > { %5199 = vmatprep.mubr.bf16.mxu1 %v5948_v38  ;;  %5255 = vmatprep.mubr.bf16.mxu0 %v5920_v30 }
  0xa6   : > { %5200 = vmatmul.mubr.bf16.gmra.mrb[60].mxu1 %v5964_v42  ;;  %5256 = vmatmul.mubr.bf16.gmra.mrb[60].mxu0 %v5939_v35 }
  0xa7   : > { %5259 = vmatprep.mubr.bf16.mxu0 %v5948_v38  ;;  %5279 = vmatprep.mubr.bf16.mxu1 %v5832_v4 }
  0xae   : > { %5260 = vmatmul.mubr.bf16.gmra.mrb[64].mxu0 %v5964_v42  ;;  %5280 = vmatmul.mubr.bf16.vlgmr.msra.gmra.mrb[64].mxu1 %v5855_v11 }
  0xaf   : > { %5283 = vmatprep.mubr.bf16.mxu1 %v5867_v15  ;;  %5339 = vmatprep.mubr.bf16.mxu0 %v5832_v4 }
  0xb0   : > { %5384 = vmatpush3.bf16.msra.mxu1 %v5711_v61 }
  0xb1   : > { %5385 = vmatprep.subr.bf16.mxu1 %v5713_v0 }
  0xb4   : > { %5386 = vmatpush3.bf16.msra.mxu1 %v5713_v0  ;;  %v5739_v0 = vld [vmem:[%s7444_s1 + $0x1f0] sm:$0xff]  }
  0xb5   : > { %5387 = vmatprep.subr.bf16.mxu1 %v5715_v1 }
  0xb6   : > { %5284 = vmatmul.mubr.bf16.gmra.mrb[68].mxu1 %v5880_v18  ;;  %5340 = vmatmul.mubr.bf16.vlgmr.msra.gmra.mrb[68].mxu0 %v5855_v11 }
  0xb7   : > { %5444 = vmatpush3.bf16.msra.mxu0 %v5712_v63  ;;  %5287 = vmatprep.mubr.bf16.mxu1 %v5889_v21 }
  0xb8   : > { %5343 = vmatprep.mubr.bf16.mxu0 %v5867_v15  ;;  %5445 = vmatprep.subr.bf16.mxu0 %v5714_v2 }
  0xb9   : > { %5388 = vmatpush3.bf16.msra.mxu1 %v5715_v1  ;;  %v5738_v1 = vld [vmem:[%s7444_s1 + $0x228] sm:$0xff]  }
  0xba   : > { %5389 = vmatprep.subr.bf16.mxu1 %v5717_v3 }
  0xbb   : > { %5446 = vmatpush3.bf16.msra.mxu0 %v5714_v2  ;;  %v5741_v2 = vld [vmem:[%s7444_s1 + $0x1f8] sm:$0xff]  }
  0xbc   : > { %5447 = vmatprep.subr.bf16.mxu0 %v5716_v6 }
  0xbd   : > { %5390 = vmatpush3.bf16.msra.mxu1 %v5717_v3 }
  0xbe   : > { %5288 = vmatmul.mubr.bf16.gmra.mrb[72].mxu1 %v5908_v26  ;;  %5344 = vmatmul.mubr.bf16.gmra.mrb[72].mxu0 %v5880_v18 }
  0xbf   : > { %5291 = vmatprep.mubr.bf16.mxu1 %v5917_v29  ;;  %5347 = vmatprep.mubr.bf16.mxu0 %v5889_v21 }
  0xc0   : > { %5448 = vmatpush3.bf16.msra.mxu0 %v5716_v6  ;;  %5391 = vmatprep.subr.bf16.mxu1 %v5719_v7 }
  0xc1   : > { %5449 = vmatprep.subr.bf16.mxu0 %v5718_v8  ;;  %5392 = vmatpush3.bf16.msra.mxu1 %v5719_v7  ;;  %v5740_v7 = vld [vmem:[%s7444_s1 + $0x230] sm:$0xff]  }
  0xc2   : > { %5393 = vmatprep.subr.bf16.mxu1 %v5721_v9 }
  0xc4   : > { %5450 = vmatpush3.bf16.msra.mxu0 %v5718_v8 }
  0xc5   : > { %5451 = vmatprep.subr.bf16.mxu0 %v5720_v10  ;;  %5394 = vmatpush3.bf16.msra.mxu1 %v5721_v9 }
  0xc6   : > { %5292 = vmatmul.mubr.bf16.gmra.mrb[76].mxu1 %v5936_v34  ;;  %5348 = vmatmul.mubr.bf16.gmra.mrb[76].mxu0 %v5908_v26 }
  0xc7   : > { %5295 = vmatprep.mubr.bf16.mxu1 %v5945_v37  ;;  %5351 = vmatprep.mubr.bf16.mxu0 %v5917_v29 }
  0xc8   : > { %5452 = vmatpush3.bf16.msra.mxu0 %v5720_v10  ;;  %5395 = vmatprep.subr.bf16.mxu1 %v5723_v12 }
  0xc9   : > { %5453 = vmatprep.subr.bf16.mxu0 %v5722_v14  ;;  %5396 = vmatpush3.bf16.msra.mxu1 %v5723_v12 }
  0xca   : > { %5397 = vmatprep.subr.bf16.mxu1 %v5725_v17 }
  0xcc   : > { %5454 = vmatpush3.bf16.msra.mxu0 %v5722_v14  ;;  %v5742_v14 = vld [vmem:[%s7444_s1 + $0x238] sm:$0xff]  }
  0xcd   : > { %5455 = vmatprep.subr.bf16.mxu0 %v5724_v19  ;;  %5398 = vmatpush3.bf16.msra.mxu1 %v5725_v17 }
  0xce   : > { %5296 = vmatmul.mubr.bf16.gmra.mrb[80].mxu1 %v5970_v44  ;;  %5352 = vmatmul.mubr.bf16.gmra.mrb[80].mxu0 %v5936_v34 }
  0xcf   : > { %5299 = vmatprep.mubr.bf16.mxu1 %v5973_v45  ;;  %5355 = vmatprep.mubr.bf16.mxu0 %v5945_v37 }
  0xd0   : > { %5456 = vmatpush3.bf16.msra.mxu0 %v5724_v19  ;;  %5503 = vmatprep.subr.bf16.mxu1 %v5727_v23 }
  0xd1   : > { %5457 = vmatprep.subr.bf16.mxu0 %v5726_v24 }
  0xd4   : > { %5458 = vmatpush3.bf16.msra.mxu0 %v5726_v24 }
  0xd5   : > { %5563 = vmatprep.subr.bf16.mxu0 %v5728_v25 }
  0xd6   : > { %5300 = vmatmul.mubr.bf16.gmra.mrb[84].mxu1 %v5983_v47  ;;  %5356 = vmatmul.mubr.bf16.gmra.mrb[84].mxu0 %v5970_v44 }
  0xd7   : > { %5303 = vmatprep.mubr.bf16.mxu1 %v5835_v5  ;;  %5359 = vmatprep.mubr.bf16.mxu0 %v5973_v45 }
  0xde   : > { %5304 = vmatmul.mubr.bf16.gmra.mrb[88].mxu1 %v5861_v13  ;;  %5360 = vmatmul.mubr.bf16.gmra.mrb[88].mxu0 %v5983_v47 }
  0xdf   : > { %5307 = vmatprep.mubr.bf16.mxu1 %v5870_v16  ;;  %5363 = vmatprep.mubr.bf16.mxu0 %v5835_v5 }
  0xe6   : > { %5308 = vmatmul.mubr.bf16.gmra.mrb[92].mxu1 %v5886_v20  ;;  %5364 = vmatmul.mubr.bf16.gmra.mrb[92].mxu0 %v5861_v13 }
  0xe7   : > { %5311 = vmatprep.mubr.bf16.mxu1 %v5892_v22  ;;  %5367 = vmatprep.mubr.bf16.mxu0 %v5870_v16 }
  0xee   : > { %5312 = vmatmul.mubr.bf16.gmra.mrb[96].mxu1 %v5914_v28  ;;  %5368 = vmatmul.mubr.bf16.gmra.mrb[96].mxu0 %v5886_v20 }
  0xef   : > { %5315 = vmatprep.mubr.bf16.mxu1 %v5920_v30  ;;  %5371 = vmatprep.mubr.bf16.mxu0 %v5892_v22 }
  0xf6   : > { %5316 = vmatmul.mubr.bf16.gmra.mrb[100].mxu1 %v5939_v35  ;;  %5372 = vmatmul.mubr.bf16.gmra.mrb[100].mxu0 %v5914_v28 }
  0xf7   : > { %5319 = vmatprep.mubr.bf16.mxu1 %v5948_v38  ;;  %5375 = vmatprep.mubr.bf16.mxu0 %v5920_v30 }
  0xfe   : > { %5320 = vmatmul.mubr.bf16.gmra.mrb[104].mxu1 %v5964_v42  ;;  %5376 = vmatmul.mubr.bf16.gmra.mrb[104].mxu0 %v5939_v35  ;;  %v5731_v35 = vld [vmem:[%s7444_s1 + $0x1d0] sm:$0xff]  }
  0xff   : > { %5379 = vmatprep.mubr.bf16.mxu0 %v5948_v38  ;;  %5399 = vmatprep.mubr.bf16.mxu1 %v5832_v4 }
 0x101   : > { %v6169_v5 = vpop.f32.mrb[0].mxu0  ;;  %v6171_v13 = vpop.f32.mrb[0].mxu1 }
 0x102   : > { %v6173_v16 = vpop.f32.mrb[1].mxu0  ;;  %v6175_v20 = vpop.f32.mrb[1].mxu1 }
 0x103   : > { %v6177_v22 = vpop.f32.mrb[2].mxu0  ;;  %v6179_v27 = vpop.f32.mrb[2].mxu1 }
 0x104   : > { %v6181_v28 = vpop.f32.mrb[3].mxu0  ;;  %v6183_v30 = vpop.f32.mrb[3].mxu1 }
 0x106   : > { %5380 = vmatmul.mubr.bf16.gmra.mrb[108].mxu0 %v5964_v42  ;;  %5400 = vmatmul.mubr.bf16.vlgmr.msra.gmra.mrb[108].mxu1 %v5855_v11  ;;  %v5730_v42 = vld [vmem:[%s7444_s1 + $0x208] sm:$0xff]  }
 0x107   : > { %5403 = vmatprep.mubr.bf16.mxu1 %v5867_v15  ;;  %5459 = vmatprep.mubr.bf16.mxu0 %v5832_v4 }
 0x108   : > { %5504 = vmatpush3.bf16.msra.mxu1 %v5727_v23 }
 0x109   : > { %v6192_v32 = vpop.f32.mrb[4].mxu0  ;;  %v6194_v33 = vpop.f32.mrb[4].mxu1  ;;  %5505 = vmatprep.subr.bf16.mxu1 %v5729_v31 }
 0x10a   : > { %v6199_v36 = vpop.f32.mrb[5].mxu0  ;;  %v6201_v38 = vpop.f32.mrb[5].mxu1 }
 0x10b   : > { %v6203_v39 = vpop.f32.mrb[6].mxu0  ;;  %v6205_v40 = vpop.f32.mrb[6].mxu1 }
 0x10c   : > { %v6207_v41 = vpop.f32.mrb[7].mxu0  ;;  %v6209_v4 = vpop.f32.mrb[7].mxu1  ;;  %5506 = vmatpush3.bf16.msra.mxu1 %v5729_v31 }
 0x10d   : > { %5507 = vmatprep.subr.bf16.mxu1 %v5731_v35 }
 0x10e   : > { %5404 = vmatmul.mubr.bf16.gmra.mrb[112].mxu1 %v5880_v18  ;;  %5460 = vmatmul.mubr.bf16.vlgmr.msra.gmra.mrb[112].mxu0 %v5855_v11 }
 0x10f   : > { %5564 = vmatpush3.bf16.msra.mxu0 %v5728_v25  ;;  %5407 = vmatprep.mubr.bf16.mxu1 %v5889_v21 }
 0x110   : > { %5463 = vmatprep.mubr.bf16.mxu0 %v5867_v15  ;;  %5565 = vmatprep.subr.bf16.mxu0 %v5730_v42 }
 0x111   : > { %v6224_v48 = vpop.f32.mrb[8].mxu0  ;;  %v6226_v49 = vpop.f32.mrb[8].mxu1  ;;  %5508 = vmatpush3.bf16.msra.mxu1 %v5731_v35 }
 0x112   : > { %v6228_v11 = vpop.f32.mrb[9].mxu0  ;;  %v6230_v50 = vpop.f32.mrb[9].mxu1  ;;  %5509 = vmatprep.subr.bf16.mxu1 %v5733_v43 }
 0x113   : > { %v6232_v51 = vpop.f32.mrb[10].mxu0  ;;  %v6234_v52 = vpop.f32.mrb[10].mxu1  ;;  %5566 = vmatpush3.bf16.msra.mxu0 %v5730_v42 }
 0x114   : > { %v6236_v15 = vpop.f32.mrb[11].mxu0  ;;  %v6238_v53 = vpop.f32.mrb[11].mxu1  ;;  %5567 = vmatprep.subr.bf16.mxu0 %v5732_v46 }
 0x115   : > { %5510 = vmatpush3.bf16.msra.mxu1 %v5733_v43 }
 0x116   : > { %5408 = vmatmul.mubr.bf16.gmra.mrb[116].mxu1 %v5908_v26  ;;  %5464 = vmatmul.mubr.bf16.gmra.mrb[116].mxu0 %v5880_v18 }
 0x117   : > { %5411 = vmatprep.mubr.bf16.mxu1 %v5917_v29  ;;  %5467 = vmatprep.mubr.bf16.mxu0 %v5889_v21 }
 0x118   : > { %5568 = vmatpush3.bf16.msra.mxu0 %v5732_v46  ;;  %5511 = vmatprep.subr.bf16.mxu1 %v5735_v54 }
 0x119   : > { %v6253_v57 = vpop.f32.mrb[12].mxu0  ;;  %v5137_v58 = vpop.f32.mrb[12].mxu1  ;;  %5569 = vmatprep.subr.bf16.mxu0 %v5734_v55  ;;  %5512 = vmatpush3.bf16.msra.mxu1 %v5735_v54 }
 0x11a   : > { %v6258_v18 = vpop.f32.mrb[13].mxu0  ;;  %v661_v60 = vpop.f32.mrb[13].mxu1  ;;  %5513 = vmatprep.subr.bf16.mxu1 %v5737_v56 }
 0x11b   : > { %v6260_v61 = vpop.f32.mrb[14].mxu0  ;;  %v5138_v62 = vpop.f32.mrb[14].mxu1 }
 0x11c   : > { %v6262_v63 = vpop.f32.mrb[15].mxu0  ;;  %v663_v21 = vpop.f32.mrb[15].mxu1  ;;  %5570 = vmatpush3.bf16.msra.mxu0 %v5734_v55 }
 0x11d   : > { %5571 = vmatprep.subr.bf16.mxu0 %v5736_v59  ;;  %5514 = vmatpush3.bf16.msra.mxu1 %v5737_v56 }
 0x11e   : > { %5412 = vmatmul.mubr.bf16.gmra.mrb[120].mxu1 %v5936_v34  ;;  %5468 = vmatmul.mubr.bf16.gmra.mrb[120].mxu0 %v5908_v26 }
 0x11f   : > { %5415 = vmatprep.mubr.bf16.mxu1 %v5945_v37  ;;  %5471 = vmatprep.mubr.bf16.mxu0 %v5917_v29 }
 0x120   : > { %5572 = vmatpush3.bf16.msra.mxu0 %v5736_v59  ;;  %5515 = vmatprep.subr.bf16.mxu1 %v5739_v0  ;;  %v6310_v59 = vld [vmem:[%s5826_s29 + $0x60] sm:$0xff]  }
 0x121   : > { %v6277_v3 = vpop.f32.mrb[16].mxu0  ;;  %v5141_v6 = vpop.f32.mrb[16].mxu1  ;;  %5573 = vmatprep.subr.bf16.mxu0 %v5738_v1  ;;  %5516 = vmatpush3.bf16.msra.mxu1 %v5739_v0 }
 0x122   : > { %v6282_v26 = vpop.f32.mrb[17].mxu0  ;;  %v673_v8 = vpop.f32.mrb[17].mxu1  ;;  %5517 = vmatprep.subr.bf16.mxu1 %v5741_v2 }
 0x123   : > { %v6284_v9 = vpop.f32.mrb[18].mxu0  ;;  %v5142_v10 = vpop.f32.mrb[18].mxu1 }
 0x124   : > { %v6286_v12 = vpop.f32.mrb[19].mxu0  ;;  %v675_v29 = vpop.f32.mrb[19].mxu1  ;;  %5574 = vmatpush3.bf16.msra.mxu0 %v5738_v1 }
 0x125   : > { %5575 = vmatprep.subr.bf16.mxu0 %v5740_v7  ;;  %5518 = vmatpush3.bf16.msra.mxu1 %v5741_v2 }
 0x126   : > { %5416 = vmatmul.mubr.bf16.gmra.mrb[124].mxu1 %v5970_v44  ;;  %5472 = vmatmul.mubr.bf16.gmra.mrb[124].mxu0 %v5936_v34 }
 0x127   : > { %5419 = vmatprep.mubr.bf16.mxu1 %v5973_v45  ;;  %5475 = vmatprep.mubr.bf16.mxu0 %v5945_v37 }
 0x128   : > { %5576 = vmatpush3.bf16.msra.mxu0 %v5740_v7 }
 0x129   : > { %v6295_v17 = vpop.f32.mrb[20].mxu0  ;;  %v5161_v19 = vpop.f32.mrb[20].mxu1  ;;  %5577 = vmatprep.subr.bf16.mxu0 %v5742_v14 }
 0x12a   : > { %v992_v23 = vrot.slane %v5161_v19, 1  ;;  %v6297_v24 = vpop.f32.mrb[21].mxu0  ;;  %v783_v25 = vpop.f32.mrb[21].mxu1 }
 0x12b   : > { %v989_v31 = vrot.slane %v783_v25, 1  ;;  %v6299_v35 = vpop.f32.mrb[22].mxu0  ;;  %v5162_v42 = vpop.f32.mrb[22].mxu1 }
 0x12c   : > { %v994_v34 = vrot.slane %v5162_v42, 1  ;;  %v6301_v43 = vpop.f32.mrb[23].mxu0  ;;  %v786_v46 = vpop.f32.mrb[23].mxu1  ;;  %5578 = vmatpush3.bf16.msra.mxu0 %v5742_v14 }
 0x12d   : > { %v990_v37 = vrot.slane %v786_v46, 1  ;;  %v6321_v46 = vld [vmem:[%s5826_s29 + $0x68] sm:$0xff]  }
 0x12e   : > { %v995_v54 = vsel %vm988_vm0, %v992_v23, %v994_v34  ;;  %5420 = vmatmul.mubr.bf16.gmra.mrb[128].mxu1 %v5983_v47  ;;  %5476 = vmatmul.mubr.bf16.gmra.mrb[128].mxu0 %v5970_v44 }
 0x12f   : > { %v1100_v55 = vadd.f32 %v6169_v5, %v995_v54  ;;  %v991_v56 = vsel %vm988_vm0, %v989_v31, %v990_v37  ;;  %v993_v58 = vsel %vm988_vm0, %v990_v37, %v992_v23  ;;  %5423 = vmatprep.mubr.bf16.mxu1 %v6310_v59  ;;  %5479 = vmatprep.mubr.bf16.mxu0 %v5973_v45 }
 0x130   : > { %v1098_v60 = vadd.f32 %v991_v56, %v6173_v16  ;;  %v1099_v62 = vadd.f32 %v993_v58, %v6181_v28 }
 0x131   : > { %v5165_v21 = vpop.f32.mrb[24].mxu1  ;;  %v5221_v0 = vpop.f32.mrb[24].mxu0 }
 0x132   : > { %v1000_v1 = vrot.slane %v5165_v21, 1  ;;  %v799_v44 = vpop.f32.mrb[25].mxu1  ;;  %v1233_v2 = vpop.f32.mrb[25].mxu0  ;;  %v1442_v8 = vrot.slane %v5221_v0, 2 }
 0x133   : > { %v996_v5 = vrot.slane %v799_v44, 1  ;;  %v5166_v6 = vpop.f32.mrb[26].mxu1  ;;  %v5222_v7 = vpop.f32.mrb[26].mxu0  ;;  %v1439_v25 = vrot.slane %v1233_v2, 2 }
 0x134   : > { %v1002_v10 = vrot.slane %v5166_v6, 1  ;;  %v1444_v29 = vrot.slane %v5222_v7, 2  ;;  %v802_v14 = vpop.f32.mrb[27].mxu1  ;;  %v1236_v45 = vpop.f32.mrb[27].mxu0 }
 0x135   : > { %v997_v16 = vsel %vm988_vm0, %v994_v34, %v996_v5  ;;  %v998_v19 = vrot.slane %v802_v14, 1  ;;  %v1440_v28 = vrot.slane %v1236_v45, 2 }
 0x136   : > { %v1101_v23 = vadd.f32 %v6177_v22, %v997_v16  ;;  %v1003_v31 = vsel %vm988_vm0, %v1000_v1, %v1002_v10  ;;  %v1445_v42 = vsel %vm1438_vm1, %v1442_v8, %v1444_v29  ;;  %5424 = vmatmul.mubr.bf16.gmra.mrb[132].mxu1 %v6321_v46  ;;  %5480 = vmatmul.mubr.bf16.gmra.mrb[132].mxu0 %v5983_v47  ;;  %v6331_v22 = vld [vmem:[%s5826_s29 + $0x70] sm:$0xff]  }
 0x137   : > { %v1104_v37 = vadd.f32 %v6192_v32, %v1003_v31  ;;  %v6326_v54 = vadd.f32 %v1445_v42, %v1100_v55  ;;  %v999_v34 = vsel %vm988_vm0, %v996_v5, %v998_v19  ;;  %v1001_v56 = vsel %vm988_vm0, %v998_v19, %v1000_v1  ;;  %5427 = vmatprep.mubr.bf16.mxu1 %v6331_v22 }
 0x138   : > { %v1102_v58 = vadd.f32 %v999_v34, %v6199_v36  ;;  %v1103_v21 = vadd.f32 %v1001_v56, %v6207_v41  ;;  %v1441_v0 = vsel %vm1438_vm1, %v1439_v25, %v1440_v28  ;;  %v1443_v47 = vsel %vm1438_vm1, %v1440_v28, %v1442_v8  ;;  %5483 = vmatprep.mubr.bf16.mxu0 %v6310_v59 }
 0x139   : > { %v6339_v32 = vadd.f32 %v1441_v0, %v1098_v60  ;;  %v6341_v55 = vadd.f32 %v1443_v47, %v1099_v62  ;;  %v5169_v44 = vpop.f32.mrb[28].mxu1  ;;  %v5225_v1 = vpop.f32.mrb[28].mxu0  ;;  %v6351_v47 = vld [vmem:[%s5826_s29 + $0x78] sm:$0xff]  }
 0x13a   : > { %v1008_v2 = vrot.slane %v5169_v44, 1  ;;  %v815_v5 = vpop.f32.mrb[29].mxu1  ;;  %v1249_v6 = vpop.f32.mrb[29].mxu0  ;;  %v1450_v45 = vrot.slane %v5225_v1, 2 }
 0x13b   : > { %v1004_v7 = vrot.slane %v815_v5, 1  ;;  %v1446_v14 = vrot.slane %v1249_v6, 2  ;;  %v5170_v36 = vpop.f32.mrb[30].mxu1  ;;  %v5226_v41 = vpop.f32.mrb[30].mxu0 }
 0x13c   : > { %v1010_v16 = vrot.slane %v5170_v36, 1  ;;  %v1452_v19 = vrot.slane %v5226_v41, 2  ;;  %v818_v8 = vpop.f32.mrb[31].mxu1  ;;  %v1252_v28 = vpop.f32.mrb[31].mxu0  ;;  %v6365_v36 = vld [vmem:[%s5826_s29 + $0x80] sm:$0xff]  }
 0x13d   : > { %v1005_v60 = vsel %vm988_vm0, %v1002_v10, %v1004_v7  ;;  %v1447_v62 = vsel %vm1438_vm1, %v1444_v29, %v1446_v14  ;;  %v1006_v25 = vrot.slane %v818_v8, 1  ;;  %v1448_v31 = vrot.slane %v1252_v28, 2 }
 0x13e   : > { %v1105_v42 = vadd.f32 %v6203_v39, %v1005_v60  ;;  %v6346_v34 = vadd.f32 %v1447_v62, %v1101_v23  ;;  %v1011_v56 = vsel %vm988_vm0, %v1008_v2, %v1010_v16  ;;  %v1453_v0 = vsel %vm1438_vm1, %v1450_v45, %v1452_v19  ;;  %5428 = vmatmul.mubr.bf16.gmra.mrb[136].mxu1 %v6351_v47 }
 0x13f   : > { %v1108_v44 = vadd.f32 %v6224_v48, %v1011_v56  ;;  %v6355_v10 = vadd.f32 %v1453_v0, %v1104_v37  ;;  %v1007_v29 = vsel %vm988_vm0, %v1004_v7, %v1006_v25  ;;  %v1009_v1 = vsel %vm988_vm0, %v1006_v25, %v1008_v2  ;;  %5484 = vmatmul.mubr.bf16.gmra.mrb[136].mxu0 %v6321_v46 }
 0x140   : > { %v1106_v39 = vadd.f32 %v1007_v29, %v6228_v11  ;;  %v1107_v23 = vadd.f32 %v1009_v1, %v6236_v15  ;;  %v1449_v5 = vsel %vm1438_vm1, %v1446_v14, %v1448_v31  ;;  %v1451_v6 = vsel %vm1438_vm1, %v1448_v31, %v1450_v45  ;;  %5431 = vmatprep.mubr.bf16.mxu1 %v6365_v36 }
 0x141   : > { %v6368_v48 = vadd.f32 %v1449_v5, %v1102_v58  ;;  %v6370_v37 = vadd.f32 %v1451_v6, %v1103_v21  ;;  %v5173_v7 = vpop.f32.mrb[32].mxu1  ;;  %v5229_v2 = vpop.f32.mrb[32].mxu0  ;;  %5487 = vmatprep.mubr.bf16.mxu0 %v6331_v22 }
 0x142   : > { %v1016_v41 = vrot.slane %v5173_v7, 1  ;;  %v831_v11 = vpop.f32.mrb[33].mxu1  ;;  %v1265_v8 = vpop.f32.mrb[33].mxu0  ;;  %v1458_v60 = vrot.slane %v5229_v2, 2  ;;  %v6381_v2 = vld [vmem:[%s5826_s29 + $0x88] sm:$0xff]  }
 0x143   : > { %v1012_v15 = vrot.slane %v831_v11, 1  ;;  %v1454_v28 = vrot.slane %v1265_v8, 2  ;;  %v5174_v14 = vpop.f32.mrb[34].mxu1  ;;  %v5230_v45 = vpop.f32.mrb[34].mxu0 }
 0x144   : > { %v1018_v62 = vrot.slane %v5174_v14, 1  ;;  %v1460_v25 = vrot.slane %v5230_v45, 2  ;;  %v834_v31 = vpop.f32.mrb[35].mxu1  ;;  %v1268_v58 = vpop.f32.mrb[35].mxu0 }
 0x145   : > { %v1013_v21 = vsel %vm988_vm0, %v1010_v16, %v1012_v15  ;;  %v1455_v56 = vsel %vm1438_vm1, %v1452_v19, %v1454_v28  ;;  %v1014_v0 = vrot.slane %v834_v31, 1  ;;  %v1456_v29 = vrot.slane %v1268_v58, 2  ;;  %v6395_v31 = vld [vmem:[%s5826_s29 + $0x90] sm:$0xff]  }
 0x146   : > { %v1109_v1 = vadd.f32 %v6232_v51, %v1013_v21  ;;  %v6376_v5 = vadd.f32 %v1455_v56, %v1105_v42  ;;  %v1019_v6 = vsel %vm988_vm0, %v1016_v41, %v1018_v62  ;;  %v1461_v7 = vsel %vm1438_vm1, %v1458_v60, %v1460_v25  ;;  %5432 = vmatmul.mubr.bf16.gmra.mrb[140].mxu1 %v6381_v2 }
 0x147   : > { %v1112_v11 = vadd.f32 %v6253_v57, %v1019_v6  ;;  %v6385_v16 = vadd.f32 %v1461_v7, %v1108_v44  ;;  %v1015_v19 = vsel %vm988_vm0, %v1012_v15, %v1014_v0  ;;  %v1017_v8 = vsel %vm988_vm0, %v1014_v0, %v1016_v41  ;;  %5488 = vmatmul.mubr.bf16.gmra.mrb[140].mxu0 %v6351_v47 }
 0x148   : > { %v1110_v51 = vadd.f32 %v1015_v19, %v6258_v18  ;;  %v1111_v42 = vadd.f32 %v1017_v8, %v6262_v63  ;;  %v1457_v14 = vsel %vm1438_vm1, %v1454_v28, %v1456_v29  ;;  %v1459_v45 = vsel %vm1438_vm1, %v1456_v29, %v1458_v60  ;;  %7451 = vst [vmem:[#allocation2_spill] sm:$0xff] %v6395_v31 }
 0x149   : > { %5435 = vmatprep.mubr.bf16.mxu1 %v6395_v31  ;;  %v6398_v57 = vadd.f32 %v1457_v14, %v1106_v39  ;;  %v6400_v44 = vadd.f32 %v1459_v45, %v1107_v23  ;;  %v5177_v15 = vpop.f32.mrb[36].mxu1  ;;  %v5233_v41 = vpop.f32.mrb[36].mxu0  ;;  %5491 = vmatprep.mubr.bf16.mxu0 %v6365_v36 }
 0x14a   : > { %v1024_v58 = vrot.slane %v5177_v15, 1  ;;  %v847_v18 = vpop.f32.mrb[37].mxu1  ;;  %v1281_v21 = vpop.f32.mrb[37].mxu0  ;;  %v1466_v0 = vrot.slane %v5233_v41, 2  ;;  %v6411_v41 = vld [vmem:[%s5826_s29 + $0x98] sm:$0xff]  }
 0x14b   : > { %v1020_v63 = vrot.slane %v847_v18, 1  ;;  %v1462_v56 = vrot.slane %v1281_v21, 2  ;;  %v5178_v28 = vpop.f32.mrb[38].mxu1  ;;  %v5234_v60 = vpop.f32.mrb[38].mxu0 }
 0x14c   : > { %v1026_v29 = vrot.slane %v5178_v28, 1  ;;  %v1468_v6 = vrot.slane %v5234_v60, 2  ;;  %v850_v7 = vpop.f32.mrb[39].mxu1  ;;  %v1284_v39 = vpop.f32.mrb[39].mxu0 }
 0x14d   : > { %v1021_v23 = vsel %vm988_vm0, %v1018_v62, %v1020_v63  ;;  %v1463_v19 = vsel %vm1438_vm1, %v1460_v25, %v1462_v56  ;;  %v1022_v8 = vrot.slane %v850_v7, 1  ;;  %v1464_v14 = vrot.slane %v1284_v39, 2 }
 0x14e   : > { %v1113_v45 = vadd.f32 %v6260_v61, %v1021_v23  ;;  %v6406_v15 = vadd.f32 %v1463_v19, %v1109_v1  ;;  %v1027_v18 = vsel %vm988_vm0, %v1024_v58, %v1026_v29  ;;  %v1469_v21 = vsel %vm1438_vm1, %v1466_v0, %v1468_v6  ;;  %5436 = vmatmul.mubr.bf16.gmra.mrb[144].mxu1 %v6411_v41  ;;  %v6425_v23 = vld [vmem:[%s5826_s29 + $0xa0] sm:$0xff]  }
 0x14f   : > { %v1116_v28 = vadd.f32 %v6277_v3, %v1027_v18  ;;  %v6415_v62 = vadd.f32 %v1469_v21, %v1112_v11  ;;  %v1023_v25 = vsel %vm988_vm0, %v1020_v63, %v1022_v8  ;;  %v1025_v60 = vsel %vm988_vm0, %v1022_v8, %v1024_v58  ;;  %5492 = vmatmul.mubr.bf16.gmra.mrb[144].mxu0 %v6381_v2 }
 0x150   : > { %v1114_v61 = vadd.f32 %v1023_v25, %v6282_v26  ;;  %v1115_v1 = vadd.f32 %v1025_v60, %v6286_v12  ;;  %v1465_v7 = vsel %vm1438_vm1, %v1462_v56, %v1464_v14  ;;  %v1467_v39 = vsel %vm1438_vm1, %v1464_v14, %v1466_v0  ;;  %5439 = vmatprep.mubr.bf16.mxu1 %v6425_v23 }
 0x151   : > { %7452 = vst [vmem:[#allocation3_spill] sm:$0xff] %v6415_v62  ;;  %v6428_v3 = vadd.f32 %v1465_v7, %v1110_v51  ;;  %v6430_v11 = vadd.f32 %v1467_v39, %v1111_v42  ;;  %v5181_v63 = vpop.f32.mrb[40].mxu1  ;;  %v5237_v58 = vpop.f32.mrb[40].mxu0  ;;  %5495 = vmatprep.mubr.bf16.mxu0 %v6395_v31  ;;  %v6441_v31 = vld [vmem:[%s5826_s29 + $0xa8] ss:$0 sps:$4 sm:$0x77]  }
 0x152   : > { %v1032_v19 = vrot.slane %v5181_v63, 1  ;;  %v863_v26 = vpop.f32.mrb[41].mxu1  ;;  %v1297_v8 = vpop.f32.mrb[41].mxu0  ;;  %v1474_v14 = vrot.slane %v5237_v58, 2 }
 0x153   : > { %7453 = vst [vmem:[#allocation4_spill] sm:$0xff] %v6430_v11  ;;  %v1028_v12 = vrot.slane %v863_v26, 1  ;;  %v1470_v18 = vrot.slane %v1297_v8, 2  ;;  %v5182_v56 = vpop.f32.mrb[42].mxu1  ;;  %v5238_v0 = vpop.f32.mrb[42].mxu0 }
 0x154   : > { %v1034_v21 = vrot.slane %v5182_v56, 1  ;;  %v1476_v25 = vrot.slane %v5238_v0, 2  ;;  %v866_v60 = vpop.f32.mrb[43].mxu1  ;;  %v1300_v51 = vpop.f32.mrb[43].mxu0 }
 0x155   : > { %v1029_v42 = vsel %vm988_vm0, %v1026_v29, %v1028_v12  ;;  %v1471_v7 = vsel %vm1438_vm1, %v1468_v6, %v1470_v18  ;;  %v1030_v39 = vrot.slane %v866_v60, 1  ;;  %v1472_v62 = vrot.slane %v1300_v51, 2 }
 0x156   : > { %v1117_v63 = vadd.f32 %v6284_v9, %v1029_v42  ;;  %v6436_v11 = vadd.f32 %v1471_v7, %v1113_v45  ;;  %v1035_v26 = vsel %vm988_vm0, %v1032_v19, %v1034_v21  ;;  %v1477_v8 = vsel %vm1438_vm1, %v1474_v14, %v1476_v25  ;;  %5440 = vmatmul.mubr.bf16.gmra.mrb[148].mxu1 %v6441_v31  ;;  %v5753_v42 = vld [vmem:[%s5826_s29] sm:$0xff]  }
 0x157   : > { %v1120_v58 = vadd.f32 %v6295_v17, %v1035_v26  ;;  %v6445_v29 = vadd.f32 %v1477_v8, %v1116_v28  ;;  %v1031_v6 = vsel %vm988_vm0, %v1028_v12, %v1030_v39  ;;  %v1033_v56 = vsel %vm988_vm0, %v1030_v39, %v1032_v19  ;;  %5496 = vmatmul.mubr.bf16.gmra.mrb[148].mxu0 %v6411_v41 }
 0x158   : > { %v1118_v9 = vadd.f32 %v1031_v6, %v6297_v24  ;;  %v1119_v45 = vadd.f32 %v1033_v56, %v6301_v43  ;;  %v1473_v0 = vsel %vm1438_vm1, %v1470_v18, %v1472_v62  ;;  %v1475_v60 = vsel %vm1438_vm1, %v1472_v62, %v1474_v14  ;;  %5499 = vmatprep.mubr.bf16.mxu0 %v6425_v23 }
 0x159   : > { %7454 = vst [vmem:[#allocation5_spill] sm:$0xff] %v6445_v29  ;;  %v6455_v51 = vadd.f32 %v1473_v0, %v1114_v61  ;;  %v6457_v17 = vadd.f32 %v1475_v60, %v1115_v1  ;;  %v5185_v28 = vpop.f32.mrb[44].mxu1  ;;  %v5241_v12 = vpop.f32.mrb[44].mxu0  ;;  %5519 = vmatprep.mubr.bf16.mxu1 %v5753_v42 }
 0x15a   : > { %v1040_v19 = vrot.slane %v5185_v28, 1  ;;  %v879_v7 = vpop.f32.mrb[45].mxu1  ;;  %v1313_v39 = vpop.f32.mrb[45].mxu0  ;;  %v1482_v8 = vrot.slane %v5241_v12, 2  ;;  %v5754_v12 = vld [vmem:[%s5826_s29 + $0x8] sm:$0xff]  }
 0x15b   : > { %v1036_v24 = vrot.slane %v879_v7, 1  ;;  %v1478_v26 = vrot.slane %v1313_v39, 2  ;;  %v5186_v43 = vpop.f32.mrb[46].mxu1  ;;  %v5242_v18 = vpop.f32.mrb[46].mxu0 }
 0x15c   : > { %v1042_v62 = vrot.slane %v5186_v43, 1  ;;  %v1484_v14 = vrot.slane %v5242_v18, 2  ;;  %v882_v6 = vpop.f32.mrb[47].mxu1  ;;  %v1316_v61 = vpop.f32.mrb[47].mxu0 }
 0x15d   : > { %v1037_v1 = vsel %vm988_vm0, %v1034_v21, %v1036_v24  ;;  %v1479_v56 = vsel %vm1438_vm1, %v1476_v25, %v1478_v26  ;;  %v1038_v0 = vrot.slane %v882_v6, 1  ;;  %v1480_v60 = vrot.slane %v1316_v61, 2 }
 0x15e   : > { %v1121_v28 = vadd.f32 %v6299_v35, %v1037_v1  ;;  %v6463_v29 = vadd.f32 %v1479_v56, %v1117_v63  ;;  %v1043_v7 = vsel %vm988_vm0, %v1040_v19, %v1042_v62  ;;  %v1485_v39 = vsel %vm1438_vm1, %v1482_v8, %v1484_v14  ;;  %5520 = vmatmul.mubr.bf16.vlgmr.msra.gmra.mrb[152].mxu1 %v5754_v12  ;;  %v5755_v1 = vld [vmem:[%s5826_s29 + $0x10] sm:$0xff]  }
 0x15f   : > { %v1124_v43 = vadd.f32 %v6171_v13, %v1043_v7  ;;  %v6469_v18 = vadd.f32 %v1485_v39, %v1120_v58  ;;  %v1039_v21 = vsel %vm988_vm0, %v1036_v24, %v1038_v0  ;;  %v1041_v25 = vsel %vm988_vm0, %v1038_v0, %v1040_v19  ;;  %5500 = vmatmul.mubr.bf16.gmra.mrb[152].mxu0 %v6441_v31 }
 0x160   : > { %v1122_v35 = vadd.f32 %v1039_v21, %v6175_v20  ;;  %v1123_v63 = vadd.f32 %v1041_v25, %v6183_v30  ;;  %v1481_v6 = vsel %vm1438_vm1, %v1478_v26, %v1480_v60  ;;  %v1483_v61 = vsel %vm1438_vm1, %v1480_v60, %v1482_v8  ;;  %5523 = vmatprep.mubr.bf16.mxu1 %v5755_v1 }
 0x161   : > { %7455 = vst [vmem:[#allocation6_spill] sm:$0xff] %v6469_v18  ;;  %v6479_v56 = vadd.f32 %v1481_v6, %v1118_v9  ;;  %v6481_v13 = vadd.f32 %v1483_v61, %v1119_v45  ;;  %v5189_v58 = vpop.f32.mrb[48].mxu1  ;;  %v5245_v24 = vpop.f32.mrb[48].mxu0  ;;  %5579 = vmatprep.mubr.bf16.mxu0 %v5753_v42 }
 0x162   : > { %v1048_v19 = vrot.slane %v5189_v58, 1  ;;  %v895_v0 = vpop.f32.mrb[49].mxu1  ;;  %v1329_v7 = vpop.f32.mrb[49].mxu0  ;;  %v1490_v26 = vrot.slane %v5245_v24, 2  ;;  %v5756_v24 = vld [vmem:[%s5826_s29 + $0x18] sm:$0xff]  }
 0x163   : > { %v1044_v39 = vrot.slane %v895_v0, 1  ;;  %v1486_v20 = vrot.slane %v1329_v7, 2  ;;  %v5190_v30 = vpop.f32.mrb[50].mxu1  ;;  %v5246_v21 = vpop.f32.mrb[50].mxu0 }
 0x164   : > { %v1050_v25 = vrot.slane %v5190_v30, 1  ;;  %v1492_v8 = vrot.slane %v5246_v21, 2  ;;  %v898_v60 = vpop.f32.mrb[51].mxu1  ;;  %v1332_v18 = vpop.f32.mrb[51].mxu0 }
 0x165   : > { %v1045_v9 = vsel %vm988_vm0, %v1042_v62, %v1044_v39  ;;  %v1487_v45 = vsel %vm1438_vm1, %v1484_v14, %v1486_v20  ;;  %v1046_v6 = vrot.slane %v898_v60, 1  ;;  %v1488_v61 = vrot.slane %v1332_v18, 2 }
 0x166   : > { %v1125_v42 = vadd.f32 %v6179_v27, %v1045_v9  ;;  %v6486_v58 = vadd.f32 %v1487_v45, %v1121_v28  ;;  %v1051_v0 = vsel %vm988_vm0, %v1048_v19, %v1050_v25  ;;  %v1493_v7 = vsel %vm1438_vm1, %v1490_v26, %v1492_v8  ;;  %5524 = vmatmul.mubr.bf16.gmra.mrb[156].mxu1 %v5756_v24  ;;  %v5757_v9 = vld [vmem:[%s5826_s29 + $0x20] sm:$0xff]  }
 0x167   : > { %v1128_v30 = vadd.f32 %v6194_v33, %v1051_v0  ;;  %v6492_v21 = vadd.f32 %v1493_v7, %v1124_v43  ;;  %v1047_v62 = vsel %vm988_vm0, %v1044_v39, %v1046_v6  ;;  %v1049_v14 = vsel %vm988_vm0, %v1046_v6, %v1048_v19  ;;  %5580 = vmatmul.mubr.bf16.vlgmr.msra.gmra.mrb[156].mxu0 %v5754_v12 }
 0x168   : > { %v1126_v18 = vadd.f32 %v1047_v62, %v6201_v38  ;;  %v1127_v27 = vadd.f32 %v1049_v14, %v6209_v4  ;;  %v1489_v28 = vsel %vm1438_vm1, %v1486_v20, %v1488_v61  ;;  %v1491_v60 = vsel %vm1438_vm1, %v1488_v61, %v1490_v26  ;;  %5527 = vmatprep.mubr.bf16.mxu1 %v5757_v9 }
 0x169   : > { %v6501_v45 = vadd.f32 %v1489_v28, %v1122_v35  ;;  %v6503_v33 = vadd.f32 %v1491_v60, %v1123_v63  ;;  %v5193_v43 = vpop.f32.mrb[52].mxu1  ;;  %v5249_v0 = vpop.f32.mrb[52].mxu0  ;;  %5583 = vmatprep.mubr.bf16.mxu0 %v5755_v1 }
 0x16a   : > { %v1056_v39 = vrot.slane %v5193_v43, 1  ;;  %v911_v19 = vpop.f32.mrb[53].mxu1  ;;  %v1345_v12 = vpop.f32.mrb[53].mxu0  ;;  %v1498_v20 = vrot.slane %v5249_v0, 2  ;;  %v5758_v0 = vld [vmem:[%s5826_s29 + $0x28] sm:$0xff]  }
 0x16b   : > { %v1052_v6 = vrot.slane %v911_v19, 1  ;;  %v1494_v38 = vrot.slane %v1345_v12, 2  ;;  %v5194_v4 = vpop.f32.mrb[54].mxu1  ;;  %v5250_v7 = vpop.f32.mrb[54].mxu0 }
 0x16c   : > { %v1058_v62 = vrot.slane %v5194_v4, 1  ;;  %v1500_v26 = vrot.slane %v5250_v7, 2  ;;  %v914_v61 = vpop.f32.mrb[55].mxu1  ;;  %v1348_v14 = vpop.f32.mrb[55].mxu0 }
 0x16d   : > { %v1053_v35 = vsel %vm988_vm0, %v1050_v25, %v1052_v6  ;;  %v1495_v63 = vsel %vm1438_vm1, %v1492_v8, %v1494_v38  ;;  %v1054_v28 = vrot.slane %v914_v61, 1  ;;  %v1496_v60 = vrot.slane %v1348_v14, 2 }
 0x16e   : > { %v1129_v1 = vadd.f32 %v6205_v40, %v1053_v35  ;;  %v6508_v43 = vadd.f32 %v1495_v63, %v1125_v42  ;;  %v1059_v19 = vsel %vm988_vm0, %v1056_v39, %v1058_v62  ;;  %v1501_v12 = vsel %vm1438_vm1, %v1498_v20, %v1500_v26  ;;  %5528 = vmatmul.mubr.bf16.gmra.mrb[160].mxu1 %v5758_v0  ;;  %v5759_v35 = vld [vmem:[%s5826_s29 + $0x30] sm:$0xff]  }
 0x16f   : > { %v1132_v4 = vadd.f32 %v6226_v49, %v1059_v19  ;;  %v6514_v7 = vadd.f32 %v1501_v12, %v1128_v30  ;;  %v1055_v25 = vsel %vm988_vm0, %v1052_v6, %v1054_v28  ;;  %v1057_v8 = vsel %vm988_vm0, %v1054_v28, %v1056_v39  ;;  %5584 = vmatmul.mubr.bf16.gmra.mrb[160].mxu0 %v5756_v24 }
 0x170   : > { %v1130_v61 = vadd.f32 %v1055_v25, %v6230_v50  ;;  %v1131_v40 = vadd.f32 %v1057_v8, %v6238_v53  ;;  %v1497_v42 = vsel %vm1438_vm1, %v1494_v38, %v1496_v60  ;;  %v1499_v14 = vsel %vm1438_vm1, %v1496_v60, %v1498_v20  ;;  %5531 = vmatprep.mubr.bf16.mxu1 %v5759_v35 }
 0x171   : > { %v6523_v63 = vadd.f32 %v1497_v42, %v1126_v18  ;;  %v6525_v49 = vadd.f32 %v1499_v14, %v1127_v27  ;;  %v5197_v30 = vpop.f32.mrb[56].mxu1  ;;  %v5253_v19 = vpop.f32.mrb[56].mxu0  ;;  %5587 = vmatprep.mubr.bf16.mxu0 %v5757_v9  ;;  %v5760_v14 = vld [vmem:[%s5826_s29 + $0x38] sm:$0xff]  }
 0x172   : > { %v927_v6 = vpop.f32.mrb[57].mxu1  ;;  %v1361_v24 = vpop.f32.mrb[57].mxu0  ;;  %v1506_v12 = vrot.slane %v5253_v19, 2 }
 0x173   : > { %v1060_v39 = vrot.slane %v927_v6, 1  ;;  %v1502_v50 = vrot.slane %v1361_v24, 2  ;;  %v5254_v28 = vpop.f32.mrb[58].mxu0  ;;  %v5198_v53 = vpop.f32.mrb[58].mxu1  ;;  %v5761_v24 = vld [vmem:[%s5826_s29 + $0x40] sm:$0xff]  }
 0x174   : > { %v1508_v38 = vrot.slane %v5254_v28, 2  ;;  %v1364_v20 = vpop.f32.mrb[59].mxu0  ;;  %v930_v60 = vpop.f32.mrb[59].mxu1 }
 0x175   : > { %v1061_v18 = vsel %vm988_vm0, %v1058_v62, %v1060_v39  ;;  %v1503_v27 = vsel %vm1438_vm1, %v1500_v26, %v1502_v50  ;;  %v1504_v25 = vrot.slane %v1364_v20, 2 }
 0x176   : > { %v1133_v8 = vadd.f32 %v6234_v52, %v1061_v18  ;;  %v6530_v9 = vadd.f32 %v1503_v27, %v1129_v1  ;;  %v1509_v42 = vsel %vm1438_vm1, %v1506_v12, %v1508_v38  ;;  %5532 = vmatmul.mubr.bf16.gmra.mrb[164].mxu1 %v5760_v14  ;;  %v5762_v18 = vld [vmem:[%s5826_s29 + $0x48] sm:$0xff]  }
 0x177   : > { %v6534_v30 = vadd.f32 %v1509_v42, %v1132_v4  ;;  %v1505_v19 = vsel %vm1438_vm1, %v1502_v50, %v1504_v25  ;;  %v1507_v6 = vsel %vm1438_vm1, %v1504_v25, %v1506_v12  ;;  %5588 = vmatmul.mubr.bf16.gmra.mrb[164].mxu0 %v5758_v0  ;;  %5535 = vmatprep.mubr.bf16.mxu1 %v5761_v24 }
 0x178   : > { %v6539_v62 = vadd.f32 %v1505_v19, %v1130_v61  ;;  %v6541_v26 = vadd.f32 %v1507_v6, %v1131_v40  ;;  %5591 = vmatprep.mubr.bf16.mxu0 %v5759_v35  ;;  %v5763_v61 = vld [vmem:[%s5826_s29 + $0x50] sm:$0xff]  }
 0x179   : > { %v5257_v52 = vpop.f32.mrb[60].mxu0  ;;  %v5201_v1 = vpop.f32.mrb[60].mxu1 }
 0x17a   : > { %v1377_v39 = vpop.f32.mrb[61].mxu0  ;;  %v940_v28 = vpop.f32.mrb[61].mxu1 }
 0x17b   : > { %v1510_v4 = vrot.slane %v1377_v39, 2  ;;  %v5258_v53 = vpop.f32.mrb[62].mxu0  ;;  %v5202_v20 = vpop.f32.mrb[62].mxu1 }
 0x17c   : > { %v1380_v50 = vpop.f32.mrb[63].mxu0  ;;  %v942_v60 = vpop.f32.mrb[63].mxu1 }
 0x17d   : > { %v1511_v0 = vsel %vm1438_vm1, %v1508_v38, %v1510_v4 }
 0x17e   : > { %v6544_v12 = vadd.f32 %v1511_v0, %v1133_v8  ;;  %5536 = vmatmul.mubr.bf16.gmra.mrb[168].mxu1 %v5762_v18  ;;  %v5764_v8 = vld [vmem:[%s5826_s29 + $0x58] sm:$0xff]   ;;  %s5640_s29 = smul.u32 288, %s7462_s19 }
 0x17f   : > { %5592 = vmatmul.mubr.bf16.gmra.mrb[168].mxu0 %v5760_v14  ;;  %5539 = vmatprep.mubr.bf16.mxu1 %v5763_v61 }
 0x180   : > { %5595 = vmatprep.mubr.bf16.mxu0 %v5761_v24  ;;  %s6974_s15 = scalar_lea.vmem %s7447_s4, %s5640_s29  ;;  %s7012_s22 = scalar_lea.vmem %s7448_s5, %s5640_s29 }
 0x181   : > { %v5261_v40 = vpop.f32.mrb[64].mxu0  ;;  %v5281_v35 = vpop.f32.mrb[64].mxu1 }
 0x182   : > { %v1888_v27 = vrot.slane %v5281_v35, 2  ;;  %v1390_v25 = vpop.f32.mrb[65].mxu0  ;;  %v1683_v42 = vpop.f32.mrb[65].mxu1 }
 0x183   : > { %v5262_v19 = vpop.f32.mrb[66].mxu0  ;;  %v5282_v6 = vpop.f32.mrb[66].mxu1 }
 0x184   : > { %v1889_v52 = vrot.slane %v5282_v6, 2  ;;  %v1392_v1 = vpop.f32.mrb[67].mxu0  ;;  %v1685_v39 = vpop.f32.mrb[67].mxu1 }
 0x186   : > { %v1890_v38 = vsel %vm1438_vm1, %v1888_v27, %v1889_v52  ;;  %5540 = vmatmul.mubr.bf16.gmra.mrb[172].mxu1 %v5764_v8 }
 0x187   : > { %v1997_v28 = vadd.f32 %v1890_v38, %v6339_v32  ;;  %5596 = vmatmul.mubr.bf16.gmra.mrb[172].mxu0 %v5762_v18  ;;  %5543 = vmatprep.mubr.bf16.mxu1 %v6310_v59 }
 0x188   : > { %5599 = vmatprep.mubr.bf16.mxu0 %v5763_v61 }
 0x189   : > { %v5285_v14 = vpop.f32.mrb[68].mxu1  ;;  %v5341_v24 = vpop.f32.mrb[68].mxu0 }
 0x18a   : > { %v1895_v4 = vrot.slane %v5285_v14, 2  ;;  %v1697_v53 = vpop.f32.mrb[69].mxu1  ;;  %v2132_v20 = vpop.f32.mrb[69].mxu0  ;;  %v2338_v40 = vrot.slane %v5341_v24, 3 }
 0x18b   : > { %v1891_v50 = vrot.slane %v1697_v53, 2  ;;  %v5286_v60 = vpop.f32.mrb[70].mxu1  ;;  %v5342_v0 = vpop.f32.mrb[70].mxu0 }
 0x18c   : > { %v1897_v35 = vrot.slane %v5286_v60, 2  ;;  %v2339_v27 = vrot.slane %v5342_v0, 3  ;;  %v1700_v25 = vpop.f32.mrb[71].mxu1  ;;  %v2134_v42 = vpop.f32.mrb[71].mxu0 }
 0x18d   : > { %v1892_v32 = vsel %vm1438_vm1, %v1889_v52, %v1891_v50  ;;  %v1893_v18 = vrot.slane %v1700_v25, 2 }
 0x18e   : > { %v1998_v19 = vadd.f32 %v1892_v32, %v6341_v55  ;;  %v1898_v61 = vsel %vm1438_vm1, %v1895_v4, %v1897_v35  ;;  %v2340_v6 = vsel %vm2337_vm2, %v2338_v40, %v2339_v27  ;;  %5544 = vmatmul.mubr.bf16.gmra.mrb[176].mxu1 %v6321_v46 }
 0x18f   : > { %v2001_v1 = vadd.f32 %v1898_v61, %v6368_v48  ;;  %v6558_v39 = vadd.f32 %v2340_v6, %v1997_v28  ;;  %v1894_v38 = vsel %vm1438_vm1, %v1891_v50, %v1893_v18  ;;  %v1896_v14 = vsel %vm1438_vm1, %v1893_v18, %v1895_v4  ;;  %5600 = vmatmul.mubr.bf16.gmra.mrb[176].mxu0 %v5764_v8 }
 0x190   : > { %v1999_v52 = vadd.f32 %v1894_v38, %v6326_v54  ;;  %v2000_v24 = vadd.f32 %v1896_v14, %v6346_v34  ;;  %5547 = vmatprep.mubr.bf16.mxu1 %v6331_v22  ;;  %5603 = vmatprep.mubr.bf16.mxu0 %v6310_v59 }
 0x191   : > { %v5289_v55 = vpop.f32.mrb[72].mxu1  ;;  %v5345_v53 = vpop.f32.mrb[72].mxu0 }
 0x192   : > { %v1903_v20 = vrot.slane %v5289_v55, 2  ;;  %v1713_v60 = vpop.f32.mrb[73].mxu1  ;;  %v2146_v48 = vpop.f32.mrb[73].mxu0  ;;  %v2345_v25 = vrot.slane %v5345_v53, 3 }
 0x193   : > { %v1899_v28 = vrot.slane %v1713_v60, 2  ;;  %v2341_v0 = vrot.slane %v2146_v48, 3  ;;  %v5290_v40 = vpop.f32.mrb[74].mxu1  ;;  %v5346_v50 = vpop.f32.mrb[74].mxu0 }
 0x194   : > { %v1905_v4 = vrot.slane %v5290_v40, 2  ;;  %v2347_v8 = vrot.slane %v5346_v50, 3  ;;  %v1716_v42 = vpop.f32.mrb[75].mxu1  ;;  %v2149_v54 = vpop.f32.mrb[75].mxu0 }
 0x195   : > { %v1900_v34 = vsel %vm1438_vm1, %v1897_v35, %v1899_v28  ;;  %v2342_v32 = vsel %vm2337_vm2, %v2339_v27, %v2341_v0  ;;  %v1901_v18 = vrot.slane %v1716_v42, 2  ;;  %v2343_v59 = vrot.slane %v2149_v54, 3 }
 0x196   : > { %v2002_v61 = vadd.f32 %v1900_v34, %v6370_v37  ;;  %v6569_v6 = vadd.f32 %v2342_v32, %v1998_v19  ;;  %v1906_v38 = vsel %vm1438_vm1, %v1903_v20, %v1905_v4  ;;  %v2348_v14 = vsel %vm2337_vm2, %v2345_v25, %v2347_v8  ;;  %5548 = vmatmul.mubr.bf16.gmra.mrb[180].mxu1 %v6351_v47 }
 0x197   : > { %v2005_v55 = vadd.f32 %v1906_v38, %v6398_v57  ;;  %v6575_v53 = vadd.f32 %v2348_v14, %v2001_v1  ;;  %v1902_v35 = vsel %vm1438_vm1, %v1899_v28, %v1901_v18  ;;  %v1904_v27 = vsel %vm1438_vm1, %v1901_v18, %v1903_v20  ;;  %5604 = vmatmul.mubr.bf16.gmra.mrb[180].mxu0 %v6321_v46 }
 0x198   : > { %v2003_v37 = vadd.f32 %v1902_v35, %v6355_v10  ;;  %v2004_v19 = vadd.f32 %v1904_v27, %v6376_v5  ;;  %v2344_v60 = vsel %vm2337_vm2, %v2341_v0, %v2343_v59  ;;  %v2346_v48 = vsel %vm2337_vm2, %v2343_v59, %v2345_v25  ;;  %5551 = vmatprep.mubr.bf16.mxu1 %v6365_v36 }
 0x199   : > { %v6585_v40 = vadd.f32 %v2344_v60, %v1999_v52  ;;  %v6587_v57 = vadd.f32 %v2346_v48, %v2000_v24  ;;  %v5293_v1 = vpop.f32.mrb[76].mxu1  ;;  %v5349_v28 = vpop.f32.mrb[76].mxu0  ;;  %5607 = vmatprep.mubr.bf16.mxu0 %v6331_v22 }
 0x19a   : > { %v1911_v20 = vrot.slane %v5293_v1, 2  ;;  %v1729_v46 = vpop.f32.mrb[77].mxu1  ;;  %v2162_v50 = vpop.f32.mrb[77].mxu0  ;;  %v2353_v0 = vrot.slane %v5349_v28, 3 }
 0x19b   : > { %v1907_v10 = vrot.slane %v1729_v46, 2  ;;  %v2349_v42 = vrot.slane %v2162_v50, 3  ;;  %v5294_v5 = vpop.f32.mrb[78].mxu1  ;;  %v5350_v54 = vpop.f32.mrb[78].mxu0  ;;  %v7456_v46 = vld [vmem:[#allocation2_spill] sm:$0xff] }
 0x19c   : > { %v1913_v34 = vrot.slane %v5294_v5, 2  ;;  %v2355_v25 = vrot.slane %v5350_v54, 3  ;;  %v1732_v32 = vpop.f32.mrb[79].mxu1  ;;  %v2165_v18 = vpop.f32.mrb[79].mxu0 }
 0x19d   : > { %v1908_v52 = vsel %vm1438_vm1, %v1905_v4, %v1907_v10  ;;  %v2350_v24 = vsel %vm2337_vm2, %v2347_v8, %v2349_v42  ;;  %v1909_v59 = vrot.slane %v1732_v32, 2  ;;  %v2351_v38 = vrot.slane %v2165_v18, 3 }
 0x19e   : > { %v2006_v22 = vadd.f32 %v1908_v52, %v6400_v44  ;;  %v6593_v14 = vadd.f32 %v2350_v24, %v2002_v61  ;;  %v1914_v35 = vsel %vm1438_vm1, %v1911_v20, %v1913_v34  ;;  %v2356_v27 = vsel %vm2337_vm2, %v2353_v0, %v2355_v25  ;;  %5552 = vmatmul.mubr.bf16.gmra.mrb[184].mxu1 %v6381_v2 }
 0x19f   : > { %v2009_v60 = vadd.f32 %v1914_v35, %v6428_v3  ;;  %v6599_v48 = vadd.f32 %v2356_v27, %v2005_v55  ;;  %v1910_v4 = vsel %vm1438_vm1, %v1907_v10, %v1909_v59  ;;  %v1912_v8 = vsel %vm1438_vm1, %v1909_v59, %v1911_v20  ;;  %5608 = vmatmul.mubr.bf16.gmra.mrb[184].mxu0 %v6351_v47  ;;  %v7457_v35 = vld [vmem:[#allocation4_spill] sm:$0xff] }
 0x1a0   : > { %v2007_v44 = vadd.f32 %v1910_v4, %v6385_v16  ;;  %v2008_v61 = vadd.f32 %v1912_v8, %v6406_v15  ;;  %v2352_v1 = vsel %vm2337_vm2, %v2349_v42, %v2351_v38  ;;  %v2354_v28 = vsel %vm2337_vm2, %v2351_v38, %v2353_v0  ;;  %5555 = vmatprep.mubr.bf16.mxu1 %v7456_v46 }
 0x1a1   : > { %v6609_v50 = vadd.f32 %v2352_v1, %v2003_v37  ;;  %v6611_v3 = vadd.f32 %v2354_v28, %v2004_v19  ;;  %v5297_v55 = vpop.f32.mrb[80].mxu1  ;;  %v5353_v10 = vpop.f32.mrb[80].mxu0  ;;  %5611 = vmatprep.mubr.bf16.mxu0 %v6365_v36 }
 0x1a2   : > { %v1919_v20 = vrot.slane %v5297_v55, 2  ;;  %v1745_v47 = vpop.f32.mrb[81].mxu1  ;;  %v2178_v5 = vpop.f32.mrb[81].mxu0  ;;  %v2361_v42 = vrot.slane %v5353_v10, 3  ;;  %v7458_v55 = vld [vmem:[#allocation3_spill] sm:$0xff] }
 0x1a3   : > { %v1915_v16 = vrot.slane %v1745_v47, 2  ;;  %v2357_v54 = vrot.slane %v2178_v5, 3  ;;  %v5298_v15 = vpop.f32.mrb[82].mxu1  ;;  %v5354_v32 = vpop.f32.mrb[82].mxu0 }
 0x1a4   : > { %v1921_v18 = vrot.slane %v5298_v15, 2  ;;  %v2363_v0 = vrot.slane %v5354_v32, 3  ;;  %v1748_v52 = vpop.f32.mrb[83].mxu1  ;;  %v2181_v24 = vpop.f32.mrb[83].mxu0 }
 0x1a5   : > { %v1916_v37 = vsel %vm1438_vm1, %v1913_v34, %v1915_v16  ;;  %v2358_v19 = vsel %vm2337_vm2, %v2355_v25, %v2357_v54  ;;  %v1917_v59 = vrot.slane %v1748_v52, 2  ;;  %v2359_v38 = vrot.slane %v2181_v24, 3 }
 0x1a6   : > { %v2010_v36 = vadd.f32 %v1916_v37, %v7457_v35  ;;  %v6617_v27 = vadd.f32 %v2358_v19, %v2006_v22  ;;  %v1922_v4 = vsel %vm1438_vm1, %v1919_v20, %v1921_v18  ;;  %v2364_v8 = vsel %vm2337_vm2, %v2361_v42, %v2363_v0  ;;  %5556 = vmatmul.mubr.bf16.gmra.mrb[188].mxu1 %v6411_v41 }
 0x1a7   : > { %v2013_v1 = vadd.f32 %v1922_v4, %v6455_v51  ;;  %v6623_v28 = vadd.f32 %v2364_v8, %v2009_v60  ;;  %v1918_v34 = vsel %vm1438_vm1, %v1915_v16, %v1917_v59  ;;  %v1920_v25 = vsel %vm1438_vm1, %v1917_v59, %v1919_v20  ;;  %5612 = vmatmul.mubr.bf16.gmra.mrb[188].mxu0 %v6381_v2 }
 0x1a8   : > { %v2011_v10 = vadd.f32 %v1918_v34, %v7458_v55  ;;  %v2012_v22 = vadd.f32 %v1920_v25, %v6436_v11  ;;  %v2360_v47 = vsel %vm2337_vm2, %v2357_v54, %v2359_v38  ;;  %v2362_v5 = vsel %vm2337_vm2, %v2359_v38, %v2361_v42  ;;  %5559 = vmatprep.mubr.bf16.mxu1 %v6425_v23 }
 0x1a9   : > { %v6633_v15 = vadd.f32 %v2360_v47, %v2007_v44  ;;  %v6635_v51 = vadd.f32 %v2362_v5, %v2008_v61  ;;  %v5301_v60 = vpop.f32.mrb[84].mxu1  ;;  %v5357_v16 = vpop.f32.mrb[84].mxu0  ;;  %5615 = vmatprep.mubr.bf16.mxu0 %v7456_v46  ;;  %v7459_v5 = vld [vmem:[#allocation5_spill] sm:$0xff] }
 0x1aa   : > { %v1927_v20 = vrot.slane %v5301_v60, 2  ;;  %v1761_v2 = vpop.f32.mrb[85].mxu1  ;;  %v2194_v32 = vpop.f32.mrb[85].mxu0  ;;  %v2369_v54 = vrot.slane %v5357_v16, 3 }
 0x1ab   : > { %v1923_v52 = vrot.slane %v1761_v2, 2  ;;  %v2365_v24 = vrot.slane %v2194_v32, 3  ;;  %v5302_v11 = vpop.f32.mrb[86].mxu1  ;;  %v5358_v37 = vpop.f32.mrb[86].mxu0 }
 0x1ac   : > { %v1929_v19 = vrot.slane %v5302_v11, 2  ;;  %v2371_v42 = vrot.slane %v5358_v37, 3  ;;  %v1764_v59 = vpop.f32.mrb[87].mxu1  ;;  %v2197_v38 = vpop.f32.mrb[87].mxu0 }
 0x1ad   : > { %v1924_v44 = vsel %vm1438_vm1, %v1921_v18, %v1923_v52  ;;  %v2366_v61 = vsel %vm2337_vm2, %v2363_v0, %v2365_v24  ;;  %v1925_v35 = vrot.slane %v1764_v59, 2  ;;  %v2367_v4 = vrot.slane %v2197_v38, 3 }
 0x1ae   : > { %v2014_v46 = vadd.f32 %v1924_v44, %v6457_v17  ;;  %v6641_v8 = vadd.f32 %v2366_v61, %v2010_v36  ;;  %v1930_v34 = vsel %vm1438_vm1, %v1927_v20, %v1929_v19  ;;  %v2372_v25 = vsel %vm2337_vm2, %v2369_v54, %v2371_v42  ;;  %5560 = vmatmul.mubr.bf16.gmra.mrb[192].mxu1 %v6441_v31 }
 0x1af   : > { %v2017_v55 = vadd.f32 %v1930_v34, %v6479_v56  ;;  %v6647_v47 = vadd.f32 %v2372_v25, %v2013_v1  ;;  %v1926_v18 = vsel %vm1438_vm1, %v1923_v52, %v1925_v35  ;;  %v1928_v0 = vsel %vm1438_vm1, %v1925_v35, %v1927_v20  ;;  %5616 = vmatmul.mubr.bf16.gmra.mrb[192].mxu0 %v6411_v41 }
 0x1b0   : > { %v2015_v17 = vadd.f32 %v1926_v18, %v7459_v5  ;;  %v2016_v36 = vadd.f32 %v1928_v0, %v6463_v29  ;;  %v2368_v60 = vsel %vm2337_vm2, %v2365_v24, %v2367_v4  ;;  %v2370_v16 = vsel %vm2337_vm2, %v2367_v4, %v2369_v54  ;;  %5619 = vmatprep.mubr.bf16.mxu0 %v6425_v23 }
 0x1b1   : > { %v6657_v2 = vadd.f32 %v2368_v60, %v2011_v10  ;;  %v6659_v56 = vadd.f32 %v2370_v16, %v2012_v22  ;;  %v5305_v1 = vpop.f32.mrb[88].mxu1  ;;  %v5361_v32 = vpop.f32.mrb[88].mxu0 }
 0x1b2   : > { %v1935_v52 = vrot.slane %v5305_v1, 2  ;;  %v1777_v20 = vpop.f32.mrb[89].mxu1  ;;  %v2210_v11 = vpop.f32.mrb[89].mxu0  ;;  %v2377_v29 = vrot.slane %v5361_v32, 3 }
 0x1b3   : > { %v1931_v41 = vrot.slane %v1777_v20, 2  ;;  %v2373_v37 = vrot.slane %v2210_v11, 3  ;;  %v5306_v59 = vpop.f32.mrb[90].mxu1  ;;  %v5362_v38 = vpop.f32.mrb[90].mxu0 }
 0x1b4   : > { %v1937_v44 = vrot.slane %v5306_v59, 2  ;;  %v2379_v24 = vrot.slane %v5362_v38, 3  ;;  %v1780_v61 = vpop.f32.mrb[91].mxu1  ;;  %v2213_v54 = vpop.f32.mrb[91].mxu0 }
 0x1b5   : > { %v1932_v23 = vsel %vm1438_vm1, %v1929_v19, %v1931_v41  ;;  %v2374_v10 = vsel %vm2337_vm2, %v2371_v42, %v2373_v37  ;;  %v1933_v22 = vrot.slane %v1780_v61, 2  ;;  %v2375_v35 = vrot.slane %v2213_v54, 3  ;;  %v7460_v42 = vld [vmem:[#allocation6_spill] sm:$0xff] }
 0x1b6   : > { %v2018_v4 = vadd.f32 %v1932_v23, %v6481_v13  ;;  %v6664_v34 = vadd.f32 %v2374_v10, %v2014_v46  ;;  %v1938_v25 = vsel %vm1438_vm1, %v1935_v52, %v1937_v44  ;;  %v2380_v18 = vsel %vm2337_vm2, %v2377_v29, %v2379_v24 }
 0x1b7   : > { %v2021_v0 = vadd.f32 %v1938_v25, %v6501_v45  ;;  %v6669_v5 = vadd.f32 %v2380_v18, %v2017_v55  ;;  %v1934_v60 = vsel %vm1438_vm1, %v1931_v41, %v1933_v22  ;;  %v1936_v19 = vsel %vm1438_vm1, %v1933_v22, %v1935_v52  ;;  %5620 = vmatmul.mubr.bf16.gmra.mrb[196].mxu0 %v6441_v31 }
 0x1b8   : > { %v2019_v16 = vadd.f32 %v1934_v60, %v7460_v42  ;;  %v2020_v13 = vadd.f32 %v1936_v19, %v6486_v58  ;;  %v2376_v46 = vsel %vm2337_vm2, %v2373_v37, %v2375_v35  ;;  %v2378_v1 = vsel %vm2337_vm2, %v2375_v35, %v2377_v29 }
 0x1b9   : > { %v6678_v32 = vadd.f32 %v2376_v46, %v2015_v17  ;;  %v6680_v20 = vadd.f32 %v2378_v1, %v2016_v36  ;;  %v5309_v45 = vpop.f32.mrb[92].mxu1  ;;  %v5365_v55 = vpop.f32.mrb[92].mxu0 }
 0x1ba   : > { %v1943_v11 = vrot.slane %v5309_v45, 2  ;;  %v1793_v41 = vpop.f32.mrb[93].mxu1  ;;  %v2226_v59 = vpop.f32.mrb[93].mxu0  ;;  %v2385_v54 = vrot.slane %v5365_v55, 3 }
 0x1bb   : > { %v1939_v52 = vrot.slane %v1793_v41, 2  ;;  %v2381_v38 = vrot.slane %v2226_v59, 3  ;;  %v5310_v31 = vpop.f32.mrb[94].mxu1  ;;  %v5366_v61 = vpop.f32.mrb[94].mxu0 }
 0x1bc   : > { %v1945_v23 = vrot.slane %v5310_v31, 2  ;;  %v2387_v58 = vrot.slane %v5366_v61, 3  ;;  %v1796_v10 = vpop.f32.mrb[95].mxu1  ;;  %v2229_v37 = vpop.f32.mrb[95].mxu0 }
 0x1bd   : > { %v1940_v29 = vsel %vm1438_vm1, %v1937_v44, %v1939_v52  ;;  %v2382_v17 = vsel %vm2337_vm2, %v2379_v24, %v2381_v38  ;;  %v1941_v36 = vrot.slane %v1796_v10, 2  ;;  %v2383_v22 = vrot.slane %v2229_v37, 3 }
 0x1be   : > { %v2022_v35 = vadd.f32 %v1940_v29, %v6503_v33  ;;  %v6685_v25 = vadd.f32 %v2382_v17, %v2018_v4  ;;  %v1946_v18 = vsel %vm1438_vm1, %v1943_v11, %v1945_v23  ;;  %v2388_v60 = vsel %vm2337_vm2, %v2385_v54, %v2387_v58 }
 0x1bf   : > { %v2025_v19 = vadd.f32 %v1946_v18, %v6523_v63  ;;  %v6690_v42 = vadd.f32 %v2388_v60, %v2021_v0  ;;  %v1942_v46 = vsel %vm1438_vm1, %v1939_v52, %v1941_v36  ;;  %v1944_v44 = vsel %vm1438_vm1, %v1941_v36, %v1943_v11 }
 0x1c0   : > { %v2023_v24 = vadd.f32 %v1942_v46, %v6492_v21  ;;  %v2024_v1 = vadd.f32 %v1944_v44, %v6508_v43  ;;  %v2384_v33 = vsel %vm2337_vm2, %v2381_v38, %v2383_v22  ;;  %v2386_v4 = vsel %vm2337_vm2, %v2383_v22, %v2385_v54 }
 0x1c1   : > { %v6698_v45 = vadd.f32 %v2384_v33, %v2019_v16  ;;  %v6700_v55 = vadd.f32 %v2386_v4, %v2020_v13  ;;  %v5313_v41 = vpop.f32.mrb[96].mxu1  ;;  %v5369_v63 = vpop.f32.mrb[96].mxu0 }
 0x1c2   : > { %v1951_v0 = vrot.slane %v5313_v41, 2  ;;  %v1809_v59 = vpop.f32.mrb[97].mxu1  ;;  %v2242_v31 = vpop.f32.mrb[97].mxu0  ;;  %v2393_v21 = vrot.slane %v5369_v63, 3 }
 0x1c3   : > { %v1947_v52 = vrot.slane %v1809_v59, 2  ;;  %v2389_v61 = vrot.slane %v2242_v31, 3  ;;  %v5314_v11 = vpop.f32.mrb[98].mxu1  ;;  %v5370_v10 = vpop.f32.mrb[98].mxu0 }
 0x1c4   : > { %v1953_v37 = vrot.slane %v5314_v11, 2  ;;  %v2395_v43 = vrot.slane %v5370_v10, 3  ;;  %v1812_v29 = vpop.f32.mrb[99].mxu1  ;;  %v2245_v38 = vpop.f32.mrb[99].mxu0 }
 0x1c5   : > { %v1948_v54 = vsel %vm1438_vm1, %v1945_v23, %v1947_v52  ;;  %v2390_v16 = vsel %vm2337_vm2, %v2387_v58, %v2389_v61  ;;  %v1949_v13 = vrot.slane %v1812_v29, 2  ;;  %v2391_v17 = vrot.slane %v2245_v38, 3 }
 0x1c6   : > { %v2026_v36 = vadd.f32 %v1948_v54, %v6525_v49  ;;  %v6705_v22 = vadd.f32 %v2390_v16, %v2022_v35  ;;  %v1954_v18 = vsel %vm1438_vm1, %v1951_v0, %v1953_v37  ;;  %v2396_v60 = vsel %vm2337_vm2, %v2393_v21, %v2395_v43 }
 0x1c7   : > { %v2029_v46 = vadd.f32 %v1954_v18, %v6539_v62  ;;  %v6710_v44 = vadd.f32 %v2396_v60, %v2025_v19  ;;  %v1950_v33 = vsel %vm1438_vm1, %v1947_v52, %v1949_v13  ;;  %v1952_v23 = vsel %vm1438_vm1, %v1949_v13, %v1951_v0 }
 0x1c8   : > { %v2027_v58 = vadd.f32 %v1950_v33, %v6514_v7  ;;  %v2028_v4 = vadd.f32 %v1952_v23, %v6530_v9  ;;  %v2392_v49 = vsel %vm2337_vm2, %v2389_v61, %v2391_v17  ;;  %v2394_v35 = vsel %vm2337_vm2, %v2391_v17, %v2393_v21 }
 0x1c9   : > { %v6718_v41 = vadd.f32 %v2392_v49, %v2023_v24  ;;  %v6720_v63 = vadd.f32 %v2394_v35, %v2024_v1  ;;  %v5317_v59 = vpop.f32.mrb[100].mxu1  ;;  %v5373_v62 = vpop.f32.mrb[100].mxu0 }
 0x1ca   : > { %v1825_v19 = vpop.f32.mrb[101].mxu1  ;;  %v2258_v31 = vpop.f32.mrb[101].mxu0  ;;  %v1959_v11 = vrot.slane %v5317_v59, 2  ;;  %v2401_v7 = vrot.slane %v5373_v62, 3 }
 0x1cb   : > { %v1955_v52 = vrot.slane %v1825_v19, 2  ;;  %v2397_v10 = vrot.slane %v2258_v31, 3  ;;  %v5318_v0 = vpop.f32.mrb[102].mxu1  ;;  %v5374_v29 = vpop.f32.mrb[102].mxu0 }
 0x1cc   : > { %v2403_v38 = vrot.slane %v5374_v29, 3  ;;  %v1828_v9 = vpop.f32.mrb[103].mxu1  ;;  %v2261_v54 = vpop.f32.mrb[103].mxu0 }
 0x1cd   : > { %v1956_v61 = vsel %vm1438_vm1, %v1953_v37, %v1955_v52  ;;  %v2398_v24 = vsel %vm2337_vm2, %v2395_v43, %v2397_v10  ;;  %v1957_v21 = vrot.slane %v1828_v9, 2  ;;  %v2399_v1 = vrot.slane %v2261_v54, 3 }
 0x1ce   : > { %v2030_v16 = vadd.f32 %v1956_v61, %v6541_v26  ;;  %v6725_v13 = vadd.f32 %v2398_v24, %v2026_v36  ;;  %v2404_v17 = vsel %vm2337_vm2, %v2401_v7, %v2403_v38 }
 0x1cf   : > { %v6728_v18 = vadd.f32 %v2404_v17, %v2029_v46  ;;  %v1958_v60 = vsel %vm1438_vm1, %v1955_v52, %v1957_v21  ;;  %v1960_v33 = vsel %vm1438_vm1, %v1957_v21, %v1959_v11  ;;  %v2400_v23 = vsel %vm2337_vm2, %v2397_v10, %v2399_v1 }
 0x1d0   : > { %v2031_v37 = vadd.f32 %v1958_v60, %v6534_v30  ;;  %v2032_v43 = vadd.f32 %v1960_v33, %v6544_v12  ;;  %v2402_v49 = vsel %vm2337_vm2, %v2399_v1, %v2401_v7  ;;  %v6736_v35 = vadd.f32 %v2400_v23, %v2027_v58 }
 0x1d1   : > { %v6738_v26 = vadd.f32 %v2402_v49, %v2028_v4  ;;  %v5377_v36 = vpop.f32.mrb[104].mxu0  ;;  %v5321_v59 = vpop.f32.mrb[104].mxu1 }
 0x1d2   : > { %v2274_v46 = vpop.f32.mrb[105].mxu0  ;;  %v1840_v62 = vpop.f32.mrb[105].mxu1  ;;  %v2409_v10 = vrot.slane %v5377_v36, 3 }
 0x1d3   : > { %v2405_v19 = vrot.slane %v2274_v46, 3  ;;  %v5378_v31 = vpop.f32.mrb[106].mxu0  ;;  %v5322_v52 = vpop.f32.mrb[106].mxu1 }
 0x1d4   : > { %v2277_v11 = vpop.f32.mrb[107].mxu0  ;;  %v1842_v0 = vpop.f32.mrb[107].mxu1 }
 0x1d5   : > { %v2406_v30 = vsel %vm2337_vm2, %v2403_v38, %v2405_v19  ;;  %v2407_v29 = vrot.slane %v2277_v11, 3 }
 0x1d6   : > { %v6741_v12 = vadd.f32 %v2406_v30, %v2030_v16 }
 0x1d7   : > { %v2408_v58 = vsel %vm2337_vm2, %v2405_v19, %v2407_v29  ;;  %v2410_v4 = vsel %vm2337_vm2, %v2407_v29, %v2409_v10 }
 0x1d8   : > { %v6745_v7 = vadd.f32 %v2408_v58, %v2031_v37  ;;  %v6747_v9 = vadd.f32 %v2410_v4, %v2032_v43 }
 0x1d9   : > { %v5381_v54 = vpop.f32.mrb[108].mxu0  ;;  %v5401_v61 = vpop.f32.mrb[108].mxu1 }
 0x1da   : > { %v2788_v24 = vrot.slane %v5401_v61, 4  ;;  %v2289_v21 = vpop.f32.mrb[109].mxu0  ;;  %v2582_v1 = vpop.f32.mrb[109].mxu1 }
 0x1db   : > { %v5382_v17 = vpop.f32.mrb[110].mxu0  ;;  %v5402_v60 = vpop.f32.mrb[110].mxu1 }
 0x1dc   : > { %v2789_v38 = vrot.slane %v5402_v60, 4  ;;  %v2291_v33 = vpop.f32.mrb[111].mxu0  ;;  %v2584_v16 = vpop.f32.mrb[111].mxu1 }
 0x1de   : > { %v2790_v23 = vsel %vm2787_vm3, %v2788_v24, %v2789_v38 }
 0x1df   : > { %v2897_v49 = vadd.f32 %v2790_v23, %v6558_v39 }
 0x1e1   : > { %v5405_v36 = vpop.f32.mrb[112].mxu1  ;;  %v5461_v37 = vpop.f32.mrb[112].mxu0 }
 0x1e2   : > { %v2795_v59 = vrot.slane %v5405_v36, 4  ;;  %v2596_v43 = vpop.f32.mrb[113].mxu1  ;;  %v3032_v46 = vpop.f32.mrb[113].mxu0 }
 0x1e3   : > { %v2791_v62 = vrot.slane %v2596_v43, 4  ;;  %v5406_v19 = vpop.f32.mrb[114].mxu1  ;;  %v5462_v31 = vpop.f32.mrb[114].mxu0 }
 0x1e4   : > { %v2797_v52 = vrot.slane %v5406_v19, 4  ;;  %v2599_v11 = vpop.f32.mrb[115].mxu1  ;;  %v3034_v0 = vpop.f32.mrb[115].mxu0 }
 0x1e5   : > { %v2792_v10 = vsel %vm2787_vm3, %v2789_v38, %v2791_v62  ;;  %v2793_v30 = vrot.slane %v2599_v11, 4 }
 0x1e6   : > { %v2898_v29 = vadd.f32 %v2792_v10, %v6569_v6  ;;  %v2798_v58 = vsel %vm2787_vm3, %v2795_v59, %v2797_v52 }
 0x1e7   : > { %v6755_v39 = vadd.f32 %v2798_v58, %v6575_v53  ;;  %v2794_v4 = vsel %vm2787_vm3, %v2791_v62, %v2793_v30  ;;  %v2796_v54 = vsel %vm2787_vm3, %v2793_v30, %v2795_v59 }
 0x1e8   : > { %v2899_v61 = vadd.f32 %v2794_v4, %v6585_v40  ;;  %v2900_v24 = vadd.f32 %v2796_v54, %v6587_v57 }
 0x1e9   : > { %v5409_v21 = vpop.f32.mrb[116].mxu1  ;;  %v5465_v1 = vpop.f32.mrb[116].mxu0 }
 0x1ea   : > { %v2803_v17 = vrot.slane %v5409_v21, 4  ;;  %v2612_v60 = vpop.f32.mrb[117].mxu1  ;;  %v3044_v38 = vpop.f32.mrb[117].mxu0  ;;  %v3240_v23 = vrot.slane %v5465_v1, 4 }
 0x1eb   : > { %v2799_v33 = vrot.slane %v2612_v60, 4  ;;  %v5410_v6 = vpop.f32.mrb[118].mxu1  ;;  %v5466_v16 = vpop.f32.mrb[118].mxu0  ;;  %v3237_v57 = vrot.slane %v3044_v38, 4 }
 0x1ec   : > { %v2805_v36 = vrot.slane %v5410_v6, 4  ;;  %v3242_v53 = vrot.slane %v5466_v16, 4  ;;  %v2615_v37 = vpop.f32.mrb[119].mxu1  ;;  %v3047_v43 = vpop.f32.mrb[119].mxu0 }
 0x1ed   : > { %v2800_v46 = vsel %vm2787_vm3, %v2797_v52, %v2799_v33  ;;  %v2801_v59 = vrot.slane %v2615_v37, 4  ;;  %v3238_v62 = vrot.slane %v3047_v43, 4 }
 0x1ee   : > { %v2902_v40 = vadd.f32 %v2800_v46, %v6593_v14  ;;  %v2806_v19 = vsel %vm2787_vm3, %v2803_v17, %v2805_v36  ;;  %v3243_v31 = vsel %vm2787_vm3, %v3240_v23, %v3242_v53 }
 0x1ef   : > { %v6766_v11 = vadd.f32 %v2806_v19, %v6599_v48  ;;  %v6768_v0 = vadd.f32 %v3243_v31, %v2899_v61  ;;  %v2802_v10 = vsel %vm2787_vm3, %v2799_v33, %v2801_v59  ;;  %v2804_v30 = vsel %vm2787_vm3, %v2801_v59, %v2803_v17 }
 0x1f0   : > { %v2903_v52 = vadd.f32 %v2802_v10, %v6609_v50  ;;  %v2904_v58 = vadd.f32 %v2804_v30, %v6611_v3  ;;  %v3239_v14 = vsel %vm2787_vm3, %v3237_v57, %v3238_v62  ;;  %v3241_v4 = vsel %vm2787_vm3, %v3238_v62, %v3240_v23 }
 0x1f1   : > { %v6776_v54 = vadd.f32 %v3239_v14, %v2897_v49  ;;  %v6778_v21 = vadd.f32 %v3241_v4, %v2898_v29  ;;  %v5413_v48 = vpop.f32.mrb[120].mxu1  ;;  %v5469_v1 = vpop.f32.mrb[120].mxu0 }
 0x1f2   : > { %v2811_v61 = vrot.slane %v5413_v48, 4  ;;  %v2628_v60 = vpop.f32.mrb[121].mxu1  ;;  %v3060_v38 = vpop.f32.mrb[121].mxu0  ;;  %v3248_v50 = vrot.slane %v5469_v1, 4 }
 0x1f3   : > { %v2807_v33 = vrot.slane %v2628_v60, 4  ;;  %v3244_v6 = vrot.slane %v3060_v38, 4  ;;  %v5414_v17 = vpop.f32.mrb[122].mxu1  ;;  %v5470_v16 = vpop.f32.mrb[122].mxu0 }
 0x1f4   : > { %v2813_v37 = vrot.slane %v5414_v17, 4  ;;  %v3250_v3 = vrot.slane %v5470_v16, 4  ;;  %v2631_v43 = vpop.f32.mrb[123].mxu1  ;;  %v3063_v46 = vpop.f32.mrb[123].mxu0 }
 0x1f5   : > { %v2808_v23 = vsel %vm2787_vm3, %v2805_v36, %v2807_v33  ;;  %v3245_v49 = vsel %vm2787_vm3, %v3242_v53, %v3244_v6  ;;  %v2809_v29 = vrot.slane %v2631_v43, 4  ;;  %v3246_v59 = vrot.slane %v3063_v46, 4 }
 0x1f6   : > { %v2906_v62 = vadd.f32 %v2808_v23, %v6617_v27  ;;  %v6783_v57 = vadd.f32 %v3245_v49, %v2900_v24  ;;  %v2814_v19 = vsel %vm2787_vm3, %v2811_v61, %v2813_v37  ;;  %v3251_v31 = vsel %vm2787_vm3, %v3248_v50, %v3250_v3 }
 0x1f7   : > { %v6788_v10 = vadd.f32 %v2814_v19, %v6623_v28  ;;  %v6790_v30 = vadd.f32 %v3251_v31, %v2903_v52  ;;  %v2810_v14 = vsel %vm2787_vm3, %v2807_v33, %v2809_v29  ;;  %v2812_v36 = vsel %vm2787_vm3, %v2809_v29, %v2811_v61 }
 0x1f8   : > { %v2907_v53 = vadd.f32 %v2810_v14, %v6633_v15  ;;  %v2908_v4 = vadd.f32 %v2812_v36, %v6635_v51  ;;  %v3247_v27 = vsel %vm2787_vm3, %v3244_v6, %v3246_v59  ;;  %v3249_v24 = vsel %vm2787_vm3, %v3246_v59, %v3248_v50 }
 0x1f9   : > { %v6799_v48 = vadd.f32 %v3247_v27, %v6755_v39  ;;  %v6801_v1 = vadd.f32 %v3249_v24, %v2902_v40  ;;  %v5417_v28 = vpop.f32.mrb[124].mxu1  ;;  %v5473_v52 = vpop.f32.mrb[124].mxu0 }
 0x1fa   : > { %v2819_v60 = vrot.slane %v5417_v28, 4  ;;  %v2644_v38 = vpop.f32.mrb[125].mxu1  ;;  %v3076_v33 = vpop.f32.mrb[125].mxu0  ;;  %v3256_v43 = vrot.slane %v5473_v52, 4 }
 0x1fb   : > { %v2815_v17 = vrot.slane %v2644_v38, 4  ;;  %v3252_v61 = vrot.slane %v3076_v33, 4  ;;  %v5418_v16 = vpop.f32.mrb[126].mxu1  ;;  %v5474_v15 = vpop.f32.mrb[126].mxu0 }
 0x1fc   : > { %v2821_v51 = vrot.slane %v5418_v16, 4  ;;  %v3258_v46 = vrot.slane %v5474_v15, 4  ;;  %v2647_v6 = vpop.f32.mrb[127].mxu1  ;;  %v3079_v23 = vpop.f32.mrb[127].mxu0 }
 0x1fd   : > { %v2816_v50 = vsel %vm2787_vm3, %v2813_v37, %v2815_v17  ;;  %v3253_v39 = vsel %vm2787_vm3, %v3250_v3, %v3252_v61  ;;  %v2817_v40 = vrot.slane %v2647_v6, 4  ;;  %v3254_v49 = vrot.slane %v3079_v23, 4 }
 0x1fe   : > { %v2910_v29 = vadd.f32 %v2816_v50, %v6641_v8  ;;  %v6806_v59 = vadd.f32 %v3253_v39, %v2904_v58  ;;  %v2822_v19 = vsel %vm2787_vm3, %v2819_v60, %v2821_v51  ;;  %v3259_v31 = vsel %vm2787_vm3, %v3256_v43, %v3258_v46 }
 0x1ff   : > { %v6811_v14 = vadd.f32 %v2822_v19, %v6647_v47  ;;  %v6813_v36 = vadd.f32 %v3259_v31, %v2907_v53  ;;  %v2818_v27 = vsel %vm2787_vm3, %v2815_v17, %v2817_v40  ;;  %v2820_v37 = vsel %vm2787_vm3, %v2817_v40, %v2819_v60 }
 0x200   : > { %v2911_v3 = vadd.f32 %v2818_v27, %v6657_v2  ;;  %v2912_v24 = vadd.f32 %v2820_v37, %v6659_v56  ;;  %v3255_v8 = vsel %vm2787_vm3, %v3252_v61, %v3254_v49  ;;  %v3257_v58 = vsel %vm2787_vm3, %v3254_v49, %v3256_v43 }
 0x201   : > { %v6822_v28 = vadd.f32 %v3255_v8, %v6766_v11  ;;  %v6824_v52 = vadd.f32 %v3257_v58, %v2906_v62  ;;  %v5421_v47 = vpop.f32.mrb[128].mxu1  ;;  %v5477_v53 = vpop.f32.mrb[128].mxu0 }
 0x202   : > { %v2827_v38 = vrot.slane %v5421_v47, 4  ;;  %v2660_v33 = vpop.f32.mrb[129].mxu1  ;;  %v3092_v17 = vpop.f32.mrb[129].mxu0  ;;  %v3264_v6 = vrot.slane %v5477_v53, 4 }
 0x203   : > { %v2823_v16 = vrot.slane %v2660_v33, 4  ;;  %v3260_v60 = vrot.slane %v3092_v17, 4  ;;  %v5422_v15 = vpop.f32.mrb[130].mxu1  ;;  %v5478_v2 = vpop.f32.mrb[130].mxu0 }
 0x204   : > { %v2829_v56 = vrot.slane %v5422_v15, 4  ;;  %v3266_v23 = vrot.slane %v5478_v2, 4  ;;  %v2663_v61 = vpop.f32.mrb[131].mxu1  ;;  %v3095_v50 = vpop.f32.mrb[131].mxu0 }
 0x205   : > { %v2824_v43 = vsel %vm2787_vm3, %v2821_v51, %v2823_v16  ;;  %v3261_v11 = vsel %vm2787_vm3, %v3258_v46, %v3260_v60  ;;  %v2825_v62 = vrot.slane %v2663_v61, 4  ;;  %v3262_v39 = vrot.slane %v3095_v50, 4 }
 0x206   : > { %v2914_v40 = vadd.f32 %v2824_v43, %v6664_v34  ;;  %v6829_v49 = vadd.f32 %v3261_v11, %v2908_v4  ;;  %v2830_v19 = vsel %vm2787_vm3, %v2827_v38, %v2829_v56  ;;  %v3267_v31 = vsel %vm2787_vm3, %v3264_v6, %v3266_v23 }
 0x207   : > { %v6834_v27 = vadd.f32 %v2830_v19, %v6669_v5  ;;  %v6836_v37 = vadd.f32 %v3267_v31, %v2911_v3  ;;  %v2826_v8 = vsel %vm2787_vm3, %v2823_v16, %v2825_v62  ;;  %v2828_v51 = vsel %vm2787_vm3, %v2825_v62, %v2827_v38 }
 0x208   : > { %v2915_v46 = vadd.f32 %v2826_v8, %v6678_v32  ;;  %v2916_v58 = vadd.f32 %v2828_v51, %v6680_v20  ;;  %v3263_v34 = vsel %vm2787_vm3, %v3260_v60, %v3262_v39  ;;  %v3265_v4 = vsel %vm2787_vm3, %v3262_v39, %v3264_v6 }
 0x209   : > { %v6845_v47 = vadd.f32 %v3263_v34, %v6788_v10  ;;  %v6847_v53 = vadd.f32 %v3265_v4, %v2910_v29  ;;  %v5425_v5 = vpop.f32.mrb[132].mxu1  ;;  %v5481_v3 = vpop.f32.mrb[132].mxu0 }
 0x20a   : > { %v2835_v33 = vrot.slane %v5425_v5, 4  ;;  %v2676_v17 = vpop.f32.mrb[133].mxu1  ;;  %v3108_v16 = vpop.f32.mrb[133].mxu0  ;;  %v3272_v61 = vrot.slane %v5481_v3, 4 }
 0x20b   : > { %v2831_v15 = vrot.slane %v2676_v17, 4  ;;  %v3268_v38 = vrot.slane %v3108_v16, 4  ;;  %v5426_v2 = vpop.f32.mrb[134].mxu1  ;;  %v5482_v32 = vpop.f32.mrb[134].mxu0 }
 0x20c   : > { %v2837_v20 = vrot.slane %v5426_v2, 4  ;;  %v3274_v50 = vrot.slane %v5482_v32, 4  ;;  %v2679_v60 = vpop.f32.mrb[135].mxu1  ;;  %v3111_v43 = vpop.f32.mrb[135].mxu0 }
 0x20d   : > { %v2832_v6 = vsel %vm2787_vm3, %v2829_v56, %v2831_v15  ;;  %v3269_v10 = vsel %vm2787_vm3, %v3266_v23, %v3268_v38  ;;  %v2833_v29 = vrot.slane %v2679_v60, 4  ;;  %v3270_v11 = vrot.slane %v3111_v43, 4 }
 0x20e   : > { %v2918_v62 = vadd.f32 %v2832_v6, %v6685_v25  ;;  %v6852_v39 = vadd.f32 %v3269_v10, %v2912_v24  ;;  %v2838_v19 = vsel %vm2787_vm3, %v2835_v33, %v2837_v20  ;;  %v3275_v31 = vsel %vm2787_vm3, %v3272_v61, %v3274_v50 }
 0x20f   : > { %v6857_v8 = vadd.f32 %v2838_v19, %v6690_v42  ;;  %v6859_v51 = vadd.f32 %v3275_v31, %v2915_v46  ;;  %v2834_v34 = vsel %vm2787_vm3, %v2831_v15, %v2833_v29  ;;  %v2836_v56 = vsel %vm2787_vm3, %v2833_v29, %v2835_v33 }
 0x210   : > { %v2919_v23 = vadd.f32 %v2834_v34, %v6698_v45  ;;  %v2920_v4 = vadd.f32 %v2836_v56, %v6700_v55  ;;  %v3271_v25 = vsel %vm2787_vm3, %v3268_v38, %v3270_v11  ;;  %v3273_v24 = vsel %vm2787_vm3, %v3270_v11, %v3272_v61 }
 0x211   : > { %v6868_v5 = vadd.f32 %v3271_v25, %v6811_v14  ;;  %v6870_v3 = vadd.f32 %v3273_v24, %v2914_v40  ;;  %v5429_v42 = vpop.f32.mrb[136].mxu1 }
 0x212   : > { %v2843_v46 = vrot.slane %v5429_v42, 4  ;;  %v5485_v17 = vpop.f32.mrb[136].mxu0  ;;  %v2692_v16 = vpop.f32.mrb[137].mxu1 }
 0x213   : > { %v2839_v15 = vrot.slane %v2692_v16, 4  ;;  %v3124_v2 = vpop.f32.mrb[137].mxu0  ;;  %v5430_v33 = vpop.f32.mrb[138].mxu1  ;;  %v3280_v43 = vrot.slane %v5485_v17, 4 }
 0x214   : > { %v3276_v32 = vrot.slane %v3124_v2, 4  ;;  %v2845_v45 = vrot.slane %v5430_v33, 4  ;;  %v5486_v60 = vpop.f32.mrb[138].mxu0  ;;  %v2695_v55 = vpop.f32.mrb[139].mxu1 }
 0x215   : > { %v2840_v38 = vsel %vm2787_vm3, %v2837_v20, %v2839_v15  ;;  %v3282_v61 = vrot.slane %v5486_v60, 4  ;;  %v2841_v6 = vrot.slane %v2695_v55, 4  ;;  %v3127_v14 = vpop.f32.mrb[139].mxu0 }
 0x216   : > { %v2922_v40 = vadd.f32 %v2840_v38, %v6705_v22  ;;  %v3277_v10 = vsel %vm2787_vm3, %v3274_v50, %v3276_v32  ;;  %v2846_v29 = vsel %vm2787_vm3, %v2843_v46, %v2845_v45  ;;  %v3278_v11 = vrot.slane %v3127_v14, 4 }
 0x217   : > { %v6876_v19 = vadd.f32 %v3277_v10, %v2916_v58  ;;  %v6879_v31 = vadd.f32 %v2846_v29, %v6710_v44  ;;  %v3283_v34 = vsel %vm2787_vm3, %v3280_v43, %v3282_v61  ;;  %v2842_v56 = vsel %vm2787_vm3, %v2839_v15, %v2841_v6 }
 0x218   : > { %v6883_v20 = vadd.f32 %v3283_v34, %v2919_v23  ;;  %v2844_v25 = vsel %vm2787_vm3, %v2841_v6, %v2843_v46  ;;  %v2923_v22 = vadd.f32 %v2842_v56, %v6718_v41  ;;  %v3279_v50 = vsel %vm2787_vm3, %v3276_v32, %v3278_v11 }
 0x219   : > { %v2924_v24 = vadd.f32 %v2844_v25, %v6720_v63  ;;  %v3281_v58 = vsel %vm2787_vm3, %v3278_v11, %v3280_v43  ;;  %v6891_v42 = vadd.f32 %v3279_v50, %v6834_v27  ;;  %v5433_v44 = vpop.f32.mrb[140].mxu1 }
 0x21a   : > { %v6893_v17 = vadd.f32 %v3281_v58, %v2918_v62  ;;  %v2851_v16 = vrot.slane %v5433_v44, 4  ;;  %v5489_v15 = vpop.f32.mrb[140].mxu0  ;;  %v2708_v23 = vpop.f32.mrb[141].mxu1 }
 0x21b   : > { %v2847_v2 = vrot.slane %v2708_v23, 4  ;;  %v3140_v33 = vpop.f32.mrb[141].mxu0  ;;  %v5434_v46 = vpop.f32.mrb[142].mxu1  ;;  %v3288_v38 = vrot.slane %v5489_v15, 4 }
 0x21c   : > { %v3284_v60 = vrot.slane %v3140_v33, 4  ;;  %v2853_v41 = vrot.slane %v5434_v46, 4  ;;  %v5490_v55 = vpop.f32.mrb[142].mxu0  ;;  %v2711_v32 = vpop.f32.mrb[143].mxu1 }
 0x21d   : > { %v2848_v63 = vsel %vm2787_vm3, %v2845_v45, %v2847_v2  ;;  %v3290_v43 = vrot.slane %v5490_v55, 4  ;;  %v2849_v6 = vrot.slane %v2711_v32, 4  ;;  %v3143_v27 = vpop.f32.mrb[143].mxu0 }
 0x21e   : > { %v2926_v14 = vadd.f32 %v2848_v63, %v6725_v13  ;;  %v3285_v62 = vsel %vm2787_vm3, %v3282_v61, %v3284_v60  ;;  %v2854_v10 = vsel %vm2787_vm3, %v2851_v16, %v2853_v41  ;;  %v3286_v29 = vrot.slane %v3143_v27, 4 }
 0x21f   : > { %v6899_v11 = vadd.f32 %v3285_v62, %v2920_v4  ;;  %v2929_v34 = vadd.f32 %v2854_v10, %v6728_v18  ;;  %v3291_v56 = vsel %vm2787_vm3, %v3288_v38, %v3290_v43  ;;  %v2850_v25 = vsel %vm2787_vm3, %v2847_v2, %v2849_v6 }
 0x220   : > { %v6904_v50 = vadd.f32 %v3291_v56, %v2923_v22  ;;  %v2852_v45 = vsel %vm2787_vm3, %v2849_v6, %v2851_v16  ;;  %v2927_v58 = vadd.f32 %v2850_v25, %v6736_v35  ;;  %v3287_v13 = vsel %vm2787_vm3, %v3284_v60, %v3286_v29 }
 0x221   : > { %v2928_v61 = vadd.f32 %v2852_v45, %v6738_v26  ;;  %v3289_v44 = vsel %vm2787_vm3, %v3286_v29, %v3288_v38  ;;  %v6912_v4 = vadd.f32 %v3287_v13, %v6857_v8  ;;  %v5437_v18 = vpop.f32.mrb[144].mxu1 }
 0x222   : > { %v6914_v15 = vadd.f32 %v3289_v44, %v2922_v40  ;;  %v5493_v23 = vpop.f32.mrb[144].mxu0  ;;  %v2724_v2 = vpop.f32.mrb[145].mxu1  ;;  %v2859_v22 = vrot.slane %v5437_v18, 4 }
 0x223   : > { %v2855_v33 = vrot.slane %v2724_v2, 4  ;;  %v3156_v46 = vpop.f32.mrb[145].mxu0  ;;  %v5438_v16 = vpop.f32.mrb[146].mxu1  ;;  %v3296_v60 = vrot.slane %v5493_v23, 4 }
 0x224   : > { %v3292_v55 = vrot.slane %v3156_v46, 4  ;;  %v5494_v35 = vpop.f32.mrb[146].mxu0  ;;  %v2727_v32 = vpop.f32.mrb[147].mxu1 }
 0x225   : > { %v2856_v26 = vsel %vm2787_vm3, %v2853_v41, %v2855_v33  ;;  %v3298_v63 = vrot.slane %v5494_v35, 4  ;;  %v2857_v38 = vrot.slane %v2727_v32, 4  ;;  %v3159_v6 = vpop.f32.mrb[147].mxu0 }
 0x226   : > { %v2930_v8 = vadd.f32 %v2856_v26, %v6741_v12  ;;  %v3293_v40 = vsel %vm2787_vm3, %v3290_v43, %v3292_v55  ;;  %v3294_v27 = vrot.slane %v3159_v6, 4 }
 0x227   : > { %v6919_v62 = vadd.f32 %v3293_v40, %v2924_v24  ;;  %v3299_v10 = vsel %vm2787_vm3, %v3296_v60, %v3298_v63  ;;  %v2858_v29 = vsel %vm2787_vm3, %v2855_v33, %v2857_v38  ;;  %v2860_v56 = vsel %vm2787_vm3, %v2857_v38, %v2859_v22 }
 0x228   : > { %v6924_v25 = vadd.f32 %v3299_v10, %v2927_v58  ;;  %v2931_v41 = vadd.f32 %v2858_v29, %v6745_v7  ;;  %v2932_v45 = vadd.f32 %v2860_v56, %v6747_v9  ;;  %v3295_v13 = vsel %vm2787_vm3, %v3292_v55, %v3294_v27 }
 0x229   : > { %v3297_v12 = vsel %vm2787_vm3, %v3294_v27, %v3296_v60  ;;  %v6931_v43 = vadd.f32 %v3295_v13, %v6879_v31  ;;  %v5441_v24 = vpop.f32.mrb[148].mxu1 }
 0x22a   : > { %v6933_v44 = vadd.f32 %v3297_v12, %v2926_v14  ;;  %v5497_v18 = vpop.f32.mrb[148].mxu0  ;;  %v2739_v23 = vpop.f32.mrb[149].mxu1 }
 0x22b   : > { %v3172_v2 = vpop.f32.mrb[149].mxu0  ;;  %v5442_v22 = vpop.f32.mrb[150].mxu1  ;;  %v3304_v7 = vrot.slane %v5497_v18, 4 }
 0x22c   : > { %v3300_v58 = vrot.slane %v3172_v2, 4  ;;  %v5498_v33 = vpop.f32.mrb[150].mxu0  ;;  %v2741_v46 = vpop.f32.mrb[151].mxu1 }
 0x22d   : > { %v3306_v16 = vrot.slane %v5498_v33, 4  ;;  %v3175_v9 = vpop.f32.mrb[151].mxu0 }
 0x22e   : > { %v3301_v55 = vsel %vm2787_vm3, %v3298_v63, %v3300_v58  ;;  %v3302_v35 = vrot.slane %v3175_v9, 4 }
 0x22f   : > { %v6936_v32 = vadd.f32 %v3301_v55, %v2928_v61  ;;  %v3307_v31 = vsel %vm2787_vm3, %v3304_v7, %v3306_v16 }
 0x230   : > { %v6939_v60 = vadd.f32 %v3307_v31, %v2931_v41  ;;  %v3303_v14 = vsel %vm2787_vm3, %v3300_v58, %v3302_v35  ;;  %v3305_v26 = vsel %vm2787_vm3, %v3302_v35, %v3304_v7 }
 0x231   : > { %v6943_v38 = vadd.f32 %v3303_v14, %v2929_v34  ;;  %v6945_v6 = vadd.f32 %v3305_v26, %v2930_v8  ;;  %v5521_v40 = vpop.f32.mrb[152].mxu1 }
 0x232   : > { %v5501_v27 = vpop.f32.mrb[152].mxu0  ;;  %v3481_v10 = vpop.f32.mrb[153].mxu1 }
 0x233   : > { %v3188_v29 = vpop.f32.mrb[153].mxu0  ;;  %v5522_v63 = vpop.f32.mrb[154].mxu1 }
 0x234   : > { %v3308_v56 = vrot.slane %v3188_v29, 4  ;;  %v5502_v61 = vpop.f32.mrb[154].mxu0  ;;  %v3483_v13 = vpop.f32.mrb[155].mxu1 }
 0x235   : > { %v3191_v12 = vpop.f32.mrb[155].mxu0 }
 0x236   : > { %v3309_v41 = vsel %vm2787_vm3, %v3306_v16, %v3308_v56 }
 0x237   : > { %v6948_v24 = vadd.f32 %v3309_v41, %v2932_v45 }
 0x239   : > { %v5525_v18 = vpop.f32.mrb[156].mxu1 }
 0x23a   : > { %v3690_v23 = vrot.slane %v5525_v18, 5  ;;  %v5581_v2 = vpop.f32.mrb[156].mxu0  ;;  %v3493_v34 = vpop.f32.mrb[157].mxu1 }
 0x23b   : > { %v3687_v22 = vrot.slane %v3493_v34, 5  ;;  %v3931_v8 = vpop.f32.mrb[157].mxu0  ;;  %v5526_v58 = vpop.f32.mrb[158].mxu1 }
 0x23c   : > { %v3692_v33 = vrot.slane %v5526_v58, 5  ;;  %v5582_v46 = vpop.f32.mrb[158].mxu0  ;;  %v3496_v7 = vpop.f32.mrb[159].mxu1 }
 0x23d   : > { %v3688_v9 = vrot.slane %v3496_v7, 5  ;;  %v3933_v55 = vpop.f32.mrb[159].mxu0  ;;  %v6965_v7 = vld [vmem:[%s7445_s2] ss:$0 sm:$0xff] }
 0x23e   : > { %v3693_v35 = vsel %vm3686_vm4, %v3690_v23, %v3692_v33 }
 0x23f   : > { %v3798_v16 = vadd.f32 %v3693_v35, %v6768_v0  ;;  %v3689_v45 = vsel %vm3686_vm4, %v3687_v22, %v3688_v9  ;;  %v3691_v31 = vsel %vm3686_vm4, %v3688_v9, %v3690_v23 }
 0x240   : > { %v3796_v14 = vadd.f32 %v3689_v45, %v6776_v54  ;;  %v3797_v26 = vadd.f32 %v3691_v31, %v6778_v21  ;;  %v6986_v45 = vld [vmem:[%s7446_s3] ss:$0 sm:$0xff] }
 0x241   : > { %v5529_v40 = vpop.f32.mrb[160].mxu1 }
 0x242   : > { %v3698_v27 = vrot.slane %v5529_v40, 5  ;;  %v5585_v10 = vpop.f32.mrb[160].mxu0  ;;  %v3509_v29 = vpop.f32.mrb[161].mxu1 }
 0x243   : > { %v3694_v63 = vrot.slane %v3509_v29, 5  ;;  %v3943_v56 = vpop.f32.mrb[161].mxu0  ;;  %v5530_v61 = vpop.f32.mrb[162].mxu1  ;;  %v4140_v41 = vrot.slane %v5585_v10, 6 }
 0x244   : > { %v3700_v13 = vrot.slane %v5530_v61, 5  ;;  %v5586_v12 = vpop.f32.mrb[162].mxu0  ;;  %v3512_v0 = vpop.f32.mrb[163].mxu1  ;;  %v4137_v34 = vrot.slane %v3943_v56, 6 }
 0x245   : > { %v3695_v18 = vsel %vm3686_vm4, %v3692_v33, %v3694_v63  ;;  %v4142_v23 = vrot.slane %v5586_v12, 6  ;;  %v3696_v54 = vrot.slane %v3512_v0, 5  ;;  %v3946_v2 = vpop.f32.mrb[163].mxu0 }
 0x246   : > { %v3799_v21 = vadd.f32 %v3695_v18, %v6783_v57  ;;  %v3701_v22 = vsel %vm3686_vm4, %v3698_v27, %v3700_v13  ;;  %v4138_v8 = vrot.slane %v3946_v2, 6 }
 0x247   : > { %v3802_v58 = vadd.f32 %v3701_v22, %v6790_v30  ;;  %v4143_v46 = vsel %vm4136_vm5, %v4140_v41, %v4142_v23  ;;  %v3697_v33 = vsel %vm3686_vm4, %v3694_v63, %v3696_v54  ;;  %v3699_v9 = vsel %vm3686_vm4, %v3696_v54, %v3698_v27 }
 0x248   : > { %v4248_v57 = vadd.f32 %v4143_v46, %v3798_v16  ;;  %v6977_v30 = vadd.f32 %v3697_v33, %v6799_v48  ;;  %v6980_v55 = vadd.f32 %v3699_v9, %v6801_v1  ;;  %v4139_v35 = vsel %vm4136_vm5, %v4137_v34, %v4138_v8  ;;  %v4370_v1 = vld [vmem:[%s6974_s15 + $0x10] sm:$0xff]  ;;  %v4369_v46 = vld [vmem:[%s6974_s15 + $0x8] sm:$0xff] }
 0x249   : > { %v4141_v31 = vsel %vm4136_vm5, %v4138_v8, %v4140_v41  ;;  %v4246_v40 = vadd.f32 %v4139_v35, %v3796_v14  ;;  %v5533_v27 = vpop.f32.mrb[164].mxu1 }
 0x24a   : > { %v4291_v16 = vmul.f32 %v6965_v7, %v4248_v57  ;;  %v4247_v10 = vadd.f32 %v4141_v31, %v3797_v26  ;;  %v6990_v48 = vpop.f32.mrb[164].mxu0  ;;  %v3525_v29 = vpop.f32.mrb[165].mxu1  ;;  %v3706_v56 = vrot.slane %v5533_v27, 5  ;;  %v4368_v26 = vld [vmem:[%s6974_s15] sm:$0xff] }
 0x24b   : > { %v4289_v63 = vmul.f32 %v6965_v7, %v4246_v40  ;;  %v4148_v61 = vrot.slane %v6990_v48, 6  ;;  %v3702_v12 = vrot.slane %v3525_v29, 5  ;;  %v3959_v0 = vpop.f32.mrb[165].mxu0  ;;  %v6995_v18 = vpop.f32.mrb[166].mxu1 }
 0x24c   : > { %v4334_v14 = vadd.f32 %v6986_v45, %v4291_v16  ;;  %v4290_v41 = vmul.f32 %v6965_v7, %v4247_v10  ;;  %v4144_v54 = vrot.slane %v3959_v0, 6  ;;  %v3708_v2 = vrot.slane %v6995_v18, 5  ;;  %v5590_v34 = vpop.f32.mrb[166].mxu0  ;;  %v3528_v22 = vpop.f32.mrb[167].mxu1 }
 0x24d   : > { %v4332_v8 = vadd.f32 %v6986_v45, %v4289_v63  ;;  %v3703_v33 = vsel %vm3686_vm4, %v3700_v13, %v3702_v12  ;;  %v4150_v9 = vrot.slane %v5590_v34, 6  ;;  %v3704_v57 = vrot.slane %v3528_v22, 5  ;;  %v3962_v35 = vpop.f32.mrb[167].mxu0  ;;  %v4371_v34 = vld [vmem:[%s6974_s15 + $0x18] sm:$0xff] }
 0x24e   : > { %v4406_v31 = vadd.f32 %v4370_v1, %v4334_v14  ;;  %v4333_v40 = vadd.f32 %v6986_v45, %v4290_v41  ;;  %v3803_v27 = vadd.f32 %v3703_v33, %v6806_v59  ;;  %v4145_v16 = vsel %vm4136_vm5, %v4142_v23, %v4144_v54  ;;  %v4374_v33 = vld [vmem:[%s6974_s15 + $0x30] sm:$0xff] }
 0x24f   : > { %v4404_v10 = vadd.f32 %v4368_v26, %v4332_v8  ;;  %v4249_v13 = vadd.f32 %v4145_v16, %v3799_v21  ;;  %v3709_v48 = vsel %vm3686_vm4, %v3706_v56, %v3708_v2  ;;  %v4151_v29 = vsel %vm4136_vm5, %v4148_v61, %v4150_v9 }
 0x250   : > { %v4442_v1 = vmax.f32 %v4406_v31, 0.0  ;;  %v4405_v63 = vadd.f32 %v4369_v46, %v4333_v40  ;;  %v3806_v59 = vadd.f32 %v3709_v48, %v6813_v36  ;;  %v4252_v23 = vadd.f32 %v4151_v29, %v3802_v58 }
 0x251   : > { %v4440_v0 = vmax.f32 %v4404_v10, 0.0  ;;  %v4292_v18 = vmul.f32 %v6965_v7, %v4249_v13  ;;  %v3705_v14 = vsel %vm3686_vm4, %v3702_v12, %v3704_v57  ;;  %v3707_v41 = vsel %vm3686_vm4, %v3704_v57, %v3706_v56  ;;  %v5537_v26 = vpop.f32.mrb[168].mxu1 }
 0x252   : > { %4478 = vst [vmem:[%s7012_s22 + $0x10] sm:$0xff] %v4442_v1  ;;  %v4441_v21 = vmax.f32 %v4405_v63, 0.0  ;;  %v4295_v22 = vmul.f32 %v6965_v7, %v4252_v23  ;;  %v7024_v8 = vadd.f32 %v3705_v14, %v6822_v28  ;;  %v7027_v36 = vadd.f32 %v3707_v41, %v6824_v52  ;;  %v5593_v58 = vpop.f32.mrb[168].mxu0  ;;  %v3541_v46 = vpop.f32.mrb[169].mxu1 }
 0x253   : > { %4476 = vst [vmem:[%s7012_s22] sm:$0xff] %v4440_v0  ;;  %v4335_v12 = vadd.f32 %v6986_v45, %v4292_v18  ;;  %v4146_v56 = vrot.slane %v3962_v35, 6  ;;  %v3714_v57 = vrot.slane %v5537_v26, 5  ;;  %v4156_v31 = vrot.slane %v5593_v58, 6  ;;  %v3975_v40 = vpop.f32.mrb[169].mxu0  ;;  %v7032_v16 = vpop.f32.mrb[170].mxu1 }
 0x254   : > { %4477 = vst [vmem:[%s7012_s22 + $0x8] sm:$0xff] %v4441_v21  ;;  %v4338_v10 = vadd.f32 %v6986_v45, %v4295_v22  ;;  %v3710_v28 = vrot.slane %v3541_v46, 5  ;;  %v4152_v13 = vrot.slane %v3975_v40, 6  ;;  %v3716_v52 = vrot.slane %v7032_v16, 5  ;;  %v7037_v48 = vpop.f32.mrb[170].mxu0  ;;  %v3544_v29 = vpop.f32.mrb[171].mxu1 }
 0x255   : > { %v4407_v1 = vadd.f32 %v4371_v34, %v4335_v12  ;;  %v4147_v63 = vsel %vm4136_vm5, %v4144_v54, %v4146_v56  ;;  %v4149_v35 = vsel %vm4136_vm5, %v4146_v56, %v4148_v61  ;;  %v4158_v23 = vrot.slane %v7037_v48, 6  ;;  %v3978_v0 = vpop.f32.mrb[171].mxu0 }
 0x256   : > { %v4410_v18 = vadd.f32 %v4374_v33, %v4338_v10  ;;  %v4250_v14 = vadd.f32 %v4147_v63, %v6977_v30  ;;  %v4251_v41 = vadd.f32 %v4149_v35, %v6980_v55  ;;  %v3711_v26 = vsel %vm3686_vm4, %v3708_v2, %v3710_v28  ;;  %v4372_v55 = vld [vmem:[%s6974_s15 + $0x20] sm:$0xff]  ;;  %v4373_v2 = vld [vmem:[%s6974_s15 + $0x28] sm:$0xff]  ;;  %v4375_v35 = vld [vmem:[%s6974_s15 + $0x38] sm:$0xff] }
 0x257   : > { %v4443_v21 = vmax.f32 %v4407_v1, 0.0  ;;  %v7046_v34 = vadd.f32 %v3711_v26, %v6829_v49  ;;  %v4153_v54 = vsel %vm4136_vm5, %v4150_v9, %v4152_v13  ;;  %v3717_v61 = vsel %vm3686_vm4, %v3714_v57, %v3716_v52 }
 0x258   : > { %v4446_v22 = vmax.f32 %v4410_v18, 0.0  ;;  %v4293_v58 = vmul.f32 %v6965_v7, %v4250_v14  ;;  %v4294_v30 = vmul.f32 %v6965_v7, %v4251_v41  ;;  %v4253_v46 = vadd.f32 %v4153_v54, %v3803_v27 }
 0x259   : > { %4479 = vst [vmem:[%s7012_s22 + $0x18] sm:$0xff] %v4443_v21  ;;  %v7058_v12 = vadd.f32 %v3717_v61, %v6836_v37  ;;  %v4159_v49 = vsel %vm4136_vm5, %v4156_v31, %v4158_v23  ;;  %v3712_v9 = vrot.slane %v3544_v29, 5  ;;  %v4154_v33 = vrot.slane %v3978_v0, 6  ;;  %v7063_v56 = vpop.f32.mrb[172].mxu1 }
 0x25a   : > { %4482 = vst [vmem:[%s7012_s22 + $0x30] sm:$0xff] %v4446_v22  ;;  %v4336_v40 = vadd.f32 %v6986_v45, %v4293_v58  ;;  %v4337_v27 = vadd.f32 %v6986_v45, %v4294_v30  ;;  %v4296_v10 = vmul.f32 %v6965_v7, %v4253_v46  ;;  %v4256_v1 = vadd.f32 %v4159_v49, %v3806_v59  ;;  %v7069_v63 = vpop.f32.mrb[172].mxu0  ;;  %v3557_v37 = vpop.f32.mrb[173].mxu1 }
 0x25b   : > { %v3713_v18 = vsel %vm3686_vm4, %v3710_v28, %v3712_v9  ;;  %v3715_v29 = vsel %vm3686_vm4, %v3712_v9, %v3714_v57  ;;  %v4155_v0 = vsel %vm4136_vm5, %v4152_v13, %v4154_v33  ;;  %v4157_v14 = vsel %vm4136_vm5, %v4154_v33, %v4156_v31  ;;  %v7076_v41 = vpop.f32.mrb[173].mxu0  ;;  %v7078_v26 = vpop.f32.mrb[174].mxu1  ;;  %v4378_v57 = vld [vmem:[%s6974_s15 + $0x50] sm:$0xff] }
 0x25c   : > { %v4408_v21 = vadd.f32 %v4372_v55, %v4336_v40  ;;  %v4409_v54 = vadd.f32 %v4373_v2, %v4337_v27  ;;  %v4339_v59 = vadd.f32 %v6986_v45, %v4296_v10  ;;  %v4299_v61 = vmul.f32 %v6965_v7, %v4256_v1  ;;  %v7082_v22 = vpop.f32.mrb[174].mxu0  ;;  %v3560_v28 = vpop.f32.mrb[175].mxu1  ;;  %v4377_v10 = vld [vmem:[%s6974_s15 + $0x48] sm:$0xff] }
 0x25d   : > { %v7086_v13 = vadd.f32 %v3713_v18, %v6845_v47  ;;  %v7089_v31 = vadd.f32 %v3715_v29, %v6847_v53  ;;  %v4254_v58 = vadd.f32 %v4155_v0, %v7024_v8  ;;  %v4255_v30 = vadd.f32 %v4157_v14, %v7027_v36  ;;  %v3994_v46 = vpop.f32.mrb[175].mxu0  ;;  %v4376_v36 = vld [vmem:[%s6974_s15 + $0x40] sm:$0xff] }
 0x25e   : > { %v4444_v55 = vmax.f32 %v4408_v21, 0.0  ;;  %v4445_v2 = vmax.f32 %v4409_v54, 0.0  ;;  %v4411_v49 = vadd.f32 %v4375_v35, %v4339_v59  ;;  %v4342_v9 = vadd.f32 %v6986_v45, %v4299_v61 }
 0x25f   : > { %v4297_v33 = vmul.f32 %v6965_v7, %v4254_v58  ;;  %v4298_v47 = vmul.f32 %v6965_v7, %v4255_v30  ;;  %v3722_v53 = vrot.slane %v7063_v56, 5  ;;  %v4164_v40 = vrot.slane %v7069_v63, 6 }
 0x260   : > { %4480 = vst [vmem:[%s7012_s22 + $0x20] sm:$0xff] %v4444_v55  ;;  %4481 = vst [vmem:[%s7012_s22 + $0x28] sm:$0xff] %v4445_v2  ;;  %v4447_v8 = vmax.f32 %v4411_v49, 0.0  ;;  %v4414_v27 = vadd.f32 %v4378_v57, %v4342_v9  ;;  %v3718_v1 = vrot.slane %v3557_v37, 5  ;;  %v4160_v35 = vrot.slane %v7076_v41, 6 }
 0x261   : > { %v4340_v18 = vadd.f32 %v6986_v45, %v4297_v33  ;;  %v4341_v29 = vadd.f32 %v6986_v45, %v4298_v47  ;;  %v3724_v0 = vrot.slane %v7078_v26, 5  ;;  %v4166_v56 = vrot.slane %v7082_v22, 6  ;;  %v7107_v14 = vpop.f32.mrb[176].mxu1  ;;  %v4379_v33 = vld [vmem:[%s6974_s15 + $0x58] sm:$0xff] }
 0x262   : > { %4483 = vst [vmem:[%s7012_s22 + $0x38] sm:$0xff] %v4447_v8  ;;  %v4450_v63 = vmax.f32 %v4414_v27, 0.0  ;;  %v3719_v21 = vsel %vm3686_vm4, %v3716_v52, %v3718_v1  ;;  %v4161_v37 = vsel %vm4136_vm5, %v4158_v23, %v4160_v35  ;;  %v3720_v41 = vrot.slane %v3560_v28, 5  ;;  %v7116_v54 = vpop.f32.mrb[176].mxu0  ;;  %v7118_v59 = vpop.f32.mrb[177].mxu1 }
 0x263   : > { %v4412_v26 = vadd.f32 %v4376_v36, %v4340_v18  ;;  %v4413_v61 = vadd.f32 %v4377_v10, %v4341_v29  ;;  %v3811_v22 = vadd.f32 %v3719_v21, %v6852_v39  ;;  %v4257_v57 = vadd.f32 %v4161_v37, %v7046_v34  ;;  %v7122_v58 = vpop.f32.mrb[177].mxu0  ;;  %v7124_v16 = vpop.f32.mrb[178].mxu1 }
 0x264   : > { %4486 = vst [vmem:[%s7012_s22 + $0x50] sm:$0xff] %v4450_v63  ;;  %v3725_v52 = vsel %vm3686_vm4, %v3722_v53, %v3724_v0  ;;  %v4167_v48 = vsel %vm4136_vm5, %v4164_v40, %v4166_v56  ;;  %v3721_v23 = vsel %vm3686_vm4, %v3718_v1, %v3720_v41  ;;  %v3723_v28 = vsel %vm3686_vm4, %v3720_v41, %v3722_v53  ;;  %v7131_v30 = vpop.f32.mrb[178].mxu0  ;;  %v3576_v39 = vpop.f32.mrb[179].mxu1 }
 0x265   : > { %v4448_v55 = vmax.f32 %v4412_v26, 0.0  ;;  %v4449_v34 = vmax.f32 %v4413_v61, 0.0  ;;  %v4300_v2 = vmul.f32 %v6965_v7, %v4257_v57  ;;  %v3814_v49 = vadd.f32 %v3725_v52, %v6859_v51  ;;  %v7135_v9 = vpop.f32.mrb[179].mxu0  ;;  %v4381_v52 = vld [vmem:[%s6974_s15 + $0x68] sm:$0xff] }
 0x266   : > { %v4260_v47 = vadd.f32 %v4167_v48, %v7058_v12  ;;  %v7140_v8 = vadd.f32 %v3721_v23, %v6868_v5  ;;  %v7143_v53 = vadd.f32 %v3723_v28, %v6870_v3  ;;  %v4162_v27 = vrot.slane %v3994_v46, 6  ;;  %v4382_v46 = vld [vmem:[%s6974_s15 + $0x70] sm:$0xff] }
 0x267   : > { %4484 = vst [vmem:[%s7012_s22 + $0x40] sm:$0xff] %v4448_v55  ;;  %4485 = vst [vmem:[%s7012_s22 + $0x48] sm:$0xff] %v4449_v34  ;;  %v4343_v36 = vadd.f32 %v6986_v45, %v4300_v2  ;;  %v3730_v10 = vrot.slane %v7107_v14, 5  ;;  %v4172_v51 = vrot.slane %v7116_v54, 6  ;;  %v3726_v1 = vrot.slane %v7118_v59, 5 }
 0x268   : > { %v4303_v18 = vmul.f32 %v6965_v7, %v4260_v47  ;;  %v4163_v12 = vsel %vm4136_vm5, %v4160_v35, %v4162_v27  ;;  %v4165_v5 = vsel %vm4136_vm5, %v4162_v27, %v4164_v40  ;;  %v4168_v3 = vrot.slane %v7122_v58, 6 }
 0x269   : > { %v4415_v29 = vadd.f32 %v4379_v33, %v4343_v36  ;;  %v4258_v63 = vadd.f32 %v4163_v12, %v7086_v13  ;;  %v4259_v21 = vadd.f32 %v4165_v5, %v7089_v31  ;;  %v3727_v14 = vsel %vm3686_vm4, %v3724_v0, %v3726_v1  ;;  %v7159_v37 = vpop.f32.mrb[180].mxu1  ;;  %v4383_v36 = vld [vmem:[%s6974_s15 + $0x78] sm:$0xff] }
 0x26a   : > { %v4346_v41 = vadd.f32 %v6986_v45, %v4303_v18  ;;  %v7163_v35 = vadd.f32 %v3727_v14, %v6876_v19  ;;  %v4169_v40 = vsel %vm4136_vm5, %v4166_v56, %v4168_v3  ;;  %v3732_v54 = vrot.slane %v7124_v16, 5  ;;  %v7167_v59 = vpop.f32.mrb[180].mxu0  ;;  %v7169_v13 = vpop.f32.mrb[181].mxu1  ;;  %v4380_v56 = vld [vmem:[%s6974_s15 + $0x60] sm:$0xff] }
 0x26b   : > { %v4451_v31 = vmax.f32 %v4415_v29, 0.0  ;;  %v4301_v0 = vmul.f32 %v6965_v7, %v4258_v63  ;;  %v4302_v26 = vmul.f32 %v6965_v7, %v4259_v21  ;;  %v4261_v61 = vadd.f32 %v4169_v40, %v3811_v22  ;;  %v7173_v57 = vpop.f32.mrb[181].mxu0  ;;  %v7175_v58 = vpop.f32.mrb[182].mxu1 }
 0x26c   : > { %v4418_v19 = vadd.f32 %v4382_v46, %v4346_v41  ;;  %v3733_v16 = vsel %vm3686_vm4, %v3730_v10, %v3732_v54  ;;  %v4174_v48 = vrot.slane %v7131_v30, 6  ;;  %v3728_v23 = vrot.slane %v3576_v39, 5  ;;  %v7181_v28 = vpop.f32.mrb[182].mxu0  ;;  %v7183_v55 = vpop.f32.mrb[183].mxu1 }
 0x26d   : > { %4487 = vst [vmem:[%s7012_s22 + $0x58] sm:$0xff] %v4451_v31  ;;  %v4344_v22 = vadd.f32 %v6986_v45, %v4301_v0  ;;  %v4345_v34 = vadd.f32 %v6986_v45, %v4302_v26  ;;  %v4304_v2 = vmul.f32 %v6965_v7, %v4261_v61  ;;  %v3818_v33 = vadd.f32 %v3733_v16, %v6883_v20  ;;  %v7190_v47 = vpop.f32.mrb[183].mxu0 }
 0x26e   : > { %v4454_v27 = vmax.f32 %v4418_v19, 0.0  ;;  %v4175_v30 = vsel %vm4136_vm5, %v4172_v51, %v4174_v48  ;;  %v3729_v39 = vsel %vm3686_vm4, %v3726_v1, %v3728_v23  ;;  %v3731_v18 = vsel %vm3686_vm4, %v3728_v23, %v3730_v10 }
 0x26f   : > { %v4416_v12 = vadd.f32 %v4380_v56, %v4344_v22  ;;  %v4417_v5 = vadd.f32 %v4381_v52, %v4345_v34  ;;  %v4347_v29 = vadd.f32 %v6986_v45, %v4304_v2  ;;  %v4264_v46 = vadd.f32 %v4175_v30, %v3814_v49  ;;  %v4386_v49 = vld [vmem:[%s6974_s15 + $0x90] sm:$0xff] }
 0x270   : > { %4490 = vst [vmem:[%s7012_s22 + $0x70] sm:$0xff] %v4454_v27  ;;  %v7199_v63 = vadd.f32 %v3729_v39, %v6891_v42  ;;  %v7202_v20 = vadd.f32 %v3731_v18, %v6893_v17  ;;  %v4170_v21 = vrot.slane %v7135_v9, 6  ;;  %v3738_v1 = vrot.slane %v7159_v37, 5 }
 0x271   : > { %v4452_v14 = vmax.f32 %v4416_v12, 0.0  ;;  %v4453_v10 = vmax.f32 %v4417_v5, 0.0  ;;  %v4419_v41 = vadd.f32 %v4383_v36, %v4347_v29  ;;  %v4307_v40 = vmul.f32 %v6965_v7, %v4264_v46  ;;  %v7207_v31 = vpop.f32.mrb[184].mxu1 }
 0x272   : > { %v4171_v42 = vsel %vm4136_vm5, %v4168_v3, %v4170_v21  ;;  %v4173_v0 = vsel %vm4136_vm5, %v4170_v21, %v4172_v51  ;;  %v4180_v17 = vrot.slane %v7167_v59, 6  ;;  %v3734_v26 = vrot.slane %v7169_v13, 5  ;;  %v7214_v61 = vpop.f32.mrb[184].mxu0  ;;  %v7216_v9 = vpop.f32.mrb[185].mxu1 }
 0x273   : > { %4488 = vst [vmem:[%s7012_s22 + $0x60] sm:$0xff] %v4452_v14  ;;  %4489 = vst [vmem:[%s7012_s22 + $0x68] sm:$0xff] %v4453_v10  ;;  %v4455_v37 = vmax.f32 %v4419_v41, 0.0  ;;  %v4350_v19 = vadd.f32 %v6986_v45, %v4307_v40  ;;  %v4262_v56 = vadd.f32 %v4171_v42, %v7140_v8  ;;  %v4263_v3 = vadd.f32 %v4173_v0, %v7143_v53  ;;  %v7223_v51 = vpop.f32.mrb[185].mxu0  ;;  %v7225_v59 = vpop.f32.mrb[186].mxu1  ;;  %v4387_v42 = vld [vmem:[%s6974_s15 + $0x98] sm:$0xff] }
 0x274   : > { %v3735_v13 = vsel %vm3686_vm4, %v3732_v54, %v3734_v26  ;;  %v4176_v52 = vrot.slane %v7173_v57, 6  ;;  %v3740_v16 = vrot.slane %v7175_v58, 5  ;;  %v4182_v23 = vrot.slane %v7181_v28, 6  ;;  %v7231_v22 = vpop.f32.mrb[186].mxu0  ;;  %v7233_v34 = vpop.f32.mrb[187].mxu1  ;;  %v4384_v57 = vld [vmem:[%s6974_s15 + $0x80] sm:$0xff] }
 0x275   : > { %4491 = vst [vmem:[%s7012_s22 + $0x78] sm:$0xff] %v4455_v37  ;;  %v4422_v8 = vadd.f32 %v4386_v49, %v4350_v19  ;;  %v4305_v53 = vmul.f32 %v6965_v7, %v4262_v56  ;;  %v4306_v2 = vmul.f32 %v6965_v7, %v4263_v3  ;;  %v7239_v27 = vadd.f32 %v3735_v13, %v6899_v11  ;;  %v7241_v54 = vpop.f32.mrb[187].mxu0  ;;  %v4385_v58 = vld [vmem:[%s6974_s15 + $0x88] sm:$0xff]  ;;  %v4390_v56 = vld [vmem:[%s6974_s15 + $0xb0] sm:$0xff] }
 0x276   : > { %v4177_v36 = vsel %vm4136_vm5, %v4174_v48, %v4176_v52  ;;  %v3741_v30 = vsel %vm3686_vm4, %v3738_v1, %v3740_v16  ;;  %v4183_v39 = vsel %vm4136_vm5, %v4180_v17, %v4182_v23  ;;  %v3736_v18 = vrot.slane %v7183_v55, 5 }
 0x277   : > { %v4458_v12 = vmax.f32 %v4422_v8, 0.0  ;;  %v4348_v11 = vadd.f32 %v6986_v45, %v4305_v53  ;;  %v4349_v5 = vadd.f32 %v6986_v45, %v4306_v2  ;;  %v4265_v29 = vadd.f32 %v4177_v36, %v7163_v35 }
 0x278   : > { %v3822_v46 = vadd.f32 %v3741_v30, %v6904_v50  ;;  %v4268_v21 = vadd.f32 %v4183_v39, %v3818_v33  ;;  %v3737_v48 = vsel %vm3686_vm4, %v3734_v26, %v3736_v18  ;;  %v3739_v14 = vsel %vm3686_vm4, %v3736_v18, %v3738_v1 }
 0x279   : > { %4494 = vst [vmem:[%s7012_s22 + $0x90] sm:$0xff] %v4458_v12  ;;  %v4420_v10 = vadd.f32 %v4384_v57, %v4348_v11  ;;  %v4421_v41 = vadd.f32 %v4385_v58, %v4349_v5  ;;  %v4308_v55 = vmul.f32 %v6965_v7, %v4265_v29  ;;  %v7260_v40 = vadd.f32 %v3737_v48, %v6912_v4  ;;  %v7262_v49 = vpop.f32.mrb[188].mxu1 }
 0x27a   : > { %v4311_v35 = vmul.f32 %v6965_v7, %v4268_v21  ;;  %v7267_v50 = vadd.f32 %v3739_v14, %v6914_v15  ;;  %v4178_v33 = vrot.slane %v7190_v47, 6  ;;  %v3746_v1 = vrot.slane %v7207_v31, 5  ;;  %v7271_v0 = vpop.f32.mrb[188].mxu0  ;;  %v7273_v26 = vpop.f32.mrb[189].mxu1  ;;  %v4389_v21 = vld [vmem:[%s6974_s15 + $0xa8] sm:$0xff] }
 0x27b   : > { %v4456_v4 = vmax.f32 %v4420_v10, 0.0  ;;  %v4457_v37 = vmax.f32 %v4421_v41, 0.0  ;;  %v4351_v19 = vadd.f32 %v6986_v45, %v4308_v55  ;;  %v4188_v3 = vrot.slane %v7214_v61, 6  ;;  %v7278_v13 = vpop.f32.mrb[189].mxu0  ;;  %v7280_v15 = vpop.f32.mrb[190].mxu1 }
 0x27c   : > { %v4354_v47 = vadd.f32 %v6986_v45, %v4311_v35  ;;  %v4179_v31 = vsel %vm4136_vm5, %v4176_v52, %v4178_v33  ;;  %v4181_v8 = vsel %vm4136_vm5, %v4178_v33, %v4180_v17  ;;  %v3742_v53 = vrot.slane %v7216_v9, 5  ;;  %v7286_v2 = vpop.f32.mrb[190].mxu0  ;;  %v7288_v57 = vpop.f32.mrb[191].mxu1 }
 0x27d   : > { %4492 = vst [vmem:[%s7012_s22 + $0x80] sm:$0xff] %v4456_v4  ;;  %4493 = vst [vmem:[%s7012_s22 + $0x88] sm:$0xff] %v4457_v37  ;;  %v4423_v58 = vadd.f32 %v4387_v42, %v4351_v19  ;;  %v4266_v36 = vadd.f32 %v4179_v31, %v7199_v63  ;;  %v4267_v30 = vadd.f32 %v4181_v8, %v7202_v20  ;;  %v4184_v39 = vrot.slane %v7223_v51, 6  ;;  %v7295_v52 = vpop.f32.mrb[191].mxu0  ;;  %v4388_v51 = vld [vmem:[%s6974_s15 + $0xa0] sm:$0xff] }
 0x27e   : > { %v4426_v17 = vadd.f32 %v4390_v56, %v4354_v47  ;;  %v3743_v9 = vsel %vm3686_vm4, %v3740_v16, %v3742_v53  ;;  %v3748_v18 = vrot.slane %v7225_v59, 5  ;;  %v4190_v12 = vrot.slane %v7231_v22, 6  ;;  %v4391_v56 = vld [vmem:[%s6974_s15 + $0xb8] sm:$0xff] }
 0x27f   : > { %v4459_v11 = vmax.f32 %v4423_v58, 0.0  ;;  %v4309_v5 = vmul.f32 %v6965_v7, %v4266_v36  ;;  %v4310_v63 = vmul.f32 %v6965_v7, %v4267_v30  ;;  %v3823_v20 = vadd.f32 %v3743_v9, %v6919_v62  ;;  %v4394_v9 = vld [vmem:[%s6974_s15 + $0xd0] sm:$0xff] }
 0x280   : > { %v4462_v29 = vmax.f32 %v4426_v17, 0.0  ;;  %v4185_v48 = vsel %vm4136_vm5, %v4182_v23, %v4184_v39  ;;  %v3749_v16 = vsel %vm3686_vm4, %v3746_v1, %v3748_v18  ;;  %v4191_v59 = vsel %vm4136_vm5, %v4188_v3, %v4190_v12 }
 0x281   : > { %4495 = vst [vmem:[%s7012_s22 + $0x98] sm:$0xff] %v4459_v11  ;;  %v4352_v22 = vadd.f32 %v6986_v45, %v4309_v5  ;;  %v4353_v14 = vadd.f32 %v6986_v45, %v4310_v63  ;;  %v4269_v62 = vadd.f32 %v4185_v48, %v7239_v27  ;;  %v7317_v10 = vadd.f32 %v3749_v16, %v6924_v25  ;;  %v5561_v28 = vpop.f32.mrb[192].mxu1 }
 0x282   : > { %4498 = vst [vmem:[%s7012_s22 + $0xb0] sm:$0xff] %v4462_v29  ;;  %v4272_v23 = vadd.f32 %v4191_v59, %v3822_v46  ;;  %v3744_v41 = vrot.slane %v7233_v34, 5  ;;  %v4186_v55 = vrot.slane %v7241_v54, 6  ;;  %v3754_v42 = vrot.slane %v7262_v49, 5  ;;  %v7323_v35 = vpop.f32.mrb[192].mxu0  ;;  %v7325_v33 = vpop.f32.mrb[193].mxu1 }
 0x283   : > { %v4424_v4 = vadd.f32 %v4388_v51, %v4352_v22  ;;  %v4425_v27 = vadd.f32 %v4389_v21, %v4353_v14  ;;  %v4312_v37 = vmul.f32 %v6965_v7, %v4269_v62  ;;  %v4196_v25 = vrot.slane %v7271_v0, 6  ;;  %v7329_v19 = vpop.f32.mrb[193].mxu0  ;;  %v5562_v46 = vpop.f32.mrb[194].mxu1  ;;  %v4392_v59 = vld [vmem:[%s6974_s15 + $0xc0] sm:$0xff]  ;;  %v4393_v14 = vld [vmem:[%s6974_s15 + $0xc8] sm:$0xff] }
 0x284   : > { %v4315_v34 = vmul.f32 %v6965_v7, %v4272_v23  ;;  %v3745_v54 = vsel %vm3686_vm4, %v3742_v53, %v3744_v41  ;;  %v3747_v47 = vsel %vm3686_vm4, %v3744_v41, %v3746_v1  ;;  %v4187_v31 = vsel %vm4136_vm5, %v4184_v39, %v4186_v55  ;;  %v7336_v8 = vpop.f32.mrb[194].mxu0  ;;  %v3640_v58 = vpop.f32.mrb[195].mxu1  ;;  %v4395_v46 = vld [vmem:[%s6974_s15 + $0xd8] sm:$0xff] }
 0x285   : > { %v4460_v36 = vmax.f32 %v4424_v4, 0.0  ;;  %v4461_v30 = vmax.f32 %v4425_v27, 0.0  ;;  %v4355_v17 = vadd.f32 %v6986_v45, %v4312_v37  ;;  %v3824_v11 = vadd.f32 %v3745_v54, %v6931_v43  ;;  %v7341_v5 = vpop.f32.mrb[195].mxu0 }
 0x286   : > { %v4358_v63 = vadd.f32 %v6986_v45, %v4315_v34  ;;  %v3825_v53 = vadd.f32 %v3747_v47, %v6933_v44  ;;  %v4189_v1 = vsel %vm4136_vm5, %v4186_v55, %v4188_v3  ;;  %v4270_v39 = vadd.f32 %v4187_v31, %v7260_v40 }
 0x287   : > { %4496 = vst [vmem:[%s7012_s22 + $0xa0] sm:$0xff] %v4460_v36  ;;  %4497 = vst [vmem:[%s7012_s22 + $0xa8] sm:$0xff] %v4461_v30  ;;  %v4427_v29 = vadd.f32 %v4391_v56, %v4355_v17  ;;  %v4271_v51 = vadd.f32 %v4189_v1, %v7267_v50  ;;  %v3750_v43 = vrot.slane %v7273_v26, 5  ;;  %v4192_v21 = vrot.slane %v7278_v13, 6  ;;  %v4398_v36 = vld [vmem:[%s6974_s15 + $0xf0] sm:$0xff] }
 0x288   : > { %v4430_v48 = vadd.f32 %v4394_v9, %v4358_v63  ;;  %v4313_v44 = vmul.f32 %v6965_v7, %v4270_v39  ;;  %v3756_v61 = vrot.slane %v7280_v15, 5  ;;  %v4198_v3 = vrot.slane %v7286_v2, 6 }
 0x289   : > { %v4463_v16 = vmax.f32 %v4427_v29, 0.0  ;;  %v4314_v40 = vmul.f32 %v6965_v7, %v4271_v51  ;;  %v3751_v22 = vsel %vm3686_vm4, %v3748_v18, %v3750_v43  ;;  %v4193_v50 = vsel %vm4136_vm5, %v4190_v12, %v4192_v21 }
 0x28a   : > { %v4466_v26 = vmax.f32 %v4430_v48, 0.0  ;;  %v4356_v13 = vadd.f32 %v6986_v45, %v4313_v44  ;;  %v3827_v62 = vadd.f32 %v3751_v22, %v6936_v32  ;;  %v4273_v28 = vadd.f32 %v4193_v50, %v3823_v20  ;;  %v5621_v15 = vpop.f32.mrb[196].mxu0 }
 0x28b   : > { %4499 = vst [vmem:[%s7012_s22 + $0xb8] sm:$0xff] %v4463_v16  ;;  %v4357_v2 = vadd.f32 %v6986_v45, %v4314_v40  ;;  %v3757_v23 = vsel %vm3686_vm4, %v3754_v42, %v3756_v61  ;;  %v4199_v18 = vsel %vm4136_vm5, %v4196_v25, %v4198_v3  ;;  %v3752_v12 = vrot.slane %v7288_v57, 5  ;;  %v7373_v41 = vpop.f32.mrb[197].mxu0  ;;  %v4402_v15 = vld [vmem:[%s6974_s15 + $0x110] sm:$0xff] }
 0x28c   : > { %4502 = vst [vmem:[%s7012_s22 + $0xd0] sm:$0xff] %v4466_v26  ;;  %v4428_v32 = vadd.f32 %v4392_v59, %v4356_v13  ;;  %v4316_v20 = vmul.f32 %v6965_v7, %v4273_v28  ;;  %v3830_v55 = vadd.f32 %v3757_v23, %v6939_v60  ;;  %v4276_v4 = vadd.f32 %v4199_v18, %v7317_v10  ;;  %v5622_v27 = vpop.f32.mrb[198].mxu0  ;;  %v4399_v28 = vld [vmem:[%s6974_s15 + $0xf8] sm:$0xff] }
 0x28d   : > { %v4429_v37 = vadd.f32 %v4393_v14, %v4357_v2  ;;  %v3753_v56 = vsel %vm3686_vm4, %v3750_v43, %v3752_v12  ;;  %v3755_v57 = vsel %vm3686_vm4, %v3752_v12, %v3754_v42  ;;  %v4194_v34 = vrot.slane %v7295_v52, 6  ;;  %v4090_v54 = vpop.f32.mrb[199].mxu0  ;;  %v4396_v43 = vld [vmem:[%s6974_s15 + $0xe0] sm:$0xff] }
 0x28e   : > { %v4464_v47 = vmax.f32 %v4428_v32, 0.0  ;;  %v4359_v31 = vadd.f32 %v6986_v45, %v4316_v20  ;;  %v4319_v60 = vmul.f32 %v6965_v7, %v4276_v4  ;;  %v3828_v10 = vadd.f32 %v3753_v56, %v6943_v38  ;;  %v4400_v32 = vld [vmem:[%s6974_s15 + $0x100] sm:$0xff]  ;;  %v4401_v20 = vld [vmem:[%s6974_s15 + $0x108] sm:$0xff] }
 0x28f   : > { %v4465_v58 = vmax.f32 %v4429_v37, 0.0  ;;  %v3829_v30 = vadd.f32 %v3755_v57, %v6945_v6  ;;  %v4195_v17 = vsel %vm4136_vm5, %v4192_v21, %v4194_v34  ;;  %v4197_v49 = vsel %vm4136_vm5, %v4194_v34, %v4196_v25 }
 0x290   : > { %4500 = vst [vmem:[%s7012_s22 + $0xc0] sm:$0xff] %v4464_v47  ;;  %v4431_v52 = vadd.f32 %v4395_v46, %v4359_v31  ;;  %v4362_v42 = vadd.f32 %v6986_v45, %v4319_v60  ;;  %v4274_v9 = vadd.f32 %v4195_v17, %v3824_v11  ;;  %v4275_v63 = vadd.f32 %v4197_v49, %v3825_v53  ;;  %v4397_v11 = vld [vmem:[%s6974_s15 + $0xe8] sm:$0xff]  ;;  %v4403_v31 = vld [vmem:[%s6974_s15 + $0x118] sm:$0xff] }
 0x291   : > { %4501 = vst [vmem:[%s7012_s22 + $0xc8] sm:$0xff] %v4465_v58  ;;  %v4204_v38 = vrot.slane %v7323_v35, 6  ;;  %v3758_v6 = vrot.slane %v7325_v33, 5  ;;  %v4200_v1 = vrot.slane %v7329_v19, 6  ;;  %v4206_v0 = vrot.slane %v7336_v8, 6 }
 0x292   : > { %v4467_v39 = vmax.f32 %v4431_v52, 0.0  ;;  %v4434_v29 = vadd.f32 %v4398_v36, %v4362_v42  ;;  %v4317_v25 = vmul.f32 %v6965_v7, %v4274_v9  ;;  %v4318_v51 = vmul.f32 %v6965_v7, %v4275_v63 }
 0x293   : > { %v3759_v53 = vsel %vm3686_vm4, %v3756_v61, %v3758_v6  ;;  %v4201_v21 = vsel %vm4136_vm5, %v4198_v3, %v4200_v1  ;;  %v4207_v35 = vsel %vm4136_vm5, %v4204_v38, %v4206_v0  ;;  %v4202_v33 = vrot.slane %v7341_v5, 6 }
 0x294   : > { %4503 = vst [vmem:[%s7012_s22 + $0xd8] sm:$0xff] %v4467_v39  ;;  %v4470_v19 = vmax.f32 %v4434_v29, 0.0  ;;  %v4360_v8 = vadd.f32 %v6986_v45, %v4317_v25  ;;  %v4361_v48 = vadd.f32 %v6986_v45, %v4318_v51  ;;  %v3831_v44 = vadd.f32 %v3759_v53, %v6948_v24 }
 0x295   : > { %v4277_v16 = vadd.f32 %v4201_v21, %v3827_v62  ;;  %v4280_v40 = vadd.f32 %v4207_v35, %v3830_v55  ;;  %v4203_v61 = vsel %vm4136_vm5, %v4200_v1, %v4202_v33  ;;  %v4205_v3 = vsel %vm4136_vm5, %v4202_v33, %v4204_v38 }
 0x296   : > { %4506 = vst [vmem:[%s7012_s22 + $0xf0] sm:$0xff] %v4470_v19  ;;  %v4432_v59 = vadd.f32 %v4396_v43, %v4360_v8  ;;  %v4433_v5 = vadd.f32 %v4397_v11, %v4361_v48  ;;  %v4278_v22 = vadd.f32 %v4203_v61, %v3828_v10  ;;  %v4279_v50 = vadd.f32 %v4205_v3, %v3829_v30 }
 0x297   : > { %v4320_v26 = vmul.f32 %v6965_v7, %v4277_v16  ;;  %v4323_v24 = vmul.f32 %v6965_v7, %v4280_v40  ;;  %v4208_v13 = vrot.slane %v7373_v41, 6 }
 0x298   : > { %v4468_v14 = vmax.f32 %v4432_v59, 0.0  ;;  %v4469_v62 = vmax.f32 %v4433_v5, 0.0  ;;  %v4321_v2 = vmul.f32 %v6965_v7, %v4278_v22  ;;  %v4322_v23 = vmul.f32 %v6965_v7, %v4279_v50 }
 0x299   : > { %v4363_v18 = vadd.f32 %v6986_v45, %v4320_v26  ;;  %v4366_v12 = vadd.f32 %v6986_v45, %v4323_v24  ;;  %v4209_v55 = vsel %vm4136_vm5, %v4206_v0, %v4208_v13 }
 0x29a   : > { %4504 = vst [vmem:[%s7012_s22 + $0xe0] sm:$0xff] %v4468_v14  ;;  %4505 = vst [vmem:[%s7012_s22 + $0xe8] sm:$0xff] %v4469_v62  ;;  %v4364_v41 = vadd.f32 %v6986_v45, %v4321_v2  ;;  %v4365_v4 = vadd.f32 %v6986_v45, %v4322_v23  ;;  %v4281_v27 = vadd.f32 %v4209_v55, %v3831_v44 }
 0x29b   : > { %v4435_v37 = vadd.f32 %v4399_v28, %v4363_v18  ;;  %v4438_v46 = vadd.f32 %v4402_v15, %v4366_v12 }
 0x29c   : > { %v4436_v56 = vadd.f32 %v4400_v32, %v4364_v41  ;;  %v4437_v57 = vadd.f32 %v4401_v20, %v4365_v4  ;;  %v4324_v34 = vmul.f32 %v6965_v7, %v4281_v27 }
 0x29d   : > { %v4471_v54 = vmax.f32 %v4435_v37, 0.0  ;;  %v4474_v47 = vmax.f32 %v4438_v46, 0.0 }
 0x29e   : > { %v4472_v60 = vmax.f32 %v4436_v56, 0.0  ;;  %v4473_v10 = vmax.f32 %v4437_v57, 0.0  ;;  %v4367_v58 = vadd.f32 %v6986_v45, %v4324_v34 }
 0x29f   : > { %4507 = vst [vmem:[%s7012_s22 + $0xf8] sm:$0xff] %v4471_v54  ;;  %4510 = vst [vmem:[%s7012_s22 + $0x110] sm:$0xff] %v4474_v47 }
 0x2a0   : > { %4508 = vst [vmem:[%s7012_s22 + $0x100] sm:$0xff] %v4472_v60  ;;  %4509 = vst [vmem:[%s7012_s22 + $0x108] sm:$0xff] %v4473_v10  ;;  %v4439_v36 = vadd.f32 %v4403_v31, %v4367_v58 }
 0x2a2   : > { %v4475_v30 = vmax.f32 %v4439_v36, 0.0 }
 0x2a4   : > { %4511 = vst [vmem:[%s7012_s22 + $0x118] sm:$0xff] %v4475_v30 }
 0x2a5 PF: > { %s15_s18 = sadd.s32 1, %s5771_s18  }
 0x2a6   : > { %p12_p4 = scmp.ge.s32.totalorder %s15_s18, 4  }
 0x2a8   :  { %14 = sbr.rel (!%p12_p4) target bundleno = 1 (0x1), region = 81 }

</bundles_post_ra>
